<compile_context>
chip_gen: v6e
topology: v6e:2x2x1
jax: 0.10.0
libtpu: 0.0.40
codegen_flags: <defaults>
</compile_context>

<pallas_src>
import math

import jax
import jax.numpy as jnp
from jax.experimental import pallas as pl
from jax.experimental.pallas import tpu as pltpu

# Conv layers in forward order: (param name, kernel size).  'same' padding
# (padding = K // 2) for every layer, exactly as in the PyTorch module.
_CONV_LAYERS = (
    ("conv1_1", 5), ("conv1_2", 5), ("conv1_3", 5), ("conv1_4", 5),
    ("conv2_1", 11), ("conv2_2", 11), ("conv2_3", 7), ("conv2_4", 7),
    ("conv3_1", 7), ("conv3_2", 7), ("conv3_3", 5), ("conv3_4", 5),
)

# Cin threshold above which a conv uses tap-accumulated matmuls instead of a
# single im2col matmul (block 3 has Cin = 96 / 256).
_TAP_ACCUM_MIN_CIN = 96


# ----------------------------------------------------------------------------
# In-kernel helpers (operate on VMEM-resident values)
# ----------------------------------------------------------------------------
def _conv1d_relu(x, w_ref, b_ref, K):
    """'same' Conv1d + ReLU on the MXU.

    x:     (Bb, L, Cin) f32 activation value
    w_ref: (K*Cin, Cout) tap-major flattened weights, bf16
    b_ref: (1, Cout) f32
    """
    Bb, L, Cin = x.shape
    Cout = w_ref.shape[1]
    P = K // 2
    pad = jnp.zeros((Bb, P, Cin), jnp.bfloat16)
    # bf16 MXU operands; padding zeros are exact in bf16.
    xp = jnp.concatenate([pad, x.astype(jnp.bfloat16), pad], axis=1)  # (Bb,L+2P,Cin)

    if Cin < _TAP_ACCUM_MIN_CIN:
        # Small channels (blocks 1-2): one im2col matmul, deep contraction.
        cols = jnp.concatenate([xp[:, k:k + L, :] for k in range(K)], axis=-1)
        acc = jnp.dot(cols.reshape(Bb * L, K * Cin), w_ref[...],
                      preferred_element_type=jnp.float32)
    else:
        # Big channels (block 3): K accumulated matmuls, no cols buffer.
        acc = jnp.zeros((Bb * L, Cout), jnp.float32)
        for k in range(K):
            win = xp[:, k:k + L, :].reshape(Bb * L, Cin)
            acc = acc + jnp.dot(win, w_ref[k * Cin:(k + 1) * Cin, :],
                                preferred_element_type=jnp.float32)

    y = jnp.maximum(acc + b_ref[...], 0.0)                       # f32 bias + ReLU
    return y.reshape(Bb, L, Cout)


def _pool2(x, op):
    """Window-2 stride-2 pooling along length (reshape + reduce, no strided loads)."""
    Bb, L, C = x.shape
    xr = x.reshape(Bb, L // 2, 2, C)
    return jnp.max(xr, axis=2) if op == "max" else jnp.mean(xr, axis=2)


def _fused_forward_kernel(x_ref, *refs):
    """Entire CNNEmbeddingLayer forward for one batch block."""
    nconv = len(_CONV_LAYERS)
    conv_refs = [(refs[2 * i], refs[2 * i + 1]) for i in range(nconv)]
    lw_ref, lb_ref, o_ref = refs[-3], refs[-2], refs[-1]

    def conv(h, idx):
        return _conv1d_relu(h, conv_refs[idx][0], conv_refs[idx][1],
                            _CONV_LAYERS[idx][1])

    # Input arrives lane-dense as (Bb, Cin, L); one small transpose to NLC.
    x = jnp.transpose(x_ref[...].astype(jnp.float32), (0, 2, 1))  # (Bb, L, Cin)

    # ---- block 1: 4x conv(k=5) -> maxpool branches -> concat -> maxpool ----
    h = conv(x, 0);   c11 = conv(h, 1)
    h = conv(c11, 2); c12 = conv(h, 3)
    b1 = _pool2(jnp.concatenate([_pool2(c11, "max"), _pool2(c12, "max")],
                                axis=-1), "max")
    # spatial_drop1: identity at inference.

    # ---- block 2: conv(k=11,11,7,7) -> maxpool branches -> concat -> avgpool
    h = conv(b1, 4);  c21 = conv(h, 5)
    h = conv(c21, 6); c22 = conv(h, 7)
    b2 = _pool2(jnp.concatenate([_pool2(c21, "max"), _pool2(c22, "max")],
                                axis=-1), "avg")

    # ---- block 3: conv(k=7,7,5,5) -> channel concat (512) -------------------
    h = conv(b2, 8);   c31 = conv(h, 9)
    h = conv(c31, 10); c32 = conv(h, 11)
    feat = jnp.concatenate([c31, c32], axis=-1)                  # (Bb, Lf, 512)
    # spatial_drop2: identity at inference.

    # ---- head: (global avg-pool + global max-pool) @ W^T + b ----------------
    v = jnp.mean(feat, axis=1) + jnp.max(feat, axis=1)           # (Bb, 512) f32
    o_ref[0] = (jnp.dot(v.astype(jnp.bfloat16), lw_ref[...],
                        preferred_element_type=jnp.float32) + lb_ref[...])


# ----------------------------------------------------------------------------
# Wrapper: one pallas_call for the whole forward
# ----------------------------------------------------------------------------
def _vmem_capacity_bytes():
    try:
        return int(pltpu.get_tpu_info().vmem_capacity_bytes)
    except Exception:
        return 64 * 1024 * 1024      # conservative (v7x-sized) fallback


def cnn_embedding_forward(x, params, block_b=None):
    """x: (b, n, in_ch, l) as in the PyTorch module; returns (b, n, out_ch)."""
    b, n, c, l = x.shape
    B = b * n
    assert l % 16 == 0, "length must be divisible by 16 (4 pool-by-2 stages)"

    # Keep NCL layout for the kernel input block (l on lanes, c on sublanes).
    xf = x.reshape(B, c, l).astype(jnp.float32)

    vmem_cap = _vmem_capacity_bytes()

    # Batch blocking from a VMEM budget: ~1.5 KB * L of live f32 activations
    # per batch element (conservative: im2col cols + block-3 live set), use
    # about half of VMEM for activations, the rest for weights / pipeline
    # buffers.  Cap so there are >= 4 grid steps when the batch allows.
    if block_b is None:
        per_elem = 1536 * l
        budget = vmem_cap // 2
        block_b = max(1, min(B, budget // per_elem))
        block_b = min(block_b, max(1, -(-B // 4)))
    nblk = -(-B // block_b)
    Bp = nblk * block_b
    if Bp != B:
        xf = jnp.concatenate([xf, jnp.zeros((Bp - B, c, l), xf.dtype)], axis=0)

    # Pack weights into kernel-friendly layouts (tap-major flattened, bf16).
    inputs = [xf]
    in_specs = [pl.BlockSpec((block_b, c, l), lambda i: (i, 0, 0))]
    for name, K in _CONV_LAYERS:
        w, bias = params[name]
        cout, cin, k = w.shape
        assert k == K
        w_flat = (jnp.transpose(w, (2, 1, 0)).reshape(K * cin, cout)
                  .astype(jnp.bfloat16))                          # (K*Cin, Cout)
        inputs += [w_flat, bias.reshape(1, cout).astype(jnp.float32)]
        in_specs += [pl.BlockSpec((K * cin, cout), lambda i: (0, 0)),
                     pl.BlockSpec((1, cout), lambda i: (0, 0))]

    w_lin, b_lin = params["linear"]
    out_ch, feat_dim = w_lin.shape
    out_pad = -(-out_ch // 128) * 128                             # lane-dense store
    wl = jnp.zeros((feat_dim, out_pad), jnp.bfloat16).at[:, :out_ch].set(
        jnp.transpose(w_lin).astype(jnp.bfloat16))
    bl = jnp.zeros((1, out_pad), jnp.float32).at[:, :out_ch].set(
        b_lin.reshape(1, out_ch).astype(jnp.float32))
    inputs += [wl, bl]
    in_specs += [pl.BlockSpec((feat_dim, out_pad), lambda i: (0, 0)),
                 pl.BlockSpec((1, out_pad), lambda i: (0, 0))]

    vmem_limit = int(min(vmem_cap, 128 * 1024 * 1024) * 0.85)

    out = pl.pallas_call(
        _fused_forward_kernel,
        out_shape=jax.ShapeDtypeStruct((nblk, block_b, out_pad), jnp.float32),
        grid=(nblk,),
        in_specs=in_specs,
        out_specs=pl.BlockSpec((1, block_b, out_pad), lambda i: (i, 0, 0)),
        compiler_params=pltpu.CompilerParams(
            dimension_semantics=("parallel",),
            vmem_limit_bytes=vmem_limit),
    )(*inputs)

    return out.reshape(Bp, out_pad)[:B, :out_ch].reshape(b, n, out_ch)


# ----------------------------------------------------------------------------
# Pure-JAX reference (mirrors the PyTorch module, NCL layout) for self-check
# ----------------------------------------------------------------------------
def _reference_forward(x, params):
    def conv(h, name, K):
        w, bias = params[name]
        y = jax.lax.conv_general_dilated(
            h, w, window_strides=(1,), padding=[(K // 2, K // 2)],
            dimension_numbers=("NCH", "OIH", "NCH"))
        return jax.nn.relu(y + bias[None, :, None])

    def pool(h, op):
        B, C, L = h.shape
        hr = h.reshape(B, C, L // 2, 2)
        return hr.max(-1) if op == "max" else hr.mean(-1)

    b, n, c, l = x.shape
    h = x.reshape(b * n, c, l).astype(jnp.float32)
    h = conv(h, "conv1_1", 5); c11 = conv(h, "conv1_2", 5)
    h = conv(c11, "conv1_3", 5); c12 = conv(h, "conv1_4", 5)
    h = pool(jnp.concatenate([pool(c11, "max"), pool(c12, "max")], axis=1), "max")
    h = conv(h, "conv2_1", 11); c21 = conv(h, "conv2_2", 11)
    h = conv(c21, "conv2_3", 7); c22 = conv(h, "conv2_4", 7)
    h = pool(jnp.concatenate([pool(c21, "max"), pool(c22, "max")], axis=1), "avg")
    h = conv(h, "conv3_1", 7); c31 = conv(h, "conv3_2", 7)
    h = conv(c31, "conv3_3", 5); c32 = conv(h, "conv3_4", 5)
    feat = jnp.concatenate([c31, c32], axis=1)                    # (B, 512, Lf)
    v = jnp.mean(feat, axis=-1) + jnp.max(feat, axis=-1)          # (B, 512)
    w_lin, b_lin = params["linear"]
    out = v @ w_lin.T + b_lin
    return out.reshape(b, n, -1)


# ----------------------------------------------------------------------------
# Deterministic parameter init (shapes from module.__init__, PyTorch layout)
# ----------------------------------------------------------------------------
def init_params(key, in_ch, out_ch):
    defs = {
        "conv1_1": (in_ch, 32, 5), "conv1_2": (32, 32, 5),
        "conv1_3": (32, 32, 5),    "conv1_4": (32, 32, 5),
        "conv2_1": (64, 32, 11),   "conv2_2": (32, 32, 11),
        "conv2_3": (32, 64, 7),    "conv2_4": (64, 64, 7),
        "conv3_1": (96, 256, 7),   "conv3_2": (256, 256, 7),
        "conv3_3": (256, 256, 5),  "conv3_4": (256, 256, 5),
    }
    params = {}
    keys = jax.random.split(key, len(defs) + 1)
    for sub, (name, (ci, co, ks)) in zip(keys[:-1], defs.items()):
        kw, kb = jax.random.split(sub)
        bound = 1.0 / math.sqrt(ci * ks)
        params[name] = (
            jax.random.uniform(kw, (co, ci, ks), jnp.float32, -bound, bound),
            jax.random.uniform(kb, (co,), jnp.float32, -bound, bound),
        )
    kw, kb = jax.random.split(keys[-1])
    bound = 1.0 / math.sqrt(512)
    params["linear"] = (
        jax.random.uniform(kw, (out_ch, 512), jnp.float32, -bound, bound),
        jax.random.uniform(kb, (out_ch,), jnp.float32, -bound, bound),
    )
    return params


if __name__ == "__main__":
    b, n, in_ch, l, out_ch = 2, 4, 4, 32, 16   # l must be divisible by 16
    kx, kp = jax.random.split(jax.random.PRNGKey(0))
    x = jax.random.normal(kx, (b, n, in_ch, l), jnp.float32)
    params = init_params(kp, in_ch, out_ch)

    fwd = jax.jit(cnn_embedding_forward)
    out = jax.block_until_ready(fwd(x, params))
    assert out.shape == (b, n, out_ch), out.shape
    assert bool(jnp.all(jnp.isfinite(out)))

    # Self-check against a pure-JAX (f32) reference of the PyTorch forward.
    # bf16 MXU operands with f32 accumulation stay well within 5% relative.
    ref = jax.block_until_ready(_reference_forward(x, params))
    rel_err = jnp.linalg.norm(out - ref) / (jnp.linalg.norm(ref) + 1e-6)
    assert float(rel_err) < 0.05, float(rel_err)

    print("KERNEL_OK")
</pallas_src>

<mosaic_0001>
module attributes {stable_mosaic.version = 11 : i64} {
  func.func @_fused_forward_kernel(%arg0: i32, %arg1: memref<2x4x32xf32, #tpu.memory_space<vmem>>, %arg2: memref<20x32xbf16, #tpu.memory_space<vmem>>, %arg3: memref<1x32xf32, #tpu.memory_space<vmem>>, %arg4: memref<160x32xbf16, #tpu.memory_space<vmem>>, %arg5: memref<1x32xf32, #tpu.memory_space<vmem>>, %arg6: memref<160x32xbf16, #tpu.memory_space<vmem>>, %arg7: memref<1x32xf32, #tpu.memory_space<vmem>>, %arg8: memref<160x32xbf16, #tpu.memory_space<vmem>>, %arg9: memref<1x32xf32, #tpu.memory_space<vmem>>, %arg10: memref<704x32xbf16, #tpu.memory_space<vmem>>, %arg11: memref<1x32xf32, #tpu.memory_space<vmem>>, %arg12: memref<352x32xbf16, #tpu.memory_space<vmem>>, %arg13: memref<1x32xf32, #tpu.memory_space<vmem>>, %arg14: memref<224x64xbf16, #tpu.memory_space<vmem>>, %arg15: memref<1x64xf32, #tpu.memory_space<vmem>>, %arg16: memref<448x64xbf16, #tpu.memory_space<vmem>>, %arg17: memref<1x64xf32, #tpu.memory_space<vmem>>, %arg18: memref<672x256xbf16, #tpu.memory_space<vmem>>, %arg19: memref<1x256xf32, #tpu.memory_space<vmem>>, %arg20: memref<1792x256xbf16, #tpu.memory_space<vmem>>, %arg21: memref<1x256xf32, #tpu.memory_space<vmem>>, %arg22: memref<1280x256xbf16, #tpu.memory_space<vmem>>, %arg23: memref<1x256xf32, #tpu.memory_space<vmem>>, %arg24: memref<1280x256xbf16, #tpu.memory_space<vmem>>, %arg25: memref<1x256xf32, #tpu.memory_space<vmem>>, %arg26: memref<512x128xbf16, #tpu.memory_space<vmem>>, %arg27: memref<1x128xf32, #tpu.memory_space<vmem>>, %arg28: memref<1x2x128xf32, #tpu.memory_space<vmem>>) attributes {dimension_semantics = [#tpu.dimension_semantics<parallel>], iteration_bounds = array<i64: 4>, scalar_prefetch = 0 : i64, scratch_operands = 0 : i64, tpu.core_type = #tpu.core_type<tc>, window_params = [{transform_indices = @transform_0, window_bounds = array<i64: 2, 4, 32>}, {pipeline_mode = #tpu.pipeline_mode<synchronous>, transform_indices = @transform_1, window_bounds = array<i64: 20, 32>}, {pipeline_mode = #tpu.pipeline_mode<synchronous>, transform_indices = @transform_2, window_bounds = array<i64: 1, 32>}, {pipeline_mode = #tpu.pipeline_mode<synchronous>, transform_indices = @transform_3, window_bounds = array<i64: 160, 32>}, {pipeline_mode = #tpu.pipeline_mode<synchronous>, transform_indices = @transform_4, window_bounds = array<i64: 1, 32>}, {pipeline_mode = #tpu.pipeline_mode<synchronous>, transform_indices = @transform_5, window_bounds = array<i64: 160, 32>}, {pipeline_mode = #tpu.pipeline_mode<synchronous>, transform_indices = @transform_6, window_bounds = array<i64: 1, 32>}, {pipeline_mode = #tpu.pipeline_mode<synchronous>, transform_indices = @transform_7, window_bounds = array<i64: 160, 32>}, {pipeline_mode = #tpu.pipeline_mode<synchronous>, transform_indices = @transform_8, window_bounds = array<i64: 1, 32>}, {pipeline_mode = #tpu.pipeline_mode<synchronous>, transform_indices = @transform_9, window_bounds = array<i64: 704, 32>}, {pipeline_mode = #tpu.pipeline_mode<synchronous>, transform_indices = @transform_10, window_bounds = array<i64: 1, 32>}, {pipeline_mode = #tpu.pipeline_mode<synchronous>, transform_indices = @transform_11, window_bounds = array<i64: 352, 32>}, {pipeline_mode = #tpu.pipeline_mode<synchronous>, transform_indices = @transform_12, window_bounds = array<i64: 1, 32>}, {pipeline_mode = #tpu.pipeline_mode<synchronous>, transform_indices = @transform_13, window_bounds = array<i64: 224, 64>}, {pipeline_mode = #tpu.pipeline_mode<synchronous>, transform_indices = @transform_14, window_bounds = array<i64: 1, 64>}, {pipeline_mode = #tpu.pipeline_mode<synchronous>, transform_indices = @transform_15, window_bounds = array<i64: 448, 64>}, {pipeline_mode = #tpu.pipeline_mode<synchronous>, transform_indices = @transform_16, window_bounds = array<i64: 1, 64>}, {pipeline_mode = #tpu.pipeline_mode<synchronous>, transform_indices = @transform_17, window_bounds = array<i64: 672, 256>}, {pipeline_mode = #tpu.pipeline_mode<synchronous>, transform_indices = @transform_18, window_bounds = array<i64: 1, 256>}, {pipeline_mode = #tpu.pipeline_mode<synchronous>, transform_indices = @transform_19, window_bounds = array<i64: 1792, 256>}, {pipeline_mode = #tpu.pipeline_mode<synchronous>, transform_indices = @transform_20, window_bounds = array<i64: 1, 256>}, {pipeline_mode = #tpu.pipeline_mode<synchronous>, transform_indices = @transform_21, window_bounds = array<i64: 1280, 256>}, {pipeline_mode = #tpu.pipeline_mode<synchronous>, transform_indices = @transform_22, window_bounds = array<i64: 1, 256>}, {pipeline_mode = #tpu.pipeline_mode<synchronous>, transform_indices = @transform_23, window_bounds = array<i64: 1280, 256>}, {pipeline_mode = #tpu.pipeline_mode<synchronous>, transform_indices = @transform_24, window_bounds = array<i64: 1, 256>}, {pipeline_mode = #tpu.pipeline_mode<synchronous>, transform_indices = @transform_25, window_bounds = array<i64: 512, 128>}, {pipeline_mode = #tpu.pipeline_mode<synchronous>, transform_indices = @transform_26, window_bounds = array<i64: 1, 128>}, {transform_indices = @transform_27, window_bounds = array<i64: 1, 2, 128>}]} {
    %c0 = arith.constant 0 : index
    %c0_0 = arith.constant 0 : index
    %c0_1 = arith.constant 0 : index
    %0 = vector.load %arg1[%c0, %c0_0, %c0_1] : memref<2x4x32xf32, #tpu.memory_space<vmem>>, vector<2x4x32xf32>
    %1 = tpu.transpose %0, [0, 2, 1] : vector<2x4x32xf32> -> vector<2x32x4xf32>
    %cst = arith.constant 0.000000e+00 : bf16
    %2 = vector.broadcast %cst : bf16 to vector<2x2x4xbf16>
    %3 = arith.truncf %1 : vector<2x32x4xf32> to vector<2x32x4xbf16>
    %4 = tpu.concatenate %2, %3, %2 in 1 : vector<2x2x4xbf16>, vector<2x32x4xbf16>, vector<2x2x4xbf16> -> vector<2x36x4xbf16>
    %5 = vector.extract_strided_slice %4 {offsets = [0, 0, 0], sizes = [2, 32, 4], strides = [1, 1, 1]} : vector<2x36x4xbf16> to vector<2x32x4xbf16>
    %6 = vector.extract_strided_slice %4 {offsets = [0, 1, 0], sizes = [2, 32, 4], strides = [1, 1, 1]} : vector<2x36x4xbf16> to vector<2x32x4xbf16>
    %7 = vector.extract_strided_slice %4 {offsets = [0, 2, 0], sizes = [2, 32, 4], strides = [1, 1, 1]} : vector<2x36x4xbf16> to vector<2x32x4xbf16>
    %8 = vector.extract_strided_slice %4 {offsets = [0, 3, 0], sizes = [2, 32, 4], strides = [1, 1, 1]} : vector<2x36x4xbf16> to vector<2x32x4xbf16>
    %9 = vector.extract_strided_slice %4 {offsets = [0, 4, 0], sizes = [2, 32, 4], strides = [1, 1, 1]} : vector<2x36x4xbf16> to vector<2x32x4xbf16>
    %10 = tpu.concatenate %5, %6, %7, %8, %9 in 2 : vector<2x32x4xbf16>, vector<2x32x4xbf16>, vector<2x32x4xbf16>, vector<2x32x4xbf16>, vector<2x32x4xbf16> -> vector<2x32x20xbf16>
    %11 = vector.shape_cast %10 : vector<2x32x20xbf16> to vector<64x20xbf16>
    %c0_2 = arith.constant 0 : index
    %c0_3 = arith.constant 0 : index
    %12 = vector.load %arg2[%c0_2, %c0_3] : memref<20x32xbf16, #tpu.memory_space<vmem>>, vector<20x32xbf16>
    %cst_4 = arith.constant dense<0.000000e+00> : vector<64x32xf32>
    %13 = tpu.matmul %11, %12, %cst_4 {dimension_numbers = #tpu.dot_dimension_numbers<[1], [0], [0], [1], [0, 0, 1, 1], [], []>} : vector<64x20xbf16>, vector<20x32xbf16>, vector<64x32xf32> -> vector<64x32xf32>
    %c0_5 = arith.constant 0 : index
    %c0_6 = arith.constant 0 : index
    %14 = vector.load %arg3[%c0_5, %c0_6] : memref<1x32xf32, #tpu.memory_space<vmem>>, vector<1x32xf32>
    %15 = vector.broadcast %14 : vector<1x32xf32> to vector<64x32xf32>
    %16 = arith.addf %13, %15 : vector<64x32xf32>
    %cst_7 = arith.constant 0.000000e+00 : f32
    %17 = vector.broadcast %cst_7 : f32 to vector<64x32xf32>
    %18 = arith.maximumf %16, %17 : vector<64x32xf32>
    %19 = vector.shape_cast %18 : vector<64x32xf32> to vector<2x32x32xf32>
    %cst_8 = arith.constant 0.000000e+00 : bf16
    %20 = vector.broadcast %cst_8 : bf16 to vector<2x2x32xbf16>
    %21 = arith.truncf %19 : vector<2x32x32xf32> to vector<2x32x32xbf16>
    %22 = tpu.concatenate %20, %21, %20 in 1 : vector<2x2x32xbf16>, vector<2x32x32xbf16>, vector<2x2x32xbf16> -> vector<2x36x32xbf16>
    %23 = vector.extract_strided_slice %22 {offsets = [0, 0, 0], sizes = [2, 32, 32], strides = [1, 1, 1]} : vector<2x36x32xbf16> to vector<2x32x32xbf16>
    %24 = vector.extract_strided_slice %22 {offsets = [0, 1, 0], sizes = [2, 32, 32], strides = [1, 1, 1]} : vector<2x36x32xbf16> to vector<2x32x32xbf16>
    %25 = vector.extract_strided_slice %22 {offsets = [0, 2, 0], sizes = [2, 32, 32], strides = [1, 1, 1]} : vector<2x36x32xbf16> to vector<2x32x32xbf16>
    %26 = vector.extract_strided_slice %22 {offsets = [0, 3, 0], sizes = [2, 32, 32], strides = [1, 1, 1]} : vector<2x36x32xbf16> to vector<2x32x32xbf16>
    %27 = vector.extract_strided_slice %22 {offsets = [0, 4, 0], sizes = [2, 32, 32], strides = [1, 1, 1]} : vector<2x36x32xbf16> to vector<2x32x32xbf16>
    %28 = tpu.concatenate %23, %24, %25, %26, %27 in 2 : vector<2x32x32xbf16>, vector<2x32x32xbf16>, vector<2x32x32xbf16>, vector<2x32x32xbf16>, vector<2x32x32xbf16> -> vector<2x32x160xbf16>
    %29 = vector.shape_cast %28 : vector<2x32x160xbf16> to vector<64x160xbf16>
    %c0_9 = arith.constant 0 : index
    %c0_10 = arith.constant 0 : index
    %30 = vector.load %arg4[%c0_9, %c0_10] : memref<160x32xbf16, #tpu.memory_space<vmem>>, vector<160x32xbf16>
    %cst_11 = arith.constant dense<0.000000e+00> : vector<64x32xf32>
    %31 = tpu.matmul %29, %30, %cst_11 {dimension_numbers = #tpu.dot_dimension_numbers<[1], [0], [0], [1], [0, 0, 1, 1], [], []>} : vector<64x160xbf16>, vector<160x32xbf16>, vector<64x32xf32> -> vector<64x32xf32>
    %c0_12 = arith.constant 0 : index
    %c0_13 = arith.constant 0 : index
    %32 = vector.load %arg5[%c0_12, %c0_13] : memref<1x32xf32, #tpu.memory_space<vmem>>, vector<1x32xf32>
    %33 = vector.broadcast %32 : vector<1x32xf32> to vector<64x32xf32>
    %34 = arith.addf %31, %33 : vector<64x32xf32>
    %cst_14 = arith.constant 0.000000e+00 : f32
    %35 = vector.broadcast %cst_14 : f32 to vector<64x32xf32>
    %36 = arith.maximumf %34, %35 : vector<64x32xf32>
    %37 = vector.shape_cast %36 : vector<64x32xf32> to vector<2x32x32xf32>
    %cst_15 = arith.constant 0.000000e+00 : bf16
    %38 = vector.broadcast %cst_15 : bf16 to vector<2x2x32xbf16>
    %39 = arith.truncf %37 : vector<2x32x32xf32> to vector<2x32x32xbf16>
    %40 = tpu.concatenate %38, %39, %38 in 1 : vector<2x2x32xbf16>, vector<2x32x32xbf16>, vector<2x2x32xbf16> -> vector<2x36x32xbf16>
    %41 = vector.extract_strided_slice %40 {offsets = [0, 0, 0], sizes = [2, 32, 32], strides = [1, 1, 1]} : vector<2x36x32xbf16> to vector<2x32x32xbf16>
    %42 = vector.extract_strided_slice %40 {offsets = [0, 1, 0], sizes = [2, 32, 32], strides = [1, 1, 1]} : vector<2x36x32xbf16> to vector<2x32x32xbf16>
    %43 = vector.extract_strided_slice %40 {offsets = [0, 2, 0], sizes = [2, 32, 32], strides = [1, 1, 1]} : vector<2x36x32xbf16> to vector<2x32x32xbf16>
    %44 = vector.extract_strided_slice %40 {offsets = [0, 3, 0], sizes = [2, 32, 32], strides = [1, 1, 1]} : vector<2x36x32xbf16> to vector<2x32x32xbf16>
    %45 = vector.extract_strided_slice %40 {offsets = [0, 4, 0], sizes = [2, 32, 32], strides = [1, 1, 1]} : vector<2x36x32xbf16> to vector<2x32x32xbf16>
    %46 = tpu.concatenate %41, %42, %43, %44, %45 in 2 : vector<2x32x32xbf16>, vector<2x32x32xbf16>, vector<2x32x32xbf16>, vector<2x32x32xbf16>, vector<2x32x32xbf16> -> vector<2x32x160xbf16>
    %47 = vector.shape_cast %46 : vector<2x32x160xbf16> to vector<64x160xbf16>
    %c0_16 = arith.constant 0 : index
    %c0_17 = arith.constant 0 : index
    %48 = vector.load %arg6[%c0_16, %c0_17] : memref<160x32xbf16, #tpu.memory_space<vmem>>, vector<160x32xbf16>
    %cst_18 = arith.constant dense<0.000000e+00> : vector<64x32xf32>
    %49 = tpu.matmul %47, %48, %cst_18 {dimension_numbers = #tpu.dot_dimension_numbers<[1], [0], [0], [1], [0, 0, 1, 1], [], []>} : vector<64x160xbf16>, vector<160x32xbf16>, vector<64x32xf32> -> vector<64x32xf32>
    %c0_19 = arith.constant 0 : index
    %c0_20 = arith.constant 0 : index
    %50 = vector.load %arg7[%c0_19, %c0_20] : memref<1x32xf32, #tpu.memory_space<vmem>>, vector<1x32xf32>
    %51 = vector.broadcast %50 : vector<1x32xf32> to vector<64x32xf32>
    %52 = arith.addf %49, %51 : vector<64x32xf32>
    %cst_21 = arith.constant 0.000000e+00 : f32
    %53 = vector.broadcast %cst_21 : f32 to vector<64x32xf32>
    %54 = arith.maximumf %52, %53 : vector<64x32xf32>
    %55 = vector.shape_cast %54 : vector<64x32xf32> to vector<2x32x32xf32>
    %cst_22 = arith.constant 0.000000e+00 : bf16
    %56 = vector.broadcast %cst_22 : bf16 to vector<2x2x32xbf16>
    %57 = arith.truncf %55 : vector<2x32x32xf32> to vector<2x32x32xbf16>
    %58 = tpu.concatenate %56, %57, %56 in 1 : vector<2x2x32xbf16>, vector<2x32x32xbf16>, vector<2x2x32xbf16> -> vector<2x36x32xbf16>
    %59 = vector.extract_strided_slice %58 {offsets = [0, 0, 0], sizes = [2, 32, 32], strides = [1, 1, 1]} : vector<2x36x32xbf16> to vector<2x32x32xbf16>
    %60 = vector.extract_strided_slice %58 {offsets = [0, 1, 0], sizes = [2, 32, 32], strides = [1, 1, 1]} : vector<2x36x32xbf16> to vector<2x32x32xbf16>
    %61 = vector.extract_strided_slice %58 {offsets = [0, 2, 0], sizes = [2, 32, 32], strides = [1, 1, 1]} : vector<2x36x32xbf16> to vector<2x32x32xbf16>
    %62 = vector.extract_strided_slice %58 {offsets = [0, 3, 0], sizes = [2, 32, 32], strides = [1, 1, 1]} : vector<2x36x32xbf16> to vector<2x32x32xbf16>
    %63 = vector.extract_strided_slice %58 {offsets = [0, 4, 0], sizes = [2, 32, 32], strides = [1, 1, 1]} : vector<2x36x32xbf16> to vector<2x32x32xbf16>
    %64 = tpu.concatenate %59, %60, %61, %62, %63 in 2 : vector<2x32x32xbf16>, vector<2x32x32xbf16>, vector<2x32x32xbf16>, vector<2x32x32xbf16>, vector<2x32x32xbf16> -> vector<2x32x160xbf16>
    %65 = vector.shape_cast %64 : vector<2x32x160xbf16> to vector<64x160xbf16>
    %c0_23 = arith.constant 0 : index
    %c0_24 = arith.constant 0 : index
    %66 = vector.load %arg8[%c0_23, %c0_24] : memref<160x32xbf16, #tpu.memory_space<vmem>>, vector<160x32xbf16>
    %cst_25 = arith.constant dense<0.000000e+00> : vector<64x32xf32>
    %67 = tpu.matmul %65, %66, %cst_25 {dimension_numbers = #tpu.dot_dimension_numbers<[1], [0], [0], [1], [0, 0, 1, 1], [], []>} : vector<64x160xbf16>, vector<160x32xbf16>, vector<64x32xf32> -> vector<64x32xf32>
    %c0_26 = arith.constant 0 : index
    %c0_27 = arith.constant 0 : index
    %68 = vector.load %arg9[%c0_26, %c0_27] : memref<1x32xf32, #tpu.memory_space<vmem>>, vector<1x32xf32>
    %69 = vector.broadcast %68 : vector<1x32xf32> to vector<64x32xf32>
    %70 = arith.addf %67, %69 : vector<64x32xf32>
    %cst_28 = arith.constant 0.000000e+00 : f32
    %71 = vector.broadcast %cst_28 : f32 to vector<64x32xf32>
    %72 = arith.maximumf %70, %71 : vector<64x32xf32>
    %73 = vector.shape_cast %72 : vector<64x32xf32> to vector<2x32x32xf32>
    %74 = vector.shape_cast %37 : vector<2x32x32xf32> to vector<2x16x2x32xf32>
    %cst_29 = arith.constant dense<0xFF800000> : vector<2x16x32xf32>
    %75 = vector.multi_reduction <maximumf>, %74, %cst_29 [2] : vector<2x16x2x32xf32> to vector<2x16x32xf32>
    %76 = vector.shape_cast %73 : vector<2x32x32xf32> to vector<2x16x2x32xf32>
    %cst_30 = arith.constant dense<0xFF800000> : vector<2x16x32xf32>
    %77 = vector.multi_reduction <maximumf>, %76, %cst_30 [2] : vector<2x16x2x32xf32> to vector<2x16x32xf32>
    %78 = tpu.concatenate %75, %77 in 2 : vector<2x16x32xf32>, vector<2x16x32xf32> -> vector<2x16x64xf32>
    %79 = vector.shape_cast %78 : vector<2x16x64xf32> to vector<2x8x2x64xf32>
    %cst_31 = arith.constant dense<0xFF800000> : vector<2x8x64xf32>
    %80 = vector.multi_reduction <maximumf>, %79, %cst_31 [2] : vector<2x8x2x64xf32> to vector<2x8x64xf32>
    %cst_32 = arith.constant 0.000000e+00 : bf16
    %81 = vector.broadcast %cst_32 : bf16 to vector<2x5x64xbf16>
    %82 = arith.truncf %80 : vector<2x8x64xf32> to vector<2x8x64xbf16>
    %83 = tpu.concatenate %81, %82, %81 in 1 : vector<2x5x64xbf16>, vector<2x8x64xbf16>, vector<2x5x64xbf16> -> vector<2x18x64xbf16>
    %84 = vector.extract_strided_slice %83 {offsets = [0, 0, 0], sizes = [2, 8, 64], strides = [1, 1, 1]} : vector<2x18x64xbf16> to vector<2x8x64xbf16>
    %85 = vector.extract_strided_slice %83 {offsets = [0, 1, 0], sizes = [2, 8, 64], strides = [1, 1, 1]} : vector<2x18x64xbf16> to vector<2x8x64xbf16>
    %86 = vector.extract_strided_slice %83 {offsets = [0, 2, 0], sizes = [2, 8, 64], strides = [1, 1, 1]} : vector<2x18x64xbf16> to vector<2x8x64xbf16>
    %87 = vector.extract_strided_slice %83 {offsets = [0, 3, 0], sizes = [2, 8, 64], strides = [1, 1, 1]} : vector<2x18x64xbf16> to vector<2x8x64xbf16>
    %88 = vector.extract_strided_slice %83 {offsets = [0, 4, 0], sizes = [2, 8, 64], strides = [1, 1, 1]} : vector<2x18x64xbf16> to vector<2x8x64xbf16>
    %89 = vector.extract_strided_slice %83 {offsets = [0, 5, 0], sizes = [2, 8, 64], strides = [1, 1, 1]} : vector<2x18x64xbf16> to vector<2x8x64xbf16>
    %90 = vector.extract_strided_slice %83 {offsets = [0, 6, 0], sizes = [2, 8, 64], strides = [1, 1, 1]} : vector<2x18x64xbf16> to vector<2x8x64xbf16>
    %91 = vector.extract_strided_slice %83 {offsets = [0, 7, 0], sizes = [2, 8, 64], strides = [1, 1, 1]} : vector<2x18x64xbf16> to vector<2x8x64xbf16>
    %92 = vector.extract_strided_slice %83 {offsets = [0, 8, 0], sizes = [2, 8, 64], strides = [1, 1, 1]} : vector<2x18x64xbf16> to vector<2x8x64xbf16>
    %93 = vector.extract_strided_slice %83 {offsets = [0, 9, 0], sizes = [2, 8, 64], strides = [1, 1, 1]} : vector<2x18x64xbf16> to vector<2x8x64xbf16>
    %94 = vector.extract_strided_slice %83 {offsets = [0, 10, 0], sizes = [2, 8, 64], strides = [1, 1, 1]} : vector<2x18x64xbf16> to vector<2x8x64xbf16>
    %95 = tpu.concatenate %84, %85, %86, %87, %88, %89, %90, %91, %92, %93, %94 in 2 : vector<2x8x64xbf16>, vector<2x8x64xbf16>, vector<2x8x64xbf16>, vector<2x8x64xbf16>, vector<2x8x64xbf16>, vector<2x8x64xbf16>, vector<2x8x64xbf16>, vector<2x8x64xbf16>, vector<2x8x64xbf16>, vector<2x8x64xbf16>, vector<2x8x64xbf16> -> vector<2x8x704xbf16>
    %96 = vector.shape_cast %95 : vector<2x8x704xbf16> to vector<16x704xbf16>
    %c0_33 = arith.constant 0 : index
    %c0_34 = arith.constant 0 : index
    %97 = vector.load %arg10[%c0_33, %c0_34] : memref<704x32xbf16, #tpu.memory_space<vmem>>, vector<704x32xbf16>
    %cst_35 = arith.constant dense<0.000000e+00> : vector<16x32xf32>
    %98 = tpu.matmul %96, %97, %cst_35 {dimension_numbers = #tpu.dot_dimension_numbers<[1], [0], [0], [1], [0, 0, 1, 1], [], []>} : vector<16x704xbf16>, vector<704x32xbf16>, vector<16x32xf32> -> vector<16x32xf32>
    %c0_36 = arith.constant 0 : index
    %c0_37 = arith.constant 0 : index
    %99 = vector.load %arg11[%c0_36, %c0_37] : memref<1x32xf32, #tpu.memory_space<vmem>>, vector<1x32xf32>
    %100 = vector.broadcast %99 : vector<1x32xf32> to vector<16x32xf32>
    %101 = arith.addf %98, %100 : vector<16x32xf32>
    %cst_38 = arith.constant 0.000000e+00 : f32
    %102 = vector.broadcast %cst_38 : f32 to vector<16x32xf32>
    %103 = arith.maximumf %101, %102 : vector<16x32xf32>
    %104 = vector.shape_cast %103 : vector<16x32xf32> to vector<2x8x32xf32>
    %cst_39 = arith.constant 0.000000e+00 : bf16
    %105 = vector.broadcast %cst_39 : bf16 to vector<2x5x32xbf16>
    %106 = arith.truncf %104 : vector<2x8x32xf32> to vector<2x8x32xbf16>
    %107 = tpu.concatenate %105, %106, %105 in 1 : vector<2x5x32xbf16>, vector<2x8x32xbf16>, vector<2x5x32xbf16> -> vector<2x18x32xbf16>
    %108 = vector.extract_strided_slice %107 {offsets = [0, 0, 0], sizes = [2, 8, 32], strides = [1, 1, 1]} : vector<2x18x32xbf16> to vector<2x8x32xbf16>
    %109 = vector.extract_strided_slice %107 {offsets = [0, 1, 0], sizes = [2, 8, 32], strides = [1, 1, 1]} : vector<2x18x32xbf16> to vector<2x8x32xbf16>
    %110 = vector.extract_strided_slice %107 {offsets = [0, 2, 0], sizes = [2, 8, 32], strides = [1, 1, 1]} : vector<2x18x32xbf16> to vector<2x8x32xbf16>
    %111 = vector.extract_strided_slice %107 {offsets = [0, 3, 0], sizes = [2, 8, 32], strides = [1, 1, 1]} : vector<2x18x32xbf16> to vector<2x8x32xbf16>
    %112 = vector.extract_strided_slice %107 {offsets = [0, 4, 0], sizes = [2, 8, 32], strides = [1, 1, 1]} : vector<2x18x32xbf16> to vector<2x8x32xbf16>
    %113 = vector.extract_strided_slice %107 {offsets = [0, 5, 0], sizes = [2, 8, 32], strides = [1, 1, 1]} : vector<2x18x32xbf16> to vector<2x8x32xbf16>
    %114 = vector.extract_strided_slice %107 {offsets = [0, 6, 0], sizes = [2, 8, 32], strides = [1, 1, 1]} : vector<2x18x32xbf16> to vector<2x8x32xbf16>
    %115 = vector.extract_strided_slice %107 {offsets = [0, 7, 0], sizes = [2, 8, 32], strides = [1, 1, 1]} : vector<2x18x32xbf16> to vector<2x8x32xbf16>
    %116 = vector.extract_strided_slice %107 {offsets = [0, 8, 0], sizes = [2, 8, 32], strides = [1, 1, 1]} : vector<2x18x32xbf16> to vector<2x8x32xbf16>
    %117 = vector.extract_strided_slice %107 {offsets = [0, 9, 0], sizes = [2, 8, 32], strides = [1, 1, 1]} : vector<2x18x32xbf16> to vector<2x8x32xbf16>
    %118 = vector.extract_strided_slice %107 {offsets = [0, 10, 0], sizes = [2, 8, 32], strides = [1, 1, 1]} : vector<2x18x32xbf16> to vector<2x8x32xbf16>
    %119 = tpu.concatenate %108, %109, %110, %111, %112, %113, %114, %115, %116, %117, %118 in 2 : vector<2x8x32xbf16>, vector<2x8x32xbf16>, vector<2x8x32xbf16>, vector<2x8x32xbf16>, vector<2x8x32xbf16>, vector<2x8x32xbf16>, vector<2x8x32xbf16>, vector<2x8x32xbf16>, vector<2x8x32xbf16>, vector<2x8x32xbf16>, vector<2x8x32xbf16> -> vector<2x8x352xbf16>
    %120 = vector.shape_cast %119 : vector<2x8x352xbf16> to vector<16x352xbf16>
    %c0_40 = arith.constant 0 : index
    %c0_41 = arith.constant 0 : index
    %121 = vector.load %arg12[%c0_40, %c0_41] : memref<352x32xbf16, #tpu.memory_space<vmem>>, vector<352x32xbf16>
    %cst_42 = arith.constant dense<0.000000e+00> : vector<16x32xf32>
    %122 = tpu.matmul %120, %121, %cst_42 {dimension_numbers = #tpu.dot_dimension_numbers<[1], [0], [0], [1], [0, 0, 1, 1], [], []>} : vector<16x352xbf16>, vector<352x32xbf16>, vector<16x32xf32> -> vector<16x32xf32>
    %c0_43 = arith.constant 0 : index
    %c0_44 = arith.constant 0 : index
    %123 = vector.load %arg13[%c0_43, %c0_44] : memref<1x32xf32, #tpu.memory_space<vmem>>, vector<1x32xf32>
    %124 = vector.broadcast %123 : vector<1x32xf32> to vector<16x32xf32>
    %125 = arith.addf %122, %124 : vector<16x32xf32>
    %cst_45 = arith.constant 0.000000e+00 : f32
    %126 = vector.broadcast %cst_45 : f32 to vector<16x32xf32>
    %127 = arith.maximumf %125, %126 : vector<16x32xf32>
    %128 = vector.shape_cast %127 : vector<16x32xf32> to vector<2x8x32xf32>
    %cst_46 = arith.constant 0.000000e+00 : bf16
    %129 = vector.broadcast %cst_46 : bf16 to vector<2x3x32xbf16>
    %130 = arith.truncf %128 : vector<2x8x32xf32> to vector<2x8x32xbf16>
    %131 = tpu.concatenate %129, %130, %129 in 1 : vector<2x3x32xbf16>, vector<2x8x32xbf16>, vector<2x3x32xbf16> -> vector<2x14x32xbf16>
    %132 = vector.extract_strided_slice %131 {offsets = [0, 0, 0], sizes = [2, 8, 32], strides = [1, 1, 1]} : vector<2x14x32xbf16> to vector<2x8x32xbf16>
    %133 = vector.extract_strided_slice %131 {offsets = [0, 1, 0], sizes = [2, 8, 32], strides = [1, 1, 1]} : vector<2x14x32xbf16> to vector<2x8x32xbf16>
    %134 = vector.extract_strided_slice %131 {offsets = [0, 2, 0], sizes = [2, 8, 32], strides = [1, 1, 1]} : vector<2x14x32xbf16> to vector<2x8x32xbf16>
    %135 = vector.extract_strided_slice %131 {offsets = [0, 3, 0], sizes = [2, 8, 32], strides = [1, 1, 1]} : vector<2x14x32xbf16> to vector<2x8x32xbf16>
    %136 = vector.extract_strided_slice %131 {offsets = [0, 4, 0], sizes = [2, 8, 32], strides = [1, 1, 1]} : vector<2x14x32xbf16> to vector<2x8x32xbf16>
    %137 = vector.extract_strided_slice %131 {offsets = [0, 5, 0], sizes = [2, 8, 32], strides = [1, 1, 1]} : vector<2x14x32xbf16> to vector<2x8x32xbf16>
    %138 = vector.extract_strided_slice %131 {offsets = [0, 6, 0], sizes = [2, 8, 32], strides = [1, 1, 1]} : vector<2x14x32xbf16> to vector<2x8x32xbf16>
    %139 = tpu.concatenate %132, %133, %134, %135, %136, %137, %138 in 2 : vector<2x8x32xbf16>, vector<2x8x32xbf16>, vector<2x8x32xbf16>, vector<2x8x32xbf16>, vector<2x8x32xbf16>, vector<2x8x32xbf16>, vector<2x8x32xbf16> -> vector<2x8x224xbf16>
    %140 = vector.shape_cast %139 : vector<2x8x224xbf16> to vector<16x224xbf16>
    %c0_47 = arith.constant 0 : index
    %c0_48 = arith.constant 0 : index
    %141 = vector.load %arg14[%c0_47, %c0_48] : memref<224x64xbf16, #tpu.memory_space<vmem>>, vector<224x64xbf16>
    %cst_49 = arith.constant dense<0.000000e+00> : vector<16x64xf32>
    %142 = tpu.matmul %140, %141, %cst_49 {dimension_numbers = #tpu.dot_dimension_numbers<[1], [0], [0], [1], [0, 0, 1, 1], [], []>} : vector<16x224xbf16>, vector<224x64xbf16>, vector<16x64xf32> -> vector<16x64xf32>
    %c0_50 = arith.constant 0 : index
    %c0_51 = arith.constant 0 : index
    %143 = vector.load %arg15[%c0_50, %c0_51] : memref<1x64xf32, #tpu.memory_space<vmem>>, vector<1x64xf32>
    %144 = vector.broadcast %143 : vector<1x64xf32> to vector<16x64xf32>
    %145 = arith.addf %142, %144 : vector<16x64xf32>
    %cst_52 = arith.constant 0.000000e+00 : f32
    %146 = vector.broadcast %cst_52 : f32 to vector<16x64xf32>
    %147 = arith.maximumf %145, %146 : vector<16x64xf32>
    %148 = vector.shape_cast %147 : vector<16x64xf32> to vector<2x8x64xf32>
    %cst_53 = arith.constant 0.000000e+00 : bf16
    %149 = vector.broadcast %cst_53 : bf16 to vector<2x3x64xbf16>
    %150 = arith.truncf %148 : vector<2x8x64xf32> to vector<2x8x64xbf16>
    %151 = tpu.concatenate %149, %150, %149 in 1 : vector<2x3x64xbf16>, vector<2x8x64xbf16>, vector<2x3x64xbf16> -> vector<2x14x64xbf16>
    %152 = vector.extract_strided_slice %151 {offsets = [0, 0, 0], sizes = [2, 8, 64], strides = [1, 1, 1]} : vector<2x14x64xbf16> to vector<2x8x64xbf16>
    %153 = vector.extract_strided_slice %151 {offsets = [0, 1, 0], sizes = [2, 8, 64], strides = [1, 1, 1]} : vector<2x14x64xbf16> to vector<2x8x64xbf16>
    %154 = vector.extract_strided_slice %151 {offsets = [0, 2, 0], sizes = [2, 8, 64], strides = [1, 1, 1]} : vector<2x14x64xbf16> to vector<2x8x64xbf16>
    %155 = vector.extract_strided_slice %151 {offsets = [0, 3, 0], sizes = [2, 8, 64], strides = [1, 1, 1]} : vector<2x14x64xbf16> to vector<2x8x64xbf16>
    %156 = vector.extract_strided_slice %151 {offsets = [0, 4, 0], sizes = [2, 8, 64], strides = [1, 1, 1]} : vector<2x14x64xbf16> to vector<2x8x64xbf16>
    %157 = vector.extract_strided_slice %151 {offsets = [0, 5, 0], sizes = [2, 8, 64], strides = [1, 1, 1]} : vector<2x14x64xbf16> to vector<2x8x64xbf16>
    %158 = vector.extract_strided_slice %151 {offsets = [0, 6, 0], sizes = [2, 8, 64], strides = [1, 1, 1]} : vector<2x14x64xbf16> to vector<2x8x64xbf16>
    %159 = tpu.concatenate %152, %153, %154, %155, %156, %157, %158 in 2 : vector<2x8x64xbf16>, vector<2x8x64xbf16>, vector<2x8x64xbf16>, vector<2x8x64xbf16>, vector<2x8x64xbf16>, vector<2x8x64xbf16>, vector<2x8x64xbf16> -> vector<2x8x448xbf16>
    %160 = vector.shape_cast %159 : vector<2x8x448xbf16> to vector<16x448xbf16>
    %c0_54 = arith.constant 0 : index
    %c0_55 = arith.constant 0 : index
    %161 = vector.load %arg16[%c0_54, %c0_55] : memref<448x64xbf16, #tpu.memory_space<vmem>>, vector<448x64xbf16>
    %cst_56 = arith.constant dense<0.000000e+00> : vector<16x64xf32>
    %162 = tpu.matmul %160, %161, %cst_56 {dimension_numbers = #tpu.dot_dimension_numbers<[1], [0], [0], [1], [0, 0, 1, 1], [], []>} : vector<16x448xbf16>, vector<448x64xbf16>, vector<16x64xf32> -> vector<16x64xf32>
    %c0_57 = arith.constant 0 : index
    %c0_58 = arith.constant 0 : index
    %163 = vector.load %arg17[%c0_57, %c0_58] : memref<1x64xf32, #tpu.memory_space<vmem>>, vector<1x64xf32>
    %164 = vector.broadcast %163 : vector<1x64xf32> to vector<16x64xf32>
    %165 = arith.addf %162, %164 : vector<16x64xf32>
    %cst_59 = arith.constant 0.000000e+00 : f32
    %166 = vector.broadcast %cst_59 : f32 to vector<16x64xf32>
    %167 = arith.maximumf %165, %166 : vector<16x64xf32>
    %168 = vector.shape_cast %167 : vector<16x64xf32> to vector<2x8x64xf32>
    %169 = vector.shape_cast %128 : vector<2x8x32xf32> to vector<2x4x2x32xf32>
    %cst_60 = arith.constant dense<0xFF800000> : vector<2x4x32xf32>
    %170 = vector.multi_reduction <maximumf>, %169, %cst_60 [2] : vector<2x4x2x32xf32> to vector<2x4x32xf32>
    %171 = vector.shape_cast %168 : vector<2x8x64xf32> to vector<2x4x2x64xf32>
    %cst_61 = arith.constant dense<0xFF800000> : vector<2x4x64xf32>
    %172 = vector.multi_reduction <maximumf>, %171, %cst_61 [2] : vector<2x4x2x64xf32> to vector<2x4x64xf32>
    %173 = tpu.concatenate %170, %172 in 2 : vector<2x4x32xf32>, vector<2x4x64xf32> -> vector<2x4x96xf32>
    %174 = vector.shape_cast %173 : vector<2x4x96xf32> to vector<2x2x2x96xf32>
    %cst_62 = arith.constant dense<0.000000e+00> : vector<2x2x96xf32>
    %175 = vector.multi_reduction <add>, %174, %cst_62 [2] : vector<2x2x2x96xf32> to vector<2x2x96xf32>
    %cst_63 = arith.constant 2.000000e+00 : f32
    %176 = vector.broadcast %cst_63 : f32 to vector<2x2x96xf32>
    %177 = arith.divf %175, %176 : vector<2x2x96xf32>
    %cst_64 = arith.constant 0.000000e+00 : bf16
    %178 = vector.broadcast %cst_64 : bf16 to vector<2x3x96xbf16>
    %179 = arith.truncf %177 : vector<2x2x96xf32> to vector<2x2x96xbf16>
    %180 = tpu.concatenate %178, %179, %178 in 1 : vector<2x3x96xbf16>, vector<2x2x96xbf16>, vector<2x3x96xbf16> -> vector<2x8x96xbf16>
    %cst_65 = arith.constant 0.000000e+00 : f32
    %181 = vector.broadcast %cst_65 : f32 to vector<4x256xf32>
    %182 = vector.extract_strided_slice %180 {offsets = [0, 0, 0], sizes = [2, 2, 96], strides = [1, 1, 1]} : vector<2x8x96xbf16> to vector<2x2x96xbf16>
    %183 = vector.shape_cast %182 : vector<2x2x96xbf16> to vector<4x96xbf16>
    %c0_66 = arith.constant 0 : index
    %c0_67 = arith.constant 0 : index
    %184 = vector.load %arg18[%c0_66, %c0_67] : memref<672x256xbf16, #tpu.memory_space<vmem>>, vector<96x256xbf16>
    %cst_68 = arith.constant dense<0.000000e+00> : vector<4x256xf32>
    %185 = tpu.matmul %183, %184, %cst_68 {dimension_numbers = #tpu.dot_dimension_numbers<[1], [0], [0], [1], [0, 0, 1, 1], [], []>} : vector<4x96xbf16>, vector<96x256xbf16>, vector<4x256xf32> -> vector<4x256xf32>
    %186 = arith.addf %181, %185 : vector<4x256xf32>
    %187 = vector.extract_strided_slice %180 {offsets = [0, 1, 0], sizes = [2, 2, 96], strides = [1, 1, 1]} : vector<2x8x96xbf16> to vector<2x2x96xbf16>
    %188 = vector.shape_cast %187 : vector<2x2x96xbf16> to vector<4x96xbf16>
    %c96 = arith.constant 96 : index
    %c0_69 = arith.constant 0 : index
    %189 = vector.load %arg18[%c96, %c0_69] : memref<672x256xbf16, #tpu.memory_space<vmem>>, vector<96x256xbf16>
    %cst_70 = arith.constant dense<0.000000e+00> : vector<4x256xf32>
    %190 = tpu.matmul %188, %189, %cst_70 {dimension_numbers = #tpu.dot_dimension_numbers<[1], [0], [0], [1], [0, 0, 1, 1], [], []>} : vector<4x96xbf16>, vector<96x256xbf16>, vector<4x256xf32> -> vector<4x256xf32>
    %191 = arith.addf %186, %190 : vector<4x256xf32>
    %192 = vector.extract_strided_slice %180 {offsets = [0, 2, 0], sizes = [2, 2, 96], strides = [1, 1, 1]} : vector<2x8x96xbf16> to vector<2x2x96xbf16>
    %193 = vector.shape_cast %192 : vector<2x2x96xbf16> to vector<4x96xbf16>
    %c192 = arith.constant 192 : index
    %c0_71 = arith.constant 0 : index
    %194 = vector.load %arg18[%c192, %c0_71] : memref<672x256xbf16, #tpu.memory_space<vmem>>, vector<96x256xbf16>
    %cst_72 = arith.constant dense<0.000000e+00> : vector<4x256xf32>
    %195 = tpu.matmul %193, %194, %cst_72 {dimension_numbers = #tpu.dot_dimension_numbers<[1], [0], [0], [1], [0, 0, 1, 1], [], []>} : vector<4x96xbf16>, vector<96x256xbf16>, vector<4x256xf32> -> vector<4x256xf32>
    %196 = arith.addf %191, %195 : vector<4x256xf32>
    %197 = vector.extract_strided_slice %180 {offsets = [0, 3, 0], sizes = [2, 2, 96], strides = [1, 1, 1]} : vector<2x8x96xbf16> to vector<2x2x96xbf16>
    %198 = vector.shape_cast %197 : vector<2x2x96xbf16> to vector<4x96xbf16>
    %c288 = arith.constant 288 : index
    %c0_73 = arith.constant 0 : index
    %199 = vector.load %arg18[%c288, %c0_73] : memref<672x256xbf16, #tpu.memory_space<vmem>>, vector<96x256xbf16>
    %cst_74 = arith.constant dense<0.000000e+00> : vector<4x256xf32>
    %200 = tpu.matmul %198, %199, %cst_74 {dimension_numbers = #tpu.dot_dimension_numbers<[1], [0], [0], [1], [0, 0, 1, 1], [], []>} : vector<4x96xbf16>, vector<96x256xbf16>, vector<4x256xf32> -> vector<4x256xf32>
    %201 = arith.addf %196, %200 : vector<4x256xf32>
    %202 = vector.extract_strided_slice %180 {offsets = [0, 4, 0], sizes = [2, 2, 96], strides = [1, 1, 1]} : vector<2x8x96xbf16> to vector<2x2x96xbf16>
    %203 = vector.shape_cast %202 : vector<2x2x96xbf16> to vector<4x96xbf16>
    %c384 = arith.constant 384 : index
    %c0_75 = arith.constant 0 : index
    %204 = vector.load %arg18[%c384, %c0_75] : memref<672x256xbf16, #tpu.memory_space<vmem>>, vector<96x256xbf16>
    %cst_76 = arith.constant dense<0.000000e+00> : vector<4x256xf32>
    %205 = tpu.matmul %203, %204, %cst_76 {dimension_numbers = #tpu.dot_dimension_numbers<[1], [0], [0], [1], [0, 0, 1, 1], [], []>} : vector<4x96xbf16>, vector<96x256xbf16>, vector<4x256xf32> -> vector<4x256xf32>
    %206 = arith.addf %201, %205 : vector<4x256xf32>
    %207 = vector.extract_strided_slice %180 {offsets = [0, 5, 0], sizes = [2, 2, 96], strides = [1, 1, 1]} : vector<2x8x96xbf16> to vector<2x2x96xbf16>
    %208 = vector.shape_cast %207 : vector<2x2x96xbf16> to vector<4x96xbf16>
    %c480 = arith.constant 480 : index
    %c0_77 = arith.constant 0 : index
    %209 = vector.load %arg18[%c480, %c0_77] : memref<672x256xbf16, #tpu.memory_space<vmem>>, vector<96x256xbf16>
    %cst_78 = arith.constant dense<0.000000e+00> : vector<4x256xf32>
    %210 = tpu.matmul %208, %209, %cst_78 {dimension_numbers = #tpu.dot_dimension_numbers<[1], [0], [0], [1], [0, 0, 1, 1], [], []>} : vector<4x96xbf16>, vector<96x256xbf16>, vector<4x256xf32> -> vector<4x256xf32>
    %211 = arith.addf %206, %210 : vector<4x256xf32>
    %212 = vector.extract_strided_slice %180 {offsets = [0, 6, 0], sizes = [2, 2, 96], strides = [1, 1, 1]} : vector<2x8x96xbf16> to vector<2x2x96xbf16>
    %213 = vector.shape_cast %212 : vector<2x2x96xbf16> to vector<4x96xbf16>
    %c576 = arith.constant 576 : index
    %c0_79 = arith.constant 0 : index
    %214 = vector.load %arg18[%c576, %c0_79] : memref<672x256xbf16, #tpu.memory_space<vmem>>, vector<96x256xbf16>
    %cst_80 = arith.constant dense<0.000000e+00> : vector<4x256xf32>
    %215 = tpu.matmul %213, %214, %cst_80 {dimension_numbers = #tpu.dot_dimension_numbers<[1], [0], [0], [1], [0, 0, 1, 1], [], []>} : vector<4x96xbf16>, vector<96x256xbf16>, vector<4x256xf32> -> vector<4x256xf32>
    %216 = arith.addf %211, %215 : vector<4x256xf32>
    %c0_81 = arith.constant 0 : index
    %c0_82 = arith.constant 0 : index
    %217 = vector.load %arg19[%c0_81, %c0_82] : memref<1x256xf32, #tpu.memory_space<vmem>>, vector<1x256xf32>
    %218 = vector.broadcast %217 : vector<1x256xf32> to vector<4x256xf32>
    %219 = arith.addf %216, %218 : vector<4x256xf32>
    %cst_83 = arith.constant 0.000000e+00 : f32
    %220 = vector.broadcast %cst_83 : f32 to vector<4x256xf32>
    %221 = arith.maximumf %219, %220 : vector<4x256xf32>
    %222 = vector.shape_cast %221 : vector<4x256xf32> to vector<2x2x256xf32>
    %cst_84 = arith.constant 0.000000e+00 : bf16
    %223 = vector.broadcast %cst_84 : bf16 to vector<2x3x256xbf16>
    %224 = arith.truncf %222 : vector<2x2x256xf32> to vector<2x2x256xbf16>
    %225 = tpu.concatenate %223, %224, %223 in 1 : vector<2x3x256xbf16>, vector<2x2x256xbf16>, vector<2x3x256xbf16> -> vector<2x8x256xbf16>
    %cst_85 = arith.constant 0.000000e+00 : f32
    %226 = vector.broadcast %cst_85 : f32 to vector<4x256xf32>
    %227 = vector.extract_strided_slice %225 {offsets = [0, 0, 0], sizes = [2, 2, 256], strides = [1, 1, 1]} : vector<2x8x256xbf16> to vector<2x2x256xbf16>
    %228 = vector.shape_cast %227 : vector<2x2x256xbf16> to vector<4x256xbf16>
    %c0_86 = arith.constant 0 : index
    %c0_87 = arith.constant 0 : index
    %229 = vector.load %arg20[%c0_86, %c0_87] : memref<1792x256xbf16, #tpu.memory_space<vmem>>, vector<256x256xbf16>
    %cst_88 = arith.constant dense<0.000000e+00> : vector<4x256xf32>
    %230 = tpu.matmul %228, %229, %cst_88 {dimension_numbers = #tpu.dot_dimension_numbers<[1], [0], [0], [1], [0, 0, 1, 1], [], []>} : vector<4x256xbf16>, vector<256x256xbf16>, vector<4x256xf32> -> vector<4x256xf32>
    %231 = arith.addf %226, %230 : vector<4x256xf32>
    %232 = vector.extract_strided_slice %225 {offsets = [0, 1, 0], sizes = [2, 2, 256], strides = [1, 1, 1]} : vector<2x8x256xbf16> to vector<2x2x256xbf16>
    %233 = vector.shape_cast %232 : vector<2x2x256xbf16> to vector<4x256xbf16>
    %c256 = arith.constant 256 : index
    %c0_89 = arith.constant 0 : index
    %234 = vector.load %arg20[%c256, %c0_89] : memref<1792x256xbf16, #tpu.memory_space<vmem>>, vector<256x256xbf16>
    %cst_90 = arith.constant dense<0.000000e+00> : vector<4x256xf32>
    %235 = tpu.matmul %233, %234, %cst_90 {dimension_numbers = #tpu.dot_dimension_numbers<[1], [0], [0], [1], [0, 0, 1, 1], [], []>} : vector<4x256xbf16>, vector<256x256xbf16>, vector<4x256xf32> -> vector<4x256xf32>
    %236 = arith.addf %231, %235 : vector<4x256xf32>
    %237 = vector.extract_strided_slice %225 {offsets = [0, 2, 0], sizes = [2, 2, 256], strides = [1, 1, 1]} : vector<2x8x256xbf16> to vector<2x2x256xbf16>
    %238 = vector.shape_cast %237 : vector<2x2x256xbf16> to vector<4x256xbf16>
    %c512 = arith.constant 512 : index
    %c0_91 = arith.constant 0 : index
    %239 = vector.load %arg20[%c512, %c0_91] : memref<1792x256xbf16, #tpu.memory_space<vmem>>, vector<256x256xbf16>
    %cst_92 = arith.constant dense<0.000000e+00> : vector<4x256xf32>
    %240 = tpu.matmul %238, %239, %cst_92 {dimension_numbers = #tpu.dot_dimension_numbers<[1], [0], [0], [1], [0, 0, 1, 1], [], []>} : vector<4x256xbf16>, vector<256x256xbf16>, vector<4x256xf32> -> vector<4x256xf32>
    %241 = arith.addf %236, %240 : vector<4x256xf32>
    %242 = vector.extract_strided_slice %225 {offsets = [0, 3, 0], sizes = [2, 2, 256], strides = [1, 1, 1]} : vector<2x8x256xbf16> to vector<2x2x256xbf16>
    %243 = vector.shape_cast %242 : vector<2x2x256xbf16> to vector<4x256xbf16>
    %c768 = arith.constant 768 : index
    %c0_93 = arith.constant 0 : index
    %244 = vector.load %arg20[%c768, %c0_93] : memref<1792x256xbf16, #tpu.memory_space<vmem>>, vector<256x256xbf16>
    %cst_94 = arith.constant dense<0.000000e+00> : vector<4x256xf32>
    %245 = tpu.matmul %243, %244, %cst_94 {dimension_numbers = #tpu.dot_dimension_numbers<[1], [0], [0], [1], [0, 0, 1, 1], [], []>} : vector<4x256xbf16>, vector<256x256xbf16>, vector<4x256xf32> -> vector<4x256xf32>
    %246 = arith.addf %241, %245 : vector<4x256xf32>
    %247 = vector.extract_strided_slice %225 {offsets = [0, 4, 0], sizes = [2, 2, 256], strides = [1, 1, 1]} : vector<2x8x256xbf16> to vector<2x2x256xbf16>
    %248 = vector.shape_cast %247 : vector<2x2x256xbf16> to vector<4x256xbf16>
    %c1024 = arith.constant 1024 : index
    %c0_95 = arith.constant 0 : index
    %249 = vector.load %arg20[%c1024, %c0_95] : memref<1792x256xbf16, #tpu.memory_space<vmem>>, vector<256x256xbf16>
    %cst_96 = arith.constant dense<0.000000e+00> : vector<4x256xf32>
    %250 = tpu.matmul %248, %249, %cst_96 {dimension_numbers = #tpu.dot_dimension_numbers<[1], [0], [0], [1], [0, 0, 1, 1], [], []>} : vector<4x256xbf16>, vector<256x256xbf16>, vector<4x256xf32> -> vector<4x256xf32>
    %251 = arith.addf %246, %250 : vector<4x256xf32>
    %252 = vector.extract_strided_slice %225 {offsets = [0, 5, 0], sizes = [2, 2, 256], strides = [1, 1, 1]} : vector<2x8x256xbf16> to vector<2x2x256xbf16>
    %253 = vector.shape_cast %252 : vector<2x2x256xbf16> to vector<4x256xbf16>
    %c1280 = arith.constant 1280 : index
    %c0_97 = arith.constant 0 : index
    %254 = vector.load %arg20[%c1280, %c0_97] : memref<1792x256xbf16, #tpu.memory_space<vmem>>, vector<256x256xbf16>
    %cst_98 = arith.constant dense<0.000000e+00> : vector<4x256xf32>
    %255 = tpu.matmul %253, %254, %cst_98 {dimension_numbers = #tpu.dot_dimension_numbers<[1], [0], [0], [1], [0, 0, 1, 1], [], []>} : vector<4x256xbf16>, vector<256x256xbf16>, vector<4x256xf32> -> vector<4x256xf32>
    %256 = arith.addf %251, %255 : vector<4x256xf32>
    %257 = vector.extract_strided_slice %225 {offsets = [0, 6, 0], sizes = [2, 2, 256], strides = [1, 1, 1]} : vector<2x8x256xbf16> to vector<2x2x256xbf16>
    %258 = vector.shape_cast %257 : vector<2x2x256xbf16> to vector<4x256xbf16>
    %c1536 = arith.constant 1536 : index
    %c0_99 = arith.constant 0 : index
    %259 = vector.load %arg20[%c1536, %c0_99] : memref<1792x256xbf16, #tpu.memory_space<vmem>>, vector<256x256xbf16>
    %cst_100 = arith.constant dense<0.000000e+00> : vector<4x256xf32>
    %260 = tpu.matmul %258, %259, %cst_100 {dimension_numbers = #tpu.dot_dimension_numbers<[1], [0], [0], [1], [0, 0, 1, 1], [], []>} : vector<4x256xbf16>, vector<256x256xbf16>, vector<4x256xf32> -> vector<4x256xf32>
    %261 = arith.addf %256, %260 : vector<4x256xf32>
    %c0_101 = arith.constant 0 : index
    %c0_102 = arith.constant 0 : index
    %262 = vector.load %arg21[%c0_101, %c0_102] : memref<1x256xf32, #tpu.memory_space<vmem>>, vector<1x256xf32>
    %263 = vector.broadcast %262 : vector<1x256xf32> to vector<4x256xf32>
    %264 = arith.addf %261, %263 : vector<4x256xf32>
    %cst_103 = arith.constant 0.000000e+00 : f32
    %265 = vector.broadcast %cst_103 : f32 to vector<4x256xf32>
    %266 = arith.maximumf %264, %265 : vector<4x256xf32>
    %267 = vector.shape_cast %266 : vector<4x256xf32> to vector<2x2x256xf32>
    %cst_104 = arith.constant 0.000000e+00 : bf16
    %268 = vector.broadcast %cst_104 : bf16 to vector<2x2x256xbf16>
    %269 = arith.truncf %267 : vector<2x2x256xf32> to vector<2x2x256xbf16>
    %270 = tpu.concatenate %268, %269, %268 in 1 : vector<2x2x256xbf16>, vector<2x2x256xbf16>, vector<2x2x256xbf16> -> vector<2x6x256xbf16>
    %cst_105 = arith.constant 0.000000e+00 : f32
    %271 = vector.broadcast %cst_105 : f32 to vector<4x256xf32>
    %272 = vector.extract_strided_slice %270 {offsets = [0, 0, 0], sizes = [2, 2, 256], strides = [1, 1, 1]} : vector<2x6x256xbf16> to vector<2x2x256xbf16>
    %273 = vector.shape_cast %272 : vector<2x2x256xbf16> to vector<4x256xbf16>
    %c0_106 = arith.constant 0 : index
    %c0_107 = arith.constant 0 : index
    %274 = vector.load %arg22[%c0_106, %c0_107] : memref<1280x256xbf16, #tpu.memory_space<vmem>>, vector<256x256xbf16>
    %cst_108 = arith.constant dense<0.000000e+00> : vector<4x256xf32>
    %275 = tpu.matmul %273, %274, %cst_108 {dimension_numbers = #tpu.dot_dimension_numbers<[1], [0], [0], [1], [0, 0, 1, 1], [], []>} : vector<4x256xbf16>, vector<256x256xbf16>, vector<4x256xf32> -> vector<4x256xf32>
    %276 = arith.addf %271, %275 : vector<4x256xf32>
    %277 = vector.extract_strided_slice %270 {offsets = [0, 1, 0], sizes = [2, 2, 256], strides = [1, 1, 1]} : vector<2x6x256xbf16> to vector<2x2x256xbf16>
    %278 = vector.shape_cast %277 : vector<2x2x256xbf16> to vector<4x256xbf16>
    %c256_109 = arith.constant 256 : index
    %c0_110 = arith.constant 0 : index
    %279 = vector.load %arg22[%c256_109, %c0_110] : memref<1280x256xbf16, #tpu.memory_space<vmem>>, vector<256x256xbf16>
    %cst_111 = arith.constant dense<0.000000e+00> : vector<4x256xf32>
    %280 = tpu.matmul %278, %279, %cst_111 {dimension_numbers = #tpu.dot_dimension_numbers<[1], [0], [0], [1], [0, 0, 1, 1], [], []>} : vector<4x256xbf16>, vector<256x256xbf16>, vector<4x256xf32> -> vector<4x256xf32>
    %281 = arith.addf %276, %280 : vector<4x256xf32>
    %282 = vector.extract_strided_slice %270 {offsets = [0, 2, 0], sizes = [2, 2, 256], strides = [1, 1, 1]} : vector<2x6x256xbf16> to vector<2x2x256xbf16>
    %283 = vector.shape_cast %282 : vector<2x2x256xbf16> to vector<4x256xbf16>
    %c512_112 = arith.constant 512 : index
    %c0_113 = arith.constant 0 : index
    %284 = vector.load %arg22[%c512_112, %c0_113] : memref<1280x256xbf16, #tpu.memory_space<vmem>>, vector<256x256xbf16>
    %cst_114 = arith.constant dense<0.000000e+00> : vector<4x256xf32>
    %285 = tpu.matmul %283, %284, %cst_114 {dimension_numbers = #tpu.dot_dimension_numbers<[1], [0], [0], [1], [0, 0, 1, 1], [], []>} : vector<4x256xbf16>, vector<256x256xbf16>, vector<4x256xf32> -> vector<4x256xf32>
    %286 = arith.addf %281, %285 : vector<4x256xf32>
    %287 = vector.extract_strided_slice %270 {offsets = [0, 3, 0], sizes = [2, 2, 256], strides = [1, 1, 1]} : vector<2x6x256xbf16> to vector<2x2x256xbf16>
    %288 = vector.shape_cast %287 : vector<2x2x256xbf16> to vector<4x256xbf16>
    %c768_115 = arith.constant 768 : index
    %c0_116 = arith.constant 0 : index
    %289 = vector.load %arg22[%c768_115, %c0_116] : memref<1280x256xbf16, #tpu.memory_space<vmem>>, vector<256x256xbf16>
    %cst_117 = arith.constant dense<0.000000e+00> : vector<4x256xf32>
    %290 = tpu.matmul %288, %289, %cst_117 {dimension_numbers = #tpu.dot_dimension_numbers<[1], [0], [0], [1], [0, 0, 1, 1], [], []>} : vector<4x256xbf16>, vector<256x256xbf16>, vector<4x256xf32> -> vector<4x256xf32>
    %291 = arith.addf %286, %290 : vector<4x256xf32>
    %292 = vector.extract_strided_slice %270 {offsets = [0, 4, 0], sizes = [2, 2, 256], strides = [1, 1, 1]} : vector<2x6x256xbf16> to vector<2x2x256xbf16>
    %293 = vector.shape_cast %292 : vector<2x2x256xbf16> to vector<4x256xbf16>
    %c1024_118 = arith.constant 1024 : index
    %c0_119 = arith.constant 0 : index
    %294 = vector.load %arg22[%c1024_118, %c0_119] : memref<1280x256xbf16, #tpu.memory_space<vmem>>, vector<256x256xbf16>
    %cst_120 = arith.constant dense<0.000000e+00> : vector<4x256xf32>
    %295 = tpu.matmul %293, %294, %cst_120 {dimension_numbers = #tpu.dot_dimension_numbers<[1], [0], [0], [1], [0, 0, 1, 1], [], []>} : vector<4x256xbf16>, vector<256x256xbf16>, vector<4x256xf32> -> vector<4x256xf32>
    %296 = arith.addf %291, %295 : vector<4x256xf32>
    %c0_121 = arith.constant 0 : index
    %c0_122 = arith.constant 0 : index
    %297 = vector.load %arg23[%c0_121, %c0_122] : memref<1x256xf32, #tpu.memory_space<vmem>>, vector<1x256xf32>
    %298 = vector.broadcast %297 : vector<1x256xf32> to vector<4x256xf32>
    %299 = arith.addf %296, %298 : vector<4x256xf32>
    %cst_123 = arith.constant 0.000000e+00 : f32
    %300 = vector.broadcast %cst_123 : f32 to vector<4x256xf32>
    %301 = arith.maximumf %299, %300 : vector<4x256xf32>
    %302 = vector.shape_cast %301 : vector<4x256xf32> to vector<2x2x256xf32>
    %cst_124 = arith.constant 0.000000e+00 : bf16
    %303 = vector.broadcast %cst_124 : bf16 to vector<2x2x256xbf16>
    %304 = arith.truncf %302 : vector<2x2x256xf32> to vector<2x2x256xbf16>
    %305 = tpu.concatenate %303, %304, %303 in 1 : vector<2x2x256xbf16>, vector<2x2x256xbf16>, vector<2x2x256xbf16> -> vector<2x6x256xbf16>
    %cst_125 = arith.constant 0.000000e+00 : f32
    %306 = vector.broadcast %cst_125 : f32 to vector<4x256xf32>
    %307 = vector.extract_strided_slice %305 {offsets = [0, 0, 0], sizes = [2, 2, 256], strides = [1, 1, 1]} : vector<2x6x256xbf16> to vector<2x2x256xbf16>
    %308 = vector.shape_cast %307 : vector<2x2x256xbf16> to vector<4x256xbf16>
    %c0_126 = arith.constant 0 : index
    %c0_127 = arith.constant 0 : index
    %309 = vector.load %arg24[%c0_126, %c0_127] : memref<1280x256xbf16, #tpu.memory_space<vmem>>, vector<256x256xbf16>
    %cst_128 = arith.constant dense<0.000000e+00> : vector<4x256xf32>
    %310 = tpu.matmul %308, %309, %cst_128 {dimension_numbers = #tpu.dot_dimension_numbers<[1], [0], [0], [1], [0, 0, 1, 1], [], []>} : vector<4x256xbf16>, vector<256x256xbf16>, vector<4x256xf32> -> vector<4x256xf32>
    %311 = arith.addf %306, %310 : vector<4x256xf32>
    %312 = vector.extract_strided_slice %305 {offsets = [0, 1, 0], sizes = [2, 2, 256], strides = [1, 1, 1]} : vector<2x6x256xbf16> to vector<2x2x256xbf16>
    %313 = vector.shape_cast %312 : vector<2x2x256xbf16> to vector<4x256xbf16>
    %c256_129 = arith.constant 256 : index
    %c0_130 = arith.constant 0 : index
    %314 = vector.load %arg24[%c256_129, %c0_130] : memref<1280x256xbf16, #tpu.memory_space<vmem>>, vector<256x256xbf16>
    %cst_131 = arith.constant dense<0.000000e+00> : vector<4x256xf32>
    %315 = tpu.matmul %313, %314, %cst_131 {dimension_numbers = #tpu.dot_dimension_numbers<[1], [0], [0], [1], [0, 0, 1, 1], [], []>} : vector<4x256xbf16>, vector<256x256xbf16>, vector<4x256xf32> -> vector<4x256xf32>
    %316 = arith.addf %311, %315 : vector<4x256xf32>
    %317 = vector.extract_strided_slice %305 {offsets = [0, 2, 0], sizes = [2, 2, 256], strides = [1, 1, 1]} : vector<2x6x256xbf16> to vector<2x2x256xbf16>
    %318 = vector.shape_cast %317 : vector<2x2x256xbf16> to vector<4x256xbf16>
    %c512_132 = arith.constant 512 : index
    %c0_133 = arith.constant 0 : index
    %319 = vector.load %arg24[%c512_132, %c0_133] : memref<1280x256xbf16, #tpu.memory_space<vmem>>, vector<256x256xbf16>
    %cst_134 = arith.constant dense<0.000000e+00> : vector<4x256xf32>
    %320 = tpu.matmul %318, %319, %cst_134 {dimension_numbers = #tpu.dot_dimension_numbers<[1], [0], [0], [1], [0, 0, 1, 1], [], []>} : vector<4x256xbf16>, vector<256x256xbf16>, vector<4x256xf32> -> vector<4x256xf32>
    %321 = arith.addf %316, %320 : vector<4x256xf32>
    %322 = vector.extract_strided_slice %305 {offsets = [0, 3, 0], sizes = [2, 2, 256], strides = [1, 1, 1]} : vector<2x6x256xbf16> to vector<2x2x256xbf16>
    %323 = vector.shape_cast %322 : vector<2x2x256xbf16> to vector<4x256xbf16>
    %c768_135 = arith.constant 768 : index
    %c0_136 = arith.constant 0 : index
    %324 = vector.load %arg24[%c768_135, %c0_136] : memref<1280x256xbf16, #tpu.memory_space<vmem>>, vector<256x256xbf16>
    %cst_137 = arith.constant dense<0.000000e+00> : vector<4x256xf32>
    %325 = tpu.matmul %323, %324, %cst_137 {dimension_numbers = #tpu.dot_dimension_numbers<[1], [0], [0], [1], [0, 0, 1, 1], [], []>} : vector<4x256xbf16>, vector<256x256xbf16>, vector<4x256xf32> -> vector<4x256xf32>
    %326 = arith.addf %321, %325 : vector<4x256xf32>
    %327 = vector.extract_strided_slice %305 {offsets = [0, 4, 0], sizes = [2, 2, 256], strides = [1, 1, 1]} : vector<2x6x256xbf16> to vector<2x2x256xbf16>
    %328 = vector.shape_cast %327 : vector<2x2x256xbf16> to vector<4x256xbf16>
    %c1024_138 = arith.constant 1024 : index
    %c0_139 = arith.constant 0 : index
    %329 = vector.load %arg24[%c1024_138, %c0_139] : memref<1280x256xbf16, #tpu.memory_space<vmem>>, vector<256x256xbf16>
    %cst_140 = arith.constant dense<0.000000e+00> : vector<4x256xf32>
    %330 = tpu.matmul %328, %329, %cst_140 {dimension_numbers = #tpu.dot_dimension_numbers<[1], [0], [0], [1], [0, 0, 1, 1], [], []>} : vector<4x256xbf16>, vector<256x256xbf16>, vector<4x256xf32> -> vector<4x256xf32>
    %331 = arith.addf %326, %330 : vector<4x256xf32>
    %c0_141 = arith.constant 0 : index
    %c0_142 = arith.constant 0 : index
    %332 = vector.load %arg25[%c0_141, %c0_142] : memref<1x256xf32, #tpu.memory_space<vmem>>, vector<1x256xf32>
    %333 = vector.broadcast %332 : vector<1x256xf32> to vector<4x256xf32>
    %334 = arith.addf %331, %333 : vector<4x256xf32>
    %cst_143 = arith.constant 0.000000e+00 : f32
    %335 = vector.broadcast %cst_143 : f32 to vector<4x256xf32>
    %336 = arith.maximumf %334, %335 : vector<4x256xf32>
    %337 = vector.shape_cast %336 : vector<4x256xf32> to vector<2x2x256xf32>
    %338 = tpu.concatenate %267, %337 in 2 : vector<2x2x256xf32>, vector<2x2x256xf32> -> vector<2x2x512xf32>
    %cst_144 = arith.constant dense<0.000000e+00> : vector<2x512xf32>
    %339 = vector.multi_reduction <add>, %338, %cst_144 [1] : vector<2x2x512xf32> to vector<2x512xf32>
    %cst_145 = arith.constant 2.000000e+00 : f32
    %340 = vector.broadcast %cst_145 : f32 to vector<2x512xf32>
    %341 = arith.divf %339, %340 : vector<2x512xf32>
    %cst_146 = arith.constant dense<0xFF800000> : vector<2x512xf32>
    %342 = vector.multi_reduction <maximumf>, %338, %cst_146 [1] : vector<2x2x512xf32> to vector<2x512xf32>
    %343 = arith.addf %341, %342 : vector<2x512xf32>
    %344 = arith.truncf %343 : vector<2x512xf32> to vector<2x512xbf16>
    %c0_147 = arith.constant 0 : index
    %c0_148 = arith.constant 0 : index
    %345 = vector.load %arg26[%c0_147, %c0_148] : memref<512x128xbf16, #tpu.memory_space<vmem>>, vector<512x128xbf16>
    %cst_149 = arith.constant dense<0.000000e+00> : vector<2x128xf32>
    %346 = tpu.matmul %344, %345, %cst_149 {dimension_numbers = #tpu.dot_dimension_numbers<[1], [0], [0], [1], [0, 0, 1, 1], [], []>} : vector<2x512xbf16>, vector<512x128xbf16>, vector<2x128xf32> -> vector<2x128xf32>
    %c0_150 = arith.constant 0 : index
    %c0_151 = arith.constant 0 : index
    %347 = vector.load %arg27[%c0_150, %c0_151] : memref<1x128xf32, #tpu.memory_space<vmem>>, vector<1x128xf32>
    %348 = vector.broadcast %347 : vector<1x128xf32> to vector<2x128xf32>
    %349 = arith.addf %346, %348 : vector<2x128xf32>
    %c0_152 = arith.constant 0 : index
    %c0_153 = arith.constant 0 : index
    %c0_154 = arith.constant 0 : index
    %350 = vector.load %arg28[%c0_152, %c0_153, %c0_154] : memref<1x2x128xf32, #tpu.memory_space<vmem>>, vector<1x2x128xf32>
    %351 = vector.shape_cast %350 : vector<1x2x128xf32> to vector<2x128xf32>
    %352 = vector.shape_cast %349 : vector<2x128xf32> to vector<1x2x128xf32>
    tpu.vector_store %arg28[%c0_152, %c0_153, %c0_154], %352 {strides = array<i32>} : memref<1x2x128xf32, #tpu.memory_space<vmem>>, vector<1x2x128xf32>,
    return
  }
  func.func @transform_0(%arg0: i32) -> (i32, i32, i32) {
    %c0_i32 = arith.constant 0 : i32
    %c0_i32_0 = arith.constant 0 : i32
    %c0_i32_1 = arith.constant 0 : i32
    return %arg0, %c0_i32, %c0_i32_0 : i32, i32, i32
  }
  func.func @transform_1(%arg0: i32) -> (i32, i32) {
    %c0_i32 = arith.constant 0 : i32
    %c0_i32_0 = arith.constant 0 : i32
    %c0_i32_1 = arith.constant 0 : i32
    return %c0_i32, %c0_i32_0 : i32, i32
  }
  func.func @transform_2(%arg0: i32) -> (i32, i32) {
    %c0_i32 = arith.constant 0 : i32
    %c0_i32_0 = arith.constant 0 : i32
    %c0_i32_1 = arith.constant 0 : i32
    return %c0_i32, %c0_i32_0 : i32, i32
  }
  func.func @transform_3(%arg0: i32) -> (i32, i32) {
    %c0_i32 = arith.constant 0 : i32
    %c0_i32_0 = arith.constant 0 : i32
    %c0_i32_1 = arith.constant 0 : i32
    return %c0_i32, %c0_i32_0 : i32, i32
  }
  func.func @transform_4(%arg0: i32) -> (i32, i32) {
    %c0_i32 = arith.constant 0 : i32
    %c0_i32_0 = arith.constant 0 : i32
    %c0_i32_1 = arith.constant 0 : i32
    return %c0_i32, %c0_i32_0 : i32, i32
  }
  func.func @transform_5(%arg0: i32) -> (i32, i32) {
    %c0_i32 = arith.constant 0 : i32
    %c0_i32_0 = arith.constant 0 : i32
    %c0_i32_1 = arith.constant 0 : i32
    return %c0_i32, %c0_i32_0 : i32, i32
  }
  func.func @transform_6(%arg0: i32) -> (i32, i32) {
    %c0_i32 = arith.constant 0 : i32
    %c0_i32_0 = arith.constant 0 : i32
    %c0_i32_1 = arith.constant 0 : i32
    return %c0_i32, %c0_i32_0 : i32, i32
  }
  func.func @transform_7(%arg0: i32) -> (i32, i32) {
    %c0_i32 = arith.constant 0 : i32
    %c0_i32_0 = arith.constant 0 : i32
    %c0_i32_1 = arith.constant 0 : i32
    return %c0_i32, %c0_i32_0 : i32, i32
  }
  func.func @transform_8(%arg0: i32) -> (i32, i32) {
    %c0_i32 = arith.constant 0 : i32
    %c0_i32_0 = arith.constant 0 : i32
    %c0_i32_1 = arith.constant 0 : i32
    return %c0_i32, %c0_i32_0 : i32, i32
  }
  func.func @transform_9(%arg0: i32) -> (i32, i32) {
    %c0_i32 = arith.constant 0 : i32
    %c0_i32_0 = arith.constant 0 : i32
    %c0_i32_1 = arith.constant 0 : i32
    return %c0_i32, %c0_i32_0 : i32, i32
  }
  func.func @transform_10(%arg0: i32) -> (i32, i32) {
    %c0_i32 = arith.constant 0 : i32
    %c0_i32_0 = arith.constant 0 : i32
    %c0_i32_1 = arith.constant 0 : i32
    return %c0_i32, %c0_i32_0 : i32, i32
  }
  func.func @transform_11(%arg0: i32) -> (i32, i32) {
    %c0_i32 = arith.constant 0 : i32
    %c0_i32_0 = arith.constant 0 : i32
    %c0_i32_1 = arith.constant 0 : i32
    return %c0_i32, %c0_i32_0 : i32, i32
  }
  func.func @transform_12(%arg0: i32) -> (i32, i32) {
    %c0_i32 = arith.constant 0 : i32
    %c0_i32_0 = arith.constant 0 : i32
    %c0_i32_1 = arith.constant 0 : i32
    return %c0_i32, %c0_i32_0 : i32, i32
  }
  func.func @transform_13(%arg0: i32) -> (i32, i32) {
    %c0_i32 = arith.constant 0 : i32
    %c0_i32_0 = arith.constant 0 : i32
    %c0_i32_1 = arith.constant 0 : i32
    return %c0_i32, %c0_i32_0 : i32, i32
  }
  func.func @transform_14(%arg0: i32) -> (i32, i32) {
    %c0_i32 = arith.constant 0 : i32
    %c0_i32_0 = arith.constant 0 : i32
    %c0_i32_1 = arith.constant 0 : i32
    return %c0_i32, %c0_i32_0 : i32, i32
  }
  func.func @transform_15(%arg0: i32) -> (i32, i32) {
    %c0_i32 = arith.constant 0 : i32
    %c0_i32_0 = arith.constant 0 : i32
    %c0_i32_1 = arith.constant 0 : i32
    return %c0_i32, %c0_i32_0 : i32, i32
  }
  func.func @transform_16(%arg0: i32) -> (i32, i32) {
    %c0_i32 = arith.constant 0 : i32
    %c0_i32_0 = arith.constant 0 : i32
    %c0_i32_1 = arith.constant 0 : i32
    return %c0_i32, %c0_i32_0 : i32, i32
  }
  func.func @transform_17(%arg0: i32) -> (i32, i32) {
    %c0_i32 = arith.constant 0 : i32
    %c0_i32_0 = arith.constant 0 : i32
    %c0_i32_1 = arith.constant 0 : i32
    return %c0_i32, %c0_i32_0 : i32, i32
  }
  func.func @transform_18(%arg0: i32) -> (i32, i32) {
    %c0_i32 = arith.constant 0 : i32
    %c0_i32_0 = arith.constant 0 : i32
    %c0_i32_1 = arith.constant 0 : i32
    return %c0_i32, %c0_i32_0 : i32, i32
  }
  func.func @transform_19(%arg0: i32) -> (i32, i32) {
    %c0_i32 = arith.constant 0 : i32
    %c0_i32_0 = arith.constant 0 : i32
    %c0_i32_1 = arith.constant 0 : i32
    return %c0_i32, %c0_i32_0 : i32, i32
  }
  func.func @transform_20(%arg0: i32) -> (i32, i32) {
    %c0_i32 = arith.constant 0 : i32
    %c0_i32_0 = arith.constant 0 : i32
    %c0_i32_1 = arith.constant 0 : i32
    return %c0_i32, %c0_i32_0 : i32, i32
  }
  func.func @transform_21(%arg0: i32) -> (i32, i32) {
    %c0_i32 = arith.constant 0 : i32
    %c0_i32_0 = arith.constant 0 : i32
    %c0_i32_1 = arith.constant 0 : i32
    return %c0_i32, %c0_i32_0 : i32, i32
  }
  func.func @transform_22(%arg0: i32) -> (i32, i32) {
    %c0_i32 = arith.constant 0 : i32
    %c0_i32_0 = arith.constant 0 : i32
    %c0_i32_1 = arith.constant 0 : i32
    return %c0_i32, %c0_i32_0 : i32, i32
  }
  func.func @transform_23(%arg0: i32) -> (i32, i32) {
    %c0_i32 = arith.constant 0 : i32
    %c0_i32_0 = arith.constant 0 : i32
    %c0_i32_1 = arith.constant 0 : i32
    return %c0_i32, %c0_i32_0 : i32, i32
  }
  func.func @transform_24(%arg0: i32) -> (i32, i32) {
    %c0_i32 = arith.constant 0 : i32
    %c0_i32_0 = arith.constant 0 : i32
    %c0_i32_1 = arith.constant 0 : i32
    return %c0_i32, %c0_i32_0 : i32, i32
  }
  func.func @transform_25(%arg0: i32) -> (i32, i32) {
    %c0_i32 = arith.constant 0 : i32
    %c0_i32_0 = arith.constant 0 : i32
    %c0_i32_1 = arith.constant 0 : i32
    return %c0_i32, %c0_i32_0 : i32, i32
  }
  func.func @transform_26(%arg0: i32) -> (i32, i32) {
    %c0_i32 = arith.constant 0 : i32
    %c0_i32_0 = arith.constant 0 : i32
    %c0_i32_1 = arith.constant 0 : i32
    return %c0_i32, %c0_i32_0 : i32, i32
  }
  func.func @transform_27(%arg0: i32) -> (i32, i32, i32) {
    %c0_i32 = arith.constant 0 : i32
    %c0_i32_0 = arith.constant 0 : i32
    %c0_i32_1 = arith.constant 0 : i32
    return %arg0, %c0_i32, %c0_i32_0 : i32, i32, i32
  }
}

</mosaic_0001>

<bundles_post_ra>
// kernel: cnn_embedding_forward.1
= control target key start
LH: loop header
LB: loop body
LE: loop exit
PB: predicated region body
PF: predicated region fallthrough
CT: control target
= control target key end

     0   :  { %s18673_s0 = inlined_call_operand.vmem [shape: f32[8,4,32], index: 0, kind: input, shape index: {}]   ;;  %s18674_s1 = inlined_call_operand.vmem [shape: bf16[20,32], index: 1, kind: input, shape index: {}]   ;;  %s18675_s2 = inlined_call_operand.vmem [shape: f32[1,32], index: 2, kind: input, shape index: {}]   ;;  %s18676_s3 = inlined_call_operand.vmem [shape: bf16[160,32], index: 3, kind: input, shape index: {}]   ;;  %s18677_s4 = inlined_call_operand.vmem [shape: f32[1,32], index: 4, kind: input, shape index: {}]   ;;  %s18678_s5 = inlined_call_operand.vmem [shape: bf16[160,32], index: 5, kind: input, shape index: {}]   ;;  %s18679_s6 = inlined_call_operand.vmem [shape: f32[1,32], index: 6, kind: input, shape index: {}]   ;;  %s18680_s7 = inlined_call_operand.vmem [shape: bf16[160,32], index: 7, kind: input, shape index: {}]   ;;  %s18681_s8 = inlined_call_operand.vmem [shape: f32[1,32], index: 8, kind: input, shape index: {}]   ;;  %s18682_s9 = inlined_call_operand.vmem [shape: bf16[704,32], index: 9, kind: input, shape index: {}]   ;;  %s18683_s10 = inlined_call_operand.vmem [shape: f32[1,32], index: 10, kind: input, shape index: {}]   ;;  %s18684_s11 = inlined_call_operand.vmem [shape: bf16[352,32], index: 11, kind: input, shape index: {}]   ;;  %s18685_s12 = inlined_call_operand.vmem [shape: f32[1,32], index: 12, kind: input, shape index: {}]   ;;  %s18686_s13 = inlined_call_operand.vmem [shape: bf16[224,64], index: 13, kind: input, shape index: {}]   ;;  %s18687_s14 = inlined_call_operand.vmem [shape: f32[1,64], index: 14, kind: input, shape index: {}]   ;;  %s18688_s15 = inlined_call_operand.vmem [shape: bf16[448,64], index: 15, kind: input, shape index: {}]   ;;  %s18689_s16 = inlined_call_operand.vmem [shape: f32[1,64], index: 16, kind: input, shape index: {}]   ;;  %s18690_s17 = inlined_call_operand.vmem [shape: bf16[672,256], index: 17, kind: input, shape index: {}]   ;;  %s18691_s18 = inlined_call_operand.vmem [shape: f32[1,256], index: 18, kind: input, shape index: {}]   ;;  %s18692_s19 = inlined_call_operand.vmem [shape: bf16[1792,256], index: 19, kind: input, shape index: {}]   ;;  %s18693_s20 = inlined_call_operand.vmem [shape: f32[1,256], index: 20, kind: input, shape index: {}]   ;;  %s18694_s21 = inlined_call_operand.vmem [shape: bf16[1280,256], index: 21, kind: input, shape index: {}]   ;;  %s18695_s22 = inlined_call_operand.vmem [shape: f32[1,256], index: 22, kind: input, shape index: {}]   ;;  %s18696_s23 = inlined_call_operand.vmem [shape: bf16[1280,256], index: 23, kind: input, shape index: {}]   ;;  %s18697_s24 = inlined_call_operand.vmem [shape: f32[1,256], index: 24, kind: input, shape index: {}]   ;;  %s18698_s25 = inlined_call_operand.vmem [shape: bf16[512,128], index: 25, kind: input, shape index: {}]   ;;  %s18699_s26 = inlined_call_operand.vmem [shape: f32[1,128], index: 26, kind: input, shape index: {}]   ;;  %s18700_s27 = inlined_call_operand.hbm [shape: f32[4,2,128], index: 27, kind: output, shape index: {}]  }
   0x1   :  { %18734 = sst [smem:[#allocation12_spill]] %s18673_s0 }
   0x2   :  { %18735 = sst [smem:[#allocation13_spill]] %s18674_s1 }
   0x3   :  { %18736 = sst [smem:[#allocation14_spill]] %s18675_s2 }
   0x4   :  { %18737 = sst [smem:[#allocation15_spill]] %s18676_s3 }
   0x5   :  { %18738 = sst [smem:[#allocation16_spill]] %s18677_s4 }
   0x6   :  { %18739 = sst [smem:[#allocation17_spill]] %s18678_s5 }
   0x7   :  { %18740 = sst [smem:[#allocation18_spill]] %s18679_s6 }
   0x8   :  { %18741 = sst [smem:[#allocation19_spill]] %s18680_s7 }
   0x9   :  { %18742 = sst [smem:[#allocation20_spill]] %s18681_s8 }
   0xa   :  { %18743 = sst [smem:[#allocation21_spill]] %s18682_s9 }
   0xb   :  { %18744 = sst [smem:[#allocation22_spill]] %s18683_s10 }
   0xc   :  { %18745 = sst [smem:[#allocation23_spill]] %s18684_s11 }
   0xd   :  { %18746 = sst [smem:[#allocation24_spill]] %s18700_s27 }
   0xe   :  { %32 = vsyncpa [#allocation3], 0 }
   0xf   :  { %34 = vsyncpa [#allocation3 + $0x1], 0  ;;  %s14510_s7 = smov 0   ;;  %s14512_s4 = smov 0  }
  0x10   :  { %s14514_s8 = smov 0   ;;  %s14516_s30 = smov 0  }
  0x11 LB: > { %18747 = sst [smem:[#allocation5_spill]] %s14343_s7  ;;  %s14531_s9 = sadd.s32 4294967295, %s14355_s30   ;;  %s14355_s30 = sphi %s14516_s30, %s18835_s30   ;;  %s14351_s8 = sphi %s14514_s8, %s18837_s8   ;;  %s14347_s4 = sphi %s14512_s4, %s18839_s4   ;;  %s14343_s7 = sphi %s14510_s7, %s18838_s7  }
  0x12   : > { %18748 = sst [smem:[#allocation6_spill]] %s14351_s8  ;;  %s12068_s5 = sadd.s32 4294967294, %s14355_s30  }
  0x13   : > { %18749 = sst [smem:[#allocation7_spill]] %s14355_s30  ;;  %s14535_s28 = sadd.s32 1, %s14355_s30  }
  0x14   : > { %18750 = sst [smem:[#allocation8_spill]] %s14535_s28  ;;  %s619_s0 = sadd.s32 1, %s14351_s8 }
  0x15   : > { %s616_s10 = ssub.s32 %s14355_s30, %s14535_s28  ;;  %p629_p0 = scmp.ne.s32.totalorder %s14351_s8, %s14347_s4 }
  0x16   : > { %p617_p1 = scmp.eq.s32.totalorder %s616_s10, 0  ;;  %p630_p2 = scmp.eq.s32.totalorder %s14531_s9, 3 }
  0x17   : > { %p635_p3 = scmp.ne.s32.totalorder %s14347_s4, %s14343_s7  ;;  %p636_p4 = scmp.eq.s32.totalorder %s12068_s5, 3 }
  0x18   : > { %s14546_s29 = scalar_select %p617_p1, %s14351_s8, %s619_s0  }
  0x19   : > { %p14548_p5 = por %p630_p2, %p629_p0  ;;  %p14552_p6 = por %p636_p4, %p635_p3 }
  0x1a   : > { %18751 = sst [smem:[#allocation9_spill]] %s14546_s29  ;;  %p12071_p7 = scmp.ge.s32.totalorder %s14355_s30, 1 }
  0x1b   : > { %s18752_s1 = scalar_select %p14548_p5, 1, 0 }
  0x1c   : > { %s18754_s6 = scalar_select %p14552_p6, 1, 0 }
  0x1d   : > { %18753 = sst [smem:[#allocation10_spill]] %s18752_s1  ;;  %p741_p8 = scmp.lt.s32.totalorder %s14355_s30, 5 }
  0x1e   : > { %18755 = sst [smem:[#allocation11_spill]] %s18754_s6 }
  0x1f   : > { %p742_p9 = pnand %p12071_p7, %p741_p8 }
  0x20   : > { %s12073_s11 = sshll.u32 (!%p742_p9), %s14531_s9, 1  ;;  %s18756_s0 = sld [smem:[#allocation12_spill]] (!%p742_p9) }
  0x21   : > { %745 = sbr.rel (%p742_p9) target bundleno = 5112 (0x13f8), region = 128  ;;  %p814_p10 = scmp.lt.s32.totalorder (!%p742_p9), %s12073_s11, 7 }
  0x22   : > { %s18757_s5 = sld [smem:[#allocation13_spill]] (!%p742_p9)  ;;  %s14360_s29 = smov (!%p742_p9), 16  }
  0x23   : > { %s18760_s3 = sld [smem:[#allocation17_spill]] (!%p742_p9)  ;;  %s18762_s8 = smov (!%p742_p9), 64  }
  0x24   : > { %s18774_s28 = sld [smem:[#allocation18_spill]] (!%p742_p9)  ;;  %s12953_s6 = sshll.u32 (!%p742_p9), %s14531_s9, 5 }
  0x25   : > { %s14369_s9 = smov (!%p742_p9), [#allocation2]  }
  0x26   : > { %s18841_s11 = smov (!%p814_p10, %s12073_s11), 7  ;;  %vm18725_vm0 = vcmask 1040384   ;;  %vm960_vm1 = vcmask 1046528   ;;  %vm979_vm2 = vsmask.f32 6400  ;;  %vm18720_vm3 = vcmask 1041408  }
  0x27   : > { %s12074_s2 = sshll.u32 %s18841_s11, 2  ;;  %s14357_s11 = smov 8   ;;  %vm911_vm4 = vsmask.f32 7424  ;;  %vm18727_vm5 = vcmask 1045504   ;;  %vm1033_vm6 = vcmask 31744  }
  0x28   : > { %s817_s10 = scalar_lea.vmem %s18756_s0, %s12074_s2  ;;  %v13181_v35 = vld [vmem:[%s18757_s5 + $0x8] ss:$0 sps:$4 sm:$0x33]   ;;  %s14358_s0 = smov 12   ;;  %v13182_v40 = vld [vmem:[%s18757_s5] sm:$0xff]   ;;  %vm1042_vm7 = vcmask 64512  }
  0x29   : > { %v820_v0 = vld [vmem:[%s817_s10] sm:$0xf]  ;;  %v821_v1 = vld [vmem:[%s817_s10 + $0x4] sm:$0xf]  ;;  %13129 = vmatprep.subr.msk.bf16.mxu0 %vm18720_vm3, %v13181_v35  ;;  %v1099_v39 = vsel %vm18720_vm3, %v13181_v35, 0  ;;  %s14359_s2 = smov 4  }
  0x2a   : > { %822 = vxpose.xlu0.b32.start.end [1/1] (short) (narrow) %v820_v0, 32  ;;  %13102 = vmatpush3.bf16.msra.mxu0 %v1099_v39  ;;  %vm1060_vm8 = vcmask 130048   ;;  %vm1051_vm9 = vcmask 97280   ;;  %vm1088_vm10 = vcmask 162816   ;;  %s18759_s5 = sld [smem:[#allocation14_spill]]  ;;  %vm1306_vm11 = vcmask 261120  }
  0x2b   : > { %13103 = vmatprep.subr.bf16.mxu0 %v13182_v40  ;;  %s18713_s10 = smov 64   ;;  %vm1315_vm12 = vcmask 523264   ;;  %vm1324_vm13 = vcmask 785408   ;;  %vm18726_vm14 = vcmask 254976   ;;  %vm3006_vm15 = vcmask 1041409  }
  0x2c   : > { %vm3018_vm3 = vcmask 1047559  }
  0x2e   : > { %13104 = vmatpush3.bf16.msra.mxu0 %v13182_v40 }
  0x37   : > { %854 = vxpose.xlu0.b32.start.end [1/1] (short) (narrow) %v821_v1, 32 }
  0xa6   : > { %v838_v2 = vpop.trf.xlu0 }
  0xaa   : > { %v839_v3 = vpop.trf.xlu0 }
  0xab   : > { %v886_v4 = vpack.c.bf16 %v839_v3, %v838_v2 }
  0xad   : > { %v895_v6 = vrot.slane %v886_v4, 7 }
  0xae   : > { %v840_v5 = vpop.trf.xlu0 }
  0xaf   : > { %v14563_v9 = vsel %vm18725_vm0, 0, %v895_v6 }
  0xb0   : > { %v914_v12 = vshll.u32 %v14563_v9, 16  ;;  %v961_v17 = vrot.slane %v14563_v9, 1  ;;  %v912_v31 = vshrl.u32 %v14563_v9, 16  ;;  %v1015_v57 = vrot.slane %v14563_v9, 2 }
  0xb2   : > { %v841_v7 = vpop.trf.xlu0  ;;  %v916_v29 = vrot.slane %v914_v12, 1  ;;  %v980_v46 = vrot.slane %v912_v31, 1  ;;  %v981_v47 = vrot.slane %v914_v12, 2 }
  0xb3   : > { %v887_v8 = vpack.c.bf16 %v841_v7, %v840_v5 }
  0xb4   : > { %v917_v37 = vor.u32 %v916_v29, %v912_v31  ;;  %v982_v51 = vor.u32 %v981_v47, %v980_v46 }
  0xb5   : > { %v896_v10 = vrot.slane %v887_v8, 7 }
  0xb6   : > { %v870_v11 = vpop.trf.xlu0 }
  0xb7   : > { %v14567_v13 = vsel %vm18725_vm0, %v895_v6, %v896_v10  ;;  %v14570_v14 = vsel %vm18725_vm0, %v896_v10, 0 }
  0xb8   : > { %v926_v15 = vshll.u32 %v14570_v14, 16  ;;  %v987_v16 = vshrl.u32 %v14570_v14, 16  ;;  %v962_v18 = vrot.slane %v14567_v13, 1  ;;  %v919_v19 = vshll.u32 %v14567_v13, 16 }
  0xb9   : > { %v923_v20 = vshrl.u32 %v14567_v13, 16  ;;  %v964_v24 = vrot.slane %v14570_v14, 1  ;;  %v1016_v54 = vrot.slane %v14567_v13, 2  ;;  %v1018_v59 = vrot.slane %v14570_v14, 2 }
  0xba   : > { %v989_v21 = vrot.slane %v987_v16, 1  ;;  %v871_v22 = vpop.trf.xlu0  ;;  %v963_v23 = vsel %vm960_vm1, %v961_v17, %v962_v18  ;;  %v990_v25 = vrot.slane %v926_v15, 2  ;;  %v984_v27 = vrot.slane %v919_v19, 2 }
  0xbb   : > { %971 = vrot.lane.b32.xlu1 %v963_v23, %s14357_s11  ;;  %v983_v26 = vrot.slane %v923_v20, 1  ;;  %v965_v33 = vsel %vm960_vm1, %v962_v18, %v964_v24  ;;  %v921_v34 = vrot.slane %v919_v19, 1  ;;  %v888_v38 = vpack.c.bf16 %v871_v22, %v870_v11 }
  0xbc   : > { %v991_v28 = vor.u32 %v990_v25, %v989_v21  ;;  %v928_v45 = vrot.slane %v926_v15, 1  ;;  %v1017_v58 = vsel %vm18727_vm5, %v1015_v57, %v1016_v54  ;;  %v1019_v63 = vsel %vm18727_vm5, %v1016_v54, %v1018_v59 }
  0xbd   : > { %v985_v30 = vor.u32 %v984_v27, %v983_v26  ;;  %v922_v42 = vsel %vm911_vm4, %v917_v37, %v921_v34  ;;  %v925_v43 = vor.u32 %v923_v20, %v921_v34  ;;  %v898_v48 = vrot.slane %v888_v38, 7 }
  0xbe   : > { %v872_v32 = vpop.trf.xlu0 }
  0xbf   : > { %973 = vrot.lane.b32.xlu1 %v965_v33, %s14357_s11  ;;  %v992_v36 = vsel %vm979_vm2, %v985_v30, %v991_v28  ;;  %v929_v49 = vsel %vm911_vm4, %v925_v43, %v928_v45  ;;  %v14599_v52 = vsel %vm18725_vm0, 0, %v898_v48  ;;  %v986_v53 = vsel %vm979_vm2, %v982_v51, %v985_v30 }
  0xc0   : > { %1008 = vrot.lane.b32.xlu0 %v992_v36, %s14358_s0  ;;  %v932_v56 = vshll.u32 %v14599_v52, 16  ;;  %v930_v61 = vshrl.u32 %v14599_v52, 16  ;;  %v966_v5 = vrot.slane %v14599_v52, 1  ;;  %v1020_v14 = vrot.slane %v14599_v52, 2 }
  0xc2   : > { %v873_v41 = vpop.trf.xlu0  ;;  %v934_v62 = vrot.slane %v932_v56, 1  ;;  %v993_v21 = vrot.slane %v930_v61, 1  ;;  %v994_v22 = vrot.slane %v932_v56, 2 }
  0xc3   : > { %v889_v44 = vpack.c.bf16 %v873_v41, %v872_v32  ;;  %948 = vrot.lane.b32.xlu1 %v922_v42, %s14359_s2 }
  0xc4   : > { %v935_v1 = vor.u32 %v934_v62, %v930_v61  ;;  %v995_v27 = vor.u32 %v994_v22, %v993_v21 }
  0xc5   : > { %v899_v50 = vrot.slane %v889_v44, 7 }
  0xc7   : > { %950 = vrot.lane.b32.xlu1 %v929_v49, %s14359_s2  ;;  %v14604_v55 = vsel %vm18725_vm0, %v898_v48, %v899_v50  ;;  %v910_v4 = vsel %vm18725_vm0, %v899_v50, 0 }
  0xc8   : > { %v937_v60 = vshll.u32 %v14604_v55, 16  ;;  %v967_v3 = vrot.slane %v14604_v55, 1  ;;  %v969_v7 = vrot.slane %v910_v4, 1  ;;  %v1021_v10 = vrot.slane %v14604_v55, 2 }
  0xc9   : > { %v941_v11 = vshrl.u32 %v14604_v55, 16  ;;  %v944_v12 = vshll.u32 %v910_v4, 16  ;;  %v1000_v15 = vshrl.u32 %v910_v4, 16  ;;  %v1023_v31 = vrot.slane %v910_v4, 2 }
  0xca   : > { %v939_v0 = vrot.slane %v937_v60, 1  ;;  %v968_v6 = vsel %vm960_vm1, %v966_v5, %v967_v3  ;;  %v970_v8 = vsel %vm960_vm1, %v967_v3, %v969_v7  ;;  %v1022_v17 = vsel %vm18727_vm5, %v1020_v14, %v1021_v10 }
  0xcb   : > { %1006 = vrot.lane.b32.xlu1 %v986_v53, %s14358_s0  ;;  %v946_v16 = vrot.slane %v944_v12, 1  ;;  %v996_v19 = vrot.slane %v941_v11, 1  ;;  %v997_v20 = vrot.slane %v937_v60, 2  ;;  %v1002_v23 = vrot.slane %v1000_v15, 1 }
  0xcc   : > { %v940_v2 = vsel %vm911_vm4, %v935_v1, %v939_v0  ;;  %v943_v18 = vor.u32 %v941_v11, %v939_v0  ;;  %v1003_v26 = vrot.slane %v944_v12, 2  ;;  %v1024_v32 = vsel %vm18727_vm5, %v1021_v10, %v1023_v31  ;;  %v14699_v10 = vld [vmem:[%s18759_s5] ss:$0 sm:$0xff]  ;;  %s18709_s5 = smov 96  }
  0xcd   : > { %v998_v25 = vor.u32 %v997_v20, %v996_v19  ;;  %v18718_v1 = vmov 0  }
  0xce   : > { %v947_v24 = vsel %vm911_vm4, %v943_v18, %v946_v16  ;;  %v1004_v29 = vor.u32 %v1003_v26, %v1002_v23  ;;  %1436 = vmatprep.subr.bf16.mxu1 %v18718_v1  ;;  %1768 = vmatprep.subr.bf16.mxu0 %v18718_v1 }
  0xcf   : > { %1025 = vrot.lane.b32.xlu1 %v1017_v58, %s14360_s29  ;;  %v999_v28 = vsel %vm979_vm2, %v995_v27, %v998_v25 }
  0xd0   : > { %v1005_v30 = vsel %vm979_vm2, %v998_v25, %v1004_v29 }
  0xd3   : > { %1027 = vrot.lane.b32.xlu1 %v1019_v63, %s14360_s29 }
  0xd7   : > { %952 = vrot.lane.b32.xlu1 %v940_v2, %s14359_s2 }
  0xdb   : > { %975 = vrot.lane.b32.xlu1 %v968_v6, %s14357_s11 }
  0xdf   : > { %977 = vrot.lane.b32.xlu1 %v970_v8, %s14357_s11  ;;  %s18761_s11 = sld [smem:[#allocation16_spill]] }
  0xe3   : > { %1029 = vrot.lane.b32.xlu1 %v1022_v17, %s14360_s29 }
  0xe7   : > { %954 = vrot.lane.b32.xlu1 %v947_v24, %s14359_s2  ;;  %s18711_s2 = smov 32  }
  0xeb   : > { %1010 = vrot.lane.b32.xlu1 %v999_v28, %s14358_s0 }
  0xef   : > { %1012 = vrot.lane.b32.xlu1 %v1005_v30, %s14358_s0  ;;  %s18758_s0 = sld [smem:[#allocation15_spill]] }
  0xf3   : > { %1031 = vrot.lane.b32.xlu1 %v1024_v32, %s14360_s29  ;;  %s18763_s29 = smov 32  }
  0xf5   : > { %v13183_v0 = vld [vmem:[%s18758_s0 + $0x38] sm:$0xff]   ;;  %v13185_v2 = vld [vmem:[%s18758_s0 + $0x28] sm:$0xff]   ;;  %v13186_v3 = vld [vmem:[%s18758_s0 + $0x20] sm:$0xff]  }
  0xf6   : > { %1437 = vmatpush1.bf16.msra.mxu1 %v13183_v0  ;;  %v13187_v4 = vld [vmem:[%s18758_s0 + $0x18] sm:$0xff]   ;;  %v13188_v5 = vld [vmem:[%s18758_s0 + $0x10] sm:$0xff]   ;;  %v13189_v6 = vld [vmem:[%s18758_s0 + $0x8] sm:$0xff]  }
  0xf7   : > { %1438 = vmatprep.subr.bf16.mxu1 %v18718_v1  ;;  %v13190_v7 = vld [vmem:[%s18758_s0] sm:$0xff]   ;;  %v13191_v17 = vld [vmem:[%s18758_s0 + $0x48] sm:$0xff]  }
  0xf8   : > { %v13192_v27 = vld [vmem:[%s18758_s0 + $0x40] sm:$0xff]  }
 0x12d   : > { %v972_v33 = vpop.permute.xlu1 %971 }
 0x131   : > { %v974_v34 = vpop.permute.xlu1 %973 }
 0x135   : > { %v949_v35 = vpop.permute.xlu1 %948 }
 0x136   : > { %v1035_v37 = vsel %vm1033_vm6, %v14563_v9, %v949_v35  ;;  %v1009_v9 = vpop.permute.xlu0 %1008 }
 0x137   : > { %v1044_v40 = vsel %vm1042_vm7, %v1035_v37, %v972_v33 }
 0x139   : > { %v951_v36 = vpop.permute.xlu1 %950 }
 0x13a   : > { %v1037_v39 = vsel %vm1033_vm6, %v14567_v13, %v951_v36 }
 0x13b   : > { %v1046_v43 = vsel %vm1042_vm7, %v1037_v39, %v974_v34 }
 0x13c   : > { %v1055_v46 = vsel %vm1051_vm9, %v1046_v43, %v1009_v9 }
 0x13d   : > { %v1007_v38 = vpop.permute.xlu1 %1006 }
 0x13e   : > { %v1053_v41 = vsel %vm1051_vm9, %v1044_v40, %v1007_v38 }
 0x141   : > { %v1026_v42 = vpop.permute.xlu1 %1025 }
 0x142   : > { %v1062_v44 = vsel %vm1060_vm8, %v1053_v41, %v1026_v42 }
 0x143   : > { %13105 = vmatprep.mubr.msk.bf16.mxu0 %vm1088_vm10, %v1062_v44 }
 0x145   : > { %v1028_v45 = vpop.permute.xlu1 %1027 }
 0x146   : > { %v1064_v13 = vsel %vm1060_vm8, %v1055_v46, %v1028_v45 }
 0x147   : > { %13106 = vmatmul.mubr.msk.bf16.vlgmr.msra.gmra.mxu0 %vm1088_vm10, %v1064_v13 }
 0x149   : > { %v953_v47 = vpop.permute.xlu1 %952 }
 0x14a   : > { %v1039_v53 = vsel %vm1033_vm6, %v14599_v52, %v953_v47 }
 0x14d   : > { %v976_v48 = vpop.permute.xlu1 %975 }
 0x14e   : > { %v1048_v54 = vsel %vm1042_vm7, %v1039_v53, %v976_v48 }
 0x151   : > { %v978_v49 = vpop.permute.xlu1 %977 }
 0x155   : > { %v1030_v50 = vpop.permute.xlu1 %1029 }
 0x159   : > { %v955_v51 = vpop.permute.xlu1 %954 }
 0x15a   : > { %v1041_v59 = vsel %vm1033_vm6, %v14604_v55, %v955_v51  ;;  %v13184_v55 = vld [vmem:[%s18758_s0 + $0x30] sm:$0xff]   ;;  %vm3008_vm6 = vcmask 1042434   ;;  %s18831_s0 = sld [smem:[#allocation24_spill]] }
 0x15b   : > { %v1050_v61 = vsel %vm1042_vm7, %v1041_v59, %v978_v49  ;;  %1439 = vmatpush1.bf16.msra.mxu1 %v13184_v55  ;;  %vm3010_vm7 = vcmask 1043459  }
 0x15c   : > { %1440 = vmatprep.subr.bf16.mxu1 %v18718_v1 }
 0x15d   : > { %v1011_v56 = vpop.permute.xlu1 %1010 }
 0x15e   : > { %v1057_v57 = vsel %vm1051_vm9, %v1048_v54, %v1011_v56 }
 0x15f   : > { %v1066_v58 = vsel %vm1060_vm8, %v1057_v57, %v1030_v50  ;;  %1441 = vmatpush1.bf16.msra.mxu1 %v13185_v2 }
 0x160   : > { %13109 = vmatprep.mubr.msk.bf16.mxu0 %vm1088_vm10, %v1066_v58  ;;  %1442 = vmatprep.subr.bf16.mxu1 %v18718_v1 }
 0x161   : > { %v1013_v60 = vpop.permute.xlu1 %1012 }
 0x162   : > { %v1059_v62 = vsel %vm1051_vm9, %v1050_v61, %v1013_v60  ;;  %vm3014_vm9 = vcmask 1045509  }
 0x163   : > { %1443 = vmatpush1.bf16.msra.mxu1 %v13186_v3 }
 0x164   : > { %1444 = vmatprep.subr.bf16.mxu1 %v18718_v1 }
 0x165   : > { %v1032_v63 = vpop.permute.xlu1 %1031 }
 0x166   : > { %v1068_v52 = vsel %vm1060_vm8, %v1059_v62, %v1032_v63  ;;  %vm3012_vm8 = vcmask 1044484  }
 0x167   : > { %13110 = vmatmul.mubr.msk.bf16.gmra.mxu0 %vm1088_vm10, %v1068_v52  ;;  %1445 = vmatpush1.bf16.msra.mxu1 %v13187_v4  ;;  %vm3016_vm10 = vcmask 1046534  }
 0x168   : > { %1446 = vmatprep.subr.bf16.mxu1 %v18718_v1 }
 0x16b   : > { %1447 = vmatpush1.bf16.msra.mxu1 %v13188_v5 }
 0x16c   : > { %1448 = vmatprep.subr.bf16.mxu1 %v18718_v1 }
 0x16f   : > { %1449 = vmatpush1.bf16.msra.mxu1 %v13189_v6 }
 0x170   : > { %1450 = vmatprep.subr.bf16.mxu1 %v18718_v1 }
 0x173   : > { %1451 = vmatpush1.bf16.msra.mxu1 %v13190_v7 }
 0x174   : > { %1464 = vmatprep.subr.bf16.mxu1 %v18718_v1 }
 0x177   : > { %1465 = vmatpush2.bf16.msra.mxu1 %v13191_v17 }
 0x178   : > { %1466 = vmatprep.subr.bf16.mxu1 %v18718_v1 }
 0x17b   : > { %1467 = vmatpush2.bf16.msra.mxu1 %v13192_v27 }
 0x17c   : > { %2100 = vmatprep.subr.bf16.mxu1 %v18718_v1 }
 0x207   : > { %v13107_v8 = vpop.f32.mrf.mxu0 }
 0x208   : > { %v1144_v12 = vadd.f32 %v13107_v8, %v14699_v10 }
 0x209   : > { %v1135_v11 = vpop.f32.mrf.mxu0 }
 0x20a   : > { %v1136_v15 = vadd.f32 %v14699_v10, %v1135_v11  ;;  %v1168_v19 = vmax.f32 %v1144_v12, 0.0 }
 0x20b   : > { %v13108_v14 = vpop.f32.mrf.mxu0 }
 0x20c   : > { %v1147_v16 = vadd.f32 %v13108_v14, %v14699_v10  ;;  %v1166_v22 = vmax.f32 %v1136_v15, 0.0 }
 0x20d   : > { %v1138_v18 = vpop.f32.mrf.mxu0 }
 0x20e   : > { %v1169_v20 = vmax.f32 %v1147_v16, 0.0  ;;  %v1139_v21 = vadd.f32 %v14699_v10, %v1138_v18 }
 0x210   : > { %v1175_v23 = vpack.c.bf16 %v1169_v20, %v1168_v19  ;;  %v1167_v24 = vmax.f32 %v1139_v21, 0.0 }
 0x212   : > { %v1183_v25 = vrot.slane %v1175_v23, 7  ;;  %v1174_v26 = vpack.c.bf16 %v1167_v24, %v1166_v22 }
 0x214   : > { %v1193_v28 = vsel %vm18725_vm0, %v1183_v25, 0  ;;  %v1182_v29 = vrot.slane %v1174_v26, 7 }
 0x215   : > { %v1210_v32 = vshll.u32 %v1193_v28, 16  ;;  %v1269_v40 = vshrl.u32 %v1193_v28, 16  ;;  %v1299_v46 = vrot.slane %v1193_v28, 2  ;;  %v1247_v52 = vrot.slane %v1193_v28, 1 }
 0x216   : > { %v14714_v30 = vsel %vm18725_vm0, %v1182_v29, %v1183_v25  ;;  %v14717_v31 = vsel %vm18725_vm0, 0, %v1182_v29 }
 0x217   : > { %v1296_v33 = vrot.slane %v14717_v31, 2  ;;  %v1297_v34 = vrot.slane %v14714_v30, 2  ;;  %v1244_v35 = vrot.slane %v14717_v31, 1  ;;  %v1245_v36 = vrot.slane %v14714_v30, 1 }
 0x218   : > { %v1203_v37 = vshll.u32 %v14714_v30, 16  ;;  %v1207_v38 = vshrl.u32 %v14714_v30, 16  ;;  %v1196_v39 = vshrl.u32 %v14717_v31, 16  ;;  %v1198_v43 = vshll.u32 %v14717_v31, 16 }
 0x219   : > { %v1298_v41 = vsel %vm18727_vm5, %v1296_v33, %v1297_v34  ;;  %v1246_v42 = vsel %vm960_vm1, %v1244_v35, %v1245_v36  ;;  %v1212_v13 = vrot.slane %v1210_v32, 1  ;;  %v1271_v51 = vrot.slane %v1269_v40, 1 }
 0x21a   : > { %12093 = vmatprep.mubr.msk.bf16.mxu1 %vm1306_vm11, %v1298_v41  ;;  %1254 = vrot.lane.b32.xlu1 %v1246_v42, %s18713_s10  ;;  %v1205_v44 = vrot.slane %v1203_v37, 1  ;;  %v1265_v9 = vrot.slane %v1207_v38, 1  ;;  %v1266_v45 = vrot.slane %v1203_v37, 2  ;;  %v1200_v47 = vrot.slane %v1198_v43, 1 }
 0x21b   : > { %v1262_v48 = vrot.slane %v1196_v39, 1  ;;  %v1263_v49 = vrot.slane %v1198_v43, 2  ;;  %v1272_v53 = vrot.slane %v1210_v32, 2  ;;  %v14733_v54 = vsel %vm18727_vm5, %v1297_v34, %v1299_v46 }
 0x21c   : > { %v1209_v50 = vor.u32 %v1207_v38, %v1205_v44  ;;  %v1201_v56 = vor.u32 %v1200_v47, %v1196_v39  ;;  %v1267_v58 = vor.u32 %v1266_v45, %v1265_v9  ;;  %v1248_v0 = vsel %vm960_vm1, %v1245_v36, %v1247_v52 }
 0x21d   : > { %v1264_v60 = vor.u32 %v1263_v49, %v1262_v48  ;;  %v1273_v61 = vor.u32 %v1272_v53, %v1271_v51 }
 0x21e   : > { %v1213_v57 = vsel %vm911_vm4, %v1209_v50, %v1212_v13  ;;  %v1206_v59 = vsel %vm911_vm4, %v1201_v56, %v1205_v44 }
 0x21f   : > { %1234 = vrot.lane.b32.xlu0 %v1213_v57, %s18711_s2  ;;  %1232 = vrot.lane.b32.xlu1 %v1206_v59, %s18711_s2  ;;  %v1274_v62 = vsel %vm979_vm2, %v1267_v58, %v1273_v61  ;;  %v1268_v63 = vsel %vm979_vm2, %v1264_v60, %v1267_v58 }
 0x223   : > { %1290 = vrot.lane.b32.xlu0 %v1274_v62, %s18709_s5  ;;  %1288 = vrot.lane.b32.xlu1 %v1268_v63, %s18709_s5 }
 0x227   : > { %v13111_v55 = vpop.f32.mrf.mxu0  ;;  %1256 = vrot.lane.b32.xlu1 %v1248_v0, %s18713_s10 }
 0x228   : > { %v1160_v3 = vadd.f32 %v13111_v55, %v14699_v10 }
 0x229   : > { %v1151_v2 = vpop.f32.mrf.mxu0 }
 0x22a   : > { %v1152_v5 = vadd.f32 %v14699_v10, %v1151_v2  ;;  %v1172_v8 = vmax.f32 %v1160_v3, 0.0 }
 0x22b   : > { %v13112_v4 = vpop.f32.mrf.mxu0 }
 0x22c   : > { %v1163_v6 = vadd.f32 %v13112_v4, %v14699_v10  ;;  %v1170_v14 = vmax.f32 %v1152_v5, 0.0 }
 0x22d   : > { %v1154_v7 = vpop.f32.mrf.mxu0 }
 0x22e   : > { %v1173_v11 = vmax.f32 %v1163_v6, 0.0  ;;  %v1155_v12 = vadd.f32 %v14699_v10, %v1154_v7 }
 0x230   : > { %v1177_v15 = vpack.c.bf16 %v1173_v11, %v1172_v8  ;;  %v1171_v16 = vmax.f32 %v1155_v12, 0.0 }
 0x232   : > { %v1186_v17 = vrot.slane %v1177_v15, 7  ;;  %v1176_v18 = vpack.c.bf16 %v1171_v16, %v1170_v14 }
 0x234   : > { %v14750_v19 = vsel %vm18725_vm0, %v1186_v17, 0  ;;  %v1185_v20 = vrot.slane %v1176_v18, 7  ;;  %v13193_v18 = vld [vmem:[%s18760_s3 + $0x38] sm:$0xff]  }
 0x235   : > { %v1228_v23 = vshll.u32 %v14750_v19, 16  ;;  %v1282_v24 = vshrl.u32 %v14750_v19, 16  ;;  %v1252_v49 = vrot.slane %v14750_v19, 1  ;;  %v1304_v6 = vrot.slane %v14750_v19, 2  ;;  %1769 = vmatpush1.bf16.msra.mxu0 %v13193_v18  ;;  %v13194_v19 = vld [vmem:[%s18760_s3 + $0x30] sm:$0xff]  }
 0x236   : > { %v14753_v21 = vsel %vm18725_vm0, %v1185_v20, %v1186_v17  ;;  %v1191_v22 = vsel %vm18725_vm0, 0, %v1185_v20  ;;  %1770 = vmatprep.subr.bf16.mxu0 %v18718_v1  ;;  %v13195_v20 = vld [vmem:[%s18760_s3 + $0x28] sm:$0xff]  }
 0x237   : > { %v1249_v25 = vrot.slane %v1191_v22, 1  ;;  %v1250_v10 = vrot.slane %v14753_v21, 1  ;;  %v1221_v26 = vshll.u32 %v14753_v21, 16  ;;  %v1225_v27 = vshrl.u32 %v14753_v21, 16 }
 0x238   : > { %v1214_v28 = vshrl.u32 %v1191_v22, 16  ;;  %v1216_v29 = vshll.u32 %v1191_v22, 16  ;;  %v1230_v40 = vrot.slane %v1228_v23, 1  ;;  %v1284_v41 = vrot.slane %v1282_v24, 1  ;;  %v13199_v24 = vld [vmem:[%s18760_s3 + $0x8] sm:$0xff]  }
 0x239   : > { %v1251_v32 = vsel %vm960_vm1, %v1249_v25, %v1250_v10  ;;  %v1223_v33 = vrot.slane %v1221_v26, 1  ;;  %v1278_v34 = vrot.slane %v1225_v27, 1  ;;  %v1279_v35 = vrot.slane %v1221_v26, 2  ;;  %1771 = vmatpush1.bf16.msra.mxu0 %v13194_v19  ;;  %v13200_v25 = vld [vmem:[%s18760_s3] sm:$0xff]  }
 0x23a   : > { %1258 = vrot.lane.b32.xlu0 %v1251_v32, %s18713_s10  ;;  %v1218_v36 = vrot.slane %v1216_v29, 1  ;;  %v1275_v37 = vrot.slane %v1214_v28, 1  ;;  %v1276_v38 = vrot.slane %v1216_v29, 2  ;;  %v1285_v42 = vrot.slane %v1228_v23, 2  ;;  %1772 = vmatprep.subr.bf16.mxu0 %v18718_v1  ;;  %v13198_v23 = vld [vmem:[%s18760_s3 + $0x10] sm:$0xff]  }
 0x23b   : > { %v1227_v39 = vor.u32 %v1225_v27, %v1223_v33  ;;  %v1280_v9 = vor.u32 %v1279_v35, %v1278_v34  ;;  %v1253_v50 = vsel %vm960_vm1, %v1250_v10, %v1252_v49  ;;  %v1301_v52 = vrot.slane %v1191_v22, 2  ;;  %v14834_v32 = vld [vmem:[%s18761_s11] ss:$0 sm:$0xff]  ;;  %s18782_s11 = sld [smem:[#allocation22_spill]] }
 0x23c   : > { %v1219_v43 = vor.u32 %v1218_v36, %v1214_v28  ;;  %v1277_v46 = vor.u32 %v1276_v38, %v1275_v37  ;;  %v1286_v13 = vor.u32 %v1285_v42, %v1284_v41  ;;  %v14365_v10 = vmov 1983009808  }
 0x23d   : > { %v1231_v44 = vsel %vm911_vm4, %v1227_v39, %v1230_v40  ;;  %1773 = vmatpush1.bf16.msra.mxu0 %v13195_v20  ;;  %v2183_v26 = vunpack.c.l.s4 %v14365_v10  ;;  %v2185_v27 = vlaneseq }
 0x23e   : > { %1238 = vrot.lane.b32.xlu0 %v1231_v44, %s18711_s2  ;;  %v1224_v45 = vsel %vm911_vm4, %v1219_v43, %v1223_v33  ;;  %v1287_v47 = vsel %vm979_vm2, %v1280_v9, %v1286_v13  ;;  %v1281_v48 = vsel %vm979_vm2, %v1277_v46, %v1280_v9  ;;  %1774 = vmatprep.subr.bf16.mxu0 %v18718_v1 }
 0x23f   : > { %1236 = vrot.lane.b32.xlu1 %v1224_v45, %s18711_s2  ;;  %v2184_v28 = vunpack.c.0.s8 %v2183_v26  ;;  %v14828_v29 = vshrl.u32 %v2185_v27, 7  ;;  %s18772_s2 = sld [smem:[#allocation19_spill]] }
 0x241   : > { %v14838_v35 = vsub.s32 %v2184_v28, %v14828_v29 }
 0x242   : > { %1294 = vrot.lane.b32.xlu0 %v1287_v47, %s18709_s5 }
 0x243   : > { %1292 = vrot.lane.b32.xlu1 %v1281_v48, %s18709_s5  ;;  %s18764_s5 = smov 96  }
 0x247   : > { %1260 = vrot.lane.b32.xlu1 %v1253_v50, %s18713_s10  ;;  %s18775_s10 = sld [smem:[#allocation20_spill]] }
 0x28c   : > { %v1255_v51 = vpop.permute.xlu1 %1254 }
 0x291   : > { %v1233_v53 = vpop.permute.xlu1 %1232  ;;  %v1235_v60 = vpop.permute.xlu0 %1234 }
 0x292   : > { %v1308_v56 = vsel %vm1306_vm11, %v14717_v31, %v1233_v53  ;;  %v1310_v62 = vsel %vm1306_vm11, %v14714_v30, %v1235_v60  ;;  %v1302_v31 = vrot.slane %v14753_v21, 2 }
 0x293   : > { %v1317_v58 = vsel %vm1315_vm12, %v1308_v56, %v1255_v51 }
 0x294   : > { %v1303_v2 = vsel %vm18727_vm5, %v1301_v52, %v1302_v31  ;;  %v1305_v11 = vsel %vm18727_vm5, %v1302_v31, %v1304_v6 }
 0x295   : > { %v1289_v57 = vpop.permute.xlu1 %1288  ;;  %v1291_v0 = vpop.permute.xlu0 %1290 }
 0x296   : > { %v1326_v59 = vsel %vm1324_vm13, %v1317_v58, %v1289_v57 }
 0x297   : > { %1469 = vmatmul.mubr.bf16.vlgmr.msra.gmra.mxu1 %v1326_v59 }
 0x298   : > { %12094 = vmatprep.mubr.msk.bf16.mxu1 %vm1306_vm11, %v14733_v54 }
 0x299   : > { %v1257_v61 = vpop.permute.xlu1 %1256 }
 0x29a   : > { %v1319_v63 = vsel %vm1315_vm12, %v1310_v62, %v1257_v61 }
 0x29b   : > { %v1329_v55 = vsel %vm1324_vm13, %v1319_v63, %v1291_v0 }
 0x29f   : > { %1477 = vmatmul.mubr.bf16.gmra.mxu1 %v1329_v55 }
 0x2a0   : > { %12095 = vmatprep.mubr.msk.bf16.mxu1 %vm1306_vm11, %v1303_v2 }
 0x2ac   : > { %v1259_v3 = vpop.permute.xlu0 %1258 }
 0x2b0   : > { %v1239_v8 = vpop.permute.xlu0 %1238 }
 0x2b1   : > { %v1237_v4 = vpop.permute.xlu1 %1236  ;;  %v1314_v14 = vsel %vm1306_vm11, %v14753_v21, %v1239_v8  ;;  %v13196_v21 = vld [vmem:[%s18760_s3 + $0x20] sm:$0xff]  }
 0x2b2   : > { %v1312_v54 = vsel %vm1306_vm11, %v1191_v22, %v1237_v4  ;;  %1775 = vmatpush1.bf16.msra.mxu0 %v13196_v21  ;;  %v13197_v22 = vld [vmem:[%s18760_s3 + $0x18] sm:$0xff]  }
 0x2b3   : > { %v1321_v30 = vsel %vm1315_vm12, %v1312_v54, %v1259_v3  ;;  %1776 = vmatprep.subr.bf16.mxu0 %v18718_v1 }
 0x2b4   : > { %v1295_v16 = vpop.permute.xlu0 %1294 }
 0x2b5   : > { %v1293_v5 = vpop.permute.xlu1 %1292 }
 0x2b6   : > { %v1332_v7 = vsel %vm1324_vm13, %v1321_v30, %v1293_v5  ;;  %1777 = vmatpush1.bf16.msra.mxu0 %v13197_v22 }
 0x2b7   : > { %1485 = vmatmul.mubr.bf16.gmra.mxu1 %v1332_v7  ;;  %1778 = vmatprep.subr.bf16.mxu0 %v18718_v1 }
 0x2b8   : > { %12096 = vmatprep.mubr.msk.bf16.mxu1 %vm1306_vm11, %v1305_v11 }
 0x2b9   : > { %v1261_v12 = vpop.permute.xlu1 %1260 }
 0x2ba   : > { %v1323_v15 = vsel %vm1315_vm12, %v1314_v14, %v1261_v12  ;;  %1779 = vmatpush1.bf16.msra.mxu0 %v13198_v23 }
 0x2bb   : > { %v1335_v17 = vsel %vm1324_vm13, %v1323_v15, %v1295_v16  ;;  %1780 = vmatprep.subr.bf16.mxu0 %v18718_v1 }
 0x2be   : > { %1781 = vmatpush1.bf16.msra.mxu0 %v13199_v24 }
 0x2bf   : > { %1493 = vmatmul.mubr.bf16.gmra.mxu1 %v1335_v17  ;;  %1782 = vmatprep.subr.bf16.mxu0 %v18718_v1 }
 0x2c2   : > { %1783 = vmatpush1.bf16.msra.mxu0 %v13200_v25 }
 0x2c3   : > { %1796 = vmatprep.subr.bf16.mxu0 %v18718_v1 }
 0x357   : > { %v1470_v33 = vpop.f32.mrf.mxu1 }
 0x358   : > { %v1471_v34 = vadd.f32 %v14834_v32, %v1470_v33 }
 0x359   : > { %v1472_v36 = vpop.f32.mrf.mxu1 }
 0x35a   : > { %v1501_v37 = vmax.f32 %v1471_v34, 0.0 }
 0x35b   : > { %v1473_v38 = vpop.f32.mrf.mxu1 }
 0x35c   : > { %v2181_v39 = vcombine.high %v1501_v37, %v1501_v37  ;;  %v2188_v40 = vrot.slane %v1501_v37, %v14838_v35  ;;  %v1474_v41 = vadd.f32 %v14834_v32, %v1473_v38 }
 0x35d   : > { %v1475_v42 = vpop.f32.mrf.mxu1 }
 0x35e   : > { %v2195_v43 = vrot.slane %v2181_v39, %v14838_v35  ;;  %v2196_v44 = vcombine.high %v2188_v40, %v2188_v40  ;;  %v2350_v9 = vsel %vm18726_vm14, %v2188_v40, -inf  ;;  %v1502_v45 = vmax.f32 %v1474_v41, 0.0 }
 0x35f   : > { %v2351_v46 = vrot.slane %v2350_v9, 4  ;;  %v1478_v13 = vpop.f32.mrf.mxu1 }
 0x360   : > { %v2197_v47 = vcombine.high %v2195_v43, %v2195_v43  ;;  %v2357_v48 = vsel %vm18726_vm14, %v2196_v44, -inf  ;;  %v2364_v49 = vsel %vm18726_vm14, %v2195_v43, -inf  ;;  %v2198_v56 = vcombine.high %v1502_v45, %v1502_v45 }
 0x361   : > { %v2352_v50 = vmax.f32 %v2350_v9, %v2351_v46  ;;  %v2358_v51 = vrot.slane %v2357_v48, 4  ;;  %v2365_v53 = vrot.slane %v2364_v49, 4  ;;  %v1480_v57 = vpop.f32.mrf.mxu1  ;;  %v2205_v59 = vrot.slane %v1502_v45, %v14838_v35 }
 0x362   : > { %v2371_v58 = vsel %vm18726_vm14, %v2197_v47, -inf  ;;  %v1509_v31 = vpack.c.bf16 %v1502_v45, %v1501_v37  ;;  %v2212_v0 = vrot.slane %v2198_v56, %v14838_v35  ;;  %v1479_v16 = vadd.f32 %v14834_v32, %v1478_v13 }
 0x363   : > { %v2353_v60 = vrot.slane %v2352_v50, 2  ;;  %v2359_v61 = vmax.f32 %v2357_v48, %v2358_v51  ;;  %v2366_v62 = vmax.f32 %v2364_v49, %v2365_v53  ;;  %v2372_v63 = vrot.slane %v2371_v58, 4  ;;  %v1481_v52 = vpop.f32.mrf.mxu1 }
 0x364   : > { %v2213_v55 = vcombine.high %v2205_v59, %v2205_v59  ;;  %v2378_v2 = vsel %vm18726_vm14, %v2205_v59, -inf  ;;  %v2214_v6 = vcombine.high %v2212_v0, %v2212_v0  ;;  %v2392_v11 = vsel %vm18726_vm14, %v2212_v0, -inf }
 0x365   : > { %v2354_v3 = vmax.f32 %v2352_v50, %v2353_v60  ;;  %v2360_v4 = vrot.slane %v2359_v61, 2  ;;  %v2367_v54 = vrot.slane %v2366_v62, 2  ;;  %v2373_v5 = vmax.f32 %v2371_v58, %v2372_v63  ;;  %v1483_v30 = vpop.f32.mrf.mxu1  ;;  %v13201_v60 = vld [vmem:[%s18760_s3 + $0x48] sm:$0xff]  }
 0x366   : > { %v2379_v7 = vrot.slane %v2378_v2, 4  ;;  %v2385_v8 = vsel %vm18726_vm14, %v2213_v55, -inf  ;;  %v14853_v17 = vrot.slane %v1509_v31, 7  ;;  %v2393_v20 = vrot.slane %v2392_v11, 4  ;;  %1797 = vmatpush2.bf16.msra.mxu0 %v13201_v60 }
 0x367   : > { %v2361_v12 = vmax.f32 %v2359_v61, %v2360_v4  ;;  %v2368_v14 = vmax.f32 %v2366_v62, %v2367_v54  ;;  %v2374_v15 = vrot.slane %v2373_v5, 2  ;;  %v2386_v19 = vrot.slane %v2385_v8, 4  ;;  %1798 = vmatprep.subr.bf16.mxu0 %v18718_v1 }
 0x368   : > { %v2380_v18 = vmax.f32 %v2378_v2, %v2379_v7  ;;  %v2355_v21 = vrot.slane %v2354_v3, 1  ;;  %v14856_v24 = vsel %vm18726_vm14, %v2214_v6, -inf  ;;  %v2394_v27 = vmax.f32 %v2392_v11, %v2393_v20 }
 0x369   : > { %v2362_v22 = vrot.slane %v2361_v12, 1  ;;  %v2375_v23 = vmax.f32 %v2373_v5, %v2374_v15  ;;  %v2369_v25 = vrot.slane %v2368_v14, 1  ;;  %v2387_v26 = vmax.f32 %v2385_v8, %v2386_v19 }
 0x36a   : > { %v2381_v10 = vrot.slane %v2380_v18, 2  ;;  %v1503_v33 = vmax.f32 %v1479_v16, 0.0  ;;  %v14860_v36 = vsel %vm18725_vm0, 0, %v14853_v17  ;;  %v1482_v38 = vadd.f32 %v14834_v32, %v1481_v52 }
 0x36b   : > { %v2376_v28 = vrot.slane %v2375_v23, 1  ;;  %v2363_v34 = vmax.f32 %v2361_v12, %v2362_v22  ;;  %v2356_v39 = vmax.f32 %v2354_v3, %v2355_v21  ;;  %v14865_v43 = vmax.f32 %v2368_v14, %v2369_v25 }
 0x36c   : > { %v2382_v37 = vmax.f32 %v2380_v18, %v2381_v10  ;;  %v2215_v41 = vcombine.high %v1503_v33, %v1503_v33  ;;  %v2222_v42 = vrot.slane %v1503_v33, %v14838_v35  ;;  %v2388_v44 = vrot.slane %v2387_v26, 2 }
 0x36d   : > { %v2395_v9 = vrot.slane %v2394_v27, 2  ;;  %v1504_v45 = vmax.f32 %v1482_v38, 0.0  ;;  %v14867_v46 = vmax.f32 %v2375_v23, %v2376_v28  ;;  %v14872_v49 = vsel %vm3006_vm15, %v2363_v34, %v2356_v39 }
 0x36e   : > { %v2229_v13 = vrot.slane %v2215_v41, %v14838_v35  ;;  %v2230_v47 = vcombine.high %v2222_v42, %v2222_v42  ;;  %v2406_v48 = vsel %vm18726_vm14, %v2222_v42, -inf  ;;  %v2383_v50 = vrot.slane %v2382_v37, 1 }
 0x36f   : > { %v2407_v51 = vrot.slane %v2406_v48, 4  ;;  %v1510_v53 = vpack.c.bf16 %v1504_v45, %v1503_v33  ;;  %v2232_v59 = vcombine.high %v1504_v45, %v1504_v45  ;;  %v14879_v61 = vmax.f32 %v2387_v26, %v2388_v44  ;;  %v13202_v44 = vld [vmem:[%s18760_s3 + $0x40] sm:$0xff]   ;;  %s18780_s3 = sld [smem:[#allocation21_spill]] }
 0x370   : > { %v2231_v56 = vcombine.high %v2229_v13, %v2229_v13  ;;  %v2413_v57 = vsel %vm18726_vm14, %v2230_v47, -inf  ;;  %v2420_v58 = vsel %vm18726_vm14, %v2229_v13, -inf  ;;  %v2239_v55 = vrot.slane %v1504_v45, %v14838_v35  ;;  %1799 = vmatpush2.bf16.msra.mxu0 %v13202_v44 }
 0x371   : > { %v2408_v62 = vmax.f32 %v2406_v48, %v2407_v51  ;;  %v2414_v63 = vrot.slane %v2413_v57, 4  ;;  %v2421_v52 = vrot.slane %v2420_v58, 4  ;;  %v1518_v0 = vrot.slane %v1510_v53, 7 }
 0x372   : > { %v2427_v31 = vsel %vm18726_vm14, %v2231_v56, -inf  ;;  %v2246_v2 = vrot.slane %v2232_v59, %v14838_v35  ;;  %v14885_v30 = vmax.f32 %v2394_v27, %v2395_v9  ;;  %v2247_v6 = vcombine.high %v2239_v55, %v2239_v55 }
 0x373   : > { %v2409_v3 = vrot.slane %v2408_v62, 2  ;;  %v2415_v4 = vmax.f32 %v2413_v57, %v2414_v63  ;;  %v2422_v54 = vmax.f32 %v2420_v58, %v2421_v52  ;;  %v2428_v5 = vrot.slane %v2427_v31, 4 }
 0x374   : > { %v2248_v7 = vcombine.high %v2246_v2, %v2246_v2  ;;  %v1631_v8 = vrot.slane %v14860_v36, 2  ;;  %v14888_v18 = vmax.f32 %v2382_v37, %v2383_v50  ;;  %v2434_v19 = vsel %vm18726_vm14, %v2239_v55, -inf }
 0x375   : > { %v2410_v11 = vmax.f32 %v2408_v62, %v2409_v3  ;;  %v2416_v12 = vrot.slane %v2415_v4, 2  ;;  %v2423_v14 = vrot.slane %v2422_v54, 2  ;;  %v2429_v15 = vmax.f32 %v2427_v31, %v2428_v5 }
 0x376   : > { %v2441_v20 = vsel %vm18726_vm14, %v2247_v6, -inf  ;;  %v2448_v21 = vsel %vm18726_vm14, %v2246_v2, -inf  ;;  %v14895_v10 = vsel %vm18725_vm0, %v14853_v17, %v1518_v0  ;;  %v2435_v28 = vrot.slane %v2434_v19, 4 }
 0x377   : > { %v1486_v16 = vpop.f32.mrf.mxu1  ;;  %v2417_v22 = vmax.f32 %v2415_v4, %v2416_v12  ;;  %v2424_v23 = vmax.f32 %v2422_v54, %v2423_v14  ;;  %v2430_v25 = vrot.slane %v2429_v15, 2  ;;  %v2442_v33 = vrot.slane %v2441_v20, 4 }
 0x378   : > { %v2449_v34 = vrot.slane %v2448_v21, 4  ;;  %v2411_v37 = vrot.slane %v2410_v11, 1  ;;  %v14899_v41 = vsel %vm18726_vm14, %v2248_v7, -inf  ;;  %v2436_v17 = vmax.f32 %v2434_v19, %v2435_v28 }
 0x379   : > { %v1488_v26 = vpop.f32.mrf.mxu1  ;;  %v2418_v38 = vrot.slane %v2417_v22, 1  ;;  %v2431_v39 = vmax.f32 %v2429_v15, %v2430_v25  ;;  %v2425_v9 = vrot.slane %v2424_v23, 1  ;;  %v2443_v45 = vmax.f32 %v2441_v20, %v2442_v33 }
 0x37a   : > { %v1632_v13 = vrot.slane %v14895_v10, 2  ;;  %v14906_v47 = vsel %vm18725_vm0, %v1518_v0, 0  ;;  %v2450_v48 = vmax.f32 %v2448_v21, %v2449_v34  ;;  %v1579_v50 = vrot.slane %v14860_v36, 1 }
 0x37b   : > { %v1489_v42 = vpop.f32.mrf.mxu1  ;;  %v1580_v51 = vrot.slane %v14895_v10, 1  ;;  %v2432_v56 = vrot.slane %v2431_v39, 1  ;;  %v2437_v57 = vrot.slane %v2436_v17, 2  ;;  %v2444_v58 = vrot.slane %v2443_v45, 2 }
 0x37c   : > { %v1633_v59 = vsel %vm18727_vm5, %v1631_v8, %v1632_v13  ;;  %v2412_v60 = vmax.f32 %v2410_v11, %v2411_v37  ;;  %v1531_v52 = vshrl.u32 %v14860_v36, 16  ;;  %v2419_v0 = vmax.f32 %v2417_v22, %v2418_v38 }
 0x37d   : > { %v1491_v53 = vpop.f32.mrf.mxu1  ;;  %12108 = vmatprep.mubr.msk.bf16.mxu0 %vm1306_vm11, %v1633_v59  ;;  %v1581_v63 = vsel %vm960_vm1, %v1579_v50, %v1580_v51  ;;  %v14919_v55 = vmax.f32 %v2424_v23, %v2425_v9  ;;  %v2438_v2 = vmax.f32 %v2436_v17, %v2437_v57  ;;  %v1533_v3 = vshll.u32 %v14860_v36, 16 }
 0x37e   : > { %1589 = vrot.lane.b32.xlu0 %v1581_v63, %s18762_s8  ;;  %v2451_v4 = vrot.slane %v2450_v48, 2  ;;  %v1538_v54 = vshll.u32 %v14895_v10, 16  ;;  %v1542_v5 = vshrl.u32 %v14895_v10, 16  ;;  %v1545_v6 = vshll.u32 %v14906_v47, 16 }
 0x37f   : > { %v1494_v31 = vpop.f32.mrf.mxu1  ;;  %v14926_v8 = vmax.f32 %v2431_v39, %v2432_v56  ;;  %v14928_v11 = vmax.f32 %v2443_v45, %v2444_v58  ;;  %v1535_v12 = vrot.slane %v1533_v3, 1  ;;  %v1597_v14 = vrot.slane %v1531_v52, 1 }
 0x380   : > { %v1540_v15 = vrot.slane %v1538_v54, 1  ;;  %v1598_v19 = vrot.slane %v1533_v3, 2  ;;  %v1600_v20 = vrot.slane %v1542_v5, 1  ;;  %v1601_v21 = vrot.slane %v1538_v54, 2 }
 0x381   : > { %v1496_v7 = vpop.f32.mrf.mxu1  ;;  %v2439_v23 = vrot.slane %v2438_v2, 1  ;;  %v1536_v25 = vor.u32 %v1535_v12, %v1531_v52  ;;  %v1547_v26 = vrot.slane %v1545_v6, 1  ;;  %v1487_v28 = vadd.f32 %v14834_v32, %v1486_v16 }
 0x382   : > { %v1544_v33 = vor.u32 %v1542_v5, %v1540_v15  ;;  %v1602_v34 = vor.u32 %v1601_v21, %v1600_v20  ;;  %v1604_v37 = vshrl.u32 %v14906_v47, 16  ;;  %v1607_v38 = vrot.slane %v1545_v6, 2 }
 0x383   : > { %v14930_v22 = vpop.f32.mrf.mxu1  ;;  %v14935_v44 = vsel %vm3006_vm15, %v2419_v0, %v2412_v60  ;;  %v1541_v9 = vsel %vm911_vm4, %v1536_v25, %v1540_v15  ;;  %v1505_v17 = vmax.f32 %v1487_v28, 0.0  ;;  %v1490_v45 = vadd.f32 %v14834_v32, %v1489_v42 }
 0x384   : > { %v14939_v50 = vmax.f32 %v2450_v48, %v2451_v4  ;;  %1567 = vrot.lane.b32.xlu1 %v1541_v9, %s18763_s29  ;;  %v1548_v16 = vsel %vm911_vm4, %v1544_v33, %v1547_v26  ;;  %v1599_v53 = vor.u32 %v1598_v19, %v1597_v14  ;;  %v1606_v56 = vrot.slane %v1604_v37, 1 }
 0x385   : > { %v1499_v39 = vpop.f32.mrf.mxu1  ;;  %1569 = vrot.lane.b32.xlu0 %v1548_v16, %s18763_s29  ;;  %v2249_v57 = vcombine.high %v1505_v17, %v1505_v17  ;;  %v2256_v58 = vrot.slane %v1505_v17, %v14838_v35  ;;  %v1582_v59 = vrot.slane %v14906_v47, 1  ;;  %v1506_v60 = vmax.f32 %v1490_v45, 0.0 }
 0x386   : > { %v14946_v63 = vmax.f32 %v2438_v2, %v2439_v23  ;;  %v1603_v48 = vsel %vm979_vm2, %v1599_v53, %v1602_v34  ;;  %v1608_v52 = vor.u32 %v1607_v38, %v1606_v56  ;;  %v1495_v54 = vadd.f32 %v14834_v32, %v1494_v31 }
 0x387   : > { %v2263_v0 = vrot.slane %v2249_v57, %v14838_v35  ;;  %v2264_v3 = vcombine.high %v2256_v58, %v2256_v58  ;;  %v2462_v4 = vsel %vm18726_vm14, %v2256_v58, -inf  ;;  %v2266_v7 = vcombine.high %v1506_v60, %v1506_v60 }
 0x388   : > { %1623 = vrot.lane.b32.xlu1 %v1603_v48, %s18764_s5  ;;  %v2463_v5 = vrot.slane %v2462_v4, 4  ;;  %v1609_v6 = vsel %vm979_vm2, %v1602_v34, %v1608_v52  ;;  %v2273_v2 = vrot.slane %v1506_v60, %v14838_v35  ;;  %v1583_v19 = vsel %vm960_vm1, %v1580_v51, %v1582_v59 }
 0x389   : > { %v2265_v12 = vcombine.high %v2263_v0, %v2263_v0  ;;  %v2469_v14 = vsel %vm18726_vm14, %v2264_v3, -inf  ;;  %v2476_v15 = vsel %vm18726_vm14, %v2263_v0, -inf  ;;  %1625 = vrot.lane.b32.xlu0 %v1609_v6, %s18764_s5  ;;  %v2280_v23 = vrot.slane %v2266_v7, %v14838_v35 }
 0x38a   : > { %v2464_v31 = vmax.f32 %v2462_v4, %v2463_v5  ;;  %v2470_v20 = vrot.slane %v2469_v14, 4  ;;  %v2477_v21 = vrot.slane %v2476_v15, 4  ;;  %v1511_v26 = vpack.c.bf16 %v1506_v60, %v1505_v17 }
 0x38b   : > { %v2483_v25 = vsel %vm18726_vm14, %v2265_v12, -inf  ;;  %v2281_v28 = vcombine.high %v2273_v2, %v2273_v2  ;;  %v2490_v33 = vsel %vm18726_vm14, %v2273_v2, -inf  ;;  %v2282_v9 = vcombine.high %v2280_v23, %v2280_v23 }
 0x38c   : > { %v2465_v34 = vrot.slane %v2464_v31, 2  ;;  %v2471_v37 = vmax.f32 %v2469_v14, %v2470_v20  ;;  %v2478_v38 = vmax.f32 %v2476_v15, %v2477_v21  ;;  %v2484_v39 = vrot.slane %v2483_v25, 4  ;;  %1591 = vrot.lane.b32.xlu1 %v1583_v19, %s18762_s8 }
 0x38d   : > { %v2491_v45 = vrot.slane %v2490_v33, 4  ;;  %v2497_v51 = vsel %vm18726_vm14, %v2281_v28, -inf  ;;  %v2504_v16 = vsel %vm18726_vm14, %v2280_v23, -inf  ;;  %v1507_v48 = vmax.f32 %v1495_v54, 0.0 }
 0x38e   : > { %v2466_v53 = vmax.f32 %v2464_v31, %v2465_v34  ;;  %v2472_v56 = vrot.slane %v2471_v37, 2  ;;  %v2479_v57 = vrot.slane %v2478_v38, 2  ;;  %v2485_v58 = vmax.f32 %v2483_v25, %v2484_v39 }
 0x38f   : > { %v2492_v17 = vmax.f32 %v2490_v33, %v2491_v45  ;;  %v2498_v59 = vrot.slane %v2497_v51, 4  ;;  %v2505_v60 = vrot.slane %v2504_v16, 4  ;;  %v14968_v4 = vrot.slane %v1511_v26, 7 }
 0x390   : > { %v2473_v52 = vmax.f32 %v2471_v37, %v2472_v56  ;;  %v2480_v0 = vmax.f32 %v2478_v38, %v2479_v57  ;;  %v2486_v3 = vrot.slane %v2485_v58, 2  ;;  %v2467_v5 = vrot.slane %v2466_v53, 1 }
 0x391   : > { %v2493_v6 = vrot.slane %v2492_v17, 2  ;;  %v2499_v7 = vmax.f32 %v2497_v51, %v2498_v59  ;;  %v2506_v2 = vmax.f32 %v2504_v16, %v2505_v60  ;;  %v14971_v19 = vsel %vm18726_vm14, %v2282_v9, -inf }
 0x392   : > { %v2474_v12 = vrot.slane %v2473_v52, 1  ;;  %v2481_v14 = vrot.slane %v2480_v0, 1  ;;  %v2487_v15 = vmax.f32 %v2485_v58, %v2486_v3  ;;  %v2283_v21 = vcombine.high %v1507_v48, %v1507_v48 }
 0x393   : > { %v2494_v31 = vmax.f32 %v2492_v17, %v2493_v6  ;;  %v2500_v20 = vrot.slane %v2499_v7, 2  ;;  %v1498_v54 = vadd.f32 %v14834_v32, %v14930_v22  ;;  %v14977_v23 = vsel %vm18725_vm0, 0, %v14968_v4 }
 0x394   : > { %v2507_v25 = vrot.slane %v2506_v2, 2  ;;  %v2290_v26 = vrot.slane %v1507_v48, %v14838_v35  ;;  %v1634_v28 = vrot.slane %v14906_v47, 2  ;;  %v2468_v33 = vmax.f32 %v2466_v53, %v2467_v5 }
 0x395   : > { %v2475_v34 = vmax.f32 %v2473_v52, %v2474_v12  ;;  %v2297_v38 = vrot.slane %v2283_v21, %v14838_v35  ;;  %v14983_v39 = vmax.f32 %v2480_v0, %v2481_v14  ;;  %v2488_v9 = vrot.slane %v2487_v15, 1 }
 0x396   : > { %v2298_v45 = vcombine.high %v2290_v26, %v2290_v26  ;;  %v2518_v32 = vsel %vm18726_vm14, %v2290_v26, -inf  ;;  %v2495_v22 = vrot.slane %v2494_v31, 1  ;;  %v14986_v51 = vmax.f32 %v2499_v7, %v2500_v20 }
 0x397   : > { %v2299_v16 = vcombine.high %v2297_v38, %v2297_v38  ;;  %v2519_v56 = vrot.slane %v2518_v32, 4  ;;  %v14988_v57 = vmax.f32 %v2506_v2, %v2507_v25  ;;  %v2532_v58 = vsel %vm18726_vm14, %v2297_v38, -inf }
 0x398   : > { %v2525_v53 = vsel %vm18726_vm14, %v2298_v45, -inf  ;;  %v1508_v17 = vmax.f32 %v1498_v54, 0.0  ;;  %v2533_v52 = vrot.slane %v2532_v58, 4  ;;  %v14994_v12 = vmax.f32 %v2487_v15, %v2488_v9 }
 0x399   : > { %v2520_v59 = vmax.f32 %v2518_v32, %v2519_v56  ;;  %v2526_v60 = vrot.slane %v2525_v53, 4  ;;  %v2539_v0 = vsel %vm18726_vm14, %v2299_v16, -inf  ;;  %v15001_v56 = vmax.f32 %v2494_v31, %v2495_v22 }
 0x39a   : > { %v2540_v3 = vrot.slane %v2539_v0, 4  ;;  %v1512_v5 = vpack.c.bf16 %v1508_v17, %v1507_v48  ;;  %v2300_v6 = vcombine.high %v1508_v17, %v1508_v17  ;;  %v2307_v7 = vrot.slane %v1508_v17, %v14838_v35 }
 0x39b   : > { %v2521_v14 = vrot.slane %v2520_v59, 2  ;;  %v2527_v2 = vmax.f32 %v2525_v53, %v2526_v60  ;;  %v2534_v20 = vmax.f32 %v2532_v58, %v2533_v52  ;;  %v14999_v48 = vsel %vm3006_vm15, %v2475_v34, %v2468_v33 }
 0x39c   : > { %v2541_v21 = vmax.f32 %v2539_v0, %v2540_v3  ;;  %v1521_v25 = vrot.slane %v1512_v5, 7  ;;  %v2314_v26 = vrot.slane %v2300_v6, %v14838_v35  ;;  %v2315_v54 = vcombine.high %v2307_v7, %v2307_v7 }
 0x39d   : > { %v2522_v38 = vmax.f32 %v2520_v59, %v2521_v14  ;;  %v2528_v45 = vrot.slane %v2527_v2, 2  ;;  %v2535_v32 = vrot.slane %v2534_v20, 2  ;;  %v2546_v16 = vsel %vm18726_vm14, %v2307_v7, -inf }
 0x39e   : > { %v2542_v15 = vrot.slane %v2541_v21, 2  ;;  %v2316_v9 = vcombine.high %v2314_v26, %v2314_v26  ;;  %v2547_v60 = vrot.slane %v2546_v16, 4  ;;  %v15006_v59 = vsel %vm18725_vm0, %v14968_v4, %v1521_v25 }
 0x39f   : > { %v2523_v58 = vrot.slane %v2522_v38, 1  ;;  %v2529_v17 = vmax.f32 %v2527_v2, %v2528_v45  ;;  %v2536_v52 = vmax.f32 %v2534_v20, %v2535_v32  ;;  %v2553_v0 = vsel %vm18726_vm14, %v2315_v54, -inf }
 0x3a0   : > { %v2560_v3 = vsel %vm18726_vm14, %v2314_v26, -inf  ;;  %v2543_v33 = vmax.f32 %v2541_v21, %v2542_v15  ;;  %v2548_v34 = vmax.f32 %v2546_v16, %v2547_v60  ;;  %v1584_v31 = vrot.slane %v14977_v23, 1 }
 0x3a1   : > { %v1549_v22 = vshrl.u32 %v14977_v23, 16  ;;  %v15013_v5 = vsel %vm18725_vm0, %v1521_v25, 0  ;;  %v2554_v6 = vrot.slane %v2553_v0, 4  ;;  %v2561_v7 = vrot.slane %v2560_v3, 4 }
 0x3a2   : > { %v15016_v14 = vsel %vm18726_vm14, %v2316_v9, -inf  ;;  %v2524_v4 = vmax.f32 %v2522_v38, %v2523_v58  ;;  %v2530_v2 = vrot.slane %v2529_v17, 1  ;;  %v2549_v20 = vrot.slane %v2548_v34, 2 }
 0x3a3   : > { %v1585_v54 = vrot.slane %v15006_v59, 1  ;;  %v2537_v26 = vrot.slane %v2536_v52, 1  ;;  %v2555_v21 = vmax.f32 %v2553_v0, %v2554_v6  ;;  %v2562_v45 = vmax.f32 %v2560_v3, %v2561_v7 }
 0x3a4   : > { %v1551_v32 = vshll.u32 %v14977_v23, 16  ;;  %v2544_v16 = vrot.slane %v2543_v33, 1  ;;  %v2550_v15 = vmax.f32 %v2548_v34, %v2549_v20  ;;  %v1556_v60 = vshll.u32 %v15006_v59, 16 }
 0x3a5   : > { %v1586_v25 = vsel %vm960_vm1, %v1584_v31, %v1585_v54  ;;  %v2556_v9 = vrot.slane %v2555_v21, 2  ;;  %v1560_v1 = vshrl.u32 %v15006_v59, 16  ;;  %v2531_v0 = vmax.f32 %v2529_v17, %v2530_v2 }
 0x3a6   : > { %1593 = vrot.lane.b32.xlu0 %v1586_v25, %s18762_s8  ;;  %v1553_v58 = vrot.slane %v1551_v32, 1  ;;  %v2563_v3 = vrot.slane %v2562_v45, 2  ;;  %v1558_v6 = vrot.slane %v1556_v60, 1  ;;  %v1563_v7 = vshll.u32 %v15013_v5, 16 }
 0x3a7   : > { %v2551_v34 = vrot.slane %v2550_v15, 1  ;;  %v1610_v20 = vrot.slane %v1549_v22, 1  ;;  %v1611_v37 = vrot.slane %v1551_v32, 2  ;;  %v2557_v53 = vmax.f32 %v2555_v21, %v2556_v9 }
 0x3a8   : > { %v1554_v31 = vor.u32 %v1553_v58, %v1549_v22  ;;  %v1562_v62 = vor.u32 %v1560_v1, %v1558_v6  ;;  %v1565_v38 = vrot.slane %v1563_v7, 1  ;;  %v1613_v42 = vrot.slane %v1560_v1, 1 }
 0x3a9   : > { %v15026_v25 = vmax.f32 %v2536_v52, %v2537_v26  ;;  %v15028_v40 = vmax.f32 %v2543_v33, %v2544_v16  ;;  %v1614_v2 = vrot.slane %v1556_v60, 2  ;;  %v1617_v58 = vshrl.u32 %v15013_v5, 16 }
 0x3aa   : > { %v1559_v17 = vsel %vm911_vm4, %v1554_v31, %v1558_v6  ;;  %v1566_v27 = vsel %vm911_vm4, %v1562_v62, %v1565_v38  ;;  %v1620_v22 = vrot.slane %v1563_v7, 2  ;;  %v1587_v32 = vrot.slane %v15013_v5, 1 }
 0x3ab   : > { %1571 = vrot.lane.b32.xlu1 %v1559_v17, %s18763_s29  ;;  %v3034_v21 = vsel %vm3006_vm15, %v2531_v0, %v2524_v4  ;;  %1573 = vrot.lane.b32.xlu0 %v1566_v27, %s18763_s29  ;;  %v1612_v1 = vor.u32 %v1611_v37, %v1610_v20  ;;  %v1615_v52 = vor.u32 %v1614_v2, %v1613_v42  ;;  %v2558_v62 = vrot.slane %v2557_v53, 1 }
 0x3ac   : > { %v15042_v33 = vsel %vm18727_vm5, %v1632_v13, %v1634_v28  ;;  %v2552_v26 = vmax.f32 %v2550_v15, %v2551_v34  ;;  %v2564_v16 = vmax.f32 %v2562_v45, %v2563_v3  ;;  %v1619_v60 = vrot.slane %v1617_v58, 1 }
 0x3ad   : > { %v1616_v9 = vsel %vm979_vm2, %v1612_v1, %v1615_v52  ;;  %v18765_v4 = vrot.slane %v14879_v61, 1  ;;  %v2397_v42 = vrot.slane %v14885_v30, 1  ;;  %v18766_v47 = vrot.slane %v14856_v24, 4 }
 0x3ae   : > { %v1621_v13 = vor.u32 %v1620_v22, %v1619_v60  ;;  %v1588_v28 = vsel %vm960_vm1, %v1585_v54, %v1587_v32  ;;  %v3009_v45 = vsel %vm3008_vm6, %v14865_v43, %v14872_v49  ;;  %v18767_v15 = vrot.slane %v14928_v11, 1 }
 0x3af   : > { %v2391_v27 = vmax.f32 %v14879_v61, %v18765_v4  ;;  %v2401_v37 = vmax.f32 %v14856_v24, %v18766_v47  ;;  %1627 = vrot.lane.b32.xlu1 %v1616_v9, %s18764_s5  ;;  %v2398_v61 = vmax.f32 %v14885_v30, %v2397_v42  ;;  %v3011_v3 = vsel %vm3010_vm7, %v14867_v46, %v3009_v45 }
 0x3b0   : > { %v2447_v38 = vmax.f32 %v14928_v11, %v18767_v15  ;;  %v2453_v24 = vrot.slane %v14939_v50, 1  ;;  %v1622_v6 = vsel %vm979_vm2, %v1615_v52, %v1621_v13  ;;  %v3013_v54 = vsel %vm3012_vm8, %v14888_v18, %v3011_v3 }
 0x3b1   : > { %v2402_v0 = vrot.slane %v2401_v37, 2  ;;  %v18768_v7 = vrot.slane %v14899_v41, 4  ;;  %v3021_v49 = vsel %vm3008_vm6, %v14919_v55, %v14935_v44  ;;  %1629 = vrot.lane.b32.xlu0 %v1622_v6, %s18764_s5  ;;  %v3015_v46 = vsel %vm3014_vm9, %v2391_v27, %v3013_v54 }
 0x3b2   : > { %v2454_v11 = vmax.f32 %v14939_v50, %v2453_v24  ;;  %v3022_v34 = vsel %vm3010_vm7, %v14926_v8, %v3021_v49  ;;  %v3017_v18 = vsel %vm3016_vm10, %v2398_v61, %v3015_v46  ;;  %v18769_v55 = vrot.slane %v14986_v51, 1 }
 0x3b3   : > { %v2457_v43 = vmax.f32 %v14899_v41, %v18768_v7  ;;  %v2403_v30 = vmax.f32 %v2401_v37, %v2402_v0  ;;  %1595 = vrot.lane.b32.xlu1 %v1588_v28, %s18762_s8  ;;  %v3023_v41 = vsel %vm3012_vm8, %v14946_v63, %v3022_v34  ;;  %v2509_v50 = vrot.slane %v14988_v57, 1 }
 0x3b4   : > { %v2503_v44 = vmax.f32 %v14986_v51, %v18769_v55  ;;  %v3024_v17 = vsel %vm3014_vm9, %v2447_v38, %v3023_v41  ;;  %v18770_v2 = vrot.slane %v14971_v19, 4  ;;  %v3028_v63 = vsel %vm3008_vm6, %v14983_v39, %v14999_v48 }
 0x3b5   : > { %v2458_v31 = vrot.slane %v2457_v43, 2  ;;  %v2404_v20 = vrot.slane %v2403_v30, 1  ;;  %v3025_v22 = vsel %vm3016_vm10, %v2454_v11, %v3024_v17  ;;  %v2559_v32 = vmax.f32 %v2557_v53, %v2558_v62 }
 0x3b6   : > { %v2513_v8 = vmax.f32 %v14971_v19, %v18770_v2  ;;  %v2510_v51 = vmax.f32 %v14988_v57, %v2509_v50  ;;  %v3029_v60 = vsel %vm3010_vm7, %v14994_v12, %v3028_v63  ;;  %v2565_v19 = vrot.slane %v2564_v16, 1  ;;  %v13204_v63 = vld [vmem:[%s18772_s2 + $0x30] sm:$0xff]  }
 0x3b7   : > { %v2459_v58 = vmax.f32 %v2457_v43, %v2458_v31  ;;  %v2405_v1 = vmax.f32 %v2403_v30, %v2404_v20  ;;  %v3030_v4 = vsel %vm3012_vm8, %v15001_v56, %v3029_v60  ;;  %v18771_v27 = vrot.slane %v15016_v14, 4  ;;  %v13209_v60 = vld [vmem:[%s18772_s2 + $0x8] sm:$0xff]  }
 0x3b8   : > { %v2514_v52 = vrot.slane %v2513_v8, 2  ;;  %v3031_v48 = vsel %vm3014_vm9, %v2503_v44, %v3030_v4  ;;  %v3035_v57 = vsel %vm3008_vm6, %v15026_v25, %v3034_v21  ;;  %v2566_v62 = vmax.f32 %v2564_v16, %v2565_v19  ;;  %v15183_v4 = vld [vmem:[%s18774_s28] ss:$0 sm:$0xff] }
 0x3b9   : > { %v2460_v9 = vrot.slane %v2459_v58, 1  ;;  %v2569_v42 = vmax.f32 %v15016_v14, %v18771_v27  ;;  %v15103_v47 = vsel %vm3018_vm3, %v2405_v1, %v3017_v18  ;;  %v3032_v12 = vsel %vm3016_vm10, %v2510_v51, %v3031_v48  ;;  %v13206_v1 = vld [vmem:[%s18772_s2 + $0x20] sm:$0xff]   ;;  %v13207_v51 = vld [vmem:[%s18772_s2 + $0x18] sm:$0xff]  }
 0x3ba   : > { %v2515_v39 = vmax.f32 %v2513_v8, %v2514_v52  ;;  %v3036_v13 = vsel %vm3010_vm7, %v15028_v40, %v3035_v57  ;;  %v1637_v46 = vrot.slane %v15006_v59, 2  ;;  %v13208_v52 = vld [vmem:[%s18772_s2 + $0x10] sm:$0xff]  }
 0x3bb   : > { %v2461_v53 = vmax.f32 %v2459_v58, %v2460_v9  ;;  %v2570_v37 = vrot.slane %v2569_v42, 2  ;;  %v3037_v45 = vsel %vm3012_vm8, %v2552_v26, %v3036_v13  ;;  %v13210_v9 = vld [vmem:[%s18772_s2] sm:$0xff]  }
 0x3bc   : > { %v2516_v56 = vrot.slane %v2515_v39, 1  ;;  %v3038_v38 = vsel %vm3014_vm9, %v2559_v32, %v3037_v45  ;;  %v18773_v32 = vmov 0   ;;  %v13211_v45 = vld [vmem:[%s18772_s2 + $0x48] sm:$0xff]  }
 0x3bd   : > { %v15112_v14 = vsel %vm3018_vm3, %v2461_v53, %v3025_v22  ;;  %v2571_v28 = vmax.f32 %v2569_v42, %v2570_v37  ;;  %v3039_v25 = vsel %vm3016_vm10, %v2566_v62, %v3038_v38  ;;  %v13203_v22 = vld [vmem:[%s18772_s2 + $0x38] sm:$0xff]  }
 0x3be   : > { %v2517_v15 = vmax.f32 %v2515_v39, %v2516_v56  ;;  %2101 = vmatpush1.bf16.msra.mxu1 %v13203_v22 }
 0x3bf   : > { %v2572_v61 = vrot.slane %v2571_v28, 1  ;;  %2102 = vmatprep.subr.bf16.mxu1 %v18773_v32 }
 0x3c0   : > { %v15118_v21 = vsel %vm3018_vm3, %v2517_v15, %v3032_v12 }
 0x3c1   : > { %v2573_v16 = vmax.f32 %v2571_v28, %v2572_v61 }
 0x3c2   : > { %2103 = vmatpush1.bf16.msra.mxu1 %v13204_v63 }
 0x3c3   : > { %v15121_v0 = vsel %vm3018_vm3, %v2573_v16, %v3039_v25  ;;  %2104 = vmatprep.subr.bf16.mxu1 %v18773_v32 }
 0x3f0   : > { %v1590_v40 = vpop.permute.xlu0 %1589 }
 0x3f6   : > { %v1568_v3 = vpop.permute.xlu1 %1567 }
 0x3f7   : > { %v1642_v24 = vsel %vm1306_vm11, %v14860_v36, %v1568_v3  ;;  %v1570_v7 = vpop.permute.xlu0 %1569  ;;  %v1636_v36 = vrot.slane %v14977_v23, 2 }
 0x3f8   : > { %v1650_v26 = vsel %vm1315_vm12, %v1642_v24, %v1590_v40  ;;  %v1644_v49 = vsel %vm1306_vm11, %v14895_v10, %v1570_v7  ;;  %v1639_v10 = vrot.slane %v15013_v5, 2  ;;  %v13212_v24 = vld [vmem:[%s18772_s2 + $0x40] sm:$0xff]  }
 0x3f9   : > { %v1638_v18 = vsel %vm18727_vm5, %v1636_v36, %v1637_v46 }
 0x3fa   : > { %v1624_v6 = vpop.permute.xlu1 %1623  ;;  %v1640_v50 = vsel %vm18727_vm5, %v1637_v46, %v1639_v10 }
 0x3fb   : > { %v1658_v54 = vsel %vm1324_vm13, %v1650_v26, %v1624_v6  ;;  %v1626_v11 = vpop.permute.xlu0 %1625 }
 0x3fc   : > { %1801 = vmatmul.mubr.bf16.vlgmr.msra.gmra.mxu0 %v1658_v54 }
 0x3fd   : > { %12109 = vmatprep.mubr.msk.bf16.mxu0 %vm1306_vm11, %v15042_v33 }
 0x3fe   : > { %v1592_v43 = vpop.permute.xlu1 %1591 }
 0x3ff   : > { %v1652_v30 = vsel %vm1315_vm12, %v1644_v49, %v1592_v43 }
 0x400   : > { %v1661_v34 = vsel %vm1324_vm13, %v1652_v30, %v1626_v11 }
 0x404   : > { %1809 = vmatmul.mubr.bf16.gmra.mxu0 %v1661_v34 }
 0x405   : > { %12110 = vmatprep.mubr.msk.bf16.mxu0 %vm1306_vm11, %v1638_v18 }
 0x418   : > { %v1594_v31 = vpop.permute.xlu0 %1593 }
 0x41d   : > { %v1572_v33 = vpop.permute.xlu1 %1571  ;;  %v1574_v17 = vpop.permute.xlu0 %1573 }
 0x41e   : > { %v1646_v41 = vsel %vm1306_vm11, %v14977_v23, %v1572_v33  ;;  %v1648_v8 = vsel %vm1306_vm11, %v15006_v59, %v1574_v17  ;;  %v13205_v59 = vld [vmem:[%s18772_s2 + $0x28] sm:$0xff]  }
 0x41f   : > { %v1654_v44 = vsel %vm1315_vm12, %v1646_v41, %v1594_v31  ;;  %2105 = vmatpush1.bf16.msra.mxu1 %v13205_v59 }
 0x420   : > { %2106 = vmatprep.subr.bf16.mxu1 %v18773_v32 }
 0x421   : > { %v1628_v55 = vpop.permute.xlu1 %1627 }
 0x422   : > { %v1664_v20 = vsel %vm1324_vm13, %v1654_v44, %v1628_v55 }
 0x423   : > { %1817 = vmatmul.mubr.bf16.gmra.mxu0 %v1664_v20  ;;  %v1630_v23 = vpop.permute.xlu0 %1629  ;;  %2107 = vmatpush1.bf16.msra.mxu1 %v13206_v1 }
 0x424   : > { %12111 = vmatprep.mubr.msk.bf16.mxu0 %vm1306_vm11, %v1640_v50  ;;  %2108 = vmatprep.subr.bf16.mxu1 %v18773_v32 }
 0x425   : > { %v1596_v2 = vpop.permute.xlu1 %1595 }
 0x426   : > { %v1656_v58 = vsel %vm1315_vm12, %v1648_v8, %v1596_v2 }
 0x427   : > { %v1667_v5 = vsel %vm1324_vm13, %v1656_v58, %v1630_v23  ;;  %2109 = vmatpush1.bf16.msra.mxu1 %v13207_v51 }
 0x428   : > { %2110 = vmatprep.subr.bf16.mxu1 %v18773_v32 }
 0x42b   : > { %1825 = vmatmul.mubr.bf16.gmra.mxu0 %v1667_v5  ;;  %2111 = vmatpush1.bf16.msra.mxu1 %v13208_v52 }
 0x42c   : > { %2112 = vmatprep.subr.bf16.mxu1 %v18773_v32 }
 0x42f   : > { %2113 = vmatpush1.bf16.msra.mxu1 %v13209_v60 }
 0x430   : > { %2114 = vmatprep.subr.bf16.mxu1 %v18773_v32 }
 0x433   : > { %2115 = vmatpush1.bf16.msra.mxu1 %v13210_v9 }
 0x434   : > { %2128 = vmatprep.subr.bf16.mxu1 %v18773_v32 }
 0x437   : > { %2129 = vmatpush2.bf16.msra.mxu1 %v13211_v45 }
 0x438   : > { %2130 = vmatprep.subr.bf16.mxu1 %v18773_v32 }
 0x43b   : > { %2131 = vmatpush2.bf16.msra.mxu1 %v13212_v24 }
 0x43c   : > { %3979 = vmatprep.subr.bf16.mxu1 %v18773_v32 }
 0x4bc   : > { %v1802_v19 = vpop.f32.mrf.mxu0 }
 0x4bd   : > { %v1803_v42 = vadd.f32 %v15183_v4, %v1802_v19 }
 0x4be   : > { %v1804_v27 = vpop.f32.mrf.mxu0 }
 0x4bf   : > { %v1833_v53 = vmax.f32 %v1803_v42, 0.0 }
 0x4c0   : > { %v1805_v39 = vpop.f32.mrf.mxu0 }
 0x4c1   : > { %v1806_v48 = vadd.f32 %v15183_v4, %v1805_v39 }
 0x4c2   : > { %v1807_v57 = vpop.f32.mrf.mxu0 }
 0x4c3   : > { %v1834_v12 = vmax.f32 %v1806_v48, 0.0 }
 0x4c4   : > { %v1810_v62 = vpop.f32.mrf.mxu0 }
 0x4c5   : > { %v1841_v37 = vpack.c.bf16 %v1834_v12, %v1833_v53  ;;  %v1811_v28 = vadd.f32 %v15183_v4, %v1810_v62 }
 0x4c6   : > { %v1812_v56 = vpop.f32.mrf.mxu0 }
 0x4c7   : > { %v1849_v13 = vrot.slane %v1841_v37, 7  ;;  %v1835_v16 = vmax.f32 %v1811_v28, 0.0 }
 0x4c8   : > { %v1813_v15 = vpop.f32.mrf.mxu0 }
 0x4c9   : > { %v15192_v38 = vsel %vm18725_vm0, 0, %v1849_v13  ;;  %v1814_v61 = vadd.f32 %v15183_v4, %v1813_v15 }
 0x4ca   : > { %v1815_v25 = vpop.f32.mrf.mxu0  ;;  %v1865_v3 = vshll.u32 %v15192_v38, 16  ;;  %v1863_v6 = vshrl.u32 %v15192_v38, 16  ;;  %v1963_v43 = vrot.slane %v15192_v38, 2  ;;  %v1911_v49 = vrot.slane %v15192_v38, 1 }
 0x4cb   : > { %v1836_v40 = vmax.f32 %v1814_v61, 0.0 }
 0x4cc   : > { %v1867_v7 = vrot.slane %v1865_v3, 1  ;;  %v1929_v11 = vrot.slane %v1863_v6, 1  ;;  %v1930_v36 = vrot.slane %v1865_v3, 2 }
 0x4cd   : > { %v1842_v26 = vpack.c.bf16 %v1836_v40, %v1835_v16 }
 0x4ce   : > { %v1868_v41 = vor.u32 %v1867_v7, %v1863_v6  ;;  %v1931_v52 = vor.u32 %v1930_v36, %v1929_v11 }
 0x4cf   : > { %v1850_v54 = vrot.slane %v1842_v26, 7 }
 0x4d1   : > { %v15205_v30 = vsel %vm18725_vm0, %v1849_v13, %v1850_v54  ;;  %v1860_v46 = vsel %vm18725_vm0, %v1850_v54, 0 }
 0x4d2   : > { %v1964_v34 = vrot.slane %v15205_v30, 2  ;;  %v1912_v18 = vrot.slane %v15205_v30, 1  ;;  %v1870_v31 = vshll.u32 %v15205_v30, 16  ;;  %v1874_v33 = vshrl.u32 %v15205_v30, 16 }
 0x4d3   : > { %v1877_v10 = vshll.u32 %v1860_v46, 16  ;;  %v1936_v55 = vshrl.u32 %v1860_v46, 16  ;;  %v1966_v44 = vrot.slane %v1860_v46, 2  ;;  %v1914_v19 = vrot.slane %v1860_v46, 1 }
 0x4d4   : > { %v1965_v20 = vsel %vm18727_vm5, %v1963_v43, %v1964_v34  ;;  %v1913_v17 = vsel %vm960_vm1, %v1911_v49, %v1912_v18  ;;  %v1872_v50 = vrot.slane %v1870_v31, 1  ;;  %v1932_v2 = vrot.slane %v1874_v33, 1 }
 0x4d5   : > { %12123 = vmatprep.mubr.msk.bf16.mxu1 %vm1306_vm11, %v1965_v20  ;;  %1921 = vrot.lane.b32.xlu0 %v1913_v17, %s18762_s8  ;;  %v1933_v8 = vrot.slane %v1870_v31, 2  ;;  %v1938_v58 = vrot.slane %v1936_v55, 1  ;;  %v1939_v23 = vrot.slane %v1877_v10, 2  ;;  %v1879_v63 = vrot.slane %v1877_v10, 1 }
 0x4d6   : > { %v1873_v5 = vsel %vm911_vm4, %v1868_v41, %v1872_v50  ;;  %v1876_v22 = vor.u32 %v1874_v33, %v1872_v50  ;;  %v15218_v59 = vsel %vm18727_vm5, %v1964_v34, %v1966_v44  ;;  %v1915_v42 = vsel %vm960_vm1, %v1912_v18, %v1914_v19 }
 0x4d7   : > { %1899 = vrot.lane.b32.xlu1 %v1873_v5, %s18763_s29  ;;  %v1934_v1 = vor.u32 %v1933_v8, %v1932_v2  ;;  %v1940_v60 = vor.u32 %v1939_v23, %v1938_v58 }
 0x4d8   : > { %v1880_v51 = vsel %vm911_vm4, %v1876_v22, %v1879_v63 }
 0x4d9   : > { %1901 = vrot.lane.b32.xlu0 %v1880_v51, %s18763_s29  ;;  %v1935_v9 = vsel %vm979_vm2, %v1931_v52, %v1934_v1  ;;  %v1941_v27 = vsel %vm979_vm2, %v1934_v1, %v1940_v60 }
 0x4db   : > { %1955 = vrot.lane.b32.xlu1 %v1935_v9, %s18764_s5 }
 0x4dd   : > { %1957 = vrot.lane.b32.xlu0 %v1941_v27, %s18764_s5 }
 0x4df   : > { %1923 = vrot.lane.b32.xlu1 %v1915_v42, %s18762_s8 }
 0x4e3   : > { %v1818_v39 = vpop.f32.mrf.mxu0 }
 0x4e4   : > { %v1819_v57 = vadd.f32 %v15183_v4, %v1818_v39 }
 0x4e5   : > { %v1820_v48 = vpop.f32.mrf.mxu0 }
 0x4e6   : > { %v1837_v37 = vmax.f32 %v1819_v57, 0.0 }
 0x4e7   : > { %v1821_v53 = vpop.f32.mrf.mxu0 }
 0x4e8   : > { %v1822_v12 = vadd.f32 %v15183_v4, %v1821_v53 }
 0x4e9   : > { %v1823_v62 = vpop.f32.mrf.mxu0 }
 0x4ea   : > { %v1838_v56 = vmax.f32 %v1822_v12, 0.0 }
 0x4eb   : > { %v1826_v13 = vpop.f32.mrf.mxu0 }
 0x4ec   : > { %v1843_v28 = vpack.c.bf16 %v1838_v56, %v1837_v37  ;;  %v1827_v61 = vadd.f32 %v15183_v4, %v1826_v13 }
 0x4ed   : > { %v1828_v45 = vpop.f32.mrf.mxu0 }
 0x4ee   : > { %v1852_v15 = vrot.slane %v1843_v28, 7  ;;  %v1839_v24 = vmax.f32 %v1827_v61, 0.0 }
 0x4ef   : > { %v1829_v25 = vpop.f32.mrf.mxu0 }
 0x4f0   : > { %v15233_v16 = vsel %vm18725_vm0, 0, %v1852_v15  ;;  %v1830_v40 = vadd.f32 %v15183_v4, %v1829_v25 }
 0x4f1   : > { %v1831_v3 = vpop.f32.mrf.mxu0  ;;  %v1883_v6 = vshll.u32 %v15233_v16, 16  ;;  %v1881_v43 = vshrl.u32 %v15233_v16, 16  ;;  %v1916_v36 = vrot.slane %v15233_v16, 1 }
 0x4f2   : > { %v1840_v26 = vmax.f32 %v1830_v40, 0.0 }
 0x4f3   : > { %v1885_v49 = vrot.slane %v1883_v6, 1  ;;  %v1942_v33 = vrot.slane %v1881_v43, 1  ;;  %v1943_v41 = vrot.slane %v1883_v6, 2 }
 0x4f4   : > { %v1844_v54 = vpack.c.bf16 %v1840_v26, %v1839_v24 }
 0x4f5   : > { %v1886_v44 = vor.u32 %v1885_v49, %v1881_v43  ;;  %v1944_v1 = vor.u32 %v1943_v41, %v1942_v33 }
 0x4f6   : > { %v1853_v7 = vrot.slane %v1844_v54, 7 }
 0x4f8   : > { %v15239_v46 = vsel %vm18725_vm0, %v1852_v15, %v1853_v7  ;;  %v15242_v11 = vsel %vm18725_vm0, %v1853_v7, 0  ;;  %vm3387_vm0 = vsmask.f32 2304 }
 0x4f9   : > { %v1917_v4 = vrot.slane %v15239_v46, 1  ;;  %v1888_v34 = vshll.u32 %v15239_v46, 16  ;;  %v1892_v18 = vshrl.u32 %v15239_v46, 16  ;;  %v1895_v31 = vshll.u32 %v15242_v11, 16 }
 0x4fa   : > { %v1949_v10 = vshrl.u32 %v15242_v11, 16  ;;  %v1919_v60 = vrot.slane %v15242_v11, 1  ;;  %v1969_v13 = vrot.slane %v15239_v46, 2 }
 0x4fb   : > { %v1918_v55 = vsel %vm960_vm1, %v1916_v36, %v1917_v4  ;;  %v1890_v20 = vrot.slane %v1888_v34, 1  ;;  %v1945_v17 = vrot.slane %v1892_v18, 1  ;;  %v1946_v50 = vrot.slane %v1888_v34, 2 }
 0x4fc   : > { %1925 = vrot.lane.b32.xlu0 %v1918_v55, %s18762_s8  ;;  %v1951_v2 = vrot.slane %v1949_v10, 1  ;;  %v1952_v8 = vrot.slane %v1895_v31, 2  ;;  %v1897_v5 = vrot.slane %v1895_v31, 1  ;;  %v1920_v19 = vsel %vm960_vm1, %v1917_v4, %v1919_v60 }
 0x4fd   : > { %v1891_v58 = vsel %vm911_vm4, %v1886_v44, %v1890_v20  ;;  %v1894_v23 = vor.u32 %v1892_v18, %v1890_v20  ;;  %v1947_v22 = vor.u32 %v1946_v50, %v1945_v17 }
 0x4fe   : > { %1903 = vrot.lane.b32.xlu1 %v1891_v58, %s18763_s29  ;;  %v1953_v51 = vor.u32 %v1952_v8, %v1951_v2 }
 0x4ff   : > { %v1898_v63 = vsel %vm911_vm4, %v1894_v23, %v1897_v5  ;;  %v1948_v52 = vsel %vm979_vm2, %v1944_v1, %v1947_v22  ;;  %vm3209_vm4 = vcmask 517120  }
 0x500   : > { %1905 = vrot.lane.b32.xlu0 %v1898_v63, %s18763_s29  ;;  %v1954_v9 = vsel %vm979_vm2, %v1947_v22, %v1953_v51 }
 0x502   : > { %1959 = vrot.lane.b32.xlu1 %v1948_v52, %s18764_s5 }
 0x504   : > { %1961 = vrot.lane.b32.xlu0 %v1954_v9, %s18764_s5 }
 0x506   : > { %1927 = vrot.lane.b32.xlu1 %v1920_v19, %s18762_s8 }
 0x547   : > { %v1922_v27 = vpop.permute.xlu0 %1921 }
 0x549   : > { %v1900_v42 = vpop.permute.xlu1 %1899 }
 0x54a   : > { %v1974_v39 = vsel %vm1306_vm11, %v15192_v38, %v1900_v42  ;;  %v1968_v38 = vrot.slane %v15233_v16, 2 }
 0x54b   : > { %v1982_v48 = vsel %vm1315_vm12, %v1974_v39, %v1922_v27  ;;  %v1902_v12 = vpop.permute.xlu0 %1901 }
 0x54c   : > { %v1976_v37 = vsel %vm1306_vm11, %v15205_v30, %v1902_v12  ;;  %v1970_v15 = vsel %vm18727_vm5, %v1968_v38, %v1969_v13  ;;  %v1971_v30 = vrot.slane %v15242_v11, 2  ;;  %v15291_v11 = vld [vmem:[%s18775_s10] ss:$0 sm:$0xff]  ;;  %s18781_s10 = sld [smem:[#allocation23_spill]] }
 0x54d   : > { %v1956_v57 = vpop.permute.xlu1 %1955 }
 0x54e   : > { %v1990_v53 = vsel %vm1324_vm13, %v1982_v48, %v1956_v57  ;;  %v1972_v6 = vsel %vm18727_vm5, %v1969_v13, %v1971_v30  ;;  %vm15449_vm5 = vmand %vm960_vm1, %vm979_vm2  ;;  %vm14367_vm1 = vmmov 0   ;;  %vm4476_vm2 = vsmask.f32 1280 }
 0x54f   : > { %2133 = vmatmul.mubr.bf16.vlgmr.msra.gmra.mxu1 %v1990_v53  ;;  %v1958_v28 = vpop.permute.xlu0 %1957 }
 0x550   : > { %12124 = vmatprep.mubr.msk.bf16.mxu1 %vm1306_vm11, %v15218_v59 }
 0x551   : > { %v1924_v62 = vpop.permute.xlu1 %1923 }
 0x552   : > { %v1984_v56 = vsel %vm1315_vm12, %v1976_v37, %v1924_v62 }
 0x553   : > { %v1993_v45 = vsel %vm1324_vm13, %v1984_v56, %v1958_v28 }
 0x557   : > { %2141 = vmatmul.mubr.bf16.gmra.mxu1 %v1993_v45 }
 0x558   : > { %12125 = vmatprep.mubr.msk.bf16.mxu1 %vm1306_vm11, %v1970_v15 }
 0x56e   : > { %v1926_v61 = vpop.permute.xlu0 %1925 }
 0x570   : > { %v1904_v59 = vpop.permute.xlu1 %1903 }
 0x571   : > { %v1978_v25 = vsel %vm1306_vm11, %v15233_v16, %v1904_v59 }
 0x572   : > { %v1986_v3 = vsel %vm1315_vm12, %v1978_v25, %v1926_v61  ;;  %v1906_v26 = vpop.permute.xlu0 %1905 }
 0x573   : > { %v1980_v7 = vsel %vm1306_vm11, %v15239_v46, %v1906_v26 }
 0x574   : > { %v1960_v40 = vpop.permute.xlu1 %1959 }
 0x575   : > { %v1996_v24 = vsel %vm1324_vm13, %v1986_v3, %v1960_v40 }
 0x576   : > { %2149 = vmatmul.mubr.bf16.gmra.mxu1 %v1996_v24  ;;  %v1962_v16 = vpop.permute.xlu0 %1961 }
 0x577   : > { %12126 = vmatprep.mubr.msk.bf16.mxu1 %vm1306_vm11, %v1972_v6 }
 0x578   : > { %v1928_v54 = vpop.permute.xlu1 %1927 }
 0x579   : > { %v1988_v43 = vsel %vm1315_vm12, %v1980_v7, %v1928_v54 }
 0x57a   : > { %v1999_v49 = vsel %vm1324_vm13, %v1988_v43, %v1962_v16 }
 0x57e   : > { %2157 = vmatmul.mubr.bf16.gmra.mxu1 %v1999_v49 }
 0x60f   : > { %v2134_v36 = vpop.f32.mrf.mxu1 }
 0x610   : > { %v2135_v4 = vadd.f32 %v15291_v11, %v2134_v36 }
 0x611   : > { %v2136_v34 = vpop.f32.mrf.mxu1 }
 0x612   : > { %v2165_v18 = vmax.f32 %v2135_v4, 0.0 }
 0x613   : > { %v2137_v31 = vpop.f32.mrf.mxu1 }
 0x614   : > { %v2582_v33 = vcombine.high %v2165_v18, %v2165_v18  ;;  %v2589_v46 = vrot.slane %v2165_v18, %v14838_v35  ;;  %v2138_v41 = vadd.f32 %v15291_v11, %v2137_v31 }
 0x615   : > { %v2139_v10 = vpop.f32.mrf.mxu1 }
 0x616   : > { %v2596_v55 = vrot.slane %v2582_v33, %v14838_v35  ;;  %v2597_v44 = vcombine.high %v2589_v46, %v2589_v46  ;;  %v2750_v20 = vsel %vm18726_vm14, %v2589_v46, -inf  ;;  %v2166_v17 = vmax.f32 %v2138_v41, 0.0 }
 0x617   : > { %v2751_v50 = vrot.slane %v2750_v20, 4  ;;  %v2142_v2 = vpop.f32.mrf.mxu1 }
 0x618   : > { %v2598_v8 = vcombine.high %v2596_v55, %v2596_v55  ;;  %v2757_v58 = vsel %vm18726_vm14, %v2597_v44, -inf  ;;  %v2764_v23 = vsel %vm18726_vm14, %v2596_v55, -inf  ;;  %v2599_v5 = vcombine.high %v2166_v17, %v2166_v17 }
 0x619   : > { %v2752_v22 = vmax.f32 %v2750_v20, %v2751_v50  ;;  %v2758_v63 = vrot.slane %v2757_v58, 4  ;;  %v2765_v1 = vrot.slane %v2764_v23, 4  ;;  %v2606_v51 = vrot.slane %v2166_v17, %v14838_v35  ;;  %v2144_v52 = vpop.f32.mrf.mxu1 }
 0x61a   : > { %v2771_v60 = vsel %vm18726_vm14, %v2598_v8, -inf  ;;  %v2613_v9 = vrot.slane %v2599_v5, %v14838_v35  ;;  %v2143_v19 = vadd.f32 %v15291_v11, %v2142_v2 }
 0x61b   : > { %v2753_v27 = vrot.slane %v2752_v22, 2  ;;  %v2759_v42 = vmax.f32 %v2757_v58, %v2758_v63  ;;  %v2766_v39 = vmax.f32 %v2764_v23, %v2765_v1  ;;  %v2772_v48 = vrot.slane %v2771_v60, 4  ;;  %v2145_v57 = vpop.f32.mrf.mxu1 }
 0x61c   : > { %v2614_v53 = vcombine.high %v2606_v51, %v2606_v51  ;;  %v2615_v12 = vcombine.high %v2613_v9, %v2613_v9  ;;  %v2778_v62 = vsel %vm18726_vm14, %v2606_v51, -inf  ;;  %v2792_v37 = vsel %vm18726_vm14, %v2613_v9, -inf }
 0x61d   : > { %v2754_v56 = vmax.f32 %v2752_v22, %v2753_v27  ;;  %v2760_v13 = vrot.slane %v2759_v42, 2  ;;  %v2767_v28 = vrot.slane %v2766_v39, 2  ;;  %v2773_v38 = vmax.f32 %v2771_v60, %v2772_v48  ;;  %v2147_v45 = vpop.f32.mrf.mxu1 }
 0x61e   : > { %v2779_v15 = vrot.slane %v2778_v62, 4  ;;  %v2785_v61 = vsel %vm18726_vm14, %v2614_v53, -inf  ;;  %v2793_v59 = vrot.slane %v2792_v37, 4  ;;  %v2799_v25 = vsel %vm18726_vm14, %v2615_v12, -inf }
 0x61f   : > { %v2755_v30 = vrot.slane %v2754_v56, 1  ;;  %v2761_v40 = vmax.f32 %v2759_v42, %v2760_v13  ;;  %v2768_v3 = vmax.f32 %v2766_v39, %v2767_v28  ;;  %v2774_v24 = vrot.slane %v2773_v38, 2 }
 0x620   : > { %v2780_v26 = vmax.f32 %v2778_v62, %v2779_v15  ;;  %v2786_v6 = vrot.slane %v2785_v61, 4  ;;  %v2794_v54 = vmax.f32 %v2792_v37, %v2793_v59  ;;  %v2800_v7 = vrot.slane %v2799_v25, 4 }
 0x621   : > { %v2756_v43 = vmax.f32 %v2754_v56, %v2755_v30  ;;  %v2762_v16 = vrot.slane %v2761_v40, 1  ;;  %v2769_v49 = vrot.slane %v2768_v3, 1  ;;  %v2775_v36 = vmax.f32 %v2773_v38, %v2774_v24 }
 0x622   : > { %v2781_v4 = vrot.slane %v2780_v26, 2  ;;  %v2787_v34 = vmax.f32 %v2785_v61, %v2786_v6  ;;  %v2795_v18 = vrot.slane %v2794_v54, 2  ;;  %v15308_v31 = vmax.f32 %v2799_v25, %v2800_v7 }
 0x623   : > { %v2763_v33 = vmax.f32 %v2761_v40, %v2762_v16  ;;  %v15310_v46 = vmax.f32 %v2768_v3, %v2769_v49  ;;  %v2776_v41 = vrot.slane %v2775_v36, 1  ;;  %v2167_v10 = vmax.f32 %v2143_v19, 0.0 }
 0x624   : > { %v2782_v55 = vmax.f32 %v2780_v26, %v2781_v4  ;;  %v2788_v44 = vrot.slane %v2787_v34, 2  ;;  %v15312_v20 = vmax.f32 %v2794_v54, %v2795_v18  ;;  %v2146_v17 = vadd.f32 %v15291_v11, %v2145_v57 }
 0x625   : > { %v15315_v50 = vmax.f32 %v2775_v36, %v2776_v41  ;;  %v15318_v2 = vsel %vm3006_vm15, %v2763_v33, %v2756_v43  ;;  %v2616_v8 = vcombine.high %v2167_v10, %v2167_v10  ;;  %v2623_v58 = vrot.slane %v2167_v10, %v14838_v35 }
 0x626   : > { %v2783_v23 = vrot.slane %v2782_v55, 1  ;;  %v2789_v5 = vmax.f32 %v2787_v34, %v2788_v44  ;;  %v2168_v22 = vmax.f32 %v2146_v17, 0.0  ;;  %v2797_v63 = vrot.slane %v15312_v20, 1 }
 0x627   : > { %v2630_v1 = vrot.slane %v2616_v8, %v14838_v35  ;;  %v2631_v51 = vcombine.high %v2623_v58, %v2623_v58  ;;  %v2806_v52 = vsel %vm18726_vm14, %v2623_v58, -inf  ;;  %v2802_v60 = vrot.slane %v15308_v31, 2 }
 0x628   : > { %v15325_v9 = vmax.f32 %v2782_v55, %v2783_v23  ;;  %v2790_v19 = vrot.slane %v2789_v5, 1  ;;  %v2807_v27 = vrot.slane %v2806_v52, 4  ;;  %v2633_v42 = vcombine.high %v2168_v22, %v2168_v22 }
 0x629   : > { %v2632_v39 = vcombine.high %v2630_v1, %v2630_v1  ;;  %v2813_v48 = vsel %vm18726_vm14, %v2631_v51, -inf  ;;  %v2820_v57 = vsel %vm18726_vm14, %v2630_v1, -inf  ;;  %v2640_v53 = vrot.slane %v2168_v22, %v14838_v35 }
 0x62a   : > { %v2808_v12 = vmax.f32 %v2806_v52, %v2807_v27  ;;  %v2814_v62 = vrot.slane %v2813_v48, 4  ;;  %v2821_v37 = vrot.slane %v2820_v57, 4  ;;  %v2647_v56 = vrot.slane %v2633_v42, %v14838_v35 }
 0x62b   : > { %v2827_v13 = vsel %vm18726_vm14, %v2632_v39, -inf  ;;  %v2648_v28 = vcombine.high %v2640_v53, %v2640_v53  ;;  %v2834_v38 = vsel %vm18726_vm14, %v2640_v53, -inf  ;;  %v2791_v45 = vmax.f32 %v2789_v5, %v2790_v19 }
 0x62c   : > { %v2809_v15 = vrot.slane %v2808_v12, 2  ;;  %v2815_v61 = vmax.f32 %v2813_v48, %v2814_v62  ;;  %v2822_v59 = vmax.f32 %v2820_v57, %v2821_v37  ;;  %v2828_v25 = vrot.slane %v2827_v13, 4 }
 0x62d   : > { %v2649_v30 = vcombine.high %v2647_v56, %v2647_v56  ;;  %v2835_v40 = vrot.slane %v2834_v38, 4  ;;  %v2841_v3 = vsel %vm18726_vm14, %v2648_v28, -inf  ;;  %v2848_v24 = vsel %vm18726_vm14, %v2647_v56, -inf }
 0x62e   : > { %v2810_v26 = vmax.f32 %v2808_v12, %v2809_v15  ;;  %v2816_v6 = vrot.slane %v2815_v61, 2  ;;  %v2823_v54 = vrot.slane %v2822_v59, 2  ;;  %v2829_v7 = vmax.f32 %v2827_v13, %v2828_v25 }
 0x62f   : > { %v2836_v43 = vmax.f32 %v2834_v38, %v2835_v40  ;;  %v2842_v16 = vrot.slane %v2841_v3, 4  ;;  %v2849_v49 = vrot.slane %v2848_v24, 4  ;;  %v2855_v36 = vsel %vm18726_vm14, %v2649_v30, -inf }
 0x630   : > { %v2811_v4 = vrot.slane %v2810_v26, 1  ;;  %v2817_v34 = vmax.f32 %v2815_v61, %v2816_v6  ;;  %v2824_v18 = vmax.f32 %v2822_v59, %v2823_v54  ;;  %v2830_v33 = vrot.slane %v2829_v7, 2 }
 0x631   : > { %v2837_v41 = vrot.slane %v2836_v43, 2  ;;  %v2843_v10 = vmax.f32 %v2841_v3, %v2842_v16  ;;  %v2850_v55 = vmax.f32 %v2848_v24, %v2849_v49  ;;  %v2856_v44 = vrot.slane %v2855_v36, 4 }
 0x632   : > { %v2812_v17 = vmax.f32 %v2810_v26, %v2811_v4  ;;  %v2818_v8 = vrot.slane %v2817_v34, 1  ;;  %v2825_v58 = vrot.slane %v2824_v18, 1  ;;  %v2831_v23 = vmax.f32 %v2829_v7, %v2830_v33 }
 0x633   : > { %v2838_v5 = vmax.f32 %v2836_v43, %v2837_v41  ;;  %v2844_v22 = vrot.slane %v2843_v10, 2  ;;  %v2851_v1 = vrot.slane %v2850_v55, 2  ;;  %v2857_v51 = vmax.f32 %v2855_v36, %v2856_v44 }
 0x634   : > { %v2819_v52 = vmax.f32 %v2817_v34, %v2818_v8  ;;  %v2826_v19 = vmax.f32 %v2824_v18, %v2825_v58  ;;  %v2832_v27 = vrot.slane %v2831_v23, 1  ;;  %v2798_v42 = vmax.f32 %v15312_v20, %v2797_v63 }
 0x635   : > { %v2839_v39 = vrot.slane %v2838_v5, 1  ;;  %v2845_v48 = vmax.f32 %v2843_v10, %v2844_v22  ;;  %v2852_v57 = vmax.f32 %v2850_v55, %v2851_v1  ;;  %v2803_v53 = vmax.f32 %v15308_v31, %v2802_v60 }
 0x636   : > { %v2833_v12 = vmax.f32 %v2831_v23, %v2832_v27  ;;  %v3084_v62 = vsel %vm3006_vm15, %v2819_v52, %v2812_v17  ;;  %v3078_v37 = vsel %vm3008_vm6, %v15310_v46, %v15318_v2  ;;  %v2150_v56 = vpop.f32.mrf.mxu1  ;;  %v2858_v13 = vrot.slane %v2857_v51, 2 }
 0x637   : > { %v2840_v28 = vmax.f32 %v2838_v5, %v2839_v39  ;;  %v2846_v38 = vrot.slane %v2845_v48, 1  ;;  %v2804_v15 = vrot.slane %v2803_v53, 1  ;;  %v3079_v20 = vsel %vm3010_vm7, %v15315_v50, %v3078_v37 }
 0x638   : > { %v3080_v63 = vsel %vm3012_vm8, %v15325_v9, %v3079_v20  ;;  %v2151_v31 = vadd.f32 %v15291_v11, %v2150_v56  ;;  %v2152_v60 = vpop.f32.mrf.mxu1  ;;  %v2853_v61 = vrot.slane %v2852_v57, 1  ;;  %v2859_v59 = vmax.f32 %v2857_v51, %v2858_v13 }
 0x639   : > { %v2805_v25 = vmax.f32 %v2803_v53, %v2804_v15  ;;  %v3081_v30 = vsel %vm3014_vm9, %v2791_v45, %v3080_v63  ;;  %v2847_v46 = vmax.f32 %v2845_v48, %v2846_v38  ;;  %v3085_v2 = vsel %vm3008_vm6, %v2826_v19, %v3084_v62 }
 0x63a   : > { %v3082_v40 = vsel %vm3016_vm10, %v2798_v42, %v3081_v30  ;;  %v2169_v3 = vmax.f32 %v2151_v31, 0.0  ;;  %v2153_v24 = vpop.f32.mrf.mxu1  ;;  %v2854_v26 = vmax.f32 %v2852_v57, %v2853_v61  ;;  %v2860_v50 = vrot.slane %v2859_v59, 1 }
 0x63b   : > { %v3083_v6 = vsel %vm3018_vm3, %v2805_v25, %v3082_v40  ;;  %v2154_v9 = vadd.f32 %v15291_v11, %v2153_v24  ;;  %v3086_v54 = vsel %vm3010_vm7, %v2833_v12, %v3085_v2 }
 0x63c   : > { %3105 = vrot.lane.b32.xlu1 %v3083_v6, %s18763_s29  ;;  %v2650_v7 = vcombine.high %v2169_v3, %v2169_v3  ;;  %v2657_v45 = vrot.slane %v2169_v3, %v14838_v35  ;;  %v2861_v43 = vmax.f32 %v2859_v59, %v2860_v50  ;;  %v3087_v16 = vsel %vm3012_vm8, %v2840_v28, %v3086_v54  ;;  %v2155_v49 = vpop.f32.mrf.mxu1 }
 0x63d   : > { %v2170_v36 = vmax.f32 %v2154_v9, 0.0  ;;  %v3088_v4 = vsel %vm3014_vm9, %v2847_v46, %v3087_v16 }
 0x63e   : > { %v2664_v34 = vrot.slane %v2650_v7, %v14838_v35  ;;  %v2665_v18 = vcombine.high %v2657_v45, %v2657_v45  ;;  %v2862_v33 = vsel %vm18726_vm14, %v2657_v45, -inf  ;;  %v3089_v41 = vsel %vm3016_vm10, %v2854_v26, %v3088_v4  ;;  %v2158_v10 = vpop.f32.mrf.mxu1 }
 0x63f   : > { %v2863_v55 = vrot.slane %v2862_v33, 4  ;;  %v2667_v44 = vcombine.high %v2170_v36, %v2170_v36  ;;  %v2674_v17 = vrot.slane %v2170_v36, %v14838_v35  ;;  %v3090_v8 = vsel %vm3018_vm3, %v2861_v43, %v3089_v41 }
 0x640   : > { %v2666_v58 = vcombine.high %v2664_v34, %v2664_v34  ;;  %v2869_v23 = vsel %vm18726_vm14, %v2665_v18, -inf  ;;  %v2876_v5 = vsel %vm18726_vm14, %v2664_v34, -inf  ;;  %3107 = vrot.lane.b32.xlu1 %v3090_v8, %s18763_s29  ;;  %v2159_v22 = vadd.f32 %v15291_v11, %v2158_v10  ;;  %v2160_v1 = vpop.f32.mrf.mxu1 }
 0x641   : > { %v2864_v51 = vmax.f32 %v2862_v33, %v2863_v55  ;;  %v2870_v52 = vrot.slane %v2869_v23, 4  ;;  %v2877_v19 = vrot.slane %v2876_v5, 4  ;;  %v2681_v27 = vrot.slane %v2667_v44, %v14838_v35 }
 0x642   : > { %v2883_v42 = vsel %vm18726_vm14, %v2666_v58, -inf  ;;  %v2682_v39 = vcombine.high %v2674_v17, %v2674_v17  ;;  %v2890_v48 = vsel %vm18726_vm14, %v2674_v17, -inf  ;;  %v2171_v57 = vmax.f32 %v2159_v22, 0.0  ;;  %v2161_v53 = vpop.f32.mrf.mxu1 }
 0x643   : > { %v2865_v12 = vrot.slane %v2864_v51, 2  ;;  %v2871_v62 = vmax.f32 %v2869_v23, %v2870_v52  ;;  %v2878_v37 = vmax.f32 %v2876_v5, %v2877_v19  ;;  %v2884_v56 = vrot.slane %v2883_v42, 4 }
 0x644   : > { %v2683_v13 = vcombine.high %v2681_v27, %v2681_v27  ;;  %v2891_v28 = vrot.slane %v2890_v48, 4  ;;  %v2897_v38 = vsel %vm18726_vm14, %v2682_v39, -inf  ;;  %v2904_v15 = vsel %vm18726_vm14, %v2681_v27, -inf  ;;  %v2163_v20 = vpop.f32.mrf.mxu1 }
 0x645   : > { %v2866_v63 = vmax.f32 %v2864_v51, %v2865_v12  ;;  %v2872_v31 = vrot.slane %v2871_v62, 2  ;;  %v2879_v60 = vrot.slane %v2878_v37, 2  ;;  %v2885_v61 = vmax.f32 %v2883_v42, %v2884_v56 }
 0x646   : > { %v2892_v59 = vmax.f32 %v2890_v48, %v2891_v28  ;;  %v2898_v25 = vrot.slane %v2897_v38, 4  ;;  %v2905_v30 = vrot.slane %v2904_v15, 4  ;;  %v2911_v46 = vsel %vm18726_vm14, %v2683_v13, -inf }
 0x647   : > { %v2867_v2 = vrot.slane %v2866_v63, 1  ;;  %v2873_v40 = vmax.f32 %v2871_v62, %v2872_v31  ;;  %v2880_v3 = vmax.f32 %v2878_v37, %v2879_v60  ;;  %v2886_v24 = vrot.slane %v2885_v61, 2 }
 0x648   : > { %v2893_v26 = vrot.slane %v2892_v59, 2  ;;  %v2899_v50 = vmax.f32 %v2897_v38, %v2898_v25  ;;  %v2906_v6 = vmax.f32 %v2904_v15, %v2905_v30  ;;  %v2912_v9 = vrot.slane %v2911_v46, 4 }
 0x649   : > { %v2868_v54 = vmax.f32 %v2866_v63, %v2867_v2  ;;  %v2874_v7 = vrot.slane %v2873_v40, 1  ;;  %v2881_v45 = vrot.slane %v2880_v3, 1  ;;  %v2887_v43 = vmax.f32 %v2885_v61, %v2886_v24 }
 0x64a   : > { %v2894_v16 = vmax.f32 %v2892_v59, %v2893_v26  ;;  %v2900_v49 = vrot.slane %v2899_v50, 2  ;;  %v2907_v36 = vrot.slane %v2906_v6, 2  ;;  %v15372_v4 = vmax.f32 %v2911_v46, %v2912_v9 }
 0x64b   : > { %v2875_v34 = vmax.f32 %v2873_v40, %v2874_v7  ;;  %v15374_v18 = vmax.f32 %v2880_v3, %v2881_v45  ;;  %v2888_v33 = vrot.slane %v2887_v43, 1  ;;  %v2684_v41 = vcombine.high %v2171_v57, %v2171_v57 }
 0x64c   : > { %v2895_v10 = vrot.slane %v2894_v16, 1  ;;  %v2901_v55 = vmax.f32 %v2899_v50, %v2900_v49  ;;  %v2908_v44 = vmax.f32 %v2906_v6, %v2907_v36  ;;  %v2691_v17 = vrot.slane %v2171_v57, %v14838_v35 }
 0x64d   : > { %v15377_v8 = vmax.f32 %v2887_v43, %v2888_v33  ;;  %v15380_v58 = vsel %vm3006_vm15, %v2875_v34, %v2868_v54  ;;  %v2698_v23 = vrot.slane %v2684_v41, %v14838_v35  ;;  %v2162_v5 = vadd.f32 %v15291_v11, %v2161_v53 }
 0x64e   : > { %v15384_v22 = vmax.f32 %v2894_v16, %v2895_v10  ;;  %v2902_v1 = vrot.slane %v2901_v55, 1  ;;  %v2699_v51 = vcombine.high %v2691_v17, %v2691_v17  ;;  %v2918_v52 = vsel %vm18726_vm14, %v2691_v17, -inf }
 0x64f   : > { %v2700_v19 = vcombine.high %v2698_v23, %v2698_v23  ;;  %v2919_v27 = vrot.slane %v2918_v52, 4  ;;  %v2932_v42 = vsel %vm18726_vm14, %v2698_v23, -inf  ;;  %v2172_v39 = vmax.f32 %v2162_v5, 0.0 }
 0x650   : > { %v2925_v48 = vsel %vm18726_vm14, %v2699_v51, -inf  ;;  %v2933_v57 = vrot.slane %v2932_v42, 4  ;;  %v15389_v12 = vmax.f32 %v2901_v55, %v2902_v1  ;;  %v2909_v62 = vrot.slane %v2908_v44, 1 }
 0x651   : > { %v2920_v37 = vmax.f32 %v2918_v52, %v2919_v27  ;;  %v2926_v56 = vrot.slane %v2925_v48, 4  ;;  %v2939_v11 = vsel %vm18726_vm14, %v2700_v19, -inf  ;;  %v2701_v53 = vcombine.high %v2172_v39, %v2172_v39 }
 0x652   : > { %v2934_v13 = vmax.f32 %v2932_v42, %v2933_v57  ;;  %v2940_v28 = vrot.slane %v2939_v11, 4  ;;  %v2708_v38 = vrot.slane %v2172_v39, %v14838_v35  ;;  %v2910_v15 = vmax.f32 %v2908_v44, %v2909_v62 }
 0x653   : > { %v2921_v20 = vrot.slane %v2920_v37, 2  ;;  %v2927_v63 = vmax.f32 %v2925_v48, %v2926_v56  ;;  %v2715_v31 = vrot.slane %v2701_v53, %v14838_v35  ;;  %v2914_v60 = vrot.slane %v15372_v4, 2 }
 0x654   : > { %v2935_v61 = vrot.slane %v2934_v13, 2  ;;  %v2941_v59 = vmax.f32 %v2939_v11, %v2940_v28  ;;  %v2716_v25 = vcombine.high %v2708_v38, %v2708_v38  ;;  %v2946_v30 = vsel %vm18726_vm14, %v2708_v38, -inf }
 0x655   : > { %v2922_v46 = vmax.f32 %v2920_v37, %v2921_v20  ;;  %v2928_v2 = vrot.slane %v2927_v63, 2  ;;  %v2717_v40 = vcombine.high %v2715_v31, %v2715_v31  ;;  %v2947_v3 = vrot.slane %v2946_v30, 4 }
 0x656   : > { %v2936_v24 = vmax.f32 %v2934_v13, %v2935_v61  ;;  %v2942_v26 = vrot.slane %v2941_v59, 2  ;;  %v2953_v50 = vsel %vm18726_vm14, %v2716_v25, -inf  ;;  %v2960_v6 = vsel %vm18726_vm14, %v2715_v31, -inf }
 0x657   : > { %v2923_v9 = vrot.slane %v2922_v46, 1  ;;  %v2929_v54 = vmax.f32 %v2927_v63, %v2928_v2  ;;  %v2948_v7 = vmax.f32 %v2946_v30, %v2947_v3  ;;  %v2954_v45 = vrot.slane %v2953_v50, 4 }
 0x658   : > { %v2937_v43 = vrot.slane %v2936_v24, 1  ;;  %v2943_v16 = vmax.f32 %v2941_v59, %v2942_v26  ;;  %v2961_v49 = vrot.slane %v2960_v6, 4  ;;  %v2967_v36 = vsel %vm18726_vm14, %v2717_v40, -inf }
 0x659   : > { %v2924_v34 = vmax.f32 %v2922_v46, %v2923_v9  ;;  %v2930_v33 = vrot.slane %v2929_v54, 1  ;;  %v2949_v41 = vrot.slane %v2948_v7, 2  ;;  %v2955_v10 = vmax.f32 %v2953_v50, %v2954_v45 }
 0x65a   : > { %v2938_v55 = vmax.f32 %v2936_v24, %v2937_v43  ;;  %v2944_v44 = vrot.slane %v2943_v16, 1  ;;  %v2962_v17 = vmax.f32 %v2960_v6, %v2961_v49  ;;  %v2968_v23 = vrot.slane %v2967_v36, 4 }
 0x65b   : > { %v2931_v5 = vmax.f32 %v2929_v54, %v2930_v33  ;;  %v2950_v1 = vmax.f32 %v2948_v7, %v2949_v41  ;;  %v2956_v51 = vrot.slane %v2955_v10, 2  ;;  %v2915_v52 = vmax.f32 %v15372_v4, %v2914_v60 }
 0x65c   : > { %v2945_v19 = vmax.f32 %v2943_v16, %v2944_v44  ;;  %v2963_v27 = vrot.slane %v2962_v17, 2  ;;  %v2969_v42 = vmax.f32 %v2967_v36, %v2968_v23  ;;  %v3092_v39 = vsel %vm3008_vm6, %v15374_v18, %v15380_v58 }
 0x65d   : > { %v3098_v48 = vsel %vm3006_vm15, %v2931_v5, %v2924_v34  ;;  %v2951_v57 = vrot.slane %v2950_v1, 1  ;;  %v2957_v62 = vmax.f32 %v2955_v10, %v2956_v51  ;;  %v2916_v37 = vrot.slane %v2915_v52, 1 }
 0x65e   : > { %v2964_v56 = vmax.f32 %v2962_v17, %v2963_v27  ;;  %v3093_v11 = vsel %vm3010_vm7, %v15377_v8, %v3092_v39  ;;  %v2970_v53 = vrot.slane %v2969_v42, 2  ;;  %v3099_v13 = vsel %vm3008_vm6, %v2938_v55, %v3098_v48 }
 0x65f   : > { %v2952_v4 = vmax.f32 %v2950_v1, %v2951_v57  ;;  %v2958_v28 = vrot.slane %v2957_v62, 1  ;;  %v2917_v38 = vmax.f32 %v2915_v52, %v2916_v37  ;;  %v3094_v20 = vsel %vm3012_vm8, %v15384_v22, %v3093_v11 }
 0x660   : > { %v3095_v18 = vsel %vm3014_vm9, %v15389_v12, %v3094_v20  ;;  %v2965_v58 = vrot.slane %v2964_v56, 1  ;;  %v2971_v63 = vmax.f32 %v2969_v42, %v2970_v53  ;;  %v3100_v31 = vsel %vm3010_vm7, %v2945_v19, %v3099_v13 }
 0x661   : > { %v3096_v60 = vsel %vm3016_vm10, %v2910_v15, %v3095_v18  ;;  %v2959_v61 = vmax.f32 %v2957_v62, %v2958_v28  ;;  %v3101_v8 = vsel %vm3012_vm8, %v2952_v4, %v3100_v31 }
 0x662   : > { %v3097_v59 = vsel %vm3018_vm3, %v2917_v38, %v3096_v60  ;;  %v2966_v25 = vmax.f32 %v2964_v56, %v2965_v58  ;;  %v2972_v30 = vrot.slane %v2971_v63, 1 }
 0x663   : > { %3109 = vrot.lane.b32.xlu0 %v3097_v59, %s18763_s29  ;;  %v3102_v22 = vsel %vm3014_vm9, %v2959_v61, %v3101_v8  ;;  %vm3386_vm9 = vcmask 1042432  }
 0x664   : > { %v2973_v46 = vmax.f32 %v2971_v63, %v2972_v30  ;;  %v3103_v12 = vsel %vm3016_vm10, %v2966_v25, %v3102_v22  ;;  %vm15442_vm14 = vmand %vm3386_vm9, %vm3387_vm0  ;;  %vm3452_vm0 = vsmask.f32 3328 }
 0x666   : > { %v3104_v2 = vsel %vm3018_vm3, %v2973_v46, %v3103_v12 }
 0x667   : > { %3111 = vrot.lane.b32.xlu0 %v3104_v2, %s18763_s29 }
 0x6ae   : > { %v3106_v40 = vpop.permute.xlu1 %3105 }
 0x6af   : > { %v3117_v15 = vsel %vm1306_vm11, %v15103_v47, %v3106_v40 }
 0x6b0   : > { %v3125_v3 = vcombine.high %v3117_v15, %v3117_v15  ;;  %v3132_v24 = vrot.slane %v3117_v15, %v14838_v35 }
 0x6b2   : > { %v3139_v26 = vrot.slane %v3125_v3, %v14838_v35  ;;  %v3140_v50 = vcombine.high %v3132_v24, %v3132_v24  ;;  %v3210_v6 = vsel %vm3209_vm4, %v3132_v24, -inf  ;;  %v3108_v9 = vpop.permute.xlu1 %3107 }
 0x6b3   : > { %v3211_v54 = vrot.slane %v3210_v6, 4  ;;  %v3118_v7 = vsel %vm1306_vm11, %v15112_v14, %v3108_v9 }
 0x6b4   : > { %v3141_v45 = vcombine.high %v3139_v26, %v3139_v26  ;;  %v3217_v43 = vsel %vm3209_vm4, %v3140_v50, -inf  ;;  %v3224_v16 = vsel %vm3209_vm4, %v3139_v26, -inf  ;;  %v3142_v49 = vcombine.high %v3118_v7, %v3118_v7 }
 0x6b5   : > { %v3212_v47 = vmax.f32 %v3210_v6, %v3211_v54  ;;  %v3218_v36 = vrot.slane %v3217_v43, 4  ;;  %v3225_v34 = vrot.slane %v3224_v16, 4  ;;  %v3149_v33 = vrot.slane %v3118_v7, %v14838_v35 }
 0x6b6   : > { %v3231_v41 = vsel %vm3209_vm4, %v3141_v45, -inf  ;;  %v3156_v10 = vrot.slane %v3142_v49, %v14838_v35 }
 0x6b7   : > { %v3213_v55 = vrot.slane %v3212_v47, 2  ;;  %v3219_v44 = vmax.f32 %v3217_v43, %v3218_v36  ;;  %v3226_v17 = vmax.f32 %v3224_v16, %v3225_v34  ;;  %v3232_v23 = vrot.slane %v3231_v41, 4 }
 0x6b8   : > { %v3157_v14 = vcombine.high %v3149_v33, %v3149_v33  ;;  %v3158_v5 = vcombine.high %v3156_v10, %v3156_v10  ;;  %v3238_v1 = vsel %vm3209_vm4, %v3149_v33, -inf  ;;  %v3252_v51 = vsel %vm3209_vm4, %v3156_v10, -inf }
 0x6b9   : > { %v3214_v52 = vmax.f32 %v3212_v47, %v3213_v55  ;;  %v3220_v19 = vrot.slane %v3219_v44, 2  ;;  %v3227_v27 = vrot.slane %v3226_v17, 2  ;;  %v3233_v42 = vmax.f32 %v3231_v41, %v3232_v23 }
 0x6ba   : > { %v3239_v39 = vrot.slane %v3238_v1, 4  ;;  %v3245_v48 = vsel %vm3209_vm4, %v3157_v14, -inf  ;;  %v3253_v57 = vrot.slane %v3252_v51, 4  ;;  %v3259_v62 = vsel %vm3209_vm4, %v3158_v5, -inf }
 0x6bb   : > { %v3221_v37 = vmax.f32 %v3219_v44, %v3220_v19  ;;  %v3228_v56 = vmax.f32 %v3226_v17, %v3227_v27  ;;  %v3234_v11 = vrot.slane %v3233_v42, 2  ;;  %v3246_v13 = vrot.slane %v3245_v48, 4 }
 0x6bc   : > { %v3240_v53 = vmax.f32 %v3238_v1, %v3239_v39  ;;  %v3254_v4 = vmax.f32 %v3252_v51, %v3253_v57  ;;  %v3260_v28 = vrot.slane %v3259_v62, 4  ;;  %v3215_v38 = vrot.slane %v3214_v52, 1  ;;  %v13269_v57 = vld [vmem:[%s18781_s10 + $0x10] sm:$0xff]  }
 0x6bd   : > { %v3222_v20 = vrot.slane %v3221_v37, 1  ;;  %v3229_v18 = vrot.slane %v3228_v56, 1  ;;  %v3235_v58 = vmax.f32 %v3233_v42, %v3234_v11  ;;  %v3247_v31 = vmax.f32 %v3245_v48, %v3246_v13  ;;  %v13215_v11 = vld [vmem:[%s18780_s3 + $0x38] sm:$0xff]  }
 0x6be   : > { %v3241_v63 = vrot.slane %v3240_v53, 2  ;;  %v3255_v60 = vrot.slane %v3254_v4, 2  ;;  %v3261_v61 = vmax.f32 %v3259_v62, %v3260_v28  ;;  %v3216_v12 = vmax.f32 %v3214_v52, %v3215_v38  ;;  %v13216_v38 = vld [vmem:[%s18780_s3 + $0x130] sm:$0xff]  }
 0x6bf   : > { %v3223_v8 = vmax.f32 %v3221_v37, %v3222_v20  ;;  %v3236_v59 = vrot.slane %v3235_v58, 1  ;;  %v3248_v30 = vrot.slane %v3247_v31, 2  ;;  %v3230_v2 = vmax.f32 %v3228_v56, %v3229_v18  ;;  %v13213_v37 = vld [vmem:[%s18780_s3 + $0x138] sm:$0xff]   ;;  %v13217_v20 = vld [vmem:[%s18780_s3 + $0x70] sm:$0xff]  }
 0x6c0   : > { %v3242_v25 = vmax.f32 %v3240_v53, %v3241_v63  ;;  %v3256_v22 = vmax.f32 %v3254_v4, %v3255_v60  ;;  %v3262_v46 = vrot.slane %v3261_v61, 2  ;;  %v3322_v43 = vpack.c.bf16 %v3216_v12, %v3216_v12  ;;  %v13214_v56 = vld [vmem:[%s18780_s3 + $0x78] sm:$0xff]   ;;  %3980 = vmatpush1.bf16.msra.mxu1 %v13213_v37  ;;  %v13218_v18 = vld [vmem:[%s18780_s3 + $0x30] sm:$0xff]  }
 0x6c1   : > { %v3237_v40 = vmax.f32 %v3235_v58, %v3236_v59  ;;  %v3249_v3 = vmax.f32 %v3247_v31, %v3248_v30  ;;  %v3323_v50 = vpack.c.bf16 %v3223_v8, %v3223_v8  ;;  %v3324_v16 = vpack.c.bf16 %v3230_v2, %v3230_v2  ;;  %12962 = vmatprep.subr.bf16.mxu0 %v13214_v56  ;;  %v13219_v2 = vld [vmem:[%s18780_s3 + $0x128] sm:$0xff]   ;;  %v13227_v37 = vld [vmem:[%s18780_s3 + $0x18] sm:$0xff]  }
 0x6c2   : > { %v3243_v15 = vrot.slane %v3242_v25, 1  ;;  %v3257_v24 = vrot.slane %v3256_v22, 1  ;;  %v3263_v26 = vmax.f32 %v3261_v61, %v3262_v46  ;;  %v3354_v17 = vunpack.c.l.b16 %v3322_v43  ;;  %12963 = vmatpush3.bf16.msra.mxu0 %v13215_v11  ;;  %3981 = vmatprep.subr.bf16.mxu1 %v18773_v32 }
 0x6c3   : > { %v3325_v6 = vpack.c.bf16 %v3237_v40, %v3237_v40  ;;  %v3250_v54 = vrot.slane %v3249_v3, 1  ;;  %v3355_v34 = vunpack.c.l.b16 %v3323_v50  ;;  %v3356_v14 = vunpack.c.l.b16 %v3324_v16  ;;  %12964 = vmatprep.subr.bf16.mxu0 %v13217_v20  ;;  %v13221_v40 = vld [vmem:[%s18780_s3 + $0x28] sm:$0xff]  }
 0x6c4   : > { %v3244_v9 = vmax.f32 %v3242_v25, %v3243_v15  ;;  %v3258_v7 = vmax.f32 %v3256_v22, %v3257_v24  ;;  %v3264_v45 = vrot.slane %v3263_v26, 1  ;;  %3982 = vmatpush1.bf16.msra.mxu1 %v13216_v38 }
 0x6c5   : > { %v3251_v49 = vmax.f32 %v3249_v3, %v3250_v54  ;;  %v3357_v41 = vunpack.c.l.b16 %v3325_v6  ;;  %v3370_v52 = vsel %vm3016_vm10, %v3355_v34, %v3354_v17  ;;  %3983 = vmatprep.subr.bf16.mxu1 %v18773_v32 }
 0x6c6   : > { %v3265_v47 = vmax.f32 %v3263_v26, %v3264_v45  ;;  %v3326_v36 = vpack.c.bf16 %v3244_v9, %v3244_v9  ;;  %v3328_v33 = vpack.c.bf16 %v3258_v7, %v3258_v7  ;;  %v3371_v42 = vsel %vm3018_vm3, %v3356_v14, %v3370_v52  ;;  %12965 = vmatpush3.bf16.msra.mxu0 %v13218_v18  ;;  %v13226_v14 = vld [vmem:[%s18780_s3 + $0x58] sm:$0xff]  }
 0x6c7   : > { %v3327_v10 = vpack.c.bf16 %v3251_v49, %v3251_v49 }
 0x6c8   : > { %v3329_v55 = vpack.c.bf16 %v3265_v47, %v3265_v47  ;;  %v3358_v44 = vunpack.c.l.b16 %v3326_v36  ;;  %v3360_v23 = vunpack.c.l.b16 %v3328_v33  ;;  %3984 = vmatpush1.bf16.msra.mxu1 %v13219_v2 }
 0x6c9   : > { %v3359_v5 = vunpack.c.l.b16 %v3327_v10  ;;  %3985 = vmatprep.subr.bf16.mxu1 %v18773_v32  ;;  %v13224_v10 = vld [vmem:[%s18780_s3 + $0x20] sm:$0xff]  }
 0x6ca   : > { %v3361_v1 = vunpack.c.l.b16 %v3329_v55  ;;  %v3372_v51 = vsel %vm3006_vm15, %v3358_v44, %v3357_v41  ;;  %v13223_v41 = vld [vmem:[%s18780_s3 + $0x60] sm:$0xff]  }
 0x6cb   : > { %v3373_v19 = vsel %vm3008_vm6, %v3359_v5, %v3372_v51 }
 0x6cc   : > { %v3374_v27 = vsel %vm3010_vm7, %v3360_v23, %v3373_v19  ;;  %v13225_v19 = vld [vmem:[%s18780_s3 + $0x118] sm:$0xff]  }
 0x6cd   : > { %v3375_v48 = vsel %vm3012_vm8, %v3361_v1, %v3374_v27 }
 0x6ce   : > { %v3382_v62 = vpack.c.b16 %v3375_v48, %v3371_v42 }
 0x6d0   : > { %v3389_v53 = vsel %vm15442_vm14, 0, %v3382_v62 }
 0x6d1   : > { %v15466_v13 = vsel %vm15449_vm5, %v3389_v53, 0 }
 0x6d2   : > { %v15469_v4 = vshrl.u32 %v15466_v13, 16  ;;  %v15472_v28 = vshll.u32 %v15466_v13, 16 }
 0x6d4   : > { %v3416_v63 = vrot.slane %v15469_v4, 1  ;;  %v3417_v31 = vrot.slane %v15472_v28, 2  ;;  %v3399_v60 = vrot.slane %v15472_v28, 1  ;;  %v3440_v61 = vrot.slane %v15469_v4, 3 }
 0x6d5   : > { %v3110_v58 = vpop.permute.xlu0 %3109  ;;  %v3441_v59 = vrot.slane %v15472_v28, 4  ;;  %v3428_v25 = vrot.slane %v15469_v4, 2  ;;  %v3429_v30 = vrot.slane %v15472_v28, 3  ;;  %v3453_v17 = vrot.slane %v15469_v4, 4 }
 0x6d6   : > { %v3119_v8 = vsel %vm1306_vm11, %v15118_v21, %v3110_v58  ;;  %v3418_v12 = vor.u32 %v3417_v31, %v3416_v63  ;;  %v13220_v21 = vld [vmem:[%s18780_s3 + $0x68] sm:$0xff]   ;;  %v3400_v50 = vor.u32 %v3399_v60, %v15469_v4  ;;  %v3454_v23 = vrot.slane %v15472_v28, 5  ;;  %v13229_v28 = vld [vmem:[%s18780_s3 + $0x50] sm:$0xff]  }
 0x6d7   : > { %v3159_v22 = vcombine.high %v3119_v8, %v3119_v8  ;;  %v3166_v46 = vrot.slane %v3119_v8, %v14838_v35  ;;  %v3442_v54 = vor.u32 %v3441_v59, %v3440_v61  ;;  %v15510_v7 = vor.u32 %v3429_v30, %v3428_v25  ;;  %12966 = vmatprep.subr.bf16.mxu0 %v13220_v21  ;;  %v13228_v8 = vld [vmem:[%s18780_s3 + $0x110] sm:$0xff]  }
 0x6d8   : > { %3422 = vrot.lane.b32.xlu1 %v3418_v12, %s18762_s8  ;;  %12967 = vmatpush3.bf16.msra.mxu0 %v13221_v40  ;;  %v3455_v61 = vor.u32 %v3454_v23, %v3453_v17 }
 0x6d9   : > { %v3173_v15 = vrot.slane %v3159_v22, %v14838_v35  ;;  %v3174_v3 = vcombine.high %v3166_v46, %v3166_v46  ;;  %v3266_v24 = vsel %vm3209_vm4, %v3166_v46, -inf  ;;  %v3112_v26 = vpop.permute.xlu0 %3111  ;;  %12968 = vmatprep.subr.bf16.mxu0 %v13223_v41  ;;  %v13230_v46 = vld [vmem:[%s18780_s3 + $0x10] sm:$0xff]  }
 0x6da   : > { %v3267_v6 = vrot.slane %v3266_v24, 4  ;;  %v3120_v9 = vsel %vm1306_vm11, %v15121_v0, %v3112_v26  ;;  %v13222_v0 = vld [vmem:[%s18780_s3 + $0x120] sm:$0xff]  }
 0x6db   : > { %v3175_v45 = vcombine.high %v3173_v15, %v3173_v15  ;;  %v3273_v43 = vsel %vm3209_vm4, %v3174_v3, -inf  ;;  %v3280_v16 = vsel %vm3209_vm4, %v3173_v15, -inf  ;;  %v3176_v49 = vcombine.high %v3120_v9, %v3120_v9  ;;  %3986 = vmatpush1.bf16.msra.mxu1 %v13222_v0  ;;  %v13232_v15 = vld [vmem:[%s18780_s3 + $0x48] sm:$0xff]  }
 0x6dc   : > { %v3268_v47 = vmax.f32 %v3266_v24, %v3267_v6  ;;  %v3274_v36 = vrot.slane %v3273_v43, 4  ;;  %v3281_v34 = vrot.slane %v3280_v16, 4  ;;  %v3183_v33 = vrot.slane %v3120_v9, %v14838_v35  ;;  %3408 = vrot.lane.b32.xlu1 %v3400_v50, %s18762_s8  ;;  %12969 = vmatpush3.bf16.msra.mxu0 %v13224_v10 }
 0x6dd   : > { %v3287_v55 = vsel %vm3209_vm4, %v3175_v45, -inf  ;;  %v3190_v44 = vrot.slane %v3176_v49, %v14838_v35  ;;  %3987 = vmatprep.subr.bf16.mxu1 %v18773_v32  ;;  %12970 = vmatprep.subr.bf16.mxu0 %v13226_v14  ;;  %v13231_v45 = vld [vmem:[%s18780_s3 + $0x108] sm:$0xff]  }
 0x6de   : > { %v3269_v5 = vrot.slane %v3268_v47, 2  ;;  %v3275_v1 = vmax.f32 %v3273_v43, %v3274_v36  ;;  %v3282_v51 = vmax.f32 %v3280_v16, %v3281_v34  ;;  %v3288_v52 = vrot.slane %v3287_v55, 4 }
 0x6df   : > { %v3191_v27 = vcombine.high %v3183_v33, %v3183_v33  ;;  %v3192_v42 = vcombine.high %v3190_v44, %v3190_v44  ;;  %v3294_v48 = vsel %vm3209_vm4, %v3183_v33, -inf  ;;  %v3308_v62 = vsel %vm3209_vm4, %v3190_v44, -inf  ;;  %3988 = vmatpush1.bf16.msra.mxu1 %v13225_v19 }
 0x6e0   : > { %v3270_v56 = vmax.f32 %v3268_v47, %v3269_v5  ;;  %v3276_v11 = vrot.slane %v3275_v1, 2  ;;  %v3283_v53 = vrot.slane %v3282_v51, 2  ;;  %v3289_v4 = vmax.f32 %v3287_v55, %v3288_v52  ;;  %3446 = vrot.lane.b32.xlu1 %v3442_v54, %s18762_s8  ;;  %12971 = vmatpush3.bf16.msra.mxu0 %v13227_v37 }
 0x6e1   : > { %v3295_v38 = vrot.slane %v3294_v48, 4  ;;  %v3301_v20 = vsel %vm3209_vm4, %v3191_v27, -inf  ;;  %v3309_v18 = vrot.slane %v3308_v62, 4  ;;  %v3315_v58 = vsel %vm3209_vm4, %v3192_v42, -inf  ;;  %3989 = vmatprep.subr.bf16.mxu1 %v18773_v32  ;;  %12972 = vmatprep.subr.bf16.mxu0 %v13229_v28 }
 0x6e2   : > { %v3277_v63 = vmax.f32 %v3275_v1, %v3276_v11  ;;  %v3284_v31 = vmax.f32 %v3282_v51, %v3283_v53  ;;  %v3290_v60 = vrot.slane %v3289_v4, 2  ;;  %v3302_v25 = vrot.slane %v3301_v20, 4 }
 0x6e3   : > { %v3296_v59 = vmax.f32 %v3294_v48, %v3295_v38  ;;  %v3310_v30 = vmax.f32 %v3308_v62, %v3309_v18  ;;  %v3316_v22 = vrot.slane %v3315_v58, 4  ;;  %v3271_v12 = vrot.slane %v3270_v56, 1  ;;  %3990 = vmatpush1.bf16.msra.mxu1 %v13228_v8  ;;  %v13234_v8 = vld [vmem:[%s18780_s3 + $0x100] sm:$0xff]  }
 0x6e4   : > { %v3278_v2 = vrot.slane %v3277_v63, 1  ;;  %v3285_v21 = vrot.slane %v3284_v31, 1  ;;  %v3291_v40 = vmax.f32 %v3289_v4, %v3290_v60  ;;  %v3303_v24 = vmax.f32 %v3301_v20, %v3302_v25  ;;  %3434 = vrot.lane.b32.xlu1 %v15510_v7, %s18762_s8  ;;  %12973 = vmatpush3.bf16.msra.mxu0 %v13230_v46  ;;  %v13233_v7 = vld [vmem:[%s18780_s3 + $0x8] sm:$0xff]   ;;  %v13236_v25 = vld [vmem:[%s18780_s3] sm:$0xff]  }
 0x6e5   : > { %v3297_v3 = vrot.slane %v3296_v59, 2  ;;  %v3311_v26 = vrot.slane %v3310_v30, 2  ;;  %v3317_v50 = vmax.f32 %v3315_v58, %v3316_v22  ;;  %v15561_v54 = vrot.slane %v18773_v32, 5  ;;  %3991 = vmatprep.subr.bf16.mxu1 %v18773_v32  ;;  %12974 = vmatprep.subr.bf16.mxu0 %v13232_v15 }
 0x6e6   : > { %v3279_v6 = vmax.f32 %v3277_v63, %v3278_v2  ;;  %v3292_v9 = vrot.slane %v3291_v40, 1  ;;  %v3304_v16 = vrot.slane %v3303_v24, 2  ;;  %v3272_v36 = vmax.f32 %v3270_v56, %v3271_v12 }
 0x6e7   : > { %v3298_v43 = vmax.f32 %v3296_v59, %v3297_v3  ;;  %v3312_v49 = vmax.f32 %v3310_v30, %v3311_v26  ;;  %v3318_v47 = vrot.slane %v3317_v50, 2  ;;  %v3286_v34 = vmax.f32 %v3284_v31, %v3285_v21  ;;  %3992 = vmatpush1.bf16.msra.mxu1 %v13231_v45  ;;  %v13235_v59 = vld [vmem:[%s18780_s3 + $0x40] sm:$0xff]   ;;  %v13237_v21 = vld [vmem:[%s18780_s3 + $0x158] sm:$0xff]  }
 0x6e8   : > { %v3293_v33 = vmax.f32 %v3291_v40, %v3292_v9  ;;  %v3459_v0 = vsel %vm3452_vm0, %v3455_v61, %v15561_v54  ;;  %v3305_v10 = vmax.f32 %v3303_v24, %v3304_v16  ;;  %v3331_v17 = vpack.c.bf16 %v3279_v6, %v3279_v6  ;;  %12975 = vmatpush3.bf16.msra.mxu0 %v13233_v7  ;;  %v13238_v40 = vld [vmem:[%s18780_s3 + $0xf8] sm:$0xff]   ;;  %v13243_v7 = vld [vmem:[%s18780_s3 + $0x148] sm:$0xff]  }
 0x6e9   : > { %v3299_v41 = vrot.slane %v3298_v43, 1  ;;  %v3313_v55 = vrot.slane %v3312_v49, 1  ;;  %v3319_v44 = vmax.f32 %v3317_v50, %v3318_v47  ;;  %3464 = vrot.lane.b32.xlu1 %v3459_v0, %s18762_s8  ;;  %3993 = vmatprep.subr.bf16.mxu1 %v18773_v32  ;;  %v3330_v52 = vpack.c.bf16 %v3272_v36, %v3272_v36  ;;  %v13246_v0 = vld [vmem:[%s18780_s3 + $0x140] sm:$0xff]  }
 0x6ea   : > { %v3333_v23 = vpack.c.bf16 %v3293_v33, %v3293_v33  ;;  %v3306_v5 = vrot.slane %v3305_v10, 1  ;;  %v3332_v19 = vpack.c.bf16 %v3286_v34, %v3286_v34  ;;  %v3363_v62 = vunpack.c.l.b16 %v3331_v17  ;;  %12976 = vmatprep.subr.bf16.mxu0 %v13235_v59  ;;  %v13244_v59 = vld [vmem:[%s18780_s3 + $0xe8] sm:$0xff]  }
 0x6eb   : > { %v3300_v14 = vmax.f32 %v3298_v43, %v3299_v41  ;;  %v3314_v1 = vmax.f32 %v3312_v49, %v3313_v55  ;;  %v3320_v51 = vrot.slane %v3319_v44, 1  ;;  %v3362_v28 = vunpack.c.l.b16 %v3330_v52  ;;  %3994 = vmatpush1.bf16.msra.mxu1 %v13234_v8  ;;  %v13240_v43 = vld [vmem:[%s18780_s3 + $0x150] sm:$0xff]  }
 0x6ec   : > { %v3307_v27 = vmax.f32 %v3305_v10, %v3306_v5  ;;  %v3365_v56 = vunpack.c.l.b16 %v3333_v23  ;;  %v3364_v20 = vunpack.c.l.b16 %v3332_v19  ;;  %12977 = vmatpush3.bf16.msra.mxu0 %v13236_v25  ;;  %4003 = vmatprep.subr.bf16.mxu1 %v18773_v32  ;;  %v3469_v2 = vrot.slane %v15466_v13, 5 }
 0x6ed   : > { %v3321_v42 = vmax.f32 %v3319_v44, %v3320_v51  ;;  %v3334_v48 = vpack.c.bf16 %v3300_v14, %v3300_v14  ;;  %v3336_v37 = vpack.c.bf16 %v3314_v1, %v3314_v1  ;;  %v3376_v31 = vsel %vm3016_vm10, %v3363_v62, %v3362_v28  ;;  %12984 = vmatprep.subr.bf16.mxu0 %v13238_v40 }
 0x6ee   : > { %v3335_v11 = vpack.c.bf16 %v3307_v27, %v3307_v27  ;;  %v3377_v30 = vsel %vm3018_vm3, %v3364_v20, %v3376_v31  ;;  %v3471_v50 = vsel %vm3386_vm9, %v3469_v2, %v15561_v54  ;;  %v3414_v52 = vrot.slane %v15466_v13, 1 }
 0x6ef   : > { %v3337_v53 = vpack.c.bf16 %v3321_v42, %v3321_v42  ;;  %v3366_v4 = vunpack.c.l.b16 %v3334_v48  ;;  %v3368_v38 = vunpack.c.l.b16 %v3336_v37  ;;  %4004 = vmatpush2.bf16.msra.mxu1 %v13237_v21  ;;  %v3438_v20 = vrot.slane %v15466_v13, 3 }
 0x6f0   : > { %v3367_v18 = vunpack.c.l.b16 %v3335_v11  ;;  %4005 = vmatprep.subr.bf16.mxu1 %v18773_v32  ;;  %vm4480_vm3 = vsmask.f32 5376 }
 0x6f1   : > { %v3369_v58 = vunpack.c.l.b16 %v3337_v53  ;;  %v3378_v63 = vsel %vm3006_vm15, %v3366_v4, %v3365_v56  ;;  %v13239_v4 = vld [vmem:[%s18780_s3 + $0xb8] sm:$0xff]  }
 0x6f2   : > { %v3379_v60 = vsel %vm3008_vm6, %v3367_v18, %v3378_v63 }
 0x6f3   : > { %v3380_v61 = vsel %vm3010_vm7, %v3368_v38, %v3379_v60  ;;  %4006 = vmatpush2.bf16.msra.mxu1 %v13240_v43  ;;  %v13241_v38 = vld [vmem:[%s18780_s3 + $0xf0] sm:$0xff]   ;;  %v13253_v43 = vld [vmem:[%s18780_s3 + $0xc8] sm:$0xff]  }
 0x6f4   : > { %v3381_v22 = vsel %vm3012_vm8, %v3369_v58, %v3380_v61  ;;  %4007 = vmatprep.subr.bf16.mxu1 %v18773_v32  ;;  %v13242_v61 = vld [vmem:[%s18780_s3 + $0xb0] sm:$0xff]  }
 0x6f5   : > { %v3383_v46 = vpack.c.b16 %v3381_v22, %v3377_v30  ;;  %v13245_v30 = vld [vmem:[%s18780_s3 + $0xa8] sm:$0xff]  }
 0x6f7   : > { %v3390_v12 = vsel %vm15442_vm14, 0, %v3383_v46  ;;  %4008 = vmatpush2.bf16.msra.mxu1 %v13243_v7  ;;  %v13247_v46 = vld [vmem:[%s18780_s3 + $0xe0] sm:$0xff]  }
 0x6f8   : > { %v15601_v15 = vsel %vm15449_vm5, %v3390_v12, 0  ;;  %4009 = vmatprep.subr.bf16.mxu1 %v18773_v32  ;;  %v3450_v12 = vrot.slane %v15466_v13, 4  ;;  %v13256_v7 = vld [vmem:[%s18780_s3 + $0x80] sm:$0xff]  }
 0x6f9   : > { %v3472_v3 = vrot.slane %v15601_v15, 5  ;;  %v3402_v24 = vshrl.u32 %v15601_v15, 16  ;;  %v3404_v26 = vshll.u32 %v15601_v15, 16  ;;  %v3415_v19 = vrot.slane %v15601_v15, 1 }
 0x6fa   : > { %v3439_v18 = vrot.slane %v15601_v15, 3  ;;  %v3451_v2 = vrot.slane %v15601_v15, 4 }
 0x6fb   : > { %v3473_v6 = vsel %vm3386_vm9, %v3472_v3, %v15561_v54  ;;  %v3419_v9 = vrot.slane %v3402_v24, 1  ;;  %v3420_v45 = vrot.slane %v3404_v26, 2  ;;  %v3406_v47 = vrot.slane %v3404_v26, 1  ;;  %4010 = vmatpush2.bf16.msra.mxu1 %v13246_v0 }
 0x6fc   : > { %v12133_v16 = vcombine.low %v3471_v50, %v3473_v6  ;;  %v3443_v34 = vrot.slane %v3402_v24, 3  ;;  %v3444_v33 = vrot.slane %v3404_v26, 4  ;;  %v3431_v10 = vrot.slane %v3402_v24, 2  ;;  %v13249_v50 = vld [vmem:[%s18780_s3 + $0xd8] sm:$0xff]  }
 0x6fd   : > { %v3421_v49 = vor.u32 %v3420_v45, %v3419_v9  ;;  %v3407_v36 = vor.u32 %v3406_v47, %v3402_v24  ;;  %v3432_v55 = vrot.slane %v3404_v26, 3  ;;  %v3460_v44 = vrot.slane %v3402_v24, 4  ;;  %v13248_v24 = vld [vmem:[%s18780_s3 + $0xa0] sm:$0xff]   ;;  %v13250_v6 = vld [vmem:[%s18780_s3 + $0x98] sm:$0xff]   ;;  %v13251_v9 = vld [vmem:[%s18780_s3 + $0xd0] sm:$0xff]  }
 0x6fe   : > { %12178 = vmatprep.mubr.msk.bf16.mxu1 %vm1315_vm12, %v12133_v16  ;;  %v3445_v41 = vor.u32 %v3444_v33, %v3443_v34  ;;  %v3461_v17 = vrot.slane %v3404_v26, 5  ;;  %v13252_v45 = vld [vmem:[%s18780_s3 + $0x90] sm:$0xff]   ;;  %v13254_v16 = vld [vmem:[%s18780_s3 + $0x88] sm:$0xff]   ;;  %v3427_v47 = vrot.slane %v15601_v15, 2 }
 0x6ff   : > { %3424 = vrot.lane.b32.xlu0 %v3421_v49, %s18762_s8  ;;  %v3433_v23 = vor.u32 %v3432_v55, %v3431_v10  ;;  %v13255_v49 = vld [vmem:[%s18780_s3 + $0xc0] sm:$0xff]   ;;  %v13259_v10 = vld [vmem:[%s18781_s10 + $0x70] sm:$0xff]  }
 0x700   : > { %v3462_v14 = vor.u32 %v3461_v17, %v3460_v44 }
 0x702   : > { %v3463_v5 = vsel %vm3452_vm0, %v3462_v14, %v15561_v54 }
 0x703   : > { %3410 = vrot.lane.b32.xlu0 %v3407_v36, %s18762_s8  ;;  %v3426_v36 = vrot.slane %v15466_v13, 2 }
 0x707   : > { %3448 = vrot.lane.b32.xlu0 %v3445_v41, %s18762_s8  ;;  %v13257_v41 = vld [vmem:[%s18781_s10 + $0x78] sm:$0xff]  }
 0x70b   : > { %3436 = vrot.lane.b32.xlu0 %v3433_v23, %s18762_s8 }
 0x70f   : > { %3466 = vrot.lane.b32.xlu0 %v3463_v5, %s18762_s8 }
 0x74a   : > { %v3423_v1 = vpop.permute.xlu1 %3422 }
 0x74b   : > { %v3480_v42 = vsel %vm1315_vm12, %v3414_v52, %v3423_v1  ;;  %v12127_v52 = vld [vmem:[%s18782_s11] ss:$0 sm:$0xff]  ;;  %s810_s11 = sand.u32 1, %s14347_s4  }
 0x74c   : > { %s12072_s27 = sshll.u32 %s810_s11, 1 }
 0x74d   : > { %s812_s7 = scalar_lea.vmem [#allocation2], %s12072_s27  ;;  %s14299_s27 = sshll.u32 %s14369_s9, 4  ;;  %s14300_s27 = int_to_ptr.vmem [resolvable:$false] %s14299_s27 }
 0x74e   : > { %v3409_v51 = vpop.permute.xlu1 %3408  ;;  %s14301_s3 = scalar_lea.vmem %s14300_s27, 64 }
 0x74f   : > { %v3475_v11 = vsel %vm1315_vm12, %v15466_v13, %v3409_v51 }
 0x752   : > { %v3447_v62 = vpop.permute.xlu1 %3446 }
 0x753   : > { %v3492_v31 = vsel %vm1315_vm12, %v3438_v20, %v3447_v62 }
 0x756   : > { %v3435_v58 = vpop.permute.xlu1 %3434 }
 0x757   : > { %v3486_v33 = vsel %vm1315_vm12, %v3426_v36, %v3435_v58  ;;  %v13261_v58 = vld [vmem:[%s18781_s10 + $0x68] sm:$0xff]   ;;  %v13268_v36 = vld [vmem:[%s18781_s10 + $0x50] sm:$0xff]  }
 0x75b   : > { %v3465_v22 = vpop.permute.xlu1 %3464 }
 0x75c   : > { %v3498_v40 = vsel %vm1315_vm12, %v3450_v12, %v3465_v22 }
 0x771   : > { %v3425_v27 = vpop.permute.xlu0 %3424 }
 0x772   : > { %v3483_v48 = vsel %vm1315_vm12, %v3415_v19, %v3425_v27 }
 0x773   : > { %v12129_v37 = vcombine.low %v3480_v42, %v3483_v48 }
 0x775   : > { %v3411_v56 = vpop.permute.xlu0 %3410  ;;  %3929 = vmatprep.mubr.bf16.mxu0 %v12129_v37 }
 0x776   : > { %v3477_v53 = vsel %vm1315_vm12, %v15601_v15, %v3411_v56  ;;  %v13258_v15 = vld [vmem:[%s18781_s10 + $0x38] sm:$0xff]  }
 0x777   : > { %v12128_v28 = vcombine.low %v3475_v11, %v3477_v53 }
 0x779   : > { %v3449_v63 = vpop.permute.xlu0 %3448  ;;  %3930 = vmatmul.mubr.bf16.vlgmr.msra.gmra.mxu0 %v12128_v28 }
 0x77a   : > { %v3495_v60 = vsel %vm1315_vm12, %v3439_v18, %v3449_v63  ;;  %12985 = vmatpush3.bf16.msra.mxu0 %v13239_v4  ;;  %v13260_v18 = vld [vmem:[%s18781_s10 + $0x30] sm:$0xff]  }
 0x77b   : > { %v12131_v8 = vcombine.low %v3492_v31, %v3495_v60  ;;  %12986 = vmatprep.subr.bf16.mxu0 %v13241_v38 }
 0x77d   : > { %v3437_v25 = vpop.permute.xlu0 %3436  ;;  %3970 = vmatprep.mubr.bf16.mxu0 %v12131_v8 }
 0x77e   : > { %12987 = vmatpush3.bf16.msra.mxu0 %v13242_v61  ;;  %v3489_v34 = vsel %vm1315_vm12, %v3427_v47, %v3437_v25  ;;  %v13263_v25 = vld [vmem:[%s18781_s10 + $0x60] sm:$0xff]   ;;  %v13266_v47 = vld [vmem:[%s18781_s10 + $0x18] sm:$0xff]  }
 0x77f   : > { %12988 = vmatprep.subr.bf16.mxu0 %v13244_v59  ;;  %v12130_v0 = vcombine.low %v3486_v33, %v3489_v34  ;;  %v13262_v59 = vld [vmem:[%s18781_s10 + $0x28] sm:$0xff]  }
 0x781   : > { %v3467_v21 = vpop.permute.xlu0 %3466 }
 0x782   : > { %v3501_v3 = vsel %vm1315_vm12, %v3451_v2, %v3467_v21  ;;  %12989 = vmatpush3.bf16.msra.mxu0 %v13245_v30 }
 0x783   : > { %v12132_v26 = vcombine.low %v3498_v40, %v3501_v3  ;;  %12990 = vmatprep.subr.bf16.mxu0 %v13247_v46  ;;  %v13264_v40 = vld [vmem:[%s18781_s10 + $0x20] sm:$0xff]   ;;  %v13265_v3 = vld [vmem:[%s18781_s10 + $0x58] sm:$0xff]  }
 0x785   : > { %4012 = vmatmul.mubr.bf16.vlgmr.msra.gmra.mxu1 %v12132_v26 }
 0x786   : > { %12991 = vmatpush3.bf16.msra.mxu0 %v13248_v24 }
 0x787   : > { %12992 = vmatprep.subr.bf16.mxu0 %v13249_v50 }
 0x78a   : > { %12993 = vmatpush3.bf16.msra.mxu0 %v13250_v6  ;;  %v14366_v6 = vmov 0.0  }
 0x78b   : > { %12994 = vmatprep.subr.bf16.mxu0 %v13251_v9  ;;  %13113 = vmatprep.subr.bf16.mxu1 %v14366_v6 }
 0x78c   : > { %13125 = vmatprep.mubr.msk.bf16.mxu1 %vm14367_vm1, %v14366_v6 }
 0x78e   : > { %12995 = vmatpush3.bf16.msra.mxu0 %v13252_v45 }
 0x78f   : > { %12996 = vmatprep.subr.bf16.mxu0 %v13253_v43 }
 0x792   : > { %12997 = vmatpush3.bf16.msra.mxu0 %v13254_v16 }
 0x793   : > { %12998 = vmatprep.subr.bf16.mxu0 %v13255_v49 }
 0x796   : > { %12999 = vmatpush3.bf16.msra.mxu0 %v13256_v7  ;;  %v13267_v7 = vld [vmem:[%s18781_s10 + $0xa8] sm:$0xff]  }
 0x797   : > { %13006 = vmatprep.subr.bf16.mxu0 %v13257_v41  ;;  %13114 = vmatpush3.bf16.msra.mxu1 %v13267_v7 }
 0x798   : > { %13115 = vmatprep.subr.bf16.mxu1 %v14366_v6 }
 0x799   : > { %3971 = vmatmul.mubr.bf16.vlgmr.msra.gmra.mxu0 %v12130_v0 }
 0x79a   : > { %13007 = vmatpush3.bf16.msra.mxu0 %v13258_v15 }
 0x79b   : > { %13008 = vmatprep.subr.bf16.mxu0 %v13259_v10 }
 0x79e   : > { %13009 = vmatpush3.bf16.msra.mxu0 %v13260_v18 }
 0x79f   : > { %13010 = vmatprep.subr.bf16.mxu0 %v13261_v58 }
 0x7a2   : > { %13011 = vmatpush3.bf16.msra.mxu0 %v13262_v59 }
 0x7a3   : > { %13012 = vmatprep.subr.bf16.mxu0 %v13263_v25 }
 0x7a6   : > { %13013 = vmatpush3.bf16.msra.mxu0 %v13264_v40 }
 0x7a7   : > { %13014 = vmatprep.subr.bf16.mxu0 %v13265_v3 }
 0x7aa   : > { %13015 = vmatpush3.bf16.msra.mxu0 %v13266_v47 }
 0x7ab   : > { %13016 = vmatprep.subr.bf16.mxu0 %v13268_v36 }
 0x7ae   : > { %13017 = vmatpush3.bf16.msra.mxu0 %v13269_v57 }
 0x839   : > { %v12978_v17 = vpop.f32.mrf.mxu0 }
 0x83b   : > { %v12979_v14 = vpop.f32.mrf.mxu0 }
 0x83c   : > { %v12980_v51 = vadd.f32 %v12979_v14, %v12978_v17  ;;  %v13271_v17 = vld [vmem:[%s18781_s10 + $0x48] sm:$0xff]  }
 0x83d   : > { %v12981_v5 = vpop.f32.mrf.mxu0  ;;  %13018 = vmatprep.subr.bf16.mxu0 %v13271_v17 }
 0x83e   : > { %v3932_v42 = vadd.f32 %v12980_v51, %v12127_v52 }
 0x83f   : > { %v12982_v1 = vpop.f32.mrf.mxu0 }
 0x840   : > { %v12983_v48 = vadd.f32 %v12982_v1, %v12981_v5 }
 0x842   : > { %v3935_v53 = vadd.f32 %v12983_v48, %v12127_v52  ;;  %v13272_v52 = vld [vmem:[%s18781_s10 + $0x8] sm:$0xff]   ;;  %v13274_v48 = vld [vmem:[%s18781_s10 + $0x40] sm:$0xff]  }
 0x843   : > { %13019 = vmatpush3.bf16.msra.mxu0 %v13272_v52 }
 0x844   : > { %13020 = vmatprep.subr.bf16.mxu0 %v13274_v48 }
 0x845   : > { %v4013_v13 = vpop.f32.mrf.mxu1 }
 0x847   : > { %v4015_v55 = vpop.f32.mrf.mxu1 }
 0x849   : > { %v4016_v44 = vpop.f32.mrf.mxu1 }
 0x84b   : > { %v4018_v23 = vpop.f32.mrf.mxu1 }
 0x859   : > { %v13000_v19 = vpop.f32.mrf.mxu0 }
 0x85b   : > { %v13001_v27 = vpop.f32.mrf.mxu0 }
 0x85c   : > { %v13002_v62 = vadd.f32 %v13001_v27, %v13000_v19  ;;  %v13273_v19 = vld [vmem:[%s18781_s10 + $0x98] sm:$0xff]  }
 0x85d   : > { %v13003_v37 = vpop.f32.mrf.mxu0 }
 0x85e   : > { %v3973_v56 = vadd.f32 %v13002_v62, %v3932_v42 }
 0x85f   : > { %v13004_v11 = vpop.f32.mrf.mxu0 }
 0x860   : > { %v4014_v4 = vadd.f32 %v4013_v13, %v3973_v56  ;;  %v13005_v28 = vadd.f32 %v13004_v11, %v13003_v37  ;;  %v13275_v11 = vld [vmem:[%s18781_s10] sm:$0xff]  }
 0x861   : > { %13021 = vmatpush3.bf16.msra.mxu0 %v13275_v11 }
 0x862   : > { %v4020_v38 = vmax.f32 %v4014_v4, 0.0  ;;  %v3976_v20 = vadd.f32 %v13005_v28, %v3935_v53  ;;  %v13276_v53 = vld [vmem:[%s18781_s10 + $0x90] sm:$0xff]   ;;  %4693 = vmatprep.subr.bf16.mxu0 %v18773_v32 }
 0x864   : > { %v4022_v63 = vpack.c.bf16 %v4020_v38, %v4020_v38  ;;  %v4017_v31 = vadd.f32 %v4016_v44, %v3976_v20  ;;  %v13270_v44 = vld [vmem:[%s18781_s10 + $0xa0] sm:$0xff]  }
 0x865   : > { %13116 = vmatpush3.bf16.msra.mxu1 %v13270_v44 }
 0x866   : > { %v4025_v60 = vshrl.u32 %v4022_v63, 16  ;;  %v4028_v61 = vshll.u32 %v4022_v63, 16  ;;  %v4021_v8 = vmax.f32 %v4017_v31, 0.0  ;;  %13117 = vmatprep.subr.bf16.mxu1 %v14366_v6 }
 0x868   : > { %v4027_v30 = vrot.slane %v4025_v60, 5  ;;  %v4030_v22 = vrot.slane %v4028_v61, 6  ;;  %v4023_v46 = vpack.c.bf16 %v4021_v8, %v4021_v8  ;;  %v13277_v60 = vld [vmem:[%s18781_s10 + $0x88] sm:$0xff]  }
 0x869   : > { %13118 = vmatpush3.bf16.msra.mxu1 %v13273_v19 }
 0x86a   : > { %v4031_v12 = vor.u32 %v4030_v22, %v4027_v30  ;;  %v4033_v2 = vshrl.u32 %v4023_v46, 16  ;;  %v4036_v21 = vshll.u32 %v4023_v46, 16  ;;  %13119 = vmatprep.subr.bf16.mxu1 %v14366_v6 }
 0x86c   : > { %v4042_v24 = vsel %vm15442_vm14, 0, %v4031_v12  ;;  %v4035_v26 = vrot.slane %v4033_v2, 5  ;;  %v4038_v50 = vrot.slane %v4036_v21, 6  ;;  %v13278_v12 = vld [vmem:[%s18781_s10 + $0x80] sm:$0xff]  }
 0x86d   : > { %v15730_v9 = vsel %vm15449_vm5, %v4042_v24, 0  ;;  %13120 = vmatpush3.bf16.msra.mxu1 %v13276_v53 }
 0x86e   : > { %v4039_v45 = vor.u32 %v4038_v50, %v4035_v26  ;;  %v4094_v43 = vrot.slane %v15730_v9, 3  ;;  %v15734_v16 = vshrl.u32 %v15730_v9, 16  ;;  %v15737_v49 = vshll.u32 %v15730_v9, 16  ;;  %13121 = vmatprep.subr.bf16.mxu1 %v14366_v6 }
 0x86f   : > { %v4066_v0 = vrot.slane %v15730_v9, 1  ;;  %v4124_v3 = vrot.slane %v15730_v9, 5 }
 0x870   : > { %v4043_v34 = vsel %vm15442_vm14, 0, %v4039_v45  ;;  %4096 = vrot.lane.b32.xlu1 %v4094_v43, %s18762_s8  ;;  %v4084_v41 = vrot.slane %v15734_v16, 2  ;;  %v4085_v10 = vrot.slane %v15737_v49, 3  ;;  %v4051_v23 = vrot.slane %v15737_v49, 1 }
 0x871   : > { %v15753_v33 = vsel %vm15449_vm5, %v4043_v34, 0  ;;  %v4100_v27 = vrot.slane %v15734_v16, 3  ;;  %v4101_v42 = vrot.slane %v15737_v49, 4  ;;  %v4072_v28 = vrot.slane %v15734_v16, 1  ;;  %13122 = vmatpush3.bf16.msra.mxu1 %v13277_v60  ;;  %v13283_v60 = vld [vmem:[%s18686_s13 + $0x18] sm:$0xff]  }
 0x872   : > { %v4095_v15 = vrot.slane %v15753_v33, 3  ;;  %v15760_v13 = vshrl.u32 %v15753_v33, 16  ;;  %v15763_v55 = vshll.u32 %v15753_v33, 16  ;;  %v4067_v14 = vrot.slane %v15753_v33, 1  ;;  %13123 = vmatprep.subr.bf16.mxu1 %v14366_v6 }
 0x873   : > { %v4086_v5 = vor.u32 %v4085_v10, %v4084_v41  ;;  %v4052_v37 = vor.u32 %v4051_v23, %v15734_v16  ;;  %v4102_v4 = vor.u32 %v4101_v42, %v4100_v27  ;;  %v4073_v58 = vrot.slane %v15737_v49, 2 }
 0x874   : > { %4098 = vrot.lane.b32.xlu0 %v4095_v15, %s18762_s8  ;;  %4068 = vrot.lane.b32.xlu1 %v4066_v0, %s18762_s8  ;;  %v4087_v1 = vrot.slane %v15760_v13, 2  ;;  %v4088_v51 = vrot.slane %v15763_v55, 3  ;;  %v4058_v56 = vrot.slane %v15763_v55, 1  ;;  %v4103_v20 = vrot.slane %v15760_v13, 3 }
 0x875   : > { %v4104_v18 = vrot.slane %v15763_v55, 4  ;;  %v4112_v63 = vrot.slane %v15734_v16, 4  ;;  %v4113_v31 = vrot.slane %v15737_v49, 5  ;;  %v4074_v8 = vor.u32 %v4073_v58, %v4072_v28  ;;  %13124 = vmatpush3.bf16.msra.mxu1 %v13278_v12  ;;  %v12179_v12 = vld [vmem:[%s18685_s12] ss:$0 sm:$0xff] }
 0x876   : > { %v4089_v62 = vor.u32 %v4088_v51, %v4087_v1  ;;  %v4059_v38 = vor.u32 %v4058_v56, %v15760_v13  ;;  %v4075_v59 = vrot.slane %v15760_v13, 1  ;;  %v4076_v25 = vrot.slane %v15763_v55, 2 }
 0x877   : > { %v4105_v61 = vor.u32 %v4104_v18, %v4103_v20  ;;  %v4114_v30 = vor.u32 %v4113_v31, %v4112_v63  ;;  %v4116_v22 = vrot.slane %v15760_v13, 4  ;;  %v4117_v46 = vrot.slane %v15763_v55, 5  ;;  %v13279_v63 = vld [vmem:[%s18686_s13 + $0x38] sm:$0xff]   ;;  %v13282_v31 = vld [vmem:[%s18686_s13 + $0x20] sm:$0xff]  }
 0x878   : > { %4070 = vrot.lane.b32.xlu0 %v4067_v14, %s18762_s8  ;;  %4090 = vrot.lane.b32.xlu1 %v4086_v5, %s18763_s29  ;;  %v4077_v2 = vor.u32 %v4076_v25, %v4075_v59  ;;  %v4125_v26 = vsel %vm3386_vm9, %v4124_v3, %v15561_v54  ;;  %v4126_v50 = vrot.slane %v15753_v33, 5  ;;  %v4082_v34 = vrot.slane %v15730_v9, 2  ;;  %v13286_v59 = vld [vmem:[%s18686_s13] sm:$0xff]  }
 0x879   : > { %v4115_v21 = vsel %vm3452_vm0, %v4114_v30, %v15561_v54  ;;  %v4118_v40 = vor.u32 %v4117_v46, %v4116_v22  ;;  %v4083_v0 = vrot.slane %v15753_v33, 2  ;;  %v4110_v56 = vrot.slane %v15730_v9, 4 }
 0x87a   : > { %v4127_v6 = vsel %vm3386_vm9, %v4126_v50, %v15561_v54  ;;  %v4111_v11 = vrot.slane %v15753_v33, 4  ;;  %vm18783_vm5 = vcmask 1041408   ;;  %vm18786_vm9 = vcmask 1045504  }
 0x87b   : > { %v4119_v24 = vsel %vm3452_vm0, %v4118_v40, %v15561_v54  ;;  %vm15918_vm10 = vmand %vm18783_vm5, %vm4476_vm2 }
 0x87c   : > { %4092 = vrot.lane.b32.xlu0 %v4089_v62, %s18763_s29  ;;  %4060 = vrot.lane.b32.xlu1 %v4052_v37, %s18763_s29  ;;  %vm15925_vm0 = vmand %vm18786_vm9, %vm4480_vm3 }
 0x880   : > { %4062 = vrot.lane.b32.xlu0 %v4059_v38, %s18763_s29  ;;  %4106 = vrot.lane.b32.xlu1 %v4102_v4, %s18764_s5 }
 0x884   : > { %4108 = vrot.lane.b32.xlu0 %v4105_v61, %s18764_s5  ;;  %4078 = vrot.lane.b32.xlu1 %v4074_v8, %s18764_s5  ;;  %v13284_v61 = vld [vmem:[%s18686_s13 + $0x10] sm:$0xff]   ;;  %v13285_v8 = vld [vmem:[%s18686_s13 + $0x8] sm:$0xff]  }
 0x888   : > { %4080 = vrot.lane.b32.xlu0 %v4077_v2, %s18764_s5  ;;  %4120 = vrot.lane.b32.xlu1 %v4115_v21, %s18763_s29 }
 0x88c   : > { %4122 = vrot.lane.b32.xlu0 %v4119_v24, %s18763_s29  ;;  %4128 = vrot.lane.b32.xlu1 %v4125_v26, %s18762_s8 }
 0x890   : > { %4130 = vrot.lane.b32.xlu0 %v4127_v6, %s18762_s8 }
 0x8e2   : > { %v4097_v45 = vpop.permute.xlu1 %4096 }
 0x8e6   : > { %v4099_v43 = vpop.permute.xlu0 %4098  ;;  %v4069_v16 = vpop.permute.xlu1 %4068 }
 0x8ea   : > { %v4071_v49 = vpop.permute.xlu0 %4070  ;;  %v4091_v47 = vpop.permute.xlu1 %4090 }
 0x8eb   : > { %v4146_v10 = vsel %vm1306_vm11, %v4082_v34, %v4091_v47 }
 0x8ec   : > { %v4151_v54 = vsel %vm1315_vm12, %v4146_v10, %v4097_v45 }
 0x8ee   : > { %v4093_v7 = vpop.permute.xlu0 %4092  ;;  %v4061_v36 = vpop.permute.xlu1 %4060 }
 0x8ef   : > { %v4149_v13 = vsel %vm1306_vm11, %v4083_v0, %v4093_v7  ;;  %v4133_v17 = vsel %vm1306_vm11, %v15730_v9, %v4061_v36  ;;  %v13280_v9 = vld [vmem:[%s18686_s13 + $0x30] sm:$0xff]  }
 0x8f0   : > { %v4153_v55 = vsel %vm1315_vm12, %v4149_v13, %v4099_v43  ;;  %v4137_v51 = vsel %vm1315_vm12, %v4133_v17, %v4069_v16  ;;  %v13287_v43 = vld [vmem:[%s18686_s13 + $0x68] sm:$0xff]  }
 0x8f2   : > { %v4063_v41 = vpop.permute.xlu0 %4062  ;;  %v4107_v15 = vpop.permute.xlu1 %4106 }
 0x8f3   : > { %v4135_v23 = vsel %vm1306_vm11, %v15753_v33, %v4063_v41  ;;  %v4155_v14 = vsel %vm1324_vm13, %v4151_v54, %v4107_v15  ;;  %v13281_v33 = vld [vmem:[%s18686_s13 + $0x28] sm:$0xff]   ;;  %v13288_v15 = vld [vmem:[%s18686_s13 + $0x60] sm:$0xff]  }
 0x8f4   : > { %v4139_v52 = vsel %vm1315_vm12, %v4135_v23, %v4071_v49 }
 0x8f6   : > { %v4109_v57 = vpop.permute.xlu0 %4108  ;;  %v4079_v44 = vpop.permute.xlu1 %4078 }
 0x8f7   : > { %v4157_v5 = vsel %vm1324_vm13, %v4153_v55, %v4109_v57  ;;  %v4141_v42 = vsel %vm1324_vm13, %v4137_v51, %v4079_v44 }
 0x8f8   : > { %v12181_v1 = vcombine.low %v4155_v14, %v4157_v5 }
 0x8fa   : > { %v4081_v19 = vpop.permute.xlu0 %4080  ;;  %4403 = vmatprep.mubr.bf16.mxu0 %v12181_v1  ;;  %v4121_v27 = vpop.permute.xlu1 %4120  ;;  %v13289_v1 = vld [vmem:[%s18686_s13 + $0x58] sm:$0xff]  }
 0x8fb   : > { %v4143_v48 = vsel %vm1324_vm13, %v4139_v52, %v4081_v19  ;;  %v4160_v4 = vsel %vm1306_vm11, %v4110_v56, %v4121_v27 }
 0x8fc   : > { %v12180_v62 = vcombine.low %v4141_v42, %v4143_v48  ;;  %v13290_v48 = vld [vmem:[%s18686_s13 + $0x50] sm:$0xff]  }
 0x8fe   : > { %v4123_v37 = vpop.permute.xlu0 %4122  ;;  %4404 = vmatmul.mubr.bf16.vlgmr.msra.gmra.mxu0 %v12180_v62  ;;  %v4129_v53 = vpop.permute.xlu1 %4128 }
 0x8ff   : > { %v4163_v28 = vsel %vm1306_vm11, %v4111_v11, %v4123_v37  ;;  %v4165_v20 = vsel %vm1315_vm12, %v4160_v4, %v4129_v53  ;;  %4694 = vmatpush1.bf16.msra.mxu0 %v13279_v63  ;;  %v13291_v4 = vld [vmem:[%s18686_s13 + $0x48] sm:$0xff]  }
 0x900   : > { %4695 = vmatprep.subr.bf16.mxu0 %v18773_v32 }
 0x902   : > { %v4131_v38 = vpop.permute.xlu0 %4130 }
 0x903   : > { %v4167_v18 = vsel %vm1315_vm12, %v4163_v28, %v4131_v38  ;;  %4696 = vmatpush1.bf16.msra.mxu0 %v13280_v9  ;;  %v13292_v9 = vld [vmem:[%s18686_s13 + $0x40] sm:$0xff]  }
 0x904   : > { %v12182_v58 = vcombine.low %v4165_v20, %v4167_v18  ;;  %4697 = vmatprep.subr.bf16.mxu0 %v18773_v32 }
 0x906   : > { %13126 = vmatmul.mubr.msk.bf16.vlgmr.msra.gmra.mxu1 %vm1324_vm13, %v12182_v58 }
 0x907   : > { %4698 = vmatpush1.bf16.msra.mxu0 %v13281_v33 }
 0x908   : > { %4699 = vmatprep.subr.bf16.mxu0 %v18773_v32 }
 0x90b   : > { %4700 = vmatpush1.bf16.msra.mxu0 %v13282_v31 }
 0x90c   : > { %4701 = vmatprep.subr.bf16.mxu0 %v18773_v32 }
 0x90f   : > { %4702 = vmatpush1.bf16.msra.mxu0 %v13283_v60 }
 0x910   : > { %4703 = vmatprep.subr.bf16.mxu0 %v18773_v32 }
 0x913   : > { %4704 = vmatpush1.bf16.msra.mxu0 %v13284_v61 }
 0x914   : > { %4705 = vmatprep.subr.bf16.mxu0 %v18773_v32 }
 0x917   : > { %4706 = vmatpush1.bf16.msra.mxu0 %v13285_v8 }
 0x918   : > { %4707 = vmatprep.subr.bf16.mxu0 %v18773_v32 }
 0x91b   : > { %4708 = vmatpush1.bf16.msra.mxu0 %v13286_v59 }
 0x91c   : > { %4713 = vmatprep.subr.bf16.mxu0 %v18773_v32 }
 0x91f   : > { %4714 = vmatpush2.bf16.msra.mxu0 %v13287_v43 }
 0x920   : > { %4715 = vmatprep.subr.bf16.mxu0 %v18773_v32 }
 0x923   : > { %4716 = vmatpush2.bf16.msra.mxu0 %v13288_v15 }
 0x924   : > { %4717 = vmatprep.subr.bf16.mxu0 %v18773_v32 }
 0x927   : > { %4718 = vmatpush2.bf16.msra.mxu0 %v13289_v1  ;;  %v13294_v1 = vld [vmem:[%s18688_s15 + $0x38] sm:$0xff]  }
 0x928   : > { %4719 = vmatprep.subr.bf16.mxu0 %v18773_v32 }
 0x92b   : > { %4720 = vmatpush2.bf16.msra.mxu0 %v13290_v48  ;;  %v13300_v48 = vld [vmem:[%s18688_s15 + $0x20] sm:$0xff]  }
 0x92c   : > { %4721 = vmatprep.subr.bf16.mxu0 %v18773_v32 }
 0x92f   : > { %4722 = vmatpush2.bf16.msra.mxu0 %v13291_v4 }
 0x930   : > { %4723 = vmatprep.subr.bf16.mxu0 %v18773_v32 }
 0x933   : > { %4724 = vmatpush2.bf16.msra.mxu0 %v13292_v9 }
 0x9be   : > { %v13022_v25 = vpop.f32.mrf.mxu0 }
 0x9c0   : > { %v13023_v30 = vpop.f32.mrf.mxu0 }
 0x9c1   : > { %v13024_v22 = vadd.f32 %v13023_v30, %v13022_v25 }
 0x9c2   : > { %v13025_v46 = vpop.f32.mrf.mxu0 }
 0x9c3   : > { %v4406_v40 = vadd.f32 %v13024_v22, %v12179_v12 }
 0x9c4   : > { %v13026_v2 = vpop.f32.mrf.mxu0 }
 0x9c5   : > { %v13027_v21 = vadd.f32 %v13026_v2, %v13025_v46 }
 0x9c6   : > { %v4446_v3 = vpop.f32.mrf.mxu1 }
 0x9c7   : > { %v4447_v24 = vadd.f32 %v4446_v3, %v4406_v40  ;;  %v4409_v6 = vadd.f32 %v13027_v21, %v12179_v12 }
 0x9c8   : > { %v13127_v26 = vpop.f32.mrf.mxu1 }
 0x9c9   : > { %v15904_v50 = vmax.f32 %v4447_v24, 0.0 }
 0x9ca   : > { %v4449_v45 = vpop.f32.mrf.mxu1 }
 0x9cb   : > { %v4455_v16 = vpack.c.bf16 %v15904_v50, %v15904_v50  ;;  %v4450_v49 = vadd.f32 %v4449_v45, %v4409_v6 }
 0x9cc   : > { %v13128_v47 = vpop.f32.mrf.mxu1 }
 0x9cd   : > { %v4458_v7 = vshrl.u32 %v4455_v16, 16  ;;  %v4461_v36 = vshll.u32 %v4455_v16, 16  ;;  %v15912_v34 = vmax.f32 %v4450_v49, 0.0 }
 0x9cf   : > { %v4460_v0 = vrot.slane %v4458_v7, 6  ;;  %v4463_v41 = vrot.slane %v4461_v36, 7  ;;  %v4456_v13 = vpack.c.bf16 %v15912_v34, %v15912_v34 }
 0x9d1   : > { %v4464_v54 = vor.u32 %v4463_v41, %v4460_v0  ;;  %v4466_v57 = vshrl.u32 %v4456_v13, 16  ;;  %v4469_v44 = vshll.u32 %v4456_v13, 16 }
 0x9d3   : > { %v4478_v17 = vsel %vm15918_vm10, 0, %v4464_v54  ;;  %v4468_v14 = vrot.slane %v4466_v57, 6  ;;  %v4471_v5 = vrot.slane %v4469_v44, 7 }
 0x9d4   : > { %v15934_v23 = vsel %vm15925_vm0, %v4478_v17, 0 }
 0x9d5   : > { %v4472_v51 = vor.u32 %v4471_v5, %v4468_v14  ;;  %v4504_v52 = vrot.slane %v15934_v23, 1  ;;  %v4532_v27 = vrot.slane %v15934_v23, 3  ;;  %v4485_v37 = vshrl.u32 %v15934_v23, 16  ;;  %v13293_v5 = vld [vmem:[%s18688_s15 + $0x78] sm:$0xff]  }
 0x9d6   : > { %v4487_v56 = vshll.u32 %v15934_v23, 16  ;;  %v4520_v6 = vrot.slane %v15934_v23, 2  ;;  %13035 = vmatprep.subr.bf16.mxu1 %v13293_v5 }
 0x9d7   : > { %v4479_v19 = vsel %vm15918_vm10, 0, %v4472_v51  ;;  %4506 = vrot.lane.b32.xlu1 %v4504_v52, %s18762_s8  ;;  %v4522_v58 = vrot.slane %v4485_v37, 2  ;;  %v4510_v8 = vrot.slane %v4485_v37, 1  ;;  %v13295_v51 = vld [vmem:[%s18688_s15 + $0x70] sm:$0xff]   ;;  %13036 = vmatpush3.bf16.msra.mxu1 %v13294_v1 }
 0x9d8   : > { %v4483_v42 = vsel %vm15925_vm0, %v4479_v19, 0  ;;  %v4489_v53 = vrot.slane %v4487_v56, 1  ;;  %v4523_v63 = vrot.slane %v4487_v56, 3  ;;  %v4511_v59 = vrot.slane %v4487_v56, 2  ;;  %v13296_v52 = vld [vmem:[%s18688_s15 + $0x30] sm:$0xff]   ;;  %13037 = vmatprep.subr.bf16.mxu1 %v13295_v51  ;;  %v13297_v19 = vld [vmem:[%s18688_s15 + $0x68] sm:$0xff]  }
 0x9d9   : > { %v4505_v62 = vrot.slane %v4483_v42, 1  ;;  %v4494_v11 = vshll.u32 %v4483_v42, 16  ;;  %v4533_v28 = vrot.slane %v4483_v42, 3  ;;  %v4492_v38 = vshrl.u32 %v4483_v42, 16  ;;  %v13303_v56 = vld [vmem:[%s18688_s15 + $0x50] sm:$0xff]  }
 0x9da   : > { %v4490_v18 = vor.u32 %v4489_v53, %v4485_v37  ;;  %v4524_v61 = vor.u32 %v4523_v63, %v4522_v58  ;;  %v4512_v46 = vor.u32 %v4511_v59, %v4510_v8  ;;  %v4521_v16 = vrot.slane %v4483_v42, 2  ;;  %v13302_v37 = vld [vmem:[%s18688_s15 + $0x18] sm:$0xff]   ;;  %v12206_v53 = vld [vmem:[%s18687_s14] ss:$0 sm:$0xff]  ;;  %v13306_v8 = vld [vmem:[%s18688_s15 + $0x8] sm:$0xff]  }
 0x9db   : > { %4534 = vrot.lane.b32.xlu1 %v4532_v27, %s18762_s8  ;;  %4508 = vrot.lane.b32.xlu0 %v4505_v62, %s18762_s8  ;;  %v4496_v20 = vrot.slane %v4494_v11, 1  ;;  %v4525_v31 = vrot.slane %v4492_v38, 2  ;;  %v4526_v60 = vrot.slane %v4494_v11, 3  ;;  %v4513_v30 = vrot.slane %v4492_v38, 1  ;;  %v13298_v27 = vld [vmem:[%s18688_s15 + $0x28] sm:$0xff]   ;;  %v13301_v62 = vld [vmem:[%s18688_s15 + $0x58] sm:$0xff]  }
 0x9dc   : > { %v4514_v22 = vrot.slane %v4494_v11, 2  ;;  %13038 = vmatpush3.bf16.msra.mxu1 %v13296_v52  ;;  %v13304_v11 = vld [vmem:[%s18688_s15 + $0x10] sm:$0xff]  }
 0x9dd   : > { %v4497_v33 = vor.u32 %v4496_v20, %v4492_v38  ;;  %v4527_v25 = vor.u32 %v4526_v60, %v4525_v31  ;;  %13039 = vmatprep.subr.bf16.mxu1 %v13297_v19 }
 0x9de   : > { %v4515_v12 = vor.u32 %v4514_v22, %v4513_v30 }
 0x9df   : > { %4536 = vrot.lane.b32.xlu0 %v4533_v28, %s18762_s8  ;;  %4498 = vrot.lane.b32.xlu1 %v4490_v18, %s18763_s29 }
 0x9e0   : > { %13040 = vmatpush3.bf16.msra.mxu1 %v13298_v27 }
 0x9e3   : > { %4500 = vrot.lane.b32.xlu0 %v4497_v33, %s18763_s29  ;;  %4528 = vrot.lane.b32.xlu1 %v4524_v61, %s18763_s29  ;;  %v13305_v61 = vld [vmem:[%s18688_s15 + $0x48] sm:$0xff]  }
 0x9e7   : > { %4530 = vrot.lane.b32.xlu0 %v4527_v25, %s18763_s29  ;;  %4516 = vrot.lane.b32.xlu1 %v4512_v46, %s18764_s5 }
 0x9eb   : > { %4518 = vrot.lane.b32.xlu0 %v4515_v12, %s18764_s5  ;;  %s12009_s5 = sshll.u32 %s812_s7, 4  ;;  %s12010_s5 = int_to_ptr.vmem [resolvable:$true] %s12009_s5 }
 0x9ec   : > { %s14295_s1 = scalar_lea.vmem %s12010_s5, 32  ;;  %p14302_p0 = scmp.lt.s32.totalorder %s12010_s5, %s14300_s27 }
 0x9ed   : > { %p14296_p11 = scmp.ne.s32.totalorder %s12010_s5, %s14295_s1  ;;  %p14303_p1 = scmp.lt.s32.totalorder %s14301_s3, %s14295_s1 }
 0x9ef   : > { %p14297_p12 = pnand %p14296_p11, %p14548_p5  ;;  %p14304_p2 = por %p14303_p1, %p14302_p0 }
 0x9f1   : > { %p14298_p13 = pneg %p14297_p12 }
 0x9f3   : > { %p14305_p3 = pnand %p14304_p2, %p14298_p13 }
 0xa49   : > { %v4507_v2 = vpop.permute.xlu1 %4506 }
 0xa4d   : > { %v4535_v21 = vpop.permute.xlu1 %4534  ;;  %v4509_v40 = vpop.permute.xlu0 %4508 }
 0xa51   : > { %v4537_v3 = vpop.permute.xlu0 %4536  ;;  %v4499_v24 = vpop.permute.xlu1 %4498 }
 0xa52   : > { %v4539_v47 = vsel %vm1306_vm11, %v15934_v23, %v4499_v24  ;;  %v13308_v24 = vld [vmem:[%s18688_s15] sm:$0xff]  }
 0xa53   : > { %v4543_v54 = vsel %vm1315_vm12, %v4539_v47, %v4507_v2 }
 0xa55   : > { %v4501_v26 = vpop.permute.xlu0 %4500  ;;  %v4529_v45 = vpop.permute.xlu1 %4528 }
 0xa56   : > { %v4552_v43 = vsel %vm1306_vm11, %v4520_v6, %v4529_v45  ;;  %v4541_v7 = vsel %vm1306_vm11, %v4483_v42, %v4501_v26  ;;  %v13299_v42 = vld [vmem:[%s18688_s15 + $0x60] sm:$0xff]  }
 0xa57   : > { %v4557_v0 = vsel %vm1315_vm12, %v4552_v43, %v4535_v21  ;;  %v4545_v57 = vsel %vm1315_vm12, %v4541_v7, %v4509_v40  ;;  %13041 = vmatprep.subr.bf16.mxu1 %v13299_v42 }
 0xa58   : > { %13042 = vmatpush3.bf16.msra.mxu1 %v13300_v48 }
 0xa59   : > { %v4531_v49 = vpop.permute.xlu0 %4530  ;;  %v4517_v41 = vpop.permute.xlu1 %4516  ;;  %13043 = vmatprep.subr.bf16.mxu1 %v13301_v62 }
 0xa5a   : > { %v4555_v36 = vsel %vm1306_vm11, %v4521_v16, %v4531_v49  ;;  %v4547_v17 = vsel %vm1324_vm13, %v4543_v54, %v4517_v41 }
 0xa5b   : > { %v4559_v15 = vsel %vm1315_vm12, %v4555_v36, %v4537_v3  ;;  %v13307_v3 = vld [vmem:[%s18688_s15 + $0x40] sm:$0xff]  }
 0xa5c   : > { %v12208_v13 = vcombine.low %v4557_v0, %v4559_v15  ;;  %13044 = vmatpush3.bf16.msra.mxu1 %v13302_v37 }
 0xa5d   : > { %v4519_v44 = vpop.permute.xlu0 %4518  ;;  %13045 = vmatprep.subr.bf16.mxu1 %v13303_v56 }
 0xa5e   : > { %v4549_v14 = vsel %vm1324_vm13, %v4545_v57, %v4519_v44  ;;  %12223 = vmatprep.mubr.msk.bf16.mxu0 %vm1324_vm13, %v12208_v13 }
 0xa5f   : > { %v12207_v23 = vcombine.low %v4547_v17, %v4549_v14 }
 0xa60   : > { %13046 = vmatpush3.bf16.msra.mxu1 %v13304_v11 }
 0xa61   : > { %4726 = vmatmul.mubr.bf16.vlgmr.msra.gmra.mxu0 %v12207_v23  ;;  %13047 = vmatprep.subr.bf16.mxu1 %v13305_v61  ;;  %v13314_v61 = vld [vmem:[%s18688_s15 + $0x90] sm:$0xff]  }
 0xa62   : > { %5690 = vmatprep.mubr.bf16.mxu0 %v18773_v32 }
 0xa64   : > { %13048 = vmatpush3.bf16.msra.mxu1 %v13306_v8  ;;  %v13315_v8 = vld [vmem:[%s18688_s15 + $0x88] sm:$0xff]  }
 0xa65   : > { %13049 = vmatprep.subr.bf16.mxu1 %v13307_v3 }
 0xa68   : > { %13050 = vmatpush3.bf16.msra.mxu1 %v13308_v24 }
 0xa69   : > { %5118 = vmatprep.subr.bf16.mxu1 %v18773_v32 }
 0xb21   : > { %v4727_v4 = vpop.f32.mrf.mxu0 }
 0xb22   : > { %v4728_v28 = vadd.f32 %v12206_v53, %v4727_v4 }
 0xb23   : > { %v4729_v38 = vpop.f32.mrf.mxu0 }
 0xb24   : > { %v4734_v20 = vmax.f32 %v4728_v28, 0.0 }
 0xb25   : > { %v4730_v18 = vpop.f32.mrf.mxu0 }
 0xb26   : > { %v4736_v58 = vpack.c.bf16 %v4734_v20, %v4734_v20  ;;  %v4731_v63 = vadd.f32 %v12206_v53, %v4730_v18  ;;  %v13309_v20 = vld [vmem:[%s18688_s15 + $0xb8] sm:$0xff]  }
 0xb27   : > { %v4732_v9 = vpop.f32.mrf.mxu0 }
 0xb28   : > { %v4739_v33 = vshrl.u32 %v4736_v58, 16  ;;  %v4742_v31 = vshll.u32 %v4736_v58, 16  ;;  %v4735_v60 = vmax.f32 %v4731_v63, 0.0  ;;  %v13310_v9 = vld [vmem:[%s18688_s15 + $0xb0] sm:$0xff]  }
 0xb2a   : > { %v4741_v59 = vrot.slane %v4739_v33, 6  ;;  %v4744_v25 = vrot.slane %v4742_v31, 7  ;;  %v4737_v30 = vpack.c.bf16 %v4735_v60, %v4735_v60  ;;  %v13311_v33 = vld [vmem:[%s18688_s15 + $0xa8] sm:$0xff]   ;;  %v13312_v31 = vld [vmem:[%s18688_s15 + $0xa0] sm:$0xff]   ;;  %v13313_v60 = vld [vmem:[%s18688_s15 + $0x98] sm:$0xff]  }
 0xb2c   : > { %v4745_v22 = vor.u32 %v4744_v25, %v4741_v59  ;;  %v4747_v46 = vshrl.u32 %v4737_v30, 16  ;;  %v4750_v12 = vshll.u32 %v4737_v30, 16  ;;  %v13316_v59 = vld [vmem:[%s18688_s15 + $0x80] sm:$0xff]   ;;  %v13317_v25 = vld [vmem:[%s18688_s15 + $0xd8] sm:$0xff]   ;;  %v13318_v30 = vld [vmem:[%s18688_s15 + $0xd0] sm:$0xff]  }
 0xb2e   : > { %v4756_v2 = vsel %vm15918_vm10, 0, %v4745_v22  ;;  %v4749_v21 = vrot.slane %v4747_v46, 6  ;;  %v4752_v40 = vrot.slane %v4750_v12, 7  ;;  %v13319_v22 = vld [vmem:[%s18688_s15 + $0xc8] sm:$0xff]  }
 0xb2f   : > { %v16038_v26 = vsel %vm15925_vm0, %v4756_v2, 0  ;;  %v13320_v2 = vld [vmem:[%s18688_s15 + $0xc0] sm:$0xff]  }
 0xb30   : > { %v4753_v6 = vor.u32 %v4752_v40, %v4749_v21  ;;  %v4761_v45 = vshrl.u32 %v16038_v26, 16  ;;  %v4763_v43 = vshll.u32 %v16038_v26, 16  ;;  %v4780_v27 = vrot.slane %v16038_v26, 1 }
 0xb31   : > { %v4804_v18 = vrot.slane %v16038_v26, 3  ;;  %v4792_v40 = vrot.slane %v16038_v26, 2 }
 0xb32   : > { %v4757_v16 = vsel %vm15918_vm10, 0, %v4753_v6  ;;  %v4782_v49 = vrot.slane %v4761_v45, 1  ;;  %v4783_v47 = vrot.slane %v4763_v43, 2  ;;  %v4765_v15 = vrot.slane %v4763_v43, 1 }
 0xb33   : > { %v16047_v7 = vsel %vm15925_vm0, %v4757_v16, 0  ;;  %v4794_v57 = vrot.slane %v4761_v45, 2  ;;  %v4795_v23 = vrot.slane %v4763_v43, 3 }
 0xb34   : > { %v4784_v36 = vor.u32 %v4783_v47, %v4782_v49  ;;  %v4768_v0 = vshrl.u32 %v16047_v7, 16  ;;  %v4770_v41 = vshll.u32 %v16047_v7, 16  ;;  %v4766_v17 = vor.u32 %v4765_v15, %v4761_v45 }
 0xb35   : > { %v4796_v5 = vor.u32 %v4795_v23, %v4794_v57  ;;  %v4781_v42 = vrot.slane %v16047_v7, 1  ;;  %v4805_v53 = vrot.slane %v16047_v7, 3  ;;  %v4793_v12 = vrot.slane %v16047_v7, 2 }
 0xb36   : > { %4788 = vrot.lane.b32.xlu1 %v4784_v36, %s18762_s8  ;;  %v4785_v13 = vrot.slane %v4768_v0, 1  ;;  %v4786_v54 = vrot.slane %v4770_v41, 2  ;;  %v4772_v14 = vrot.slane %v4770_v41, 1  ;;  %v4797_v1 = vrot.slane %v4768_v0, 2 }
 0xb37   : > { %v4798_v51 = vrot.slane %v4770_v41, 3  ;;  %v12228_v63 = vcombine.low %v4804_v18, %v4805_v53 }
 0xb38   : > { %v4787_v44 = vor.u32 %v4786_v54, %v4785_v13  ;;  %v4773_v55 = vor.u32 %v4772_v14, %v4768_v0 }
 0xb39   : > { %v4799_v52 = vor.u32 %v4798_v51, %v4797_v1 }
 0xb3a   : > { %4790 = vrot.lane.b32.xlu0 %v4787_v44, %s18762_s8  ;;  %4774 = vrot.lane.b32.xlu1 %v4766_v17, %s18762_s8 }
 0xb3e   : > { %4776 = vrot.lane.b32.xlu0 %v4773_v55, %s18762_s8  ;;  %4800 = vrot.lane.b32.xlu1 %v4796_v5, %s18762_s8 }
 0xb42   : > { %4802 = vrot.lane.b32.xlu0 %v4799_v52, %s18762_s8  ;;  %s18638_s8 = scalar_lea.hbm %s18831_s0, %s12953_s6 }
 0xba8   : > { %v4789_v19 = vpop.permute.xlu1 %4788 }
 0xba9   : > { %v4812_v62 = vsel %vm1315_vm12, %v4780_v27, %v4789_v19 }
 0xbac   : > { %v4791_v48 = vpop.permute.xlu0 %4790  ;;  %v4775_v11 = vpop.permute.xlu1 %4774 }
 0xbad   : > { %v4815_v37 = vsel %vm1315_vm12, %v4781_v42, %v4791_v48  ;;  %v4807_v28 = vsel %vm1315_vm12, %v16038_v26, %v4775_v11 }
 0xbae   : > { %v12226_v56 = vcombine.low %v4812_v62, %v4815_v37 }
 0xbb0   : > { %v4777_v4 = vpop.permute.xlu0 %4776  ;;  %5109 = vmatprep.mubr.bf16.mxu1 %v12226_v56  ;;  %v4801_v21 = vpop.permute.xlu1 %4800 }
 0xbb1   : > { %v4809_v38 = vsel %vm1315_vm12, %v16047_v7, %v4777_v4  ;;  %v4818_v24 = vsel %vm1315_vm12, %v4792_v40, %v4801_v21  ;;  %v12224_v7 = vld [vmem:[%s18689_s16] ss:$0 sm:$0xff] }
 0xbb2   : > { %v12225_v58 = vcombine.low %v4807_v28, %v4809_v38 }
 0xbb4   : > { %5110 = vmatmul.mubr.bf16.vlgmr.msra.gmra.mxu1 %v12225_v58  ;;  %v4803_v46 = vpop.permute.xlu0 %4802 }
 0xbb5   : > { %5119 = vmatpush1.bf16.msra.mxu1 %v13309_v20  ;;  %12257 = vmatprep.mubr.msk.bf16.mxu1 %vm1315_vm12, %v12228_v63  ;;  %v4821_v3 = vsel %vm1315_vm12, %v4793_v12, %v4803_v46  ;;  %vm18789_vm12 = vcmask 254976  }
 0xbb6   : > { %5120 = vmatprep.subr.bf16.mxu1 %v18773_v32  ;;  %v12227_v6 = vcombine.low %v4818_v24, %v4821_v3 }
 0xbb9   : > { %5121 = vmatpush1.bf16.msra.mxu1 %v13310_v9 }
 0xbba   : > { %5122 = vmatprep.subr.bf16.mxu1 %v18773_v32 }
 0xbbd   : > { %5123 = vmatpush1.bf16.msra.mxu1 %v13311_v33 }
 0xbbe   : > { %5124 = vmatprep.subr.bf16.mxu1 %v18773_v32 }
 0xbc1   : > { %5125 = vmatpush1.bf16.msra.mxu1 %v13312_v31 }
 0xbc2   : > { %5126 = vmatprep.subr.bf16.mxu1 %v18773_v32 }
 0xbc5   : > { %5127 = vmatpush1.bf16.msra.mxu1 %v13313_v60 }
 0xbc6   : > { %5128 = vmatprep.subr.bf16.mxu1 %v18773_v32 }
 0xbc9   : > { %5129 = vmatpush1.bf16.msra.mxu1 %v13314_v61 }
 0xbca   : > { %5130 = vmatprep.subr.bf16.mxu1 %v18773_v32 }
 0xbcd   : > { %5131 = vmatpush1.bf16.msra.mxu1 %v13315_v8 }
 0xbce   : > { %5132 = vmatprep.subr.bf16.mxu1 %v18773_v32 }
 0xbd1   : > { %5133 = vmatpush1.bf16.msra.mxu1 %v13316_v59 }
 0xbd2   : > { %5142 = vmatprep.subr.bf16.mxu1 %v18773_v32 }
 0xbd5   : > { %5143 = vmatpush2.bf16.msra.mxu1 %v13317_v25 }
 0xbd6   : > { %5144 = vmatprep.subr.bf16.mxu1 %v18773_v32 }
 0xbd9   : > { %5145 = vmatpush2.bf16.msra.mxu1 %v13318_v30 }
 0xbda   : > { %5146 = vmatprep.subr.bf16.mxu1 %v18773_v32 }
 0xbdd   : > { %5147 = vmatpush2.bf16.msra.mxu1 %v13319_v22 }
 0xbde   : > { %5148 = vmatprep.subr.bf16.mxu1 %v18773_v32 }
 0xbe1   : > { %5149 = vmatpush2.bf16.msra.mxu1 %v13320_v2 }
 0xbe4   : > { %5151 = vmatmul.mubr.bf16.vlgmr.msra.gmra.mxu1 %v12227_v6 }
 0xbe5   : > { %5940 = vmatprep.mubr.bf16.mxu1 %v18773_v32 }
 0xc74   : > { %v13051_v45 = vpop.f32.mrf.mxu1 }
 0xc76   : > { %v13052_v43 = vpop.f32.mrf.mxu1 }
 0xc77   : > { %v13053_v49 = vadd.f32 %v13052_v43, %v13051_v45 }
 0xc78   : > { %v13054_v16 = vpop.f32.mrf.mxu1 }
 0xc79   : > { %v5112_v26 = vadd.f32 %v13053_v49, %v12224_v7 }
 0xc7a   : > { %v13055_v47 = vpop.f32.mrf.mxu1 }
 0xc7b   : > { %v13056_v36 = vadd.f32 %v13055_v47, %v13054_v16 }
 0xc7d   : > { %v5115_v54 = vadd.f32 %v13056_v36, %v12224_v7 }
 0xca4   : > { %v5152_v0 = vpop.f32.mrf.mxu1 }
 0xca5   : > { %v5153_v41 = vadd.f32 %v5152_v0, %v5112_v26 }
 0xca6   : > { %v5154_v15 = vpop.f32.mrf.mxu1 }
 0xca7   : > { %v5159_v13 = vmax.f32 %v5153_v41, 0.0 }
 0xca8   : > { %v5155_v57 = vpop.f32.mrf.mxu1 }
 0xca9   : > { %v5263_v44 = vcombine.high %v5159_v13, %v5159_v13  ;;  %v5270_v17 = vrot.slane %v5159_v13, %v14838_v35  ;;  %v5156_v14 = vadd.f32 %v5155_v57, %v5115_v54 }
 0xcaa   : > { %v5157_v23 = vpop.f32.mrf.mxu1 }
 0xcab   : > { %v5277_v55 = vrot.slane %v5263_v44, %v14838_v35  ;;  %v5278_v5 = vcombine.high %v5270_v17, %v5270_v17  ;;  %v5305_v1 = vsel %vm3209_vm4, %v5270_v17, -inf  ;;  %v5160_v51 = vmax.f32 %v5156_v14, 0.0 }
 0xcac   : > { %v5306_v52 = vrot.slane %v5305_v1, 4 }
 0xcad   : > { %v5279_v19 = vcombine.high %v5277_v55, %v5277_v55  ;;  %v5312_v27 = vsel %vm3209_vm4, %v5278_v5, -inf  ;;  %v5319_v42 = vsel %vm3209_vm4, %v5277_v55, -inf  ;;  %v5280_v48 = vcombine.high %v5160_v51, %v5160_v51 }
 0xcae   : > { %v5307_v62 = vmax.f32 %v5305_v1, %v5306_v52  ;;  %v5313_v37 = vrot.slane %v5312_v27, 4  ;;  %v5320_v56 = vrot.slane %v5319_v42, 4  ;;  %v5287_v11 = vrot.slane %v5160_v51, %v14838_v35 }
 0xcaf   : > { %v5326_v53 = vsel %vm3209_vm4, %v5279_v19, -inf  ;;  %v5294_v4 = vrot.slane %v5280_v48, %v14838_v35 }
 0xcb0   : > { %v5308_v28 = vrot.slane %v5307_v62, 2  ;;  %v5314_v38 = vmax.f32 %v5312_v27, %v5313_v37  ;;  %v5321_v20 = vmax.f32 %v5319_v42, %v5320_v56  ;;  %v5327_v18 = vrot.slane %v5326_v53, 4 }
 0xcb1   : > { %v5295_v58 = vcombine.high %v5287_v11, %v5287_v11  ;;  %v5296_v63 = vcombine.high %v5294_v4, %v5294_v4  ;;  %v5333_v9 = vsel %vm3209_vm4, %v5287_v11, -inf  ;;  %v5347_v33 = vsel %vm3209_vm4, %v5294_v4, -inf  ;;  %v13321_v4 = vld [vmem:[%s18690_s17 + $0x110] ss:$8 sps:$4 sm:$0xff]  }
 0xcb2   : > { %v5309_v31 = vmax.f32 %v5307_v62, %v5308_v28  ;;  %v5315_v60 = vrot.slane %v5314_v38, 2  ;;  %v5322_v61 = vrot.slane %v5321_v20, 2  ;;  %v5328_v8 = vmax.f32 %v5326_v53, %v5327_v18  ;;  %v13323_v28 = vld [vmem:[%s18690_s17 + $0x114] ss:$8 sps:$4 sm:$0xff]   ;;  %v13329_v18 = vld [vmem:[%s18690_s17 + $0x104] ss:$8 sps:$4 sm:$0xff]  }
 0xcb3   : > { %v5334_v59 = vrot.slane %v5333_v9, 4  ;;  %v5340_v25 = vsel %vm3209_vm4, %v5295_v58, -inf  ;;  %v5348_v30 = vrot.slane %v5347_v33, 4  ;;  %v5354_v22 = vsel %vm3209_vm4, %v5296_v63, -inf  ;;  %5912 = vmatprep.subr.bf16.mxu1 %v13323_v28  ;;  %v13332_v58 = vld [vmem:[%s18690_s17 + $0xa4] ss:$8 sps:$4 sm:$0xff]   ;;  %vm18790_vm4 = vmmov %vm18789_vm12 }
 0xcb4   : > { %v5310_v46 = vrot.slane %v5309_v31, 1  ;;  %v5316_v12 = vmax.f32 %v5314_v38, %v5315_v60  ;;  %v5323_v2 = vmax.f32 %v5321_v20, %v5322_v61  ;;  %v5341_v21 = vrot.slane %v5340_v25, 4  ;;  %v13324_v38 = vld [vmem:[%s18690_s17 + $0xb0] ss:$8 sps:$4 sm:$0xff]   ;;  %v13326_v20 = vld [vmem:[%s18690_s17 + $0xb4] ss:$8 sps:$4 sm:$0xff]   ;;  %5913 = vmatpush1.bf16.msra.mxu1 %v13321_v4  ;;  %vm18791_vm1 = vmmov %vm18790_vm4 }
 0xcb5   : > { %v5335_v40 = vmax.f32 %v5333_v9, %v5334_v59  ;;  %v5349_v3 = vmax.f32 %v5347_v33, %v5348_v30  ;;  %v5355_v24 = vrot.slane %v5354_v22, 4  ;;  %v5329_v6 = vrot.slane %v5328_v8, 2  ;;  %5662 = vmatprep.subr.bf16.mxu0 %v13326_v20  ;;  %v13327_v63 = vld [vmem:[%s18690_s17 + $0x100] ss:$8 sps:$4 sm:$0xff]   ;;  %5914 = vmatprep.subr.bf16.mxu1 %v13329_v18  ;;  %v13335_v33 = vld [vmem:[%s18690_s17 + $0xf4] ss:$8 sps:$4 sm:$0xff]   ;;  %vm18792_vm2 = vmmov %vm18791_vm1 }
 0xcb6   : > { %v5317_v45 = vrot.slane %v5316_v12, 1  ;;  %v5324_v43 = vrot.slane %v5323_v2, 1  ;;  %v5342_v16 = vmax.f32 %v5340_v25, %v5341_v21  ;;  %v5311_v26 = vmax.f32 %v5309_v31, %v5310_v46  ;;  %5663 = vmatpush1.bf16.msra.mxu0 %v13324_v38  ;;  %v13330_v9 = vld [vmem:[%s18690_s17 + $0xa0] ss:$8 sps:$4 sm:$0xff]   ;;  %v13338_v31 = vld [vmem:[%s18690_s17 + $0x94] ss:$8 sps:$4 sm:$0xff]   ;;  %vm18793_vm3 = vmmov %vm18791_vm1 }
 0xcb7   : > { %v5336_v49 = vrot.slane %v5335_v40, 2  ;;  %v5350_v47 = vrot.slane %v5349_v3, 2  ;;  %v5356_v7 = vmax.f32 %v5354_v22, %v5355_v24  ;;  %v5330_v36 = vmax.f32 %v5328_v8, %v5329_v6  ;;  %5664 = vmatprep.subr.bf16.mxu0 %v13332_v58  ;;  %v13333_v60 = vld [vmem:[%s18690_s17 + $0xf0] ss:$8 sps:$4 sm:$0xff]   ;;  %v13341_v8 = vld [vmem:[%s18690_s17 + $0xe4] ss:$8 sps:$4 sm:$0xff]   ;;  %vm18794_vm5 = vmmov %vm18791_vm1 }
 0xcb8   : > { %v5318_v0 = vmax.f32 %v5316_v12, %v5317_v45  ;;  %v5343_v41 = vrot.slane %v5342_v16, 2  ;;  %v5325_v15 = vmax.f32 %v5323_v2, %v5324_v43  ;;  %5915 = vmatpush1.bf16.msra.mxu1 %v13327_v63  ;;  %v13336_v61 = vld [vmem:[%s18690_s17 + $0x90] ss:$8 sps:$4 sm:$0xff]   ;;  %v13344_v59 = vld [vmem:[%s18690_s17 + $0x84] ss:$8 sps:$4 sm:$0xff]   ;;  %v5170_v43 = vrot.slane %v15904_v50, %v14838_v35  ;;  %vm18795_vm9 = vmmov %vm18791_vm1 }
 0xcb9   : > { %v5337_v13 = vmax.f32 %v5335_v40, %v5336_v49  ;;  %v5351_v54 = vmax.f32 %v5349_v3, %v5350_v47  ;;  %v5331_v57 = vrot.slane %v5330_v36, 1  ;;  %v5357_v44 = vrot.slane %v5356_v7, 2  ;;  %5916 = vmatprep.subr.bf16.mxu1 %v13335_v33  ;;  %v13339_v25 = vld [vmem:[%s18690_s17 + $0xe0] ss:$8 sps:$4 sm:$0xff]   ;;  %v13347_v22 = vld [vmem:[%s18690_s17 + $0xd4] ss:$8 sps:$4 sm:$0xff]   ;;  %vm18796_vm0 = vmmov %vm18791_vm1 }
 0xcba   : > { %v5344_v17 = vmax.f32 %v5342_v16, %v5343_v41  ;;  %v5385_v14 = vsel %vm3006_vm15, %v5318_v0, %v5311_v26  ;;  %5665 = vmatpush1.bf16.msra.mxu0 %v13330_v9  ;;  %v13342_v30 = vld [vmem:[%s18690_s17 + $0x80] ss:$8 sps:$4 sm:$0xff]   ;;  %v13350_v46 = vld [vmem:[%s18690_s17 + $0x74] ss:$8 sps:$4 sm:$0xff]   ;;  %v13345_v12 = vld [vmem:[%s18690_s17 + $0xd0] ss:$8 sps:$4 sm:$0xff]   ;;  %v5163_v16 = vcombine.high %v15904_v50, %v15904_v50  ;;  %v5178_v49 = vcombine.high %v5170_v43, %v5170_v43 }
 0xcbb   : > { %v5338_v23 = vrot.slane %v5337_v13, 1  ;;  %v5352_v55 = vrot.slane %v5351_v54, 1  ;;  %v5332_v5 = vmax.f32 %v5330_v36, %v5331_v57  ;;  %v5386_v1 = vsel %vm3008_vm6, %v5325_v15, %v5385_v14  ;;  %5666 = vmatprep.subr.bf16.mxu0 %v13338_v31  ;;  %v13348_v2 = vld [vmem:[%s18690_s17 + $0x70] ss:$8 sps:$4 sm:$0xff]   ;;  %v13353_v21 = vld [vmem:[%s18690_s17 + $0xc4] ss:$8 sps:$4 sm:$0xff]  }
 0xcbc   : > { %v5345_v51 = vrot.slane %v5344_v17, 1  ;;  %v5358_v52 = vmax.f32 %v5356_v7, %v5357_v44  ;;  %5917 = vmatpush1.bf16.msra.mxu1 %v13333_v60  ;;  %v13356_v40 = vld [vmem:[%s18690_s17 + $0x64] ss:$8 sps:$4 sm:$0xff]   ;;  %v13351_v3 = vld [vmem:[%s18690_s17 + $0xc0] ss:$8 sps:$4 sm:$0xff]   ;;  %v5187_v47 = vrot.slane %v15912_v34, %v14838_v35  ;;  %v5177_v7 = vrot.slane %v5163_v16, %v14838_v35 }
 0xcbd   : > { %v5387_v19 = vsel %vm3010_vm7, %v5332_v5, %v5386_v1  ;;  %v5353_v27 = vmax.f32 %v5351_v54, %v5352_v55  ;;  %v5339_v42 = vmax.f32 %v5337_v13, %v5338_v23  ;;  %5918 = vmatprep.subr.bf16.mxu1 %v13341_v8  ;;  %v13354_v24 = vld [vmem:[%s18690_s17 + $0x60] ss:$8 sps:$4 sm:$0xff]   ;;  %v13359_v6 = vld [vmem:[%s18690_s17 + $0x1d4] ss:$8 sps:$4 sm:$0xff]   ;;  %v5180_v36 = vcombine.high %v15912_v34, %v15912_v34 }
 0xcbe   : > { %v5346_v48 = vmax.f32 %v5344_v17, %v5345_v51  ;;  %5391 = vrot.lane.b32.xlu1 %v5387_v19, %s18763_s29  ;;  %v5359_v62 = vrot.slane %v5358_v52, 1  ;;  %5667 = vmatpush1.bf16.msra.mxu0 %v13336_v61  ;;  %v13362_v45 = vld [vmem:[%s18690_s17 + $0x54] ss:$8 sps:$4 sm:$0xff]   ;;  %v5212_v26 = vsel %vm18789_vm12, %v5178_v49, -inf  ;;  %v5195_v0 = vcombine.high %v5187_v47, %v5187_v47 }
 0xcbf   : > { %5668 = vmatprep.subr.bf16.mxu0 %v13344_v59  ;;  %v5179_v41 = vcombine.high %v5177_v7, %v5177_v7  ;;  %v5205_v15 = vsel %vm18790_vm4, %v5170_v43, -inf  ;;  %v5213_v13 = vrot.slane %v5212_v26, 4  ;;  %v5219_v54 = vsel %vm18791_vm1, %v5177_v7, -inf }
 0xcc0   : > { %v5360_v37 = vmax.f32 %v5358_v52, %v5359_v62  ;;  %v5388_v56 = vsel %vm3006_vm15, %v5346_v48, %v5339_v42  ;;  %5919 = vmatpush1.bf16.msra.mxu1 %v13339_v25  ;;  %v5194_v50 = vrot.slane %v5180_v36, %v14838_v35  ;;  %v5206_v57 = vrot.slane %v5205_v15, 4 }
 0xcc1   : > { %v5389_v11 = vsel %vm3008_vm6, %v5353_v27, %v5388_v56  ;;  %5920 = vmatprep.subr.bf16.mxu1 %v13347_v22  ;;  %v5240_v44 = vsel %vm18792_vm2, %v5195_v0, -inf  ;;  %v5220_v17 = vrot.slane %v5219_v54, 4  ;;  %v5226_v14 = vsel %vm18793_vm3, %v5179_v41, -inf }
 0xcc2   : > { %v5390_v53 = vsel %vm3010_vm7, %v5360_v37, %v5389_v11  ;;  %5669 = vmatpush1.bf16.msra.mxu0 %v13342_v30  ;;  %v5214_v23 = vmax.f32 %v5212_v26, %v5213_v13  ;;  %v5196_v55 = vcombine.high %v5194_v50, %v5194_v50  ;;  %v5233_v34 = vsel %vm18794_vm5, %v5187_v47, -inf }
 0xcc3   : > { %5393 = vrot.lane.b32.xlu0 %v5390_v53, %s18763_s29  ;;  %5670 = vmatprep.subr.bf16.mxu0 %v13350_v46  ;;  %v5241_v5 = vrot.slane %v5240_v44, 4  ;;  %v5247_v1 = vsel %vm18795_vm9, %v5194_v50, -inf  ;;  %v5207_v51 = vmax.f32 %v5205_v15, %v5206_v57  ;;  %v5227_v52 = vrot.slane %v5226_v14, 4  ;;  %s11996_s29 = scalar_lea.sflag [#allocation3], %s810_s11 }
 0xcc4   : > { %5921 = vmatpush1.bf16.msra.mxu1 %v13345_v12  ;;  %v5221_v19 = vmax.f32 %v5219_v54, %v5220_v17  ;;  %v5234_v27 = vrot.slane %v5233_v34, 4  ;;  %v5215_v42 = vrot.slane %v5214_v23, 2  ;;  %v5248_v48 = vrot.slane %v5247_v1, 4 }
 0xcc5   : > { %5922 = vmatprep.subr.bf16.mxu1 %v13353_v21  ;;  %v5254_v62 = vsel %vm18796_vm0, %v5196_v55, -inf  ;;  %v5242_v37 = vmax.f32 %v5240_v44, %v5241_v5  ;;  %v5208_v56 = vrot.slane %v5207_v51, 2  ;;  %v5228_v11 = vmax.f32 %v5226_v14, %v5227_v52 }
 0xcc6   : > { %5671 = vmatpush1.bf16.msra.mxu0 %v13348_v2  ;;  %v5222_v53 = vrot.slane %v5221_v19, 2  ;;  %v5235_v4 = vmax.f32 %v5233_v34, %v5234_v27  ;;  %v5255_v28 = vrot.slane %v5254_v62, 4  ;;  %v5216_v38 = vmax.f32 %v5214_v23, %v5215_v42 }
 0xcc7   : > { %5672 = vmatprep.subr.bf16.mxu0 %v13356_v40  ;;  %v5249_v20 = vmax.f32 %v5247_v1, %v5248_v48  ;;  %v5243_v18 = vrot.slane %v5242_v37, 2  ;;  %v5209_v58 = vmax.f32 %v5207_v51, %v5208_v56  ;;  %v5229_v63 = vrot.slane %v5228_v11, 2 }
 0xcc8   : > { %5923 = vmatpush1.bf16.msra.mxu1 %v13351_v3  ;;  %v5223_v9 = vmax.f32 %v5221_v19, %v5222_v53  ;;  %v5236_v33 = vrot.slane %v5235_v4, 2  ;;  %v5256_v31 = vmax.f32 %v5254_v62, %v5255_v28  ;;  %v5217_v60 = vrot.slane %v5216_v38, 1 }
 0xcc9   : > { %6196 = vmatprep.subr.bf16.mxu1 %v13359_v6  ;;  %v5250_v61 = vrot.slane %v5249_v20, 2  ;;  %v5244_v8 = vmax.f32 %v5242_v37, %v5243_v18  ;;  %v5210_v59 = vrot.slane %v5209_v58, 1  ;;  %v5230_v25 = vmax.f32 %v5228_v11, %v5229_v63 }
 0xcca   : > { %5673 = vmatpush1.bf16.msra.mxu0 %v13354_v24  ;;  %v5237_v30 = vmax.f32 %v5235_v4, %v5236_v33  ;;  %v5224_v22 = vrot.slane %v5223_v9, 1  ;;  %v5257_v46 = vrot.slane %v5256_v31, 2  ;;  %v5218_v2 = vmax.f32 %v5216_v38, %v5217_v60 }
 0xccb   : > { %5781 = vmatprep.subr.bf16.mxu0 %v13362_v45  ;;  %v5251_v12 = vmax.f32 %v5249_v20, %v5250_v61  ;;  %v5245_v21 = vrot.slane %v5244_v8, 1  ;;  %v5211_v40 = vmax.f32 %v5209_v58, %v5210_v59  ;;  %v5231_v3 = vrot.slane %v5230_v25, 1 }
 0xccc   : > { %v5238_v24 = vrot.slane %v5237_v30, 1  ;;  %v5225_v6 = vmax.f32 %v5223_v9, %v5224_v22  ;;  %v5258_v45 = vmax.f32 %v5256_v31, %v5257_v46  ;;  %vm5421_vm12 = vcmask 779264  }
 0xccd   : > { %v5369_v43 = vsel %vm3006_vm15, %v5218_v2, %v5211_v40  ;;  %v5252_v16 = vrot.slane %v5251_v12, 1  ;;  %v5246_v49 = vmax.f32 %v5244_v8, %v5245_v21  ;;  %v5232_v47 = vmax.f32 %v5230_v25, %v5231_v3 }
 0xcce   : > { %v5239_v7 = vmax.f32 %v5237_v30, %v5238_v24  ;;  %v5370_v36 = vsel %vm3008_vm6, %v5225_v6, %v5369_v43  ;;  %v5259_v26 = vrot.slane %v5258_v45, 1  ;;  %v14368_v60 = vmov 1966171168  }
 0xccf   : > { %v5253_v0 = vmax.f32 %v5251_v12, %v5252_v16  ;;  %v5371_v15 = vsel %vm3010_vm7, %v5232_v47, %v5370_v36  ;;  %v5492_v61 = vunpack.c.l.s4 %v14368_v60  ;;  %vm5538_vm4 = vsmask.f32 2312 }
 0xcd0   : > { %v5372_v41 = vsel %vm3006_vm15, %v5246_v49, %v5239_v7  ;;  %v5260_v50 = vmax.f32 %v5258_v45, %v5259_v26  ;;  %vm5540_vm2 = vsmask.f32 3340  ;;  %vm5542_vm5 = vsmask.f32 4368 }
 0xcd1   : > { %v5373_v44 = vsel %vm3008_vm6, %v5253_v0, %v5372_v41  ;;  %vm5536_vm6 = vsmask.f32 1284  ;;  %v5493_v40 = vunpack.c.0.s8 %v5492_v61  ;;  %vm5544_vm0 = vsmask.f32 5396 }
 0xcd2   : > { %v5374_v55 = vsel %vm3010_vm7, %v5260_v50, %v5373_v44 }
 0xcd3   : > { %v16255_v47 = vsub.s32 %v5493_v40, %v14828_v29 }
 0xd30   : > { %v5392_v13 = vpop.permute.xlu1 %5391 }
 0xd31   : > { %v5397_v54 = vsel %vm1306_vm11, %v5371_v15, %v5392_v13 }
 0xd32   : > { %v5407_v57 = vrot.slane %v5397_v54, %v14838_v35 }
 0xd34   : > { %v5408_v17 = vcombine.high %v5407_v57, %v5407_v57  ;;  %v5422_v14 = vsel %vm5421_vm12, %v5407_v57, 0.0 }
 0xd35   : > { %v5423_v23 = vrot.slane %v5422_v14, 4  ;;  %v5394_v34 = vpop.permute.xlu0 %5393 }
 0xd36   : > { %v5429_v5 = vsel %vm5421_vm12, %v5408_v17, 0.0  ;;  %v5398_v1 = vsel %vm1306_vm11, %v5374_v55, %v5394_v34  ;;  %vm5535_vm11 = vsmask.f32 256 }
 0xd37   : > { %v5424_v51 = vadd.f32 %v5423_v23, %v5422_v14  ;;  %v5430_v52 = vrot.slane %v5429_v5, 4  ;;  %v5415_v19 = vrot.slane %v5398_v1, %v14838_v35  ;;  %vm5537_vm7 = vmor %vm5535_vm11, %vm5536_vm6  ;;  %vm5546_vm11 = vsmask.f32 6424 }
 0xd38   : > { %vm5539_vm1 = vmor %vm5537_vm7, %vm5538_vm4  ;;  %vm5548_vm6 = vsmask.f32 7452 }
 0xd39   : > { %v5425_v27 = vrot.slane %v5424_v51, 2  ;;  %v5431_v42 = vadd.f32 %v5430_v52, %v5429_v5  ;;  %v5416_v48 = vcombine.high %v5415_v19, %v5415_v19  ;;  %v5436_v62 = vsel %vm5421_vm12, %v5415_v19, 0.0  ;;  %vm5541_vm3 = vmor %vm5539_vm1, %vm5540_vm2 }
 0xd3a   : > { %v5437_v37 = vrot.slane %v5436_v62, 4  ;;  %vm5543_vm9 = vmor %vm5541_vm3, %vm5542_vm5 }
 0xd3b   : > { %v5426_v56 = vadd.f32 %v5425_v27, %v5424_v51  ;;  %v5432_v11 = vrot.slane %v5431_v42, 2  ;;  %v5443_v53 = vsel %vm5421_vm12, %v5416_v48, 0.0  ;;  %vm5545_vm12 = vmor %vm5543_vm9, %vm5544_vm0 }
 0xd3c   : > { %v5438_v4 = vadd.f32 %v5437_v37, %v5436_v62  ;;  %v5444_v28 = vrot.slane %v5443_v53, 4 }
 0xd3d   : > { %v5427_v38 = vrot.slane %v5426_v56, 1  ;;  %v5433_v20 = vadd.f32 %v5432_v11, %v5431_v42 }
 0xd3e   : > { %v5439_v18 = vrot.slane %v5438_v4, 2  ;;  %v5445_v58 = vadd.f32 %v5444_v28, %v5443_v53 }
 0xd3f   : > { %v5428_v63 = vadd.f32 %v5427_v38, %v5426_v56  ;;  %v5434_v9 = vrot.slane %v5433_v20, 1 }
 0xd40   : > { %v5440_v33 = vadd.f32 %v5439_v18, %v5438_v4  ;;  %v5446_v31 = vrot.slane %v5445_v58, 2 }
 0xd41   : > { %v5435_v8 = vadd.f32 %v5434_v9, %v5433_v20  ;;  %v5451_v59 = vmul.f32 0.5, %v5428_v63 }
 0xd42   : > { %v5441_v25 = vrot.slane %v5440_v33, 1  ;;  %v5447_v30 = vadd.f32 %v5446_v31, %v5445_v58 }
 0xd43   : > { %v5452_v22 = vmul.f32 0.5, %v5435_v8  ;;  %v5455_v46 = vpack.c.bf16 %v5451_v59, %v5451_v59  ;;  %v13357_v59 = vld [vmem:[%s18690_s17 + $0x1d0] ss:$8 sps:$4 sm:$0xff]  }
 0xd44   : > { %v5442_v12 = vadd.f32 %v5441_v25, %v5440_v33  ;;  %v5448_v2 = vrot.slane %v5447_v30, 1 }
 0xd45   : > { %v5456_v21 = vpack.c.bf16 %v5452_v22, %v5452_v22  ;;  %v5463_v6 = vunpack.c.l.b16 %v5455_v46 }
 0xd46   : > { %v5449_v3 = vadd.f32 %v5448_v2, %v5447_v30  ;;  %v5453_v24 = vmul.f32 0.5, %v5442_v12  ;;  %v13365_v2 = vld [vmem:[%s18690_s17 + $0x1c4] ss:$8 sps:$4 sm:$0xff]  }
 0xd47   : > { %v5464_v45 = vunpack.c.l.b16 %v5456_v21 }
 0xd48   : > { %v5454_v43 = vmul.f32 0.5, %v5449_v3  ;;  %v5457_v16 = vpack.c.bf16 %v5453_v24, %v5453_v24  ;;  %v13360_v24 = vld [vmem:[%s18690_s17 + $0x50] ss:$8 sps:$4 sm:$0xff]  }
 0xd49   : > { %v5467_v49 = vsel %vm3012_vm8, %v5464_v45, %v5463_v6 }
 0xd4a   : > { %v5469_v7 = vpack.c.b16 %v5467_v49, %v5467_v49  ;;  %v5458_v36 = vpack.c.bf16 %v5454_v43, %v5454_v43  ;;  %v5465_v0 = vunpack.c.l.b16 %v5457_v16  ;;  %v13363_v43 = vld [vmem:[%s18690_s17 + $0x1c0] ss:$8 sps:$4 sm:$0xff]   ;;  %v13368_v16 = vld [vmem:[%s18690_s17 + $0x44] ss:$8 sps:$4 sm:$0xff]   ;;  %v13371_v49 = vld [vmem:[%s18690_s17 + $0x1b4] ss:$8 sps:$4 sm:$0xff]  }
 0xd4c   : > { %v5473_v26 = vsel %vm15918_vm10, 0, %v5469_v7  ;;  %v5466_v41 = vunpack.c.l.b16 %v5458_v36  ;;  %v13366_v7 = vld [vmem:[%s18690_s17 + $0x40] ss:$8 sps:$4 sm:$0xff]   ;;  %v13369_v36 = vld [vmem:[%s18690_s17 + $0x1b0] ss:$8 sps:$4 sm:$0xff]  }
 0xd4d   : > { %v16261_v15 = vsel %vm15442_vm14, %v5473_v26, 0  ;;  %v13374_v26 = vld [vmem:[%s18690_s17 + $0x34] ss:$8 sps:$4 sm:$0xff]  }
 0xd4e   : > { %v5497_v13 = vrot.slane %v16261_v15, %v16255_v47  ;;  %v5468_v54 = vsel %vm3012_vm8, %v5466_v41, %v5465_v0  ;;  %vm5547_vm8 = vmor %vm5545_vm12, %vm5546_vm11  ;;  %v13377_v0 = vld [vmem:[%s18690_s17 + $0x1a4] ss:$8 sps:$4 sm:$0xff]   ;;  %v13372_v41 = vld [vmem:[%s18690_s17 + $0x30] ss:$8 sps:$4 sm:$0xff]  }
 0xd4f   : > { %v5470_v50 = vpack.c.b16 %v5468_v54, %v5468_v54  ;;  %vm16293_vm7 = vmor %vm5547_vm8, %vm5548_vm6  ;;  %v13380_v54 = vld [vmem:[%s18690_s17 + $0x24] ss:$8 sps:$4 sm:$0xff]  }
 0xd50   : > { %v5498_v57 = vcombine.high %v5497_v13, %v5497_v13  ;;  %v16267_v44 = vrot.slane %v5497_v13, %v16255_v47  ;;  %v13375_v13 = vld [vmem:[%s18690_s17 + $0x1a0] ss:$8 sps:$4 sm:$0xff]  }
 0xd51   : > { %v5474_v17 = vsel %vm15918_vm10, 0, %v5470_v50  ;;  %v13383_v50 = vld [vmem:[%s18690_s17 + $0x194] ss:$8 sps:$4 sm:$0xff]  }
 0xd52   : > { %v16272_v14 = vrot.slane %v5498_v57, %v16255_v47  ;;  %v16276_v23 = vsel %vm15442_vm14, %v5474_v17, 0  ;;  %v5951_v55 = vcombine.high %v16267_v44, %v16267_v44  ;;  %v5551_v53 = vshrl.u32 %v16267_v44, 16  ;;  %v13378_v57 = vld [vmem:[%s18690_s17 + $0x20] ss:$8 sps:$4 sm:$0xff]   ;;  %v13381_v17 = vld [vmem:[%s18690_s17 + $0x190] ss:$8 sps:$4 sm:$0xff]  }
 0xd53   : > { %v5519_v34 = vrot.slane %v16276_v23, %v16255_v47  ;;  %v5699_v5 = vcombine.low %v16261_v15, %v16276_v23  ;;  %v13399_v23 = vld [vmem:[%s18690_s17 + $0x280] ss:$8 sps:$4 sm:$0xff]  }
 0xd54   : > { %v6235_v1 = vcombine.high %v16272_v14, %v16272_v14  ;;  %v5556_v19 = vshll.u32 %v16272_v14, 16  ;;  %v6237_v27 = vshrl.u32 %v5951_v55, 16  ;;  %v5953_v56 = vshrl.u32 %v16272_v14, 16 }
 0xd55   : > { %v5520_v51 = vcombine.high %v5519_v34, %v5519_v34  ;;  %v16287_v52 = vrot.slane %v5519_v34, %v16255_v47  ;;  %v5958_v11 = vshll.u32 %v5951_v55, 16  ;;  %v13386_v55 = vld [vmem:[%s18690_s17 + $0x14] ss:$8 sps:$4 sm:$0xff]   ;;  %v13389_v34 = vld [vmem:[%s18690_s17 + $0x184] ss:$8 sps:$4 sm:$0xff]  }
 0xd56   : > { %v6242_v42 = vshll.u32 %v6235_v1, 16  ;;  %v5558_v60 = vsel %vm16293_vm7, %v5551_v53, %v5556_v19  ;;  %v13384_v1 = vld [vmem:[%s18690_s17 + $0x10] ss:$8 sps:$4 sm:$0xff]   ;;  %v13392_v19 = vld [vmem:[%s18690_s17 + $0x4] ss:$8 sps:$4 sm:$0xff]  }
 0xd57   : > { %v16291_v48 = vrot.slane %v5520_v51, %v16255_v47  ;;  %v12314_v37 = vcombine.high %v16267_v44, %v16287_v52  ;;  %v5952_v4 = vcombine.high %v16287_v52, %v16287_v52  ;;  %v5560_v20 = vshrl.u32 %v16287_v52, 16  ;;  %v13387_v51 = vld [vmem:[%s18690_s17 + $0x180] ss:$8 sps:$4 sm:$0xff]   ;;  %v13398_v52 = vld [vmem:[%s18690_s17 + $0x174] ss:$8 sps:$4 sm:$0xff]  }
 0xd58   : > { %v16305_v28 = vsel %vm16293_vm7, %v6237_v27, %v6242_v42  ;;  %v16323_v8 = vsel %vm16293_vm7, %v5953_v56, %v5958_v11  ;;  %v13395_v42 = vld [vmem:[%s18690_s17 + $0x294] ss:$8 sps:$4 sm:$0xff]   ;;  %v13390_v56 = vld [vmem:[%s18690_s17] ss:$8 sps:$4 sm:$0xff]   ;;  %v13393_v11 = vld [vmem:[%s18690_s17 + $0x290] ss:$8 sps:$4 sm:$0xff]   ;;  %v5706_v44 = vrot.slane %v5699_v5, %v16255_v47 }
 0xd59   : > { %v5830_v38 = vcombine.low %v16272_v14, %v16291_v48  ;;  %v5565_v18 = vshll.u32 %v16291_v48, 16  ;;  %v12343_v58 = vcombine.high %v16272_v14, %v16291_v48  ;;  %v5961_v63 = vshrl.u32 %v16291_v48, 16  ;;  %v13401_v53 = vld [vmem:[%s18690_s17 + $0x284] ss:$8 sps:$4 sm:$0xff]   ;;  %v13429_v14 = vld [vmem:[%s18690_s17 + $0x230] ss:$8 sps:$4 sm:$0xff]  }
 0xd5a   : > { %v5966_v9 = vshll.u32 %v5952_v4, 16  ;;  %v6236_v33 = vcombine.high %v16291_v48, %v16291_v48  ;;  %v6245_v22 = vshrl.u32 %v5952_v4, 16  ;;  %v6121_v27 = vrot.slane %v12314_v37, %v16255_v47  ;;  %v13396_v4 = vld [vmem:[%s18690_s17 + $0x170] ss:$8 sps:$4 sm:$0xff]   ;;  %v13404_v5 = vld [vmem:[%s18690_s17 + $0x164] ss:$8 sps:$4 sm:$0xff]  }
 0xd5b   : > { %v5837_v31 = vrot.slane %v5830_v38, %v16255_v47  ;;  %v5567_v61 = vsel %vm16293_vm7, %v5560_v20, %v5565_v18  ;;  %v5713_v15 = vrot.slane %v5706_v44, %v16255_v47  ;;  %v13407_v38 = vld [vmem:[%s18690_s17 + $0x274] ss:$8 sps:$4 sm:$0xff]   ;;  %v13402_v20 = vld [vmem:[%s18690_s17 + $0x160] ss:$8 sps:$4 sm:$0xff]   ;;  %v13405_v18 = vld [vmem:[%s18690_s17 + $0x270] ss:$8 sps:$4 sm:$0xff]  }
 0xd5c   : > { %v5580_v25 = vcombine.low %v5558_v60, %v5567_v61  ;;  %v16330_v30 = vsel %vm16293_vm7, %v5961_v63, %v5966_v9  ;;  %v6250_v46 = vshll.u32 %v6236_v33, 16  ;;  %v6128_v37 = vrot.slane %v6121_v27, %v16255_v47  ;;  %v13410_v63 = vld [vmem:[%s18690_s17 + $0x154] ss:$8 sps:$4 sm:$0xff]   ;;  %v13413_v9 = vld [vmem:[%s18690_s17 + $0x264] ss:$8 sps:$4 sm:$0xff]  }
 0xd5d   : > { %v5844_v12 = vrot.slane %v5837_v31, %v16255_v47  ;;  %v5981_v21 = vcombine.low %v16323_v8, %v16330_v30  ;;  %v13408_v33 = vld [vmem:[%s18690_s17 + $0x150] ss:$8 sps:$4 sm:$0xff]   ;;  %v13411_v31 = vld [vmem:[%s18690_s17 + $0x260] ss:$8 sps:$4 sm:$0xff]   ;;  %v13416_v60 = vld [vmem:[%s18690_s17 + $0x144] ss:$8 sps:$4 sm:$0xff]  }
 0xd5e   : > { %v5587_v40 = vrot.slane %v5580_v25, %v16255_v47  ;;  %v16341_v3 = vsel %vm16293_vm7, %v6245_v22, %v6250_v46  ;;  %v13419_v61 = vld [vmem:[%s18690_s17 + $0x254] ss:$8 sps:$4 sm:$0xff]   ;;  %v13417_v25 = vld [vmem:[%s18690_s17 + $0x250] ss:$8 sps:$4 sm:$0xff]   ;;  %v13425_v46 = vld [vmem:[%s18690_s17 + $0x244] ss:$8 sps:$4 sm:$0xff]  }
 0xd5f   : > { %12298 = vmatmul.mubr.msk.bf16.vlgmr.msra.gmra.mxu1 %vm1324_vm13, %v5844_v12  ;;  %v6265_v6 = vcombine.low %v16305_v28, %v16341_v3  ;;  %v13422_v22 = vld [vmem:[%s18690_s17 + $0x134] ss:$8 sps:$4 sm:$0xff]   ;;  %v13420_v12 = vld [vmem:[%s18690_s17 + $0x130] ss:$8 sps:$4 sm:$0xff]   ;;  %v13432_v8 = vld [vmem:[%s18690_s17 + $0x220] ss:$8 sps:$4 sm:$0xff]  }
 0xd60   : > { %6197 = vmatpush1.bf16.msra.mxu1 %v13357_v59  ;;  %v5594_v45 = vrot.slane %v5587_v40, %v16255_v47  ;;  %6224 = vmatprep.mubr.bf16.mxu1 %v18773_v32  ;;  %v13414_v59 = vld [vmem:[%s18690_s17 + $0x140] ss:$8 sps:$4 sm:$0xff]   ;;  %v13428_v40 = vld [vmem:[%s18690_s17 + $0x124] ss:$8 sps:$4 sm:$0xff]   ;;  %v13437_v30 = vld [vmem:[%s18690_s17 + $0x214] ss:$8 sps:$4 sm:$0xff]  }
 0xd61   : > { %6198 = vmatprep.subr.bf16.mxu1 %v13365_v2  ;;  %v13423_v2 = vld [vmem:[%s18690_s17 + $0x240] ss:$8 sps:$4 sm:$0xff]   ;;  %v13453_v28 = vld [vmem:[%s18692_s19 + $0x170] ss:$8 sps:$4 sm:$0xff]   ;;  %v13464_v27 = vld [vmem:[%s18692_s19 + $0x44] ss:$8 sps:$4 sm:$0xff]  }
 0xd62   : > { %12272 = vmatmul.mubr.msk.bf16.vlgmr.msra.gmra.mxu0 %vm1324_vm13, %v5594_v45  ;;  %v13426_v45 = vld [vmem:[%s18690_s17 + $0x120] ss:$8 sps:$4 sm:$0xff]   ;;  %v13470_v44 = vld [vmem:[%s18692_s19 + $0x34] ss:$8 sps:$4 sm:$0xff]  }
 0xd63   : > { %5782 = vmatpush1.bf16.msra.mxu0 %v13360_v24  ;;  %5809 = vmatprep.mubr.bf16.mxu0 %v18773_v32  ;;  %v6405_v24 = vrot.slane %v12343_v58, %v16255_v47  ;;  %v13434_v58 = vld [vmem:[%s18690_s17 + $0x224] ss:$8 sps:$4 sm:$0xff]   ;;  %v13450_v3 = vld [vmem:[%s18692_s19 + $0x60] ss:$8 sps:$4 sm:$0xff]  }
 0xd64   : > { %6199 = vmatpush1.bf16.msra.mxu1 %v13363_v43  ;;  %5783 = vmatprep.subr.bf16.mxu0 %v13368_v16  ;;  %v5988_v43 = vrot.slane %v5981_v21, %v16255_v47  ;;  %v13431_v16 = vld [vmem:[%s18690_s17 + $0x234] ss:$8 sps:$4 sm:$0xff]   ;;  %v13435_v21 = vld [vmem:[%s18690_s17 + $0x210] ss:$8 sps:$4 sm:$0xff]  }
 0xd65   : > { %6200 = vmatprep.subr.bf16.mxu1 %v13371_v49  ;;  %v6412_v49 = vrot.slane %v6405_v24, %v16255_v47  ;;  %v13509_v24 = vld [vmem:[%s18692_s19 + $0x1e4] ss:$8 sps:$4 sm:$0xff]  }
 0xd66   : > { %v5995_v48 = vrot.slane %v5988_v43, %v16255_v47  ;;  %v13507_v43 = vld [vmem:[%s18692_s19 + $0x1e0] ss:$8 sps:$4 sm:$0xff]  }
 0xd67   : > { %5784 = vmatpush1.bf16.msra.mxu0 %v13366_v7  ;;  %v13440_v7 = vld [vmem:[%s18690_s17 + $0x204] ss:$8 sps:$4 sm:$0xff]  }
 0xd68   : > { %6201 = vmatpush1.bf16.msra.mxu1 %v13369_v36  ;;  %5785 = vmatprep.subr.bf16.mxu0 %v13374_v26  ;;  %v13443_v36 = vld [vmem:[%s18690_s17 + $0x1f4] ss:$8 sps:$4 sm:$0xff]   ;;  %v13441_v26 = vld [vmem:[%s18690_s17 + $0x1f0] ss:$8 sps:$4 sm:$0xff]  }
 0xd69   : > { %6202 = vmatprep.subr.bf16.mxu1 %v13377_v0  ;;  %v13446_v0 = vld [vmem:[%s18690_s17 + $0x1e4] ss:$8 sps:$4 sm:$0xff]  }
 0xd6b   : > { %5786 = vmatpush1.bf16.msra.mxu0 %v13372_v41  ;;  %v13444_v41 = vld [vmem:[%s18690_s17 + $0x1e0] ss:$8 sps:$4 sm:$0xff]  }
 0xd6c   : > { %6203 = vmatpush1.bf16.msra.mxu1 %v13375_v13  ;;  %5787 = vmatprep.subr.bf16.mxu0 %v13380_v54  ;;  %v6272_v13 = vrot.slane %v6265_v6, %v16255_v47  ;;  %v13455_v6 = vld [vmem:[%s18692_s19 + $0x174] ss:$8 sps:$4 sm:$0xff]  }
 0xd6d   : > { %6204 = vmatprep.subr.bf16.mxu1 %v13383_v50  ;;  %v13447_v50 = vld [vmem:[%s18692_s19 + $0x70] ss:$8 sps:$4 sm:$0xff]  }
 0xd6e   : > { %v6279_v54 = vrot.slane %v6272_v13, %v16255_v47  ;;  %v13533_v13 = vld [vmem:[%s18692_s19 + $0x1a4] ss:$8 sps:$4 sm:$0xff]  }
 0xd6f   : > { %5788 = vmatpush1.bf16.msra.mxu0 %v13378_v57  ;;  %v13449_v57 = vld [vmem:[%s18692_s19 + $0x74] ss:$8 sps:$4 sm:$0xff]  }
 0xd70   : > { %6205 = vmatpush1.bf16.msra.mxu1 %v13381_v17  ;;  %5789 = vmatprep.subr.bf16.mxu0 %v13386_v55  ;;  %v13452_v17 = vld [vmem:[%s18692_s19 + $0x64] ss:$8 sps:$4 sm:$0xff]   ;;  %v13458_v55 = vld [vmem:[%s18692_s19 + $0x54] ss:$8 sps:$4 sm:$0xff]  }
 0xd71   : > { %6206 = vmatprep.subr.bf16.mxu1 %v13389_v34  ;;  %v13461_v34 = vld [vmem:[%s18692_s19 + $0x164] ss:$8 sps:$4 sm:$0xff]  }
 0xd73   : > { %5790 = vmatpush1.bf16.msra.mxu0 %v13384_v1  ;;  %v13459_v1 = vld [vmem:[%s18692_s19 + $0x160] ss:$8 sps:$4 sm:$0xff]  }
 0xd74   : > { %6207 = vmatpush1.bf16.msra.mxu1 %v13387_v51  ;;  %5791 = vmatprep.subr.bf16.mxu0 %v13392_v19  ;;  %v13456_v51 = vld [vmem:[%s18692_s19 + $0x50] ss:$8 sps:$4 sm:$0xff]   ;;  %v13467_v19 = vld [vmem:[%s18692_s19 + $0x154] ss:$8 sps:$4 sm:$0xff]  }
 0xd75   : > { %6480 = vmatprep.subr.bf16.mxu1 %v13395_v42  ;;  %v13465_v42 = vld [vmem:[%s18692_s19 + $0x150] ss:$8 sps:$4 sm:$0xff]  }
 0xd77   : > { %5792 = vmatpush1.bf16.msra.mxu0 %v13390_v56  ;;  %12327 = vmatmul.mubr.msk.bf16.vlgmr.msra.gmra.mxu1 %vm1324_vm13, %v6128_v37  ;;  %v13462_v56 = vld [vmem:[%s18692_s19 + $0x40] ss:$8 sps:$4 sm:$0xff]   ;;  %v13468_v37 = vld [vmem:[%s18692_s19 + $0x30] ss:$8 sps:$4 sm:$0xff]  }
 0xd78   : > { %6481 = vmatpush1.bf16.msra.mxu1 %v13393_v11  ;;  %6063 = vmatprep.subr.bf16.mxu0 %v13398_v52  ;;  %v13473_v11 = vld [vmem:[%s18692_s19 + $0x144] ss:$8 sps:$4 sm:$0xff]   ;;  %v13471_v52 = vld [vmem:[%s18692_s19 + $0x140] ss:$8 sps:$4 sm:$0xff]  }
 0xd79   : > { %6482 = vmatprep.subr.bf16.mxu1 %v13401_v53  ;;  %6508 = vmatprep.mubr.bf16.mxu1 %v18773_v32  ;;  %v13474_v53 = vld [vmem:[%s18692_s19 + $0x20] ss:$8 sps:$4 sm:$0xff]  }
 0xd7a   : > { %12285 = vmatmul.mubr.msk.bf16.vlgmr.msra.gmra.mxu0 %vm1324_vm13, %v5713_v15  ;;  %v13479_v15 = vld [vmem:[%s18692_s19 + $0x134] ss:$8 sps:$4 sm:$0xff]  }
 0xd7b   : > { %6064 = vmatpush1.bf16.msra.mxu0 %v13396_v4  ;;  %6091 = vmatprep.mubr.bf16.mxu0 %v18773_v32  ;;  %v13476_v4 = vld [vmem:[%s18692_s19 + $0x24] ss:$8 sps:$4 sm:$0xff]  }
 0xd7c   : > { %6483 = vmatpush1.bf16.msra.mxu1 %v13399_v23  ;;  %6065 = vmatprep.subr.bf16.mxu0 %v13404_v5  ;;  %v13477_v23 = vld [vmem:[%s18692_s19 + $0x130] ss:$8 sps:$4 sm:$0xff]   ;;  %v13482_v5 = vld [vmem:[%s18692_s19 + $0x14] ss:$8 sps:$4 sm:$0xff]  }
 0xd7d   : > { %6484 = vmatprep.subr.bf16.mxu1 %v13407_v38  ;;  %v13480_v38 = vld [vmem:[%s18692_s19 + $0x10] ss:$8 sps:$4 sm:$0xff]  }
 0xd7f   : > { %6066 = vmatpush1.bf16.msra.mxu0 %v13402_v20  ;;  %v13485_v20 = vld [vmem:[%s18692_s19 + $0x124] ss:$8 sps:$4 sm:$0xff]  }
 0xd80   : > { %6485 = vmatpush1.bf16.msra.mxu1 %v13405_v18  ;;  %6067 = vmatprep.subr.bf16.mxu0 %v13410_v63  ;;  %v13483_v18 = vld [vmem:[%s18692_s19 + $0x120] ss:$8 sps:$4 sm:$0xff]  }
 0xd81   : > { %6486 = vmatprep.subr.bf16.mxu1 %v13413_v9  ;;  %v13486_v63 = vld [vmem:[%s18692_s19] ss:$8 sps:$4 sm:$0xff]   ;;  %v13488_v9 = vld [vmem:[%s18692_s19 + $0x4] ss:$8 sps:$4 sm:$0xff]  }
 0xd83   : > { %6068 = vmatpush1.bf16.msra.mxu0 %v13408_v33  ;;  %v13489_v33 = vld [vmem:[%s18692_s19 + $0x110] ss:$8 sps:$4 sm:$0xff]  }
 0xd84   : > { %6487 = vmatpush1.bf16.msra.mxu1 %v13411_v31  ;;  %6069 = vmatprep.subr.bf16.mxu0 %v13416_v60  ;;  %v13491_v31 = vld [vmem:[%s18692_s19 + $0x114] ss:$8 sps:$4 sm:$0xff]  }
 0xd85   : > { %6488 = vmatprep.subr.bf16.mxu1 %v13419_v61  ;;  %v13494_v60 = vld [vmem:[%s18692_s19 + $0xf4] ss:$8 sps:$4 sm:$0xff]   ;;  %v13497_v61 = vld [vmem:[%s18692_s19 + $0x104] ss:$8 sps:$4 sm:$0xff]  }
 0xd87   : > { %6070 = vmatpush1.bf16.msra.mxu0 %v13414_v59  ;;  %v13492_v59 = vld [vmem:[%s18692_s19 + $0xf0] ss:$8 sps:$4 sm:$0xff]  }
 0xd88   : > { %6489 = vmatpush1.bf16.msra.mxu1 %v13417_v25  ;;  %6071 = vmatprep.subr.bf16.mxu0 %v13422_v22  ;;  %v13495_v25 = vld [vmem:[%s18692_s19 + $0x100] ss:$8 sps:$4 sm:$0xff]   ;;  %v13500_v22 = vld [vmem:[%s18692_s19 + $0xe4] ss:$8 sps:$4 sm:$0xff]  }
 0xd89   : > { %6490 = vmatprep.subr.bf16.mxu1 %v13425_v46  ;;  %v13503_v46 = vld [vmem:[%s18692_s19 + $0x1f4] ss:$8 sps:$4 sm:$0xff]  }
 0xd8b   : > { %6072 = vmatpush1.bf16.msra.mxu0 %v13420_v12  ;;  %v13498_v12 = vld [vmem:[%s18692_s19 + $0xe0] ss:$8 sps:$4 sm:$0xff]  }
 0xd8c   : > { %6491 = vmatpush1.bf16.msra.mxu1 %v13423_v2  ;;  %6073 = vmatprep.subr.bf16.mxu0 %v13428_v40  ;;  %v13501_v2 = vld [vmem:[%s18692_s19 + $0x1f0] ss:$8 sps:$4 sm:$0xff]   ;;  %v13506_v40 = vld [vmem:[%s18692_s19 + $0xd4] ss:$8 sps:$4 sm:$0xff]  }
 0xd8d   : > { %7157 = vmatprep.subr.bf16.mxu1 %v13449_v57  ;;  %v13528_v57 = vld [vmem:[%s18692_s19 + $0x90] ss:$8 sps:$4 sm:$0xff]  }
 0xd8f   : > { %6074 = vmatpush1.bf16.msra.mxu0 %v13426_v45  ;;  %12356 = vmatmul.mubr.msk.bf16.vlgmr.msra.gmra.mxu1 %vm1324_vm13, %v6412_v49  ;;  %v13504_v45 = vld [vmem:[%s18692_s19 + $0xd0] ss:$8 sps:$4 sm:$0xff]   ;;  %v13515_v49 = vld [vmem:[%s18692_s19 + $0x1d4] ss:$8 sps:$4 sm:$0xff]  }
 0xd90   : > { %6347 = vmatprep.subr.bf16.mxu0 %v13431_v16  ;;  %7158 = vmatpush1.bf16.msra.mxu1 %v13447_v50  ;;  %v13512_v16 = vld [vmem:[%s18692_s19 + $0xc4] ss:$8 sps:$4 sm:$0xff]  }
 0xd91   : > { %7159 = vmatprep.subr.bf16.mxu1 %v13452_v17 }
 0xd92   : > { %12313 = vmatmul.mubr.msk.bf16.vlgmr.msra.gmra.mxu0 %vm1324_vm13, %v5995_v48  ;;  %v13513_v48 = vld [vmem:[%s18692_s19 + $0x1d0] ss:$8 sps:$4 sm:$0xff]  }
 0xd93   : > { %6348 = vmatpush1.bf16.msra.mxu0 %v13429_v14  ;;  %6375 = vmatprep.mubr.bf16.mxu0 %v18773_v32  ;;  %v13438_v32 = vld [vmem:[%s18690_s17 + $0x200] ss:$8 sps:$4 sm:$0xff]  }
 0xd94   : > { %6349 = vmatprep.subr.bf16.mxu0 %v13434_v58  ;;  %7160 = vmatpush1.bf16.msra.mxu1 %v13450_v3  ;;  %v13510_v14 = vld [vmem:[%s18692_s19 + $0xc0] ss:$8 sps:$4 sm:$0xff]   ;;  %v13518_v58 = vld [vmem:[%s18692_s19 + $0xb4] ss:$8 sps:$4 sm:$0xff]   ;;  %v13536_v3 = vld [vmem:[%s18692_s19 + $0x84] ss:$8 sps:$4 sm:$0xff]  }
 0xd95   : > { %7161 = vmatprep.subr.bf16.mxu1 %v13458_v55  ;;  %v13539_v55 = vld [vmem:[%s18692_s19 + $0x194] ss:$8 sps:$4 sm:$0xff]  }
 0xd97   : > { %6350 = vmatpush1.bf16.msra.mxu0 %v13432_v8  ;;  %v13521_v8 = vld [vmem:[%s18692_s19 + $0x1c4] ss:$8 sps:$4 sm:$0xff]  }
 0xd98   : > { %6351 = vmatprep.subr.bf16.mxu0 %v13437_v30  ;;  %7162 = vmatpush1.bf16.msra.mxu1 %v13456_v51  ;;  %v13516_v30 = vld [vmem:[%s18692_s19 + $0xb0] ss:$8 sps:$4 sm:$0xff]   ;;  %v13534_v51 = vld [vmem:[%s18692_s19 + $0x80] ss:$8 sps:$4 sm:$0xff]  }
 0xd99   : > { %7163 = vmatprep.subr.bf16.mxu1 %v13464_v27  ;;  %v13542_v27 = vld [vmem:[%s18692_s19 + $0x374] ss:$8 sps:$4 sm:$0xff]  }
 0xd9b   : > { %6352 = vmatpush1.bf16.msra.mxu0 %v13435_v21  ;;  %v13519_v21 = vld [vmem:[%s18692_s19 + $0x1c0] ss:$8 sps:$4 sm:$0xff]  }
 0xd9c   : > { %6353 = vmatprep.subr.bf16.mxu0 %v13440_v7  ;;  %7164 = vmatpush1.bf16.msra.mxu1 %v13462_v56  ;;  %v13524_v7 = vld [vmem:[%s18692_s19 + $0xa4] ss:$8 sps:$4 sm:$0xff]  }
 0xd9d   : > { %7165 = vmatprep.subr.bf16.mxu1 %v13470_v44  ;;  %v13545_v56 = vld [vmem:[%s18692_s19 + $0x184] ss:$8 sps:$4 sm:$0xff]   ;;  %v13551_v44 = vld [vmem:[%s18692_s19 + $0x274] ss:$8 sps:$4 sm:$0xff]  }
 0xd9f   : > { %6354 = vmatpush1.bf16.msra.mxu0 %v13438_v32  ;;  %v13527_v32 = vld [vmem:[%s18692_s19 + $0x1b4] ss:$8 sps:$4 sm:$0xff]  }
 0xda0   : > { %6355 = vmatprep.subr.bf16.mxu0 %v13443_v36  ;;  %7166 = vmatpush1.bf16.msra.mxu1 %v13468_v37  ;;  %v13522_v36 = vld [vmem:[%s18692_s19 + $0xa0] ss:$8 sps:$4 sm:$0xff]  }
 0xda1   : > { %7167 = vmatprep.subr.bf16.mxu1 %v13476_v4 }
 0xda3   : > { %6356 = vmatpush1.bf16.msra.mxu0 %v13441_v26 }
 0xda4   : > { %6357 = vmatprep.subr.bf16.mxu0 %v13446_v0  ;;  %7168 = vmatpush1.bf16.msra.mxu1 %v13474_v53  ;;  %v13525_v0 = vld [vmem:[%s18692_s19 + $0x1b0] ss:$8 sps:$4 sm:$0xff]  }
 0xda5   : > { %7169 = vmatprep.subr.bf16.mxu1 %v13482_v5 }
 0xda7   : > { %6358 = vmatpush1.bf16.msra.mxu0 %v13444_v41  ;;  %v13530_v41 = vld [vmem:[%s18692_s19 + $0x94] ss:$8 sps:$4 sm:$0xff]  }
 0xda8   : > { %6931 = vmatprep.subr.bf16.mxu0 %v13455_v6  ;;  %7170 = vmatpush1.bf16.msra.mxu1 %v13480_v38 }
 0xda9   : > { %7171 = vmatprep.subr.bf16.mxu1 %v13488_v9 }
 0xdaa   : > { %12342 = vmatmul.mubr.msk.bf16.vlgmr.msra.gmra.mxu0 %vm1324_vm13, %v6279_v54  ;;  %vm18799_vm13 = vcmask 1041408  }
 0xdab   : > { %6932 = vmatpush1.bf16.msra.mxu0 %v13453_v28  ;;  %v13531_v28 = vld [vmem:[%s18692_s19 + $0x1a0] ss:$8 sps:$4 sm:$0xff]  }
 0xdac   : > { %6933 = vmatprep.subr.bf16.mxu0 %v13461_v34  ;;  %7172 = vmatpush1.bf16.msra.mxu1 %v13486_v63 }
 0xdad   : > { %7173 = vmatprep.subr.bf16.mxu1 %v13494_v60 }
 0xdaf   : > { %6934 = vmatpush1.bf16.msra.mxu0 %v13459_v1 }
 0xdb0   : > { %6935 = vmatprep.subr.bf16.mxu0 %v13467_v19  ;;  %7174 = vmatpush2.bf16.msra.mxu1 %v13492_v59  ;;  %v13537_v19 = vld [vmem:[%s18692_s19 + $0x190] ss:$8 sps:$4 sm:$0xff]  }
 0xdb1   : > { %7175 = vmatprep.subr.bf16.mxu1 %v13500_v22 }
 0xdb3   : > { %6936 = vmatpush1.bf16.msra.mxu0 %v13465_v42 }
 0xdb4   : > { %6937 = vmatprep.subr.bf16.mxu0 %v13473_v11  ;;  %7176 = vmatpush2.bf16.msra.mxu1 %v13498_v12  ;;  %v13543_v11 = vld [vmem:[%s18692_s19 + $0x180] ss:$8 sps:$4 sm:$0xff]  }
 0xdb5   : > { %7177 = vmatprep.subr.bf16.mxu1 %v13506_v40  ;;  %v16750_v40 = vsub.s32 0, %v14828_v29 }
 0xdb7   : > { %6938 = vmatpush1.bf16.msra.mxu0 %v13471_v52 }
 0xdb8   : > { %6939 = vmatprep.subr.bf16.mxu0 %v13479_v15  ;;  %7178 = vmatpush2.bf16.msra.mxu1 %v13504_v45 }
 0xdb9   : > { %7179 = vmatprep.subr.bf16.mxu1 %v13512_v16 }
 0xdbb   : > { %6940 = vmatpush1.bf16.msra.mxu0 %v13477_v23 }
 0xdbc   : > { %6941 = vmatprep.subr.bf16.mxu0 %v13485_v20  ;;  %7180 = vmatpush2.bf16.msra.mxu1 %v13510_v14 }
 0xdbd   : > { %7181 = vmatprep.subr.bf16.mxu1 %v13518_v58 }
 0xdbf   : > { %6942 = vmatpush1.bf16.msra.mxu0 %v13483_v18 }
 0xdc0   : > { %6943 = vmatprep.subr.bf16.mxu0 %v13491_v31  ;;  %7182 = vmatpush2.bf16.msra.mxu1 %v13516_v30 }
 0xdc1   : > { %7183 = vmatprep.subr.bf16.mxu1 %v13524_v7 }
 0xdc3   : > { %6944 = vmatpush1.bf16.msra.mxu0 %v13489_v33 }
 0xdc4   : > { %6945 = vmatprep.subr.bf16.mxu0 %v13497_v61  ;;  %7184 = vmatpush2.bf16.msra.mxu1 %v13522_v36 }
 0xdc5   : > { %7185 = vmatprep.subr.bf16.mxu1 %v13530_v41 }
 0xdc7   : > { %6946 = vmatpush1.bf16.msra.mxu0 %v13495_v25 }
 0xdc8   : > { %6947 = vmatprep.subr.bf16.mxu0 %v13503_v46  ;;  %7186 = vmatpush2.bf16.msra.mxu1 %v13528_v57 }
 0xdc9   : > { %7187 = vmatprep.subr.bf16.mxu1 %v13536_v3 }
 0xdcb   : > { %6948 = vmatpush2.bf16.msra.mxu0 %v13501_v2 }
 0xdcc   : > { %6949 = vmatprep.subr.bf16.mxu0 %v13509_v24  ;;  %7188 = vmatpush2.bf16.msra.mxu1 %v13534_v51  ;;  %v6519_v24 = vld [vmem:[%s18691_s18] sm:$0x3] }
 0xdcd   : > { %7693 = vmatprep.subr.bf16.mxu1 %v13542_v27  ;;  %v6524_v14 = vrot.slane %v6519_v24, %v16750_v40 }
 0xdcf   : > { %6950 = vmatpush2.bf16.msra.mxu0 %v13507_v43  ;;  %v16756_v43 = vsub.s32 1, %v14828_v29 }
 0xdd0   : > { %6951 = vmatprep.subr.bf16.mxu0 %v13515_v49 }
 0xdd3   : > { %6952 = vmatpush2.bf16.msra.mxu0 %v13513_v48 }
 0xdd4   : > { %6953 = vmatprep.subr.bf16.mxu0 %v13521_v8 }
 0xdd7   : > { %6954 = vmatpush2.bf16.msra.mxu0 %v13519_v21  ;;  %v6528_v21 = vrot.slane %v6519_v24, %v16756_v43 }
 0xdd8   : > { %6955 = vmatprep.subr.bf16.mxu0 %v13527_v32 }
 0xddb   : > { %6956 = vmatpush2.bf16.msra.mxu0 %v13525_v0 }
 0xddc   : > { %6957 = vmatprep.subr.bf16.mxu0 %v13533_v13 }
 0xddf   : > { %6958 = vmatpush2.bf16.msra.mxu0 %v13531_v28 }
 0xde0   : > { %6959 = vmatprep.subr.bf16.mxu0 %v13539_v55 }
 0xde3   : > { %6960 = vmatpush2.bf16.msra.mxu0 %v13537_v19 }
 0xde4   : > { %6961 = vmatprep.subr.bf16.mxu0 %v13545_v56 }
 0xde7   : > { %6962 = vmatpush2.bf16.msra.mxu0 %v13543_v11 }
 0xde8   : > { %7415 = vmatprep.subr.bf16.mxu0 %v13551_v44 }
 0xe1f   : > { %v5942_v26 = vpop.f32.mrf.mxu1 }
 0xe21   : > { %v5944_v54 = vpop.f32.mrf.mxu1 }
 0xe22   : > { %v5692_v50 = vpop.f32.mrf.mxu0 }
 0xe23   : > { %v5946_v17 = vpop.f32.mrf.mxu1 }
 0xe24   : > { %v5694_v6 = vpop.f32.mrf.mxu0 }
 0xe25   : > { %v5947_v34 = vpop.f32.mrf.mxu1 }
 0xe26   : > { %v5696_v1 = vpop.f32.mrf.mxu0 }
 0xe28   : > { %v5697_v42 = vpop.f32.mrf.mxu0 }
 0xe37   : > { %v6226_v52 = vpop.f32.mrf.mxu1 }
 0xe39   : > { %v6228_v37 = vpop.f32.mrf.mxu1 }
 0xe3a   : > { %v5811_v53 = vpop.f32.mrf.mxu0 }
 0xe3b   : > { %v5812_v4 = vadd.f32 %v5811_v53, %v5692_v50  ;;  %v6230_v15 = vpop.f32.mrf.mxu1 }
 0xe3c   : > { %v5813_v23 = vpop.f32.mrf.mxu0 }
 0xe3d   : > { %v5814_v5 = vadd.f32 %v5813_v23, %v5694_v6  ;;  %v6231_v38 = vpop.f32.mrf.mxu1  ;;  %v5949_v20 = vadd.f32 %v5942_v26, %v5812_v4 }
 0xe3e   : > { %v5815_v18 = vpop.f32.mrf.mxu0 }
 0xe3f   : > { %v5950_v63 = vadd.f32 %v5944_v54, %v5814_v5 }
 0xe40   : > { %v5816_v9 = vpop.f32.mrf.mxu0 }
 0xe4f   : > { %v6510_v33 = vpop.f32.mrf.mxu1 }
 0xe51   : > { %v6512_v31 = vpop.f32.mrf.mxu1 }
 0xe52   : > { %v6093_v60 = vpop.f32.mrf.mxu0 }
 0xe53   : > { %v6514_v61 = vpop.f32.mrf.mxu1  ;;  %v6100_v12 = vadd.f32 %v6093_v60, %v5949_v20 }
 0xe54   : > { %v6095_v59 = vpop.f32.mrf.mxu0 }
 0xe55   : > { %v6515_v25 = vpop.f32.mrf.mxu1  ;;  %v6101_v2 = vadd.f32 %v6095_v59, %v5950_v63  ;;  %v6233_v45 = vadd.f32 %v6226_v52, %v6100_v12 }
 0xe56   : > { %v6097_v22 = vpop.f32.mrf.mxu0 }
 0xe57   : > { %v6234_v48 = vadd.f32 %v6228_v37, %v6101_v2 }
 0xe58   : > { %v6098_v46 = vpop.f32.mrf.mxu0 }
 0xe6a   : > { %v6377_v16 = vpop.f32.mrf.mxu0 }
 0xe6b   : > { %v6384_v49 = vadd.f32 %v6377_v16, %v6233_v45 }
 0xe6c   : > { %v6379_v58 = vpop.f32.mrf.mxu0 }
 0xe6d   : > { %v6517_v8 = vadd.f32 %v6510_v33, %v6384_v49  ;;  %v6385_v30 = vadd.f32 %v6379_v58, %v6234_v48 }
 0xe6e   : > { %v6381_v7 = vpop.f32.mrf.mxu0 }
 0xe6f   : > { %v6531_v32 = vadd.f32 %v6524_v14, %v6517_v8  ;;  %v6518_v36 = vadd.f32 %v6512_v31, %v6385_v30 }
 0xe70   : > { %v6382_v26 = vpop.f32.mrf.mxu0 }
 0xe71   : > { %v6532_v0 = vadd.f32 %v6528_v21, %v6518_v36  ;;  %v6533_v41 = vmax.f32 %v6531_v32, 0.0 }
 0xe73   : > { %v6534_v13 = vmax.f32 %v6532_v0, 0.0 }
 0xe75   : > { %v6537_v54 = vcombine.low %v6533_v41, %v6534_v13 }
 0xe77   : > { %v6544_v29 = vrot.slane %v6537_v54, %v14838_v35 }
 0xe79   : > { %v6545_v50 = vcombine.high %v6544_v29, %v6544_v29  ;;  %v6552_v57 = vrot.slane %v6544_v29, %v14838_v35 }
 0xe7b   : > { %v6553_v17 = vcombine.high %v6552_v57, %v6552_v57  ;;  %v6560_v28 = vrot.slane %v6545_v50, %v14838_v35  ;;  %v6566_v3 = vpack.c.bf16 %v6552_v57, %v6552_v57 }
 0xe7d   : > { %v6561_v6 = vcombine.high %v6560_v28, %v6560_v28  ;;  %v6567_v55 = vpack.c.bf16 %v6553_v17, %v6553_v17  ;;  %v6568_v34 = vpack.c.bf16 %v6560_v28, %v6560_v28  ;;  %v6571_v1 = vshrl.u32 %v6566_v3, 16 }
 0xe7e   : > { %v6574_v51 = vshll.u32 %v6566_v3, 16 }
 0xe7f   : > { %v6569_v19 = vpack.c.bf16 %v6561_v6, %v6561_v6  ;;  %v6573_v27 = vrot.slane %v6571_v1, 6  ;;  %v6579_v42 = vshrl.u32 %v6567_v55, 16  ;;  %v6582_v56 = vshll.u32 %v6567_v55, 16  ;;  %v13540_v1 = vld [vmem:[%s18692_s19 + $0x370] ss:$8 sps:$4 sm:$0xff]  }
 0xe80   : > { %v6576_v11 = vrot.slane %v6574_v51, 7  ;;  %v6587_v44 = vshrl.u32 %v6568_v34, 16  ;;  %v6590_v52 = vshll.u32 %v6568_v34, 16 }
 0xe81   : > { %v6581_v37 = vrot.slane %v6579_v42, 6  ;;  %v6584_v53 = vrot.slane %v6582_v56, 7  ;;  %v6595_v4 = vshrl.u32 %v6569_v19, 16  ;;  %v6598_v15 = vshll.u32 %v6569_v19, 16  ;;  %v13548_v42 = vld [vmem:[%s18692_s19 + $0x364] ss:$8 sps:$4 sm:$0xff]  }
 0xe82   : > { %v6577_v23 = vor.u32 %v6576_v11, %v6573_v27  ;;  %v6589_v5 = vrot.slane %v6587_v44, 6  ;;  %v6592_v38 = vrot.slane %v6590_v52, 7 }
 0xe83   : > { %v6585_v20 = vor.u32 %v6584_v53, %v6581_v37  ;;  %v6597_v18 = vrot.slane %v6595_v4, 6  ;;  %v6600_v63 = vrot.slane %v6598_v15, 7  ;;  %v13546_v53 = vld [vmem:[%s18692_s19 + $0x360] ss:$8 sps:$4 sm:$0xff]  }
 0xe84   : > { %v6593_v9 = vor.u32 %v6592_v38, %v6589_v5  ;;  %v6606_v33 = vsel %vm15918_vm10, 0, %v6577_v23  ;;  %v13554_v5 = vld [vmem:[%s18692_s19 + $0x354] ss:$8 sps:$4 sm:$0xff]   ;;  %v13549_v38 = vld [vmem:[%s18692_s19 + $0x270] ss:$8 sps:$4 sm:$0xff]  }
 0xe85   : > { %v6601_v31 = vor.u32 %v6600_v63, %v6597_v18  ;;  %v6607_v60 = vsel %vm15918_vm10, 0, %v6585_v20  ;;  %v6610_v59 = vsel %vm15442_vm14, %v6606_v33, 0  ;;  %v13557_v63 = vld [vmem:[%s18692_s19 + $0x264] ss:$8 sps:$4 sm:$0xff]   ;;  %v13552_v33 = vld [vmem:[%s18692_s19 + $0x350] ss:$8 sps:$4 sm:$0xff]  }
 0xe86   : > { %v6608_v61 = vsel %vm15918_vm10, 0, %v6593_v9  ;;  %v6611_v25 = vsel %vm15442_vm14, %v6607_v60, 0  ;;  %v13555_v60 = vld [vmem:[%s18692_s19 + $0x260] ss:$8 sps:$4 sm:$0xff]  }
 0xe87   : > { %v6609_v22 = vsel %vm15918_vm10, 0, %v6601_v31  ;;  %v6618_v46 = vcombine.low %v6610_v59, %v6611_v25  ;;  %v6612_v12 = vsel %vm15442_vm14, %v6608_v61, 0  ;;  %v13560_v31 = vld [vmem:[%s18692_s19 + $0x344] ss:$8 sps:$4 sm:$0xff]   ;;  %v13563_v61 = vld [vmem:[%s18692_s19 + $0x254] ss:$8 sps:$4 sm:$0xff]   ;;  %vm18801_vm10 = vmmov %vm18799_vm13 }
 0xe88   : > { %v6613_v2 = vsel %vm15442_vm14, %v6609_v22, 0  ;;  %v13558_v59 = vld [vmem:[%s18692_s19 + $0x340] ss:$8 sps:$4 sm:$0xff]   ;;  %v13566_v25 = vld [vmem:[%s18692_s19 + $0x334] ss:$8 sps:$4 sm:$0xff]   ;;  %vm18800_vm14 = vcmask 1040384   ;;  %vm18804_vm2 = vmmov %vm18801_vm10 }
 0xe89   : > { %v6625_v24 = vrot.slane %v6618_v46, %v16255_v47  ;;  %v6633_v45 = vcombine.low %v6612_v12, %v6613_v2  ;;  %v13561_v22 = vld [vmem:[%s18692_s19 + $0x250] ss:$8 sps:$4 sm:$0xff]   ;;  %v13569_v46 = vld [vmem:[%s18692_s19 + $0x244] ss:$8 sps:$4 sm:$0xff]   ;;  %vm18802_vm4 = vmmov %vm18800_vm14 }
 0xe8a   : > { %v13564_v12 = vld [vmem:[%s18692_s19 + $0x330] ss:$8 sps:$4 sm:$0xff]   ;;  %v13572_v2 = vld [vmem:[%s18692_s19 + $0x324] ss:$8 sps:$4 sm:$0xff]   ;;  %vm18803_vm1 = vmmov %vm18802_vm4 }
 0xe8b   : > { %v16781_v16 = vrot.slane %v6625_v24, %v16255_v47  ;;  %v6640_v49 = vrot.slane %v6633_v45, %v16255_v47  ;;  %v6680_v14 = vcombine.high %v6625_v24, %v6625_v24  ;;  %v13567_v24 = vld [vmem:[%s18692_s19 + $0x240] ss:$8 sps:$4 sm:$0xff]   ;;  %v13575_v45 = vld [vmem:[%s18692_s19 + $0x234] ss:$8 sps:$4 sm:$0xff]   ;;  %vm18805_vm3 = vmmov %vm18804_vm2 }
 0xe8c   : > { %vm18806_vm5 = vmmov %vm18804_vm2 }
 0xe8d   : > { %v16785_v48 = vrot.slane %v6640_v49, %v16255_v47  ;;  %v16788_v10 = vrot.slane %v6680_v14, %v16255_v47  ;;  %v6688_v58 = vcombine.high %v6640_v49, %v6640_v49  ;;  %v16792_v39 = vcombine.high %v16781_v16, %v16781_v16  ;;  %v13570_v49 = vld [vmem:[%s18692_s19 + $0x320] ss:$8 sps:$4 sm:$0xff]   ;;  %v13578_v14 = vld [vmem:[%s18692_s19 + $0x314] ss:$8 sps:$4 sm:$0xff]   ;;  %vm18807_vm9 = vmmov %vm18804_vm2 }
 0xe8e   : > { %v6697_v7 = vshrl.u32 %v16781_v16, 16  ;;  %vm18808_vm0 = vmmov %vm18803_vm1 }
 0xe8f   : > { %v16795_v8 = vrot.slane %v6688_v58, %v16255_v47  ;;  %v6972_v30 = vcombine.low %v16781_v16, %v16785_v48  ;;  %v6702_v21 = vshll.u32 %v16788_v10, 16  ;;  %v16803_v32 = vcombine.high %v16785_v48, %v16785_v48  ;;  %v13573_v58 = vld [vmem:[%s18692_s19 + $0x230] ss:$8 sps:$4 sm:$0xff]   ;;  %vm18809_vm12 = vmmov %vm18804_vm2 }
 0xe90   : > { %v7460_v36 = vshrl.u32 %v16788_v10, 16  ;;  %v7465_v26 = vshll.u32 %v16792_v39, 16  ;;  %v6706_v41 = vshrl.u32 %v16785_v48, 16  ;;  %v12489_v44 = vcombine.high %v16781_v16, %v16785_v48  ;;  %v13647_v16 = vld [vmem:[%s18692_s19 + $0x474] ss:$8 sps:$4 sm:$0xff]   ;;  %vm18810_vm11 = vmmov %vm18804_vm2 }
 0xe91   : > { %v6979_v0 = vrot.slane %v6972_v30, %v16255_v47  ;;  %v6711_v13 = vshll.u32 %v16795_v8, 16  ;;  %v7468_v54 = vshrl.u32 %v16795_v8, 16  ;;  %v7473_v29 = vshll.u32 %v16803_v32, 16  ;;  %v13581_v30 = vld [vmem:[%s18692_s19 + $0x224] ss:$8 sps:$4 sm:$0xff]   ;;  %vm18811_vm8 = vmmov %vm18804_vm2 }
 0xe92   : > { %v7230_v50 = vcombine.low %v16788_v10, %v16795_v8  ;;  %v6704_v17 = vsel %vm16293_vm7, %v6697_v7, %v6702_v21  ;;  %v7467_v6 = vsel %vm16293_vm7, %v7460_v36, %v7465_v26  ;;  %v12556_v52 = vcombine.high %v16788_v10, %v16795_v8  ;;  %v13576_v21 = vld [vmem:[%s18692_s19 + $0x310] ss:$8 sps:$4 sm:$0xff]   ;;  %v13584_v7 = vld [vmem:[%s18692_s19 + $0x304] ss:$8 sps:$4 sm:$0xff]   ;;  %v13579_v36 = vld [vmem:[%s18692_s19 + $0x220] ss:$8 sps:$4 sm:$0xff]  }
 0xe93   : > { %v6980_v57 = vcombine.high %v6979_v0, %v6979_v0  ;;  %v6713_v28 = vsel %vm16293_vm7, %v6706_v41, %v6711_v13  ;;  %v7475_v55 = vsel %vm16293_vm7, %v7468_v54, %v7473_v29  ;;  %v6987_v27 = vrot.slane %v6979_v0, %v16255_v47  ;;  %v13587_v26 = vld [vmem:[%s18692_s19 + $0x214] ss:$8 sps:$4 sm:$0xff]   ;;  %v13582_v0 = vld [vmem:[%s18692_s19 + $0x300] ss:$8 sps:$4 sm:$0xff]   ;;  %v13585_v13 = vld [vmem:[%s18692_s19 + $0x210] ss:$8 sps:$4 sm:$0xff]  }
 0xe94   : > { %v6746_v3 = vcombine.low %v6704_v17, %v6713_v28  ;;  %v7508_v51 = vcombine.low %v7467_v6, %v7475_v55  ;;  %v16827_v19 = vrot.slane %v7230_v50, %v16255_v47  ;;  %v13590_v41 = vld [vmem:[%s18692_s19 + $0x3f4] ss:$8 sps:$4 sm:$0xff]   ;;  %v13593_v54 = vld [vmem:[%s18692_s19 + $0x204] ss:$8 sps:$4 sm:$0xff]   ;;  %v13588_v29 = vld [vmem:[%s18692_s19 + $0x3f0] ss:$8 sps:$4 sm:$0xff]  }
 0xe95   : > { %v6994_v34 = vrot.slane %v6980_v57, %v16255_v47  ;;  %v13596_v50 = vld [vmem:[%s18692_s19 + $0x3e4] ss:$8 sps:$4 sm:$0xff]   ;;  %v13591_v57 = vld [vmem:[%s18692_s19 + $0x200] ss:$8 sps:$4 sm:$0xff]   ;;  %v13599_v17 = vld [vmem:[%s18692_s19 + $0x2f4] ss:$8 sps:$4 sm:$0xff]  }
 0xe96   : > { %v6753_v56 = vrot.slane %v6746_v3, %v16255_v47  ;;  %v16835_v11 = vrot.slane %v7508_v51, %v16255_v47  ;;  %v7238_v15 = vcombine.high %v16827_v19, %v16827_v19  ;;  %v13594_v28 = vld [vmem:[%s18692_s19 + $0x3e0] ss:$8 sps:$4 sm:$0xff]   ;;  %v13602_v3 = vld [vmem:[%s18692_s19 + $0x3d4] ss:$8 sps:$4 sm:$0xff]   ;;  %v13597_v6 = vld [vmem:[%s18692_s19 + $0x2f0] ss:$8 sps:$4 sm:$0xff]  }
 0xe97   : > { %7189 = vmatprep.mubr.bf16.mxu1 %v6994_v34  ;;  %v13605_v55 = vld [vmem:[%s18692_s19 + $0x2e4] ss:$8 sps:$4 sm:$0xff]   ;;  %v13600_v34 = vld [vmem:[%s18692_s19 + $0x3d0] ss:$8 sps:$4 sm:$0xff]   ;;  %v13603_v51 = vld [vmem:[%s18692_s19 + $0x2e0] ss:$8 sps:$4 sm:$0xff]  }
 0xe98   : > { %7190 = vmatmul.mubr.bf16.vlgmr.msra.gmra.mxu1 %v6987_v27  ;;  %v6754_v37 = vcombine.high %v6753_v56, %v6753_v56  ;;  %v7516_v4 = vcombine.high %v16835_v11, %v16835_v11  ;;  %v6761_v18 = vrot.slane %v6753_v56, %v16255_v47  ;;  %v7252_v9 = vrot.slane %v7238_v15, %v16255_v47  ;;  %v13611_v27 = vld [vmem:[%s18692_s19 + $0x2d4] ss:$8 sps:$4 sm:$0xff]   ;;  %v13606_v56 = vld [vmem:[%s18692_s19 + $0x3c0] ss:$8 sps:$4 sm:$0xff]   ;;  %v13617_v15 = vld [vmem:[%s18692_s19 + $0x2c4] ss:$8 sps:$4 sm:$0xff]  }
 0xe99   : > { %7694 = vmatpush1.bf16.msra.mxu1 %v13540_v1  ;;  %v13608_v1 = vld [vmem:[%s18692_s19 + $0x3c4] ss:$8 sps:$4 sm:$0xff]   ;;  %v13642_v48 = vld [vmem:[%s18692_s19 + $0x560] ss:$8 sps:$4 sm:$0xff]   ;;  %vm18812_vm6 = vmmov %vm18804_vm2 }
 0xe9a   : > { %7695 = vmatprep.subr.bf16.mxu1 %v13548_v42  ;;  %v6768_v23 = vrot.slane %v6754_v37, %v16255_v47  ;;  %v7530_v20 = vrot.slane %v7516_v4, %v16255_v47  ;;  %v7997_v42 = vcombine.high %v16795_v8, %v16795_v8  ;;  %v13614_v37 = vld [vmem:[%s18692_s19 + $0x3b4] ss:$8 sps:$4 sm:$0xff]   ;;  %v13609_v4 = vld [vmem:[%s18692_s19 + $0x2d0] ss:$8 sps:$4 sm:$0xff]  }
 0xe9c   : > { %6963 = vmatprep.mubr.bf16.mxu0 %v6768_v23  ;;  %7725 = vmatprep.mubr.bf16.mxu1 %v7530_v20  ;;  %v8011_v23 = vshll.u32 %v7997_v42, 16  ;;  %v13671_v42 = vld [vmem:[%s18692_s19 + $0x434] ss:$8 sps:$4 sm:$0xff]  }
 0xe9d   : > { %7696 = vmatpush1.bf16.msra.mxu1 %v13546_v53  ;;  %6964 = vmatmul.mubr.bf16.vlgmr.msra.gmra.mxu0 %v6761_v18  ;;  %v7996_v53 = vcombine.high %v16788_v10, %v16788_v10  ;;  %v8006_v18 = vshrl.u32 %v16803_v32, 16  ;;  %v13618_v32 = vld [vmem:[%s18692_s19 + $0x3a0] ss:$8 sps:$4 sm:$0xff]   ;;  %v13735_v10 = vld [vmem:[%s18692_s19 + $0x670] ss:$8 sps:$4 sm:$0xff]  }
 0xe9e   : > { %7697 = vmatprep.subr.bf16.mxu1 %v13554_v5  ;;  %7416 = vmatpush1.bf16.msra.mxu0 %v13549_v38  ;;  %v13612_v5 = vld [vmem:[%s18692_s19 + $0x3b0] ss:$8 sps:$4 sm:$0xff]   ;;  %v13620_v38 = vld [vmem:[%s18692_s19 + $0x3a4] ss:$8 sps:$4 sm:$0xff]  }
 0xe9f   : > { %7447 = vmatprep.mubr.bf16.mxu0 %v7252_v9  ;;  %7417 = vmatprep.subr.bf16.mxu0 %v13557_v63  ;;  %v8003_v20 = vshll.u32 %v7996_v53, 16  ;;  %v13615_v63 = vld [vmem:[%s18692_s19 + $0x2c0] ss:$8 sps:$4 sm:$0xff]   ;;  %v13623_v9 = vld [vmem:[%s18692_s19 + $0x2b4] ss:$8 sps:$4 sm:$0xff]  }
 0xea0   : > { %v13669_v53 = vld [vmem:[%s18692_s19 + $0x430] ss:$8 sps:$4 sm:$0xff]  }
 0xea1   : > { %7698 = vmatpush1.bf16.msra.mxu1 %v13552_v33  ;;  %v7998_v33 = vshrl.u32 %v16792_v39, 16  ;;  %v13621_v39 = vld [vmem:[%s18692_s19 + $0x2b0] ss:$8 sps:$4 sm:$0xff]  }
 0xea2   : > { %7699 = vmatprep.subr.bf16.mxu1 %v13560_v31  ;;  %7418 = vmatpush1.bf16.msra.mxu0 %v13555_v60  ;;  %v8013_v31 = vsel %vm16293_vm7, %v8006_v18, %v8011_v23  ;;  %v13626_v60 = vld [vmem:[%s18692_s19 + $0x394] ss:$8 sps:$4 sm:$0xff]   ;;  %v13680_v23 = vld [vmem:[%s18692_s19 + $0x504] ss:$8 sps:$4 sm:$0xff]  }
 0xea3   : > { %7419 = vmatprep.subr.bf16.mxu0 %v13563_v61  ;;  %v8005_v61 = vsel %vm16293_vm7, %v7998_v33, %v8003_v20  ;;  %v13678_v20 = vld [vmem:[%s18692_s19 + $0x500] ss:$8 sps:$4 sm:$0xff]   ;;  %v13686_v18 = vld [vmem:[%s18692_s19 + $0x5f4] ss:$8 sps:$4 sm:$0xff]   ;;  %v13684_v33 = vld [vmem:[%s18692_s19 + $0x5f0] ss:$8 sps:$4 sm:$0xff]  }
 0xea5   : > { %7700 = vmatpush1.bf16.msra.mxu1 %v13558_v59  ;;  %v8046_v59 = vcombine.low %v8005_v61, %v8013_v31  ;;  %v13692_v31 = vld [vmem:[%s18692_s19 + $0x5e4] ss:$8 sps:$4 sm:$0xff]   ;;  %v13690_v61 = vld [vmem:[%s18692_s19 + $0x5e0] ss:$8 sps:$4 sm:$0xff]  }
 0xea6   : > { %7701 = vmatprep.subr.bf16.mxu1 %v13566_v25  ;;  %7420 = vmatpush1.bf16.msra.mxu0 %v13561_v22  ;;  %v13629_v25 = vld [vmem:[%s18692_s19 + $0x2a4] ss:$8 sps:$4 sm:$0xff]   ;;  %v13624_v22 = vld [vmem:[%s18692_s19 + $0x390] ss:$8 sps:$4 sm:$0xff]  }
 0xea7   : > { %7421 = vmatprep.subr.bf16.mxu0 %v13569_v46  ;;  %v13632_v46 = vld [vmem:[%s18692_s19 + $0x384] ss:$8 sps:$4 sm:$0xff]  }
 0xea9   : > { %7702 = vmatpush1.bf16.msra.mxu1 %v13564_v12  ;;  %v13627_v12 = vld [vmem:[%s18692_s19 + $0x2a0] ss:$8 sps:$4 sm:$0xff]  }
 0xeaa   : > { %7703 = vmatprep.subr.bf16.mxu1 %v13572_v2  ;;  %7422 = vmatpush1.bf16.msra.mxu0 %v13567_v24  ;;  %v17025_v2 = vrot.slane %v8046_v59, %v16255_v47  ;;  %v13635_v24 = vld [vmem:[%s18692_s19 + $0x294] ss:$8 sps:$4 sm:$0xff]   ;;  %v13693_v59 = vld [vmem:[%s18692_s19 + $0x4f0] ss:$8 sps:$4 sm:$0xff]  }
 0xeab   : > { %7423 = vmatprep.subr.bf16.mxu0 %v13575_v45  ;;  %v13630_v45 = vld [vmem:[%s18692_s19 + $0x380] ss:$8 sps:$4 sm:$0xff]  }
 0xead   : > { %7704 = vmatpush1.bf16.msra.mxu1 %v13570_v49  ;;  %v13638_v49 = vld [vmem:[%s18692_s19 + $0x574] ss:$8 sps:$4 sm:$0xff]  }
 0xeae   : > { %7705 = vmatprep.subr.bf16.mxu1 %v13578_v14  ;;  %7424 = vmatpush1.bf16.msra.mxu0 %v13573_v58  ;;  %v13633_v14 = vld [vmem:[%s18692_s19 + $0x290] ss:$8 sps:$4 sm:$0xff]   ;;  %v8054_v58 = vcombine.high %v17025_v2, %v17025_v2 }
 0xeaf   : > { %7425 = vmatprep.subr.bf16.mxu0 %v13581_v30  ;;  %v13641_v30 = vld [vmem:[%s18692_s19 + $0x284] ss:$8 sps:$4 sm:$0xff]  }
 0xeb1   : > { %7706 = vmatpush1.bf16.msra.mxu1 %v13576_v21  ;;  %v13636_v21 = vld [vmem:[%s18692_s19 + $0x570] ss:$8 sps:$4 sm:$0xff]  }
 0xeb2   : > { %7707 = vmatprep.subr.bf16.mxu1 %v13584_v7  ;;  %7426 = vmatpush1.bf16.msra.mxu0 %v13579_v36  ;;  %v17051_v7 = vrot.slane %v12489_v44, %v16255_v47  ;;  %v7523_v36 = vrot.slane %v16835_v11, %v16255_v47  ;;  %v13650_v44 = vld [vmem:[%s18692_s19 + $0x554] ss:$8 sps:$4 sm:$0xff]  }
 0xeb3   : > { %7427 = vmatprep.subr.bf16.mxu0 %v13587_v26  ;;  %v13644_v26 = vld [vmem:[%s18692_s19 + $0x564] ss:$8 sps:$4 sm:$0xff]  }
 0xeb4   : > { %v7776_v11 = vcombine.high %v17051_v7, %v17051_v7  ;;  %v7783_v8 = vrot.slane %v17051_v7, %v16255_v47  ;;  %v13741_v7 = vld [vmem:[%s18692_s19 + $0x650] ss:$8 sps:$4 sm:$0xff]  }
 0xeb5   : > { %7708 = vmatpush1.bf16.msra.mxu1 %v13582_v0  ;;  %v13639_v0 = vld [vmem:[%s18692_s19 + $0x280] ss:$8 sps:$4 sm:$0xff]  }
 0xeb6   : > { %7709 = vmatprep.subr.bf16.mxu1 %v13590_v41  ;;  %7428 = vmatpush1.bf16.msra.mxu0 %v13585_v13  ;;  %v8068_v41 = vrot.slane %v8054_v58, %v16255_v47  ;;  %v13645_v13 = vld [vmem:[%s18692_s19 + $0x470] ss:$8 sps:$4 sm:$0xff]   ;;  %v13713_v58 = vld [vmem:[%s18692_s19 + $0x4c4] ss:$8 sps:$4 sm:$0xff]  }
 0xeb7   : > { %7429 = vmatprep.subr.bf16.mxu0 %v13593_v54  ;;  %v7245_v54 = vrot.slane %v16827_v19, %v16255_v47  ;;  %v13651_v19 = vld [vmem:[%s18692_s19 + $0x460] ss:$8 sps:$4 sm:$0xff]  }
 0xeb9   : > { %7710 = vmatpush2.bf16.msra.mxu1 %v13588_v29  ;;  %v13653_v29 = vld [vmem:[%s18692_s19 + $0x464] ss:$8 sps:$4 sm:$0xff]  }
 0xeba   : > { %7711 = vmatprep.subr.bf16.mxu1 %v13596_v50  ;;  %7430 = vmatpush1.bf16.msra.mxu0 %v13591_v57  ;;  %v7790_v50 = vrot.slane %v7776_v11, %v16255_v47  ;;  %v13648_v57 = vld [vmem:[%s18692_s19 + $0x550] ss:$8 sps:$4 sm:$0xff]  }
 0xebb   : > { %7431 = vmatprep.subr.bf16.mxu0 %v13599_v17  ;;  %v13656_v17 = vld [vmem:[%s18692_s19 + $0x544] ss:$8 sps:$4 sm:$0xff]   ;;  %v13720_v11 = vld [vmem:[%s18692_s19 + $0x590] ss:$8 sps:$4 sm:$0xff]  }
 0xebd   : > { %7712 = vmatpush2.bf16.msra.mxu1 %v13594_v28  ;;  %v13659_v28 = vld [vmem:[%s18692_s19 + $0x454] ss:$8 sps:$4 sm:$0xff]  }
 0xebe   : > { %7713 = vmatprep.subr.bf16.mxu1 %v13602_v3  ;;  %7432 = vmatpush2.bf16.msra.mxu0 %v13597_v6  ;;  %v13654_v3 = vld [vmem:[%s18692_s19 + $0x540] ss:$8 sps:$4 sm:$0xff]   ;;  %v13662_v6 = vld [vmem:[%s18692_s19 + $0x534] ss:$8 sps:$4 sm:$0xff]  }
 0xebf   : > { %7433 = vmatprep.subr.bf16.mxu0 %v13605_v55  ;;  %v13657_v55 = vld [vmem:[%s18692_s19 + $0x450] ss:$8 sps:$4 sm:$0xff]  }
 0xec1   : > { %7714 = vmatpush2.bf16.msra.mxu1 %v13600_v34  ;;  %v13665_v34 = vld [vmem:[%s18692_s19 + $0x444] ss:$8 sps:$4 sm:$0xff]  }
 0xec2   : > { %7715 = vmatprep.subr.bf16.mxu1 %v13608_v1  ;;  %7434 = vmatpush2.bf16.msra.mxu0 %v13603_v51  ;;  %v13660_v1 = vld [vmem:[%s18692_s19 + $0x530] ss:$8 sps:$4 sm:$0xff]   ;;  %v13668_v51 = vld [vmem:[%s18692_s19 + $0x524] ss:$8 sps:$4 sm:$0xff]  }
 0xec3   : > { %7435 = vmatprep.subr.bf16.mxu0 %v13611_v27  ;;  %v13663_v27 = vld [vmem:[%s18692_s19 + $0x440] ss:$8 sps:$4 sm:$0xff]  }
 0xec5   : > { %7716 = vmatpush2.bf16.msra.mxu1 %v13606_v56  ;;  %v13666_v56 = vld [vmem:[%s18692_s19 + $0x520] ss:$8 sps:$4 sm:$0xff]  }
 0xec6   : > { %7717 = vmatprep.subr.bf16.mxu1 %v13614_v37  ;;  %7436 = vmatpush2.bf16.msra.mxu0 %v13609_v4  ;;  %v13674_v37 = vld [vmem:[%s18692_s19 + $0x514] ss:$8 sps:$4 sm:$0xff]   ;;  %v13677_v4 = vld [vmem:[%s18692_s19 + $0x424] ss:$8 sps:$4 sm:$0xff]  }
 0xec7   : > { %7437 = vmatprep.subr.bf16.mxu0 %v13617_v15  ;;  %v13672_v15 = vld [vmem:[%s18692_s19 + $0x510] ss:$8 sps:$4 sm:$0xff]  }
 0xec9   : > { %7718 = vmatpush2.bf16.msra.mxu1 %v13612_v5  ;;  %v13675_v5 = vld [vmem:[%s18692_s19 + $0x420] ss:$8 sps:$4 sm:$0xff]  }
 0xeca   : > { %7719 = vmatprep.subr.bf16.mxu1 %v13620_v38  ;;  %7438 = vmatpush2.bf16.msra.mxu0 %v13615_v63  ;;  %v13683_v38 = vld [vmem:[%s18692_s19 + $0x414] ss:$8 sps:$4 sm:$0xff]   ;;  %v13681_v63 = vld [vmem:[%s18692_s19 + $0x410] ss:$8 sps:$4 sm:$0xff]  }
 0xecb   : > { %7439 = vmatprep.subr.bf16.mxu0 %v13623_v9  ;;  %v13689_v9 = vld [vmem:[%s18692_s19 + $0x404] ss:$8 sps:$4 sm:$0xff]  }
 0xecd   : > { %7720 = vmatpush2.bf16.msra.mxu1 %v13618_v32  ;;  %v13687_v32 = vld [vmem:[%s18692_s19 + $0x400] ss:$8 sps:$4 sm:$0xff]  }
 0xece   : > { %7721 = vmatprep.subr.bf16.mxu1 %v13626_v60  ;;  %7440 = vmatpush2.bf16.msra.mxu0 %v13621_v39  ;;  %v13695_v60 = vld [vmem:[%s18692_s19 + $0x4f4] ss:$8 sps:$4 sm:$0xff]  }
 0xecf   : > { %7441 = vmatprep.subr.bf16.mxu0 %v13629_v25  ;;  %v13698_v39 = vld [vmem:[%s18692_s19 + $0x5d4] ss:$8 sps:$4 sm:$0xff]   ;;  %v13701_v25 = vld [vmem:[%s18692_s19 + $0x4e4] ss:$8 sps:$4 sm:$0xff]  }
 0xed1   : > { %7722 = vmatpush2.bf16.msra.mxu1 %v13624_v22  ;;  %v13696_v22 = vld [vmem:[%s18692_s19 + $0x5d0] ss:$8 sps:$4 sm:$0xff]  }
 0xed2   : > { %7723 = vmatprep.subr.bf16.mxu1 %v13632_v46  ;;  %7442 = vmatpush2.bf16.msra.mxu0 %v13627_v12  ;;  %v13704_v46 = vld [vmem:[%s18692_s19 + $0x5c4] ss:$8 sps:$4 sm:$0xff]   ;;  %v13699_v12 = vld [vmem:[%s18692_s19 + $0x4e0] ss:$8 sps:$4 sm:$0xff]  }
 0xed3   : > { %7443 = vmatprep.subr.bf16.mxu0 %v13635_v24  ;;  %v13707_v24 = vld [vmem:[%s18692_s19 + $0x4d4] ss:$8 sps:$4 sm:$0xff]  }
 0xed5   : > { %7724 = vmatpush2.bf16.msra.mxu1 %v13630_v45  ;;  %v13702_v45 = vld [vmem:[%s18692_s19 + $0x5c0] ss:$8 sps:$4 sm:$0xff]  }
 0xed6   : > { %8231 = vmatprep.subr.bf16.mxu1 %v13638_v49  ;;  %7444 = vmatpush2.bf16.msra.mxu0 %v13633_v14  ;;  %v13710_v49 = vld [vmem:[%s18692_s19 + $0x5b4] ss:$8 sps:$4 sm:$0xff]   ;;  %v13705_v14 = vld [vmem:[%s18692_s19 + $0x4d0] ss:$8 sps:$4 sm:$0xff]  }
 0xed7   : > { %7445 = vmatprep.subr.bf16.mxu0 %v13641_v30  ;;  %v13708_v30 = vld [vmem:[%s18692_s19 + $0x5b0] ss:$8 sps:$4 sm:$0xff]  }
 0xed8   : > { %7726 = vmatmul.mubr.bf16.vlgmr.msra.gmra.mxu1 %v7523_v36  ;;  %v13711_v36 = vld [vmem:[%s18692_s19 + $0x4c0] ss:$8 sps:$4 sm:$0xff]  }
 0xed9   : > { %8232 = vmatpush1.bf16.msra.mxu1 %v13636_v21  ;;  %8263 = vmatprep.mubr.bf16.mxu1 %v8068_v41  ;;  %v13716_v21 = vld [vmem:[%s18692_s19 + $0x5a4] ss:$8 sps:$4 sm:$0xff]   ;;  %v13722_v41 = vld [vmem:[%s18692_s19 + $0x594] ss:$8 sps:$4 sm:$0xff]  }
 0xeda   : > { %8233 = vmatprep.subr.bf16.mxu1 %v13644_v26  ;;  %7446 = vmatpush2.bf16.msra.mxu0 %v13639_v0  ;;  %v13719_v26 = vld [vmem:[%s18692_s19 + $0x4b4] ss:$8 sps:$4 sm:$0xff]   ;;  %v13714_v0 = vld [vmem:[%s18692_s19 + $0x5a0] ss:$8 sps:$4 sm:$0xff]  }
 0xedb   : > { %7953 = vmatprep.subr.bf16.mxu0 %v13647_v16  ;;  %v13717_v16 = vld [vmem:[%s18692_s19 + $0x4b0] ss:$8 sps:$4 sm:$0xff]  }
 0xedd   : > { %8234 = vmatpush1.bf16.msra.mxu1 %v13642_v48  ;;  %7448 = vmatmul.mubr.bf16.vlgmr.msra.gmra.mxu0 %v7245_v54  ;;  %v13725_v48 = vld [vmem:[%s18692_s19 + $0x4a4] ss:$8 sps:$4 sm:$0xff]   ;;  %v13731_v54 = vld [vmem:[%s18692_s19 + $0x494] ss:$8 sps:$4 sm:$0xff]  }
 0xede   : > { %8235 = vmatprep.subr.bf16.mxu1 %v13650_v44  ;;  %7954 = vmatpush1.bf16.msra.mxu0 %v13645_v13  ;;  %v13728_v44 = vld [vmem:[%s18692_s19 + $0x584] ss:$8 sps:$4 sm:$0xff]   ;;  %v13723_v13 = vld [vmem:[%s18692_s19 + $0x4a0] ss:$8 sps:$4 sm:$0xff]  }
 0xedf   : > { %7985 = vmatprep.mubr.bf16.mxu0 %v7790_v50  ;;  %7955 = vmatprep.subr.bf16.mxu0 %v13653_v29  ;;  %v13726_v29 = vld [vmem:[%s18692_s19 + $0x580] ss:$8 sps:$4 sm:$0xff]   ;;  %v13729_v50 = vld [vmem:[%s18692_s19 + $0x490] ss:$8 sps:$4 sm:$0xff]  }
 0xee1   : > { %8236 = vmatpush1.bf16.msra.mxu1 %v13648_v57  ;;  %v13734_v57 = vld [vmem:[%s18692_s19 + $0x484] ss:$8 sps:$4 sm:$0xff]  }
 0xee2   : > { %8237 = vmatprep.subr.bf16.mxu1 %v13656_v17  ;;  %7956 = vmatpush1.bf16.msra.mxu0 %v13651_v19  ;;  %v17251_v17 = vrot.slane %v12556_v52, %v16255_v47  ;;  %v8061_v19 = vrot.slane %v17025_v2, %v16255_v47  ;;  %v13740_v52 = vld [vmem:[%s18692_s19 + $0x664] ss:$8 sps:$4 sm:$0xff]  }
 0xee3   : > { %7957 = vmatprep.subr.bf16.mxu0 %v13659_v28  ;;  %v13732_v28 = vld [vmem:[%s18692_s19 + $0x480] ss:$8 sps:$4 sm:$0xff]  }
 0xee5   : > { %8238 = vmatpush1.bf16.msra.mxu1 %v13654_v3  ;;  %v13737_v3 = vld [vmem:[%s18692_s19 + $0x674] ss:$8 sps:$4 sm:$0xff]  }
 0xee6   : > { %8239 = vmatprep.subr.bf16.mxu1 %v13662_v6  ;;  %7958 = vmatpush1.bf16.msra.mxu0 %v13657_v55  ;;  %v8314_v6 = vcombine.high %v17251_v17, %v17251_v17  ;;  %v13738_v55 = vld [vmem:[%s18692_s19 + $0x660] ss:$8 sps:$4 sm:$0xff]  }
 0xee7   : > { %7959 = vmatprep.subr.bf16.mxu0 %v13665_v34  ;;  %v13743_v34 = vld [vmem:[%s18692_s19 + $0x654] ss:$8 sps:$4 sm:$0xff]  }
 0xee8   : > { %v8328_v2 = vrot.slane %v8314_v6, %v16255_v47  ;;  %v13798_v6 = vld [vmem:[%s18694_s21 + $0x40] ss:$8 sps:$4 sm:$0xff]  }
 0xee9   : > { %8240 = vmatpush1.bf16.msra.mxu1 %v13660_v1  ;;  %v13746_v1 = vld [vmem:[%s18692_s19 + $0x644] ss:$8 sps:$4 sm:$0xff]  }
 0xeea   : > { %8241 = vmatprep.subr.bf16.mxu1 %v13668_v51  ;;  %7960 = vmatpush1.bf16.msra.mxu0 %v13663_v27  ;;  %v13744_v51 = vld [vmem:[%s18692_s19 + $0x640] ss:$8 sps:$4 sm:$0xff]   ;;  %v13749_v27 = vld [vmem:[%s18692_s19 + $0x634] ss:$8 sps:$4 sm:$0xff]  }
 0xeeb   : > { %7961 = vmatprep.subr.bf16.mxu0 %v13671_v42  ;;  %v13747_v42 = vld [vmem:[%s18692_s19 + $0x630] ss:$8 sps:$4 sm:$0xff]  }
 0xeed   : > { %8242 = vmatpush1.bf16.msra.mxu1 %v13666_v56  ;;  %v13752_v56 = vld [vmem:[%s18692_s19 + $0x624] ss:$8 sps:$4 sm:$0xff]  }
 0xeee   : > { %8243 = vmatprep.subr.bf16.mxu1 %v13674_v37  ;;  %7962 = vmatpush1.bf16.msra.mxu0 %v13669_v53  ;;  %v13750_v37 = vld [vmem:[%s18692_s19 + $0x620] ss:$8 sps:$4 sm:$0xff]   ;;  %v13755_v53 = vld [vmem:[%s18692_s19 + $0x614] ss:$8 sps:$4 sm:$0xff]  }
 0xeef   : > { %7963 = vmatprep.subr.bf16.mxu0 %v13677_v4  ;;  %v13753_v4 = vld [vmem:[%s18692_s19 + $0x610] ss:$8 sps:$4 sm:$0xff]  }
 0xef1   : > { %8244 = vmatpush1.bf16.msra.mxu1 %v13672_v15  ;;  %v13758_v15 = vld [vmem:[%s18692_s19 + $0x604] ss:$8 sps:$4 sm:$0xff]  }
 0xef2   : > { %8245 = vmatprep.subr.bf16.mxu1 %v13680_v23  ;;  %7964 = vmatpush1.bf16.msra.mxu0 %v13675_v5  ;;  %v13756_v23 = vld [vmem:[%s18692_s19 + $0x600] ss:$8 sps:$4 sm:$0xff]   ;;  %v13761_v5 = vld [vmem:[%s18692_s19 + $0x6f4] ss:$8 sps:$4 sm:$0xff]  }
 0xef3   : > { %7965 = vmatprep.subr.bf16.mxu0 %v13683_v38  ;;  %v13759_v38 = vld [vmem:[%s18692_s19 + $0x6f0] ss:$8 sps:$4 sm:$0xff]  }
 0xef5   : > { %8246 = vmatpush1.bf16.msra.mxu1 %v13678_v20  ;;  %v13764_v20 = vld [vmem:[%s18692_s19 + $0x6e4] ss:$8 sps:$4 sm:$0xff]  }
 0xef6   : > { %8247 = vmatprep.subr.bf16.mxu1 %v13686_v18  ;;  %7966 = vmatpush1.bf16.msra.mxu0 %v13681_v63  ;;  %v13762_v18 = vld [vmem:[%s18692_s19 + $0x6e0] ss:$8 sps:$4 sm:$0xff]   ;;  %v13767_v63 = vld [vmem:[%s18692_s19 + $0x6d4] ss:$8 sps:$4 sm:$0xff]  }
 0xef7   : > { %7967 = vmatprep.subr.bf16.mxu0 %v13689_v9  ;;  %v13765_v9 = vld [vmem:[%s18692_s19 + $0x6d0] ss:$8 sps:$4 sm:$0xff]  }
 0xef9   : > { %8248 = vmatpush2.bf16.msra.mxu1 %v13684_v33  ;;  %v13770_v33 = vld [vmem:[%s18692_s19 + $0x6c4] ss:$8 sps:$4 sm:$0xff]  }
 0xefa   : > { %8249 = vmatprep.subr.bf16.mxu1 %v13692_v31  ;;  %7968 = vmatpush1.bf16.msra.mxu0 %v13687_v32  ;;  %v13768_v31 = vld [vmem:[%s18692_s19 + $0x6c0] ss:$8 sps:$4 sm:$0xff]   ;;  %v13773_v32 = vld [vmem:[%s18692_s19 + $0x6b4] ss:$8 sps:$4 sm:$0xff]  }
 0xefb   : > { %7969 = vmatprep.subr.bf16.mxu0 %v13695_v60  ;;  %v13771_v60 = vld [vmem:[%s18692_s19 + $0x6b0] ss:$8 sps:$4 sm:$0xff]  }
 0xefd   : > { %8250 = vmatpush2.bf16.msra.mxu1 %v13690_v61  ;;  %v13776_v61 = vld [vmem:[%s18692_s19 + $0x6a4] ss:$8 sps:$4 sm:$0xff]  }
 0xefe   : > { %8251 = vmatprep.subr.bf16.mxu1 %v13698_v39  ;;  %7970 = vmatpush2.bf16.msra.mxu0 %v13693_v59  ;;  %v13774_v39 = vld [vmem:[%s18692_s19 + $0x6a0] ss:$8 sps:$4 sm:$0xff]   ;;  %v13779_v59 = vld [vmem:[%s18692_s19 + $0x694] ss:$8 sps:$4 sm:$0xff]  }
 0xeff   : > { %7971 = vmatprep.subr.bf16.mxu0 %v13701_v25  ;;  %v13777_v25 = vld [vmem:[%s18692_s19 + $0x690] ss:$8 sps:$4 sm:$0xff]  }
 0xf01   : > { %8252 = vmatpush2.bf16.msra.mxu1 %v13696_v22  ;;  %v13782_v22 = vld [vmem:[%s18692_s19 + $0x684] ss:$8 sps:$4 sm:$0xff]  }
 0xf02   : > { %8253 = vmatprep.subr.bf16.mxu1 %v13704_v46  ;;  %7972 = vmatpush2.bf16.msra.mxu0 %v13699_v12  ;;  %v13780_v46 = vld [vmem:[%s18692_s19 + $0x680] ss:$8 sps:$4 sm:$0xff]  }
 0xf03   : > { %7973 = vmatprep.subr.bf16.mxu0 %v13707_v24 }
 0xf05   : > { %8254 = vmatpush2.bf16.msra.mxu1 %v13702_v45 }
 0xf06   : > { %8255 = vmatprep.subr.bf16.mxu1 %v13710_v49  ;;  %7974 = vmatpush2.bf16.msra.mxu0 %v13705_v14  ;;  %v8321_v49 = vrot.slane %v17251_v17, %v16255_v47  ;;  %v13792_v17 = vld [vmem:[%s18694_s21 + $0x50] ss:$8 sps:$4 sm:$0xff]  }
 0xf07   : > { %7975 = vmatprep.subr.bf16.mxu0 %v13713_v58 }
 0xf09   : > { %8256 = vmatpush2.bf16.msra.mxu1 %v13708_v30 }
 0xf0a   : > { %8257 = vmatprep.subr.bf16.mxu1 %v13716_v21  ;;  %7976 = vmatpush2.bf16.msra.mxu0 %v13711_v36 }
 0xf0b   : > { %7977 = vmatprep.subr.bf16.mxu0 %v13719_v26 }
 0xf0d   : > { %8258 = vmatpush2.bf16.msra.mxu1 %v13714_v0 }
 0xf0e   : > { %8259 = vmatprep.subr.bf16.mxu1 %v13722_v41  ;;  %7978 = vmatpush2.bf16.msra.mxu0 %v13717_v16  ;;  %v13783_v41 = vld [vmem:[%s18694_s21 + $0x70] ss:$8 sps:$4 sm:$0xff]   ;;  %v13785_v16 = vld [vmem:[%s18694_s21 + $0x74] ss:$8 sps:$4 sm:$0xff]  }
 0xf0f   : > { %7979 = vmatprep.subr.bf16.mxu0 %v13725_v48  ;;  %v13788_v48 = vld [vmem:[%s18694_s21 + $0x64] ss:$8 sps:$4 sm:$0xff]  }
 0xf11   : > { %8260 = vmatpush2.bf16.msra.mxu1 %v13720_v11  ;;  %v13789_v11 = vld [vmem:[%s18694_s21 + $0x170] ss:$8 sps:$4 sm:$0xff]  }
 0xf12   : > { %8261 = vmatprep.subr.bf16.mxu1 %v13728_v44  ;;  %7980 = vmatpush2.bf16.msra.mxu0 %v13723_v13  ;;  %v13791_v44 = vld [vmem:[%s18694_s21 + $0x174] ss:$8 sps:$4 sm:$0xff]   ;;  %v13786_v13 = vld [vmem:[%s18694_s21 + $0x60] ss:$8 sps:$4 sm:$0xff]  }
 0xf13   : > { %7981 = vmatprep.subr.bf16.mxu0 %v13731_v54  ;;  %v13797_v54 = vld [vmem:[%s18694_s21 + $0x164] ss:$8 sps:$4 sm:$0xff]  }
 0xf15   : > { %8262 = vmatpush2.bf16.msra.mxu1 %v13726_v29  ;;  %v13794_v29 = vld [vmem:[%s18694_s21 + $0x54] ss:$8 sps:$4 sm:$0xff]  }
 0xf16   : > { %7982 = vmatpush2.bf16.msra.mxu0 %v13729_v50  ;;  %8922 = vmatprep.subr.bf16.mxu1 %v13791_v44  ;;  %v13795_v50 = vld [vmem:[%s18694_s21 + $0x160] ss:$8 sps:$4 sm:$0xff]   ;;  %v13863_v44 = vld [vmem:[%s18694_s21 + $0x1b4] ss:$8 sps:$4 sm:$0xff]  }
 0xf17   : > { %7983 = vmatprep.subr.bf16.mxu0 %v13734_v57  ;;  %v13803_v57 = vld [vmem:[%s18694_s21 + $0x154] ss:$8 sps:$4 sm:$0xff]  }
 0xf18   : > { %8264 = vmatmul.mubr.bf16.vlgmr.msra.gmra.mxu1 %v8061_v19  ;;  %v13800_v19 = vld [vmem:[%s18694_s21 + $0x44] ss:$8 sps:$4 sm:$0xff]  }
 0xf19   : > { %8923 = vmatpush1.bf16.msra.mxu1 %v13789_v11  ;;  %v13860_v11 = vld [vmem:[%s18694_s21 + $0xa4] ss:$8 sps:$4 sm:$0xff]  }
 0xf1a   : > { %7984 = vmatpush2.bf16.msra.mxu0 %v13732_v28  ;;  %8924 = vmatprep.subr.bf16.mxu1 %v13797_v54  ;;  %v13801_v28 = vld [vmem:[%s18694_s21 + $0x150] ss:$8 sps:$4 sm:$0xff]  }
 0xf1b   : > { %8491 = vmatprep.subr.bf16.mxu0 %v13737_v3  ;;  %v13809_v3 = vld [vmem:[%s18694_s21 + $0x144] ss:$8 sps:$4 sm:$0xff]   ;;  %v13861_v54 = vld [vmem:[%s18694_s21 + $0x1b0] ss:$8 sps:$4 sm:$0xff]  }
 0xf1d   : > { %7986 = vmatmul.mubr.bf16.vlgmr.msra.gmra.mxu0 %v7783_v8  ;;  %8925 = vmatpush1.bf16.msra.mxu1 %v13795_v50  ;;  %v13807_v8 = vld [vmem:[%s18694_s21 + $0x140] ss:$8 sps:$4 sm:$0xff]   ;;  %v13869_v50 = vld [vmem:[%s18694_s21 + $0x1a4] ss:$8 sps:$4 sm:$0xff]  }
 0xf1e   : > { %8492 = vmatpush1.bf16.msra.mxu0 %v13735_v10  ;;  %8523 = vmatprep.mubr.bf16.mxu0 %v8328_v2  ;;  %v13806_v10 = vld [vmem:[%s18694_s21 + $0x34] ss:$8 sps:$4 sm:$0xff]   ;;  %v13804_v2 = vld [vmem:[%s18694_s21 + $0x30] ss:$8 sps:$4 sm:$0xff]  }
 0xf1f   : > { %8493 = vmatprep.subr.bf16.mxu0 %v13740_v52  ;;  %8926 = vmatprep.subr.bf16.mxu1 %v13803_v57  ;;  %v13815_v52 = vld [vmem:[%s18694_s21 + $0x134] ss:$8 sps:$4 sm:$0xff]   ;;  %v13864_v57 = vld [vmem:[%s18694_s21 + $0x90] ss:$8 sps:$4 sm:$0xff]  }
 0xf21   : > { %8927 = vmatpush1.bf16.msra.mxu1 %v13801_v28  ;;  %v13875_v28 = vld [vmem:[%s18694_s21 + $0x194] ss:$8 sps:$4 sm:$0xff]  }
 0xf22   : > { %8494 = vmatpush1.bf16.msra.mxu0 %v13738_v55  ;;  %8928 = vmatprep.subr.bf16.mxu1 %v13809_v3  ;;  %v13812_v55 = vld [vmem:[%s18694_s21 + $0x24] ss:$8 sps:$4 sm:$0xff]   ;;  %v13870_v3 = vld [vmem:[%s18694_s21 + $0x80] ss:$8 sps:$4 sm:$0xff]  }
 0xf23   : > { %8495 = vmatprep.subr.bf16.mxu0 %v13743_v34  ;;  %v13813_v34 = vld [vmem:[%s18694_s21 + $0x130] ss:$8 sps:$4 sm:$0xff]  }
 0xf25   : > { %8929 = vmatpush1.bf16.msra.mxu1 %v13807_v8  ;;  %v13881_v8 = vld [vmem:[%s18694_s21 + $0x184] ss:$8 sps:$4 sm:$0xff]  }
 0xf26   : > { %8496 = vmatpush1.bf16.msra.mxu0 %v13741_v7  ;;  %8930 = vmatprep.subr.bf16.mxu1 %v13815_v52  ;;  %v13810_v7 = vld [vmem:[%s18694_s21 + $0x20] ss:$8 sps:$4 sm:$0xff]  }
 0xf27   : > { %8497 = vmatprep.subr.bf16.mxu0 %v13746_v1  ;;  %v13818_v1 = vld [vmem:[%s18694_s21 + $0x14] ss:$8 sps:$4 sm:$0xff]   ;;  %v13879_v52 = vld [vmem:[%s18694_s21 + $0x180] ss:$8 sps:$4 sm:$0xff]  }
 0xf29   : > { %8931 = vmatpush1.bf16.msra.mxu1 %v13813_v34 }
 0xf2a   : > { %8498 = vmatpush1.bf16.msra.mxu0 %v13744_v51  ;;  %v13816_v51 = vld [vmem:[%s18694_s21 + $0x10] ss:$8 sps:$4 sm:$0xff]  }
 0xf2b   : > { %8499 = vmatprep.subr.bf16.mxu0 %v13749_v27 }
 0xf2e   : > { %8500 = vmatpush1.bf16.msra.mxu0 %v13747_v42 }
 0xf2f   : > { %8501 = vmatprep.subr.bf16.mxu0 %v13752_v56 }
 0xf32   : > { %8502 = vmatpush1.bf16.msra.mxu0 %v13750_v37 }
 0xf33   : > { %8503 = vmatprep.subr.bf16.mxu0 %v13755_v53 }
 0xf36   : > { %8504 = vmatpush1.bf16.msra.mxu0 %v13753_v4 }
 0xf37   : > { %8505 = vmatprep.subr.bf16.mxu0 %v13758_v15 }
 0xf3a   : > { %8506 = vmatpush1.bf16.msra.mxu0 %v13756_v23 }
 0xf3b   : > { %8507 = vmatprep.subr.bf16.mxu0 %v13761_v5 }
 0xf3e   : > { %8508 = vmatpush2.bf16.msra.mxu0 %v13759_v38 }
 0xf3f   : > { %8509 = vmatprep.subr.bf16.mxu0 %v13764_v20 }
 0xf42   : > { %8510 = vmatpush2.bf16.msra.mxu0 %v13762_v18  ;;  %v13819_v18 = vld [vmem:[%s18694_s21 + $0x120] ss:$8 sps:$4 sm:$0xff]  }
 0xf43   : > { %8511 = vmatprep.subr.bf16.mxu0 %v13767_v63  ;;  %v13821_v63 = vld [vmem:[%s18694_s21 + $0x124] ss:$8 sps:$4 sm:$0xff]  }
 0xf44   : > { %8932 = vmatprep.subr.bf16.mxu1 %v13821_v63 }
 0xf45   : > { %8933 = vmatpush1.bf16.msra.mxu1 %v13819_v18 }
 0xf46   : > { %8512 = vmatpush2.bf16.msra.mxu0 %v13765_v9 }
 0xf47   : > { %8513 = vmatprep.subr.bf16.mxu0 %v13770_v33  ;;  %v13824_v33 = vld [vmem:[%s18694_s21 + $0x4] ss:$8 sps:$4 sm:$0xff]  }
 0xf4a   : > { %8514 = vmatpush2.bf16.msra.mxu0 %v13768_v31  ;;  %v13822_v31 = vld [vmem:[%s18694_s21] ss:$8 sps:$4 sm:$0xff]  }
 0xf4b   : > { %8515 = vmatprep.subr.bf16.mxu0 %v13773_v32  ;;  %v13827_v32 = vld [vmem:[%s18694_s21 + $0x114] ss:$8 sps:$4 sm:$0xff]  }
 0xf4c   : > { %8934 = vmatprep.subr.bf16.mxu1 %v13827_v32 }
 0xf4e   : > { %8516 = vmatpush2.bf16.msra.mxu0 %v13771_v60  ;;  %v13825_v60 = vld [vmem:[%s18694_s21 + $0x110] ss:$8 sps:$4 sm:$0xff]  }
 0xf4f   : > { %8517 = vmatprep.subr.bf16.mxu0 %v13776_v61  ;;  %v13830_v61 = vld [vmem:[%s18694_s21 + $0xf4] ss:$8 sps:$4 sm:$0xff]   ;;  %8935 = vmatpush1.bf16.msra.mxu1 %v13825_v60 }
 0xf52   : > { %8518 = vmatpush2.bf16.msra.mxu0 %v13774_v39  ;;  %v13828_v39 = vld [vmem:[%s18694_s21 + $0xf0] ss:$8 sps:$4 sm:$0xff]  }
 0xf53   : > { %8519 = vmatprep.subr.bf16.mxu0 %v13779_v59  ;;  %v13833_v59 = vld [vmem:[%s18694_s21 + $0x104] ss:$8 sps:$4 sm:$0xff]  }
 0xf54   : > { %8936 = vmatprep.subr.bf16.mxu1 %v13833_v59 }
 0xf56   : > { %8520 = vmatpush2.bf16.msra.mxu0 %v13777_v25  ;;  %v13831_v25 = vld [vmem:[%s18694_s21 + $0x100] ss:$8 sps:$4 sm:$0xff]  }
 0xf57   : > { %8521 = vmatprep.subr.bf16.mxu0 %v13782_v22  ;;  %v13836_v22 = vld [vmem:[%s18694_s21 + $0xe4] ss:$8 sps:$4 sm:$0xff]   ;;  %8937 = vmatpush1.bf16.msra.mxu1 %v13831_v25 }
 0xf58   : > { %v7191_v12 = vpop.f32.mrf.mxu1 }
 0xf5a   : > { %v7193_v24 = vpop.f32.mrf.mxu1  ;;  %8522 = vmatpush2.bf16.msra.mxu0 %v13780_v46  ;;  %v13839_v46 = vld [vmem:[%s18694_s21 + $0x1f4] ss:$8 sps:$4 sm:$0xff]  }
 0xf5b   : > { %9148 = vmatprep.subr.bf16.mxu0 %v13785_v16  ;;  %8938 = vmatprep.subr.bf16.mxu1 %v13839_v46  ;;  %v13852_v16 = vld [vmem:[%s18694_s21 + $0xb0] ss:$8 sps:$4 sm:$0xff]  }
 0xf5c   : > { %v7195_v45 = vpop.f32.mrf.mxu1 }
 0xf5d   : > { %8524 = vmatmul.mubr.bf16.vlgmr.msra.gmra.mxu0 %v8321_v49  ;;  %v6965_v14 = vpop.f32.mrf.mxu0  ;;  %v13842_v45 = vld [vmem:[%s18694_s21 + $0xd4] ss:$8 sps:$4 sm:$0xff]   ;;  %v13845_v49 = vld [vmem:[%s18694_s21 + $0x1e4] ss:$8 sps:$4 sm:$0xff]  }
 0xf5e   : > { %v7196_v58 = vpop.f32.mrf.mxu1  ;;  %v7192_v30 = vadd.f32 %v7191_v12, %v6965_v14  ;;  %9149 = vmatpush1.bf16.msra.mxu0 %v13783_v41  ;;  %v13834_v12 = vld [vmem:[%s18694_s21 + $0xe0] ss:$8 sps:$4 sm:$0xff]   ;;  %v13840_v14 = vld [vmem:[%s18694_s21 + $0xd0] ss:$8 sps:$4 sm:$0xff]   ;;  %v13857_v41 = vld [vmem:[%s18694_s21 + $0x1c4] ss:$8 sps:$4 sm:$0xff]  }
 0xf5f   : > { %v6967_v21 = vpop.f32.mrf.mxu0  ;;  %9150 = vmatprep.subr.bf16.mxu0 %v13788_v48  ;;  %v13843_v58 = vld [vmem:[%s18694_s21 + $0x1e0] ss:$8 sps:$4 sm:$0xff]  }
 0xf60   : > { %v7194_v36 = vadd.f32 %v7193_v24, %v6967_v21  ;;  %v13837_v24 = vld [vmem:[%s18694_s21 + $0x1f0] ss:$8 sps:$4 sm:$0xff]   ;;  %v13851_v21 = vld [vmem:[%s18694_s21 + $0x1d4] ss:$8 sps:$4 sm:$0xff]   ;;  %v13855_v48 = vld [vmem:[%s18694_s21 + $0x1c0] ss:$8 sps:$4 sm:$0xff]  }
 0xf61   : > { %v6969_v26 = vpop.f32.mrf.mxu0  ;;  %8939 = vmatpush2.bf16.msra.mxu1 %v13837_v24 }
 0xf62   : > { %9151 = vmatpush1.bf16.msra.mxu0 %v13786_v13  ;;  %8940 = vmatprep.subr.bf16.mxu1 %v13845_v49  ;;  %v13849_v26 = vld [vmem:[%s18694_s21 + $0x1d0] ss:$8 sps:$4 sm:$0xff]   ;;  %v13858_v13 = vld [vmem:[%s18694_s21 + $0xa0] ss:$8 sps:$4 sm:$0xff]  }
 0xf63   : > { %v6970_v0 = vpop.f32.mrf.mxu0  ;;  %9152 = vmatprep.subr.bf16.mxu0 %v13794_v29  ;;  %v13866_v29 = vld [vmem:[%s18694_s21 + $0x94] ss:$8 sps:$4 sm:$0xff]  }
 0xf64   : > { %v13854_v0 = vld [vmem:[%s18694_s21 + $0xb4] ss:$8 sps:$4 sm:$0xff]  }
 0xf65   : > { %8941 = vmatpush2.bf16.msra.mxu1 %v13843_v58 }
 0xf66   : > { %9153 = vmatpush1.bf16.msra.mxu0 %v13792_v17  ;;  %8942 = vmatprep.subr.bf16.mxu1 %v13851_v21  ;;  %v13867_v17 = vld [vmem:[%s18694_s21 + $0x1a0] ss:$8 sps:$4 sm:$0xff]  }
 0xf67   : > { %9154 = vmatprep.subr.bf16.mxu0 %v13800_v19  ;;  %v13872_v19 = vld [vmem:[%s18694_s21 + $0x84] ss:$8 sps:$4 sm:$0xff]  }
 0xf69   : > { %8943 = vmatpush2.bf16.msra.mxu1 %v13849_v26 }
 0xf6a   : > { %9155 = vmatpush1.bf16.msra.mxu0 %v13798_v6  ;;  %8944 = vmatprep.subr.bf16.mxu1 %v13857_v41  ;;  %v13873_v6 = vld [vmem:[%s18694_s21 + $0x190] ss:$8 sps:$4 sm:$0xff]  }
 0xf6b   : > { %9156 = vmatprep.subr.bf16.mxu0 %v13806_v10  ;;  %v13878_v10 = vld [vmem:[%s18694_s21 + $0x374] ss:$8 sps:$4 sm:$0xff]  }
 0xf6d   : > { %8945 = vmatpush2.bf16.msra.mxu1 %v13855_v48 }
 0xf6e   : > { %9157 = vmatpush1.bf16.msra.mxu0 %v13804_v2  ;;  %8946 = vmatprep.subr.bf16.mxu1 %v13863_v44 }
 0xf6f   : > { %9158 = vmatprep.subr.bf16.mxu0 %v13812_v55  ;;  %v13887_v55 = vld [vmem:[%s18694_s21 + $0x274] ss:$8 sps:$4 sm:$0xff]  }
 0xf71   : > { %8947 = vmatpush2.bf16.msra.mxu1 %v13861_v54 }
 0xf72   : > { %9159 = vmatpush1.bf16.msra.mxu0 %v13810_v7  ;;  %8948 = vmatprep.subr.bf16.mxu1 %v13869_v50 }
 0xf73   : > { %9160 = vmatprep.subr.bf16.mxu0 %v13818_v1 }
 0xf75   : > { %8949 = vmatpush2.bf16.msra.mxu1 %v13867_v17 }
 0xf76   : > { %9161 = vmatpush1.bf16.msra.mxu0 %v13816_v51  ;;  %8950 = vmatprep.subr.bf16.mxu1 %v13875_v28 }
 0xf77   : > { %9162 = vmatprep.subr.bf16.mxu0 %v13824_v33 }
 0xf79   : > { %8951 = vmatpush2.bf16.msra.mxu1 %v13873_v6 }
 0xf7a   : > { %9163 = vmatpush1.bf16.msra.mxu0 %v13822_v31  ;;  %8952 = vmatprep.subr.bf16.mxu1 %v13881_v8 }
 0xf7b   : > { %9164 = vmatprep.subr.bf16.mxu0 %v13830_v61 }
 0xf7d   : > { %8953 = vmatpush2.bf16.msra.mxu1 %v13879_v52 }
 0xf7e   : > { %9165 = vmatpush2.bf16.msra.mxu0 %v13828_v39  ;;  %9406 = vmatprep.subr.bf16.mxu1 %v13887_v55 }
 0xf7f   : > { %9166 = vmatprep.subr.bf16.mxu0 %v13836_v22 }
 0xf82   : > { %9167 = vmatpush2.bf16.msra.mxu0 %v13834_v12 }
 0xf83   : > { %9168 = vmatprep.subr.bf16.mxu0 %v13842_v45 }
 0xf86   : > { %9169 = vmatpush2.bf16.msra.mxu0 %v13840_v14 }
 0xf98   : > { %v7727_v27 = vpop.f32.mrf.mxu1 }
 0xf9a   : > { %v7729_v42 = vpop.f32.mrf.mxu1 }
 0xf9c   : > { %v7731_v56 = vpop.f32.mrf.mxu1 }
 0xf9d   : > { %v7449_v37 = vpop.f32.mrf.mxu0 }
 0xf9e   : > { %v7732_v53 = vpop.f32.mrf.mxu1  ;;  %v7456_v4 = vadd.f32 %v7449_v37, %v7192_v30  ;;  %v13848_v30 = vld [vmem:[%s18694_s21 + $0xc4] ss:$8 sps:$4 sm:$0xff]  }
 0xf9f   : > { %v7451_v15 = vpop.f32.mrf.mxu0  ;;  %9170 = vmatprep.subr.bf16.mxu0 %v13848_v30 }
 0xfa0   : > { %v7457_v23 = vadd.f32 %v7451_v15, %v7194_v36  ;;  %v17433_v5 = vadd.f32 %v7727_v27, %v7456_v4  ;;  %v13846_v36 = vld [vmem:[%s18694_s21 + $0xc0] ss:$8 sps:$4 sm:$0xff]  }
 0xfa1   : > { %v7453_v38 = vpop.f32.mrf.mxu0  ;;  %9171 = vmatpush2.bf16.msra.mxu0 %v13846_v36 }
 0xfa2   : > { %v17435_v20 = vadd.f32 %v7729_v42, %v7457_v23  ;;  %9172 = vmatprep.subr.bf16.mxu0 %v13854_v0  ;;  %v8534_v23 = vld [vmem:[%s18693_s20] sm:$0x3] }
 0xfa3   : > { %v7454_v9 = vpop.f32.mrf.mxu0  ;;  %v8539_v38 = vrot.slane %v8534_v23, %v16750_v40 }
 0xfa4   : > { %v8543_v9 = vrot.slane %v8534_v23, %v16756_v43 }
 0xfa5   : > { %9173 = vmatpush2.bf16.msra.mxu0 %v13852_v16 }
 0xfa6   : > { %9174 = vmatprep.subr.bf16.mxu0 %v13860_v11 }
 0xfa9   : > { %9175 = vmatpush2.bf16.msra.mxu0 %v13858_v13 }
 0xfaa   : > { %9176 = vmatprep.subr.bf16.mxu0 %v13866_v29 }
 0xfad   : > { %9177 = vmatpush2.bf16.msra.mxu0 %v13864_v57 }
 0xfae   : > { %9178 = vmatprep.subr.bf16.mxu0 %v13872_v19 }
 0xfb1   : > { %9179 = vmatpush2.bf16.msra.mxu0 %v13870_v3 }
 0xfb2   : > { %9684 = vmatprep.subr.bf16.mxu0 %v13878_v10 }
 0xfd8   : > { %v8265_v2 = vpop.f32.mrf.mxu1 }
 0xfda   : > { %v8267_v34 = vpop.f32.mrf.mxu1 }
 0xfdc   : > { %v8269_v7 = vpop.f32.mrf.mxu1 }
 0xfdd   : > { %v7987_v1 = vpop.f32.mrf.mxu0 }
 0xfde   : > { %v8270_v51 = vpop.f32.mrf.mxu1  ;;  %v7994_v27 = vadd.f32 %v7987_v1, %v17433_v5 }
 0xfdf   : > { %v7989_v42 = vpop.f32.mrf.mxu0 }
 0xfe0   : > { %v7995_v56 = vadd.f32 %v7989_v42, %v17435_v20  ;;  %v8272_v37 = vadd.f32 %v8265_v2, %v7994_v27 }
 0xfe1   : > { %v7991_v53 = vpop.f32.mrf.mxu0 }
 0xfe2   : > { %v8273_v4 = vadd.f32 %v8267_v34, %v7995_v56 }
 0xfe3   : > { %v7992_v15 = vpop.f32.mrf.mxu0 }
0x101d   : > { %v8525_v18 = vpop.f32.mrf.mxu0 }
0x101e   : > { %v8532_v63 = vadd.f32 %v8525_v18, %v8272_v37 }
0x101f   : > { %v8527_v33 = vpop.f32.mrf.mxu0 }
0x1020   : > { %v8546_v31 = vadd.f32 %v8539_v38, %v8532_v63  ;;  %v8533_v5 = vadd.f32 %v8527_v33, %v8273_v4 }
0x1021   : > { %v8529_v32 = vpop.f32.mrf.mxu0 }
0x1022   : > { %v8547_v60 = vadd.f32 %v8543_v9, %v8533_v5  ;;  %v8548_v61 = vmax.f32 %v8546_v31, 0.0 }
0x1023   : > { %v8530_v20 = vpop.f32.mrf.mxu0 }
0x1024   : > { %v8549_v39 = vmax.f32 %v8547_v60, 0.0 }
0x1026   : > { %v8552_v59 = vcombine.low %v8548_v61, %v8549_v39 }
0x1028   : > { %v8559_v25 = vrot.slane %v8552_v59, %v14838_v35 }
0x102a   : > { %v8560_v22 = vcombine.high %v8559_v25, %v8559_v25  ;;  %v8567_v46 = vrot.slane %v8559_v25, %v14838_v35 }
0x102c   : > { %v8568_v12 = vcombine.high %v8567_v46, %v8567_v46  ;;  %v8575_v24 = vrot.slane %v8560_v22, %v14838_v35  ;;  %v8581_v45 = vpack.c.bf16 %v8567_v46, %v8567_v46  ;;  %v11487_v49 = vsel %vm18799_vm13, %v8567_v46, 0.0  ;;  %vm18813_vm13 = vmmov %vm18804_vm2 }
0x102d   : > { %v11488_v16 = vrot.slane %v11487_v49, 4  ;;  %v11551_v55 = vsel %vm18812_vm6, %v8567_v46, -inf }
0x102e   : > { %v8576_v14 = vcombine.high %v8575_v24, %v8575_v24  ;;  %v8582_v58 = vpack.c.bf16 %v8568_v12, %v8568_v12  ;;  %v8583_v30 = vpack.c.bf16 %v8575_v24, %v8575_v24  ;;  %v8589_v21 = vrot.slane %v8581_v45, 7 }
0x102f   : > { %v11515_v48 = vsel %vm18801_vm10, %v8575_v24, 0.0  ;;  %v11494_v54 = vsel %vm18804_vm2, %v8568_v12, 0.0  ;;  %v11558_v2 = vsel %vm18811_vm8, %v8568_v12, -inf  ;;  %v11489_v51 = vadd.f32 %v11488_v16, %v11487_v49  ;;  %vm18815_vm10 = vmmov %vm18808_vm0 }
0x1030   : > { %v8584_v36 = vpack.c.bf16 %v8576_v14, %v8576_v14  ;;  %v8590_v26 = vrot.slane %v8582_v58, 7  ;;  %v8591_v0 = vrot.slane %v8583_v30, 7  ;;  %v8594_v41 = vsel %vm18800_vm14, 0, %v8589_v21  ;;  %vm18814_vm14 = vmmov %vm18804_vm2 }
0x1031   : > { %v8601_v29 = vsel %vm18805_vm3, %v8594_v41, 0  ;;  %v11495_v57 = vrot.slane %v11494_v54, 4  ;;  %v11522_v17 = vsel %vm18807_vm9, %v8576_v14, 0.0  ;;  %v11516_v28 = vrot.slane %v11515_v48, 4  ;;  %vm18818_vm3 = vmmov %vm18804_vm2 }
0x1032   : > { %v8592_v11 = vrot.slane %v8584_v36, 7  ;;  %v8596_v44 = vsel %vm18802_vm4, 0, %v8590_v26  ;;  %v8598_v13 = vsel %vm18803_vm1, 0, %v8591_v0  ;;  %v11523_v6 = vrot.slane %v11522_v17, 4  ;;  %vm18816_vm4 = vmmov %vm18808_vm0 }
0x1033   : > { %v8602_v50 = vsel %vm18806_vm5, %v8596_v44, 0  ;;  %v8603_v10 = vsel %vm18809_vm12, %v8598_v13, 0  ;;  %v11496_v52 = vadd.f32 %v11495_v57, %v11494_v54  ;;  %v11559_v42 = vrot.slane %v11558_v2, 4  ;;  %v13876_v57 = vld [vmem:[%s18694_s21 + $0x370] ss:$8 sps:$4 sm:$0xff]   ;;  %vm18817_vm1 = vmmov %vm18808_vm0 }
0x1034   : > { %v8609_v19 = vcombine.low %v8601_v29, %v8602_v50  ;;  %v8600_v3 = vsel %vm18808_vm0, 0, %v8592_v11  ;;  %v11524_v1 = vadd.f32 %v11523_v6, %v11522_v17  ;;  %v11586_v56 = vsel %vm18813_vm13, %v8576_v14, -inf  ;;  %v13884_v6 = vld [vmem:[%s18694_s21 + $0x364] ss:$8 sps:$4 sm:$0xff]   ;;  %vm18819_vm5 = vmmov %vm18808_vm0 }
0x1035   : > { %v8604_v8 = vsel %vm18810_vm11, %v8600_v3, 0  ;;  %v11497_v27 = vrot.slane %v11496_v52, 2  ;;  %v11552_v23 = vrot.slane %v11551_v55, 4  ;;  %v17594_v38 = vsel %vm18814_vm14, %v8575_v24, -inf  ;;  %vm18820_vm9 = vmmov %vm18804_vm2 }
0x1036   : > { %v8616_v34 = vrot.slane %v8609_v19, %v16255_v47  ;;  %v8624_v7 = vcombine.low %v8603_v10, %v8604_v8  ;;  %v11525_v15 = vrot.slane %v11524_v1, 2  ;;  %v17596_v63 = vadd.f32 %v11516_v28, %v11515_v48  ;;  %vm18821_vm0 = vmmov %vm18804_vm2 }
0x1037   : > { %v11498_v18 = vadd.f32 %v11497_v27, %v11496_v52  ;;  %v11587_v5 = vrot.slane %v11586_v56, 4  ;;  %v11560_v61 = vmax.f32 %v11558_v2, %v11559_v42  ;;  %v11490_v0 = vrot.slane %v11489_v51, 2  ;;  %vm18823_vm12 = vmmov %vm18821_vm0 }
0x1038   : > { %v17590_v37 = vrot.slane %v8616_v34, %v16255_v47  ;;  %v8631_v53 = vrot.slane %v8624_v7, %v16255_v47  ;;  %v8671_v4 = vcombine.high %v8616_v34, %v8616_v34  ;;  %v11526_v22 = vadd.f32 %v11525_v15, %v11524_v1  ;;  %vm18824_vm11 = vmmov %vm18821_vm0 }
0x1039   : > { %v11499_v20 = vrot.slane %v11498_v18, 1  ;;  %v11588_v26 = vmax.f32 %v11586_v56, %v11587_v5  ;;  %v11561_v11 = vrot.slane %v11560_v61, 2  ;;  %v11491_v8 = vadd.f32 %v11490_v0, %v11489_v51  ;;  %v13882_v51 = vld [vmem:[%s18694_s21 + $0x360] ss:$8 sps:$4 sm:$0xff]   ;;  %vm18825_vm8 = vmmov %vm18821_vm0 }
0x103a   : > { %v17599_v9 = vrot.slane %v8631_v53, %v16255_v47  ;;  %v8678_v33 = vrot.slane %v8671_v4, %v16255_v47  ;;  %v8679_v31 = vcombine.high %v8631_v53, %v8631_v53  ;;  %v8688_v32 = vshrl.u32 %v17590_v37, 16  ;;  %vm18826_vm6 = vmmov %vm18821_vm0 }
0x103b   : > { %v9449_v60 = vcombine.high %v17590_v37, %v17590_v37  ;;  %v11500_v19 = vadd.f32 %v11499_v20, %v11498_v18  ;;  %v11527_v28 = vrot.slane %v11526_v22, 1  ;;  %v11518_v52 = vrot.slane %v17596_v63, 2  ;;  %vm18827_vm13 = vmmov %vm18821_vm0 }
0x103c   : > { %v8963_v39 = vcombine.low %v17590_v37, %v17599_v9  ;;  %v8686_v59 = vrot.slane %v8679_v31, %v16255_v47  ;;  %v8693_v25 = vshll.u32 %v8678_v33, 16  ;;  %v9450_v46 = vcombine.high %v17599_v9, %v17599_v9  ;;  %vm18828_vm14 = vmmov %vm18821_vm0 }
0x103d   : > { %v9451_v12 = vshrl.u32 %v8678_v33, 16  ;;  %v9456_v24 = vshll.u32 %v9449_v60, 16  ;;  %v12721_v45 = vcombine.high %v17590_v37, %v17599_v9  ;;  %v8697_v14 = vshrl.u32 %v17599_v9, 16  ;;  %v13885_v60 = vld [vmem:[%s18694_s21 + $0x270] ss:$8 sps:$4 sm:$0xff]  }
0x103e   : > { %v8970_v49 = vrot.slane %v8963_v39, %v16255_v47  ;;  %v8702_v58 = vshll.u32 %v8686_v59, 16  ;;  %v9459_v30 = vshrl.u32 %v8686_v59, 16  ;;  %v9464_v21 = vshll.u32 %v9450_v46, 16  ;;  %v13975_v37 = vld [vmem:[%s18694_s21 + $0x470] ss:$8 sps:$4 sm:$0xff]  }
0x103f   : > { %v9221_v36 = vcombine.low %v8678_v33, %v8686_v59  ;;  %v8695_v16 = vsel %vm16293_vm7, %v8688_v32, %v8693_v25  ;;  %v9458_v13 = vsel %vm16293_vm7, %v9451_v12, %v9456_v24  ;;  %v11553_v2 = vmax.f32 %v11551_v55, %v11552_v23  ;;  %v13890_v33 = vld [vmem:[%s18694_s21 + $0x354] ss:$8 sps:$4 sm:$0xff]   ;;  %v13893_v25 = vld [vmem:[%s18694_s21 + $0x264] ss:$8 sps:$4 sm:$0xff]  }
0x1040   : > { %v8971_v41 = vcombine.high %v8970_v49, %v8970_v49  ;;  %v8704_v48 = vsel %vm16293_vm7, %v8697_v14, %v8702_v58  ;;  %v9466_v54 = vsel %vm16293_vm7, %v9459_v30, %v9464_v21  ;;  %v8978_v3 = vrot.slane %v8970_v49, %v16255_v47  ;;  %v13888_v49 = vld [vmem:[%s18694_s21 + $0x350] ss:$8 sps:$4 sm:$0xff]   ;;  %v13896_v30 = vld [vmem:[%s18694_s21 + $0x344] ss:$8 sps:$4 sm:$0xff]  }
0x1041   : > { %v8737_v44 = vcombine.low %v8695_v16, %v8704_v48  ;;  %v17623_v29 = vrot.slane %v9221_v36, %v16255_v47  ;;  %v9499_v17 = vcombine.low %v9458_v13, %v9466_v54  ;;  %v11580_v34 = vrot.slane %v17594_v38, 4  ;;  %v13899_v48 = vld [vmem:[%s18694_s21 + $0x254] ss:$8 sps:$4 sm:$0xff]   ;;  %v13894_v13 = vld [vmem:[%s18694_s21 + $0x340] ss:$8 sps:$4 sm:$0xff]  }
0x1042   : > { %v8985_v50 = vrot.slane %v8971_v41, %v16255_v47  ;;  %v11562_v1 = vmax.f32 %v11560_v61, %v11561_v11  ;;  %v11528_v56 = vadd.f32 %v11527_v28, %v11526_v22  ;;  %v11589_v53 = vrot.slane %v11588_v26, 2  ;;  %v13897_v28 = vld [vmem:[%s18694_s21 + $0x250] ss:$8 sps:$4 sm:$0xff]  }
0x1043   : > { %v8744_v10 = vrot.slane %v8737_v44, %v16255_v47  ;;  %v17637_v7 = vrot.slane %v9499_v17, %v16255_v47  ;;  %v9229_v42 = vcombine.high %v17623_v29, %v17623_v29  ;;  %v11544_v15 = vmul.f32 0.5, %v11500_v19  ;;  %v13902_v17 = vld [vmem:[%s18694_s21 + $0x334] ss:$8 sps:$4 sm:$0xff]  }
0x1044   : > { %9180 = vmatprep.mubr.bf16.mxu0 %v8985_v50  ;;  %v11563_v23 = vrot.slane %v11562_v1, 1  ;;  %v11590_v31 = vmax.f32 %v11588_v26, %v11589_v53  ;;  %v11492_v5 = vrot.slane %v11491_v8, 1  ;;  %v11519_v32 = vadd.f32 %v11518_v52, %v17596_v63  ;;  %v13891_v26 = vld [vmem:[%s18694_s21 + $0x260] ss:$8 sps:$4 sm:$0xff]  }
0x1045   : > { %9181 = vmatmul.mubr.bf16.vlgmr.msra.gmra.mxu0 %v8978_v3  ;;  %v8745_v27 = vcombine.high %v8744_v10, %v8744_v10  ;;  %v9507_v55 = vcombine.high %v17637_v7, %v17637_v7  ;;  %v8752_v4 = vrot.slane %v8744_v10, %v16255_v47  ;;  %v11554_v39 = vrot.slane %v11553_v2, 2  ;;  %v13905_v10 = vld [vmem:[%s18694_s21 + $0x244] ss:$8 sps:$4 sm:$0xff]  }
0x1046   : > { %9685 = vmatpush1.bf16.msra.mxu0 %v13876_v57  ;;  %v11564_v61 = vmax.f32 %v11562_v1, %v11563_v23  ;;  %v11581_v59 = vmax.f32 %v17594_v38, %v11580_v34  ;;  %v11548_v22 = vmul.f32 0.5, %v11528_v56  ;;  %v11591_v46 = vrot.slane %v11590_v31, 1  ;;  %v13903_v56 = vld [vmem:[%s18694_s21 + $0x240] ss:$8 sps:$4 sm:$0xff]   ;;  %v13914_v23 = vld [vmem:[%s18694_s21 + $0x314] ss:$8 sps:$4 sm:$0xff]  }
0x1047   : > { %9686 = vmatprep.subr.bf16.mxu0 %v13884_v6  ;;  %v8759_v18 = vrot.slane %v8745_v27, %v16255_v47  ;;  %v9521_v20 = vrot.slane %v9507_v55, %v16255_v47  ;;  %v11493_v12 = vadd.f32 %v11492_v5, %v11491_v8  ;;  %v11520_v24 = vrot.slane %v11519_v32, 1  ;;  %v13908_v27 = vld [vmem:[%s18694_s21 + $0x324] ss:$8 sps:$4 sm:$0xff]   ;;  %v13906_v55 = vld [vmem:[%s18694_s21 + $0x320] ss:$8 sps:$4 sm:$0xff]  }
0x1048   : > { %v9243_v63 = vrot.slane %v9229_v42, %v16255_v47  ;;  %v11608_v14 = vadd.f32 %v11564_v61, %v11544_v15  ;;  %v11555_v58 = vmax.f32 %v11553_v2, %v11554_v39  ;;  %v11582_v38 = vrot.slane %v11581_v59, 2  ;;  %v13900_v2 = vld [vmem:[%s18694_s21 + $0x330] ss:$8 sps:$4 sm:$0xff]   ;;  %v13918_v61 = vld [vmem:[%s18694_s21 + $0x300] ss:$8 sps:$4 sm:$0xff]  }
0x1049   : > { %8954 = vmatprep.mubr.bf16.mxu1 %v8759_v18  ;;  %9716 = vmatprep.mubr.bf16.mxu0 %v9521_v20  ;;  %v11592_v21 = vmax.f32 %v11590_v31, %v11591_v46  ;;  %v11521_v36 = vadd.f32 %v11520_v24, %v11519_v32  ;;  %v11543_v0 = vmul.f32 0.5, %v11493_v12  ;;  %v13909_v18 = vld [vmem:[%s18694_s21 + $0x230] ss:$8 sps:$4 sm:$0xff]   ;;  %v13917_v31 = vld [vmem:[%s18694_s21 + $0x224] ss:$8 sps:$4 sm:$0xff]   ;;  %v9236_v9 = vrot.slane %v17623_v29, %v16255_v47 }
0x104a   : > { %9687 = vmatpush1.bf16.msra.mxu0 %v13882_v51  ;;  %8955 = vmatmul.mubr.bf16.vlgmr.msra.gmra.mxu1 %v8752_v4  ;;  %v11556_v41 = vrot.slane %v11555_v58, 1  ;;  %v11583_v16 = vmax.f32 %v11581_v59, %v11582_v38  ;;  %v11616_v44 = vpack.c.bf16 %v11608_v14, %v11608_v14  ;;  %v13911_v51 = vld [vmem:[%s18694_s21 + $0x234] ss:$8 sps:$4 sm:$0xff]   ;;  %v13912_v5 = vld [vmem:[%s18694_s21 + $0x310] ss:$8 sps:$4 sm:$0xff]  }
0x104b   : > { %9688 = vmatprep.subr.bf16.mxu0 %v13890_v33  ;;  %9407 = vmatpush1.bf16.msra.mxu1 %v13885_v60  ;;  %v11612_v11 = vadd.f32 %v11592_v21, %v11548_v22  ;;  %v11547_v54 = vmul.f32 0.5, %v11521_v36  ;;  %v13920_v32 = vld [vmem:[%s18694_s21 + $0x304] ss:$8 sps:$4 sm:$0xff]   ;;  %v13915_v60 = vld [vmem:[%s18694_s21 + $0x220] ss:$8 sps:$4 sm:$0xff]  }
0x104c   : > { %9438 = vmatprep.mubr.bf16.mxu1 %v9243_v63  ;;  %9408 = vmatprep.subr.bf16.mxu1 %v13893_v25  ;;  %v11557_v50 = vmax.f32 %v11555_v58, %v11556_v41  ;;  %v11584_v57 = vrot.slane %v11583_v16, 1  ;;  %v11703_v8 = vunpack.c.l.b16 %v11616_v44  ;;  %v13923_v20 = vld [vmem:[%s18694_s21 + $0x214] ss:$8 sps:$4 sm:$0xff]   ;;  %v13921_v59 = vld [vmem:[%s18694_s21 + $0x210] ss:$8 sps:$4 sm:$0xff]  }
0x104d   : > { %v11620_v19 = vpack.c.bf16 %v11612_v11, %v11612_v11  ;;  %v13926_v39 = vld [vmem:[%s18694_s21 + $0x3f4] ss:$8 sps:$4 sm:$0xff]   ;;  %v13929_v25 = vld [vmem:[%s18694_s21 + $0x204] ss:$8 sps:$4 sm:$0xff]   ;;  %v13924_v22 = vld [vmem:[%s18694_s21 + $0x3f0] ss:$8 sps:$4 sm:$0xff]  }
0x104e   : > { %9689 = vmatpush1.bf16.msra.mxu0 %v13888_v49  ;;  %v11585_v3 = vmax.f32 %v11583_v16, %v11584_v57  ;;  %v11607_v6 = vadd.f32 %v11557_v50, %v11543_v0  ;;  %v13932_v46 = vld [vmem:[%s18694_s21 + $0x3e4] ss:$8 sps:$4 sm:$0xff]   ;;  %v13927_v12 = vld [vmem:[%s18694_s21 + $0x200] ss:$8 sps:$4 sm:$0xff]   ;;  %v13935_v24 = vld [vmem:[%s18694_s21 + $0x2f4] ss:$8 sps:$4 sm:$0xff]  }
0x104f   : > { %9690 = vmatprep.subr.bf16.mxu0 %v13896_v30  ;;  %9409 = vmatpush1.bf16.msra.mxu1 %v13891_v26  ;;  %v11707_v52 = vunpack.c.l.b16 %v11620_v19  ;;  %v13930_v63 = vld [vmem:[%s18694_s21 + $0x3e0] ss:$8 sps:$4 sm:$0xff]   ;;  %v13938_v49 = vld [vmem:[%s18694_s21 + $0x3d4] ss:$8 sps:$4 sm:$0xff]   ;;  %v13933_v14 = vld [vmem:[%s18694_s21 + $0x2f0] ss:$8 sps:$4 sm:$0xff]  }
0x1050   : > { %9410 = vmatprep.subr.bf16.mxu1 %v13899_v48  ;;  %v11611_v34 = vadd.f32 %v11585_v3, %v11547_v54  ;;  %v11615_v1 = vpack.c.bf16 %v11607_v6, %v11607_v6  ;;  %v13941_v58 = vld [vmem:[%s18694_s21 + $0x2e4] ss:$8 sps:$4 sm:$0xff]   ;;  %v13936_v38 = vld [vmem:[%s18694_s21 + $0x3d0] ss:$8 sps:$4 sm:$0xff]   ;;  %v13939_v21 = vld [vmem:[%s18694_s21 + $0x2e0] ss:$8 sps:$4 sm:$0xff]  }
0x1051   : > { %v17692_v42 = vsel %vm3006_vm15, %v11707_v52, %v11703_v8  ;;  %v13944_v30 = vld [vmem:[%s18694_s21 + $0x3c4] ss:$8 sps:$4 sm:$0xff]   ;;  %v13947_v36 = vld [vmem:[%s18694_s21 + $0x2d4] ss:$8 sps:$4 sm:$0xff]   ;;  %v13942_v26 = vld [vmem:[%s18694_s21 + $0x3c0] ss:$8 sps:$4 sm:$0xff]  }
0x1052   : > { %9691 = vmatpush1.bf16.msra.mxu0 %v13894_v13  ;;  %v11619_v53 = vpack.c.bf16 %v11611_v34, %v11611_v34  ;;  %v11702_v4 = vunpack.c.l.b16 %v11615_v1  ;;  %v13950_v0 = vld [vmem:[%s18694_s21 + $0x3b4] ss:$8 sps:$4 sm:$0xff]   ;;  %v13945_v41 = vld [vmem:[%s18694_s21 + $0x2d0] ss:$8 sps:$4 sm:$0xff]   ;;  %v13953_v16 = vld [vmem:[%s18694_s21 + $0x2c4] ss:$8 sps:$4 sm:$0xff]   ;;  %v9514_v34 = vrot.slane %v17637_v7, %v16255_v47 }
0x1053   : > { %9692 = vmatprep.subr.bf16.mxu0 %v13902_v17  ;;  %9411 = vmatpush1.bf16.msra.mxu1 %v13897_v28  ;;  %v13948_v48 = vld [vmem:[%s18694_s21 + $0x3b0] ss:$8 sps:$4 sm:$0xff]   ;;  %v13956_v11 = vld [vmem:[%s18694_s21 + $0x3a4] ss:$8 sps:$4 sm:$0xff]   ;;  %v13951_v44 = vld [vmem:[%s18694_s21 + $0x2c0] ss:$8 sps:$4 sm:$0xff]  }
0x1054   : > { %9412 = vmatprep.subr.bf16.mxu1 %v13905_v10  ;;  %v11706_v15 = vunpack.c.l.b16 %v11619_v53  ;;  %v13959_v13 = vld [vmem:[%s18694_s21 + $0x2b4] ss:$8 sps:$4 sm:$0xff]   ;;  %v13954_v54 = vld [vmem:[%s18694_s21 + $0x3a0] ss:$8 sps:$4 sm:$0xff]   ;;  %v13957_v57 = vld [vmem:[%s18694_s21 + $0x2b0] ss:$8 sps:$4 sm:$0xff]  }
0x1055   : > { %v13962_v50 = vld [vmem:[%s18694_s21 + $0x394] ss:$8 sps:$4 sm:$0xff]   ;;  %v13965_v17 = vld [vmem:[%s18694_s21 + $0x2a4] ss:$8 sps:$4 sm:$0xff]   ;;  %v13960_v19 = vld [vmem:[%s18694_s21 + $0x390] ss:$8 sps:$4 sm:$0xff]  }
0x1056   : > { %9693 = vmatpush1.bf16.msra.mxu0 %v13900_v2  ;;  %v17710_v33 = vsel %vm3006_vm15, %v11706_v15, %v11702_v4  ;;  %v13968_v28 = vld [vmem:[%s18694_s21 + $0x384] ss:$8 sps:$4 sm:$0xff]   ;;  %v13963_v3 = vld [vmem:[%s18694_s21 + $0x2a0] ss:$8 sps:$4 sm:$0xff]   ;;  %v13971_v6 = vld [vmem:[%s18694_s21 + $0x294] ss:$8 sps:$4 sm:$0xff]   ;;  %v17836_v2 = vrot.slane %v12721_v45, %v16255_v47 }
0x1057   : > { %9694 = vmatprep.subr.bf16.mxu0 %v13908_v27  ;;  %9413 = vmatpush1.bf16.msra.mxu1 %v13903_v56  ;;  %v13966_v10 = vld [vmem:[%s18694_s21 + $0x380] ss:$8 sps:$4 sm:$0xff]   ;;  %v13969_v8 = vld [vmem:[%s18694_s21 + $0x290] ss:$8 sps:$4 sm:$0xff]   ;;  %v13974_v52 = vld [vmem:[%s18694_s21 + $0x284] ss:$8 sps:$4 sm:$0xff]  }
0x1058   : > { %9414 = vmatprep.subr.bf16.mxu1 %v13911_v51  ;;  %v13972_v1 = vld [vmem:[%s18694_s21 + $0x280] ss:$8 sps:$4 sm:$0xff]   ;;  %v13977_v27 = vld [vmem:[%s18694_s21 + $0x474] ss:$8 sps:$4 sm:$0xff]   ;;  %v9767_v56 = vcombine.high %v17836_v2, %v17836_v2  ;;  %v13980_v45 = vld [vmem:[%s18694_s21 + $0x464] ss:$8 sps:$4 sm:$0xff]  }
0x1059   : > { %v13978_v53 = vld [vmem:[%s18694_s21 + $0x460] ss:$8 sps:$4 sm:$0xff]   ;;  %v13983_v51 = vld [vmem:[%s18694_s21 + $0x454] ss:$8 sps:$4 sm:$0xff]   ;;  %v13981_v29 = vld [vmem:[%s18694_s21 + $0x450] ss:$8 sps:$4 sm:$0xff]  }
0x105a   : > { %9695 = vmatpush1.bf16.msra.mxu0 %v13906_v55  ;;  %v9781_v7 = vrot.slane %v9767_v56, %v16255_v47  ;;  %v13986_v55 = vld [vmem:[%s18694_s21 + $0x444] ss:$8 sps:$4 sm:$0xff]   ;;  %v13984_v4 = vld [vmem:[%s18694_s21 + $0x440] ss:$8 sps:$4 sm:$0xff]   ;;  %v13989_v15 = vld [vmem:[%s18694_s21 + $0x434] ss:$8 sps:$4 sm:$0xff]  }
0x105b   : > { %9696 = vmatprep.subr.bf16.mxu0 %v13914_v23  ;;  %9415 = vmatpush1.bf16.msra.mxu1 %v13909_v18  ;;  %v13987_v23 = vld [vmem:[%s18694_s21 + $0x430] ss:$8 sps:$4 sm:$0xff]   ;;  %v13992_v18 = vld [vmem:[%s18694_s21 + $0x424] ss:$8 sps:$4 sm:$0xff]   ;;  %v14058_v56 = vld [vmem:[%s18696_s23 + $0x14] ss:$8 sps:$4 sm:$0xff]  }
0x105c   : > { %9416 = vmatprep.subr.bf16.mxu1 %v13917_v31  ;;  %v13990_v31 = vld [vmem:[%s18694_s21 + $0x420] ss:$8 sps:$4 sm:$0xff]  }
0x105e   : > { %9697 = vmatpush1.bf16.msra.mxu0 %v13912_v5  ;;  %v13995_v5 = vld [vmem:[%s18694_s21 + $0x414] ss:$8 sps:$4 sm:$0xff]  }
0x105f   : > { %9698 = vmatprep.subr.bf16.mxu0 %v13920_v32  ;;  %9417 = vmatpush1.bf16.msra.mxu1 %v13915_v60  ;;  %v13993_v32 = vld [vmem:[%s18694_s21 + $0x410] ss:$8 sps:$4 sm:$0xff]   ;;  %v13998_v60 = vld [vmem:[%s18694_s21 + $0x404] ss:$8 sps:$4 sm:$0xff]  }
0x1060   : > { %9418 = vmatprep.subr.bf16.mxu1 %v13923_v20  ;;  %v13996_v20 = vld [vmem:[%s18694_s21 + $0x400] ss:$8 sps:$4 sm:$0xff]  }
0x1062   : > { %9699 = vmatpush1.bf16.msra.mxu0 %v13918_v61  ;;  %v14001_v61 = vld [vmem:[%s18694_s21 + $0x4f4] ss:$8 sps:$4 sm:$0xff]  }
0x1063   : > { %9700 = vmatprep.subr.bf16.mxu0 %v13926_v39  ;;  %9419 = vmatpush1.bf16.msra.mxu1 %v13921_v59  ;;  %v13999_v39 = vld [vmem:[%s18694_s21 + $0x4f0] ss:$8 sps:$4 sm:$0xff]   ;;  %v14004_v59 = vld [vmem:[%s18694_s21 + $0x4e4] ss:$8 sps:$4 sm:$0xff]  }
0x1064   : > { %9420 = vmatprep.subr.bf16.mxu1 %v13929_v25  ;;  %v14002_v25 = vld [vmem:[%s18694_s21 + $0x4e0] ss:$8 sps:$4 sm:$0xff]  }
0x1066   : > { %9701 = vmatpush2.bf16.msra.mxu0 %v13924_v22  ;;  %v14007_v22 = vld [vmem:[%s18694_s21 + $0x4d4] ss:$8 sps:$4 sm:$0xff]  }
0x1067   : > { %9702 = vmatprep.subr.bf16.mxu0 %v13932_v46  ;;  %9421 = vmatpush1.bf16.msra.mxu1 %v13927_v12  ;;  %v14005_v46 = vld [vmem:[%s18694_s21 + $0x4d0] ss:$8 sps:$4 sm:$0xff]   ;;  %v14010_v12 = vld [vmem:[%s18694_s21 + $0x4c4] ss:$8 sps:$4 sm:$0xff]  }
0x1068   : > { %9422 = vmatprep.subr.bf16.mxu1 %v13935_v24  ;;  %v14008_v24 = vld [vmem:[%s18694_s21 + $0x4c0] ss:$8 sps:$4 sm:$0xff]  }
0x106a   : > { %9703 = vmatpush2.bf16.msra.mxu0 %v13930_v63  ;;  %v14013_v63 = vld [vmem:[%s18694_s21 + $0x4b4] ss:$8 sps:$4 sm:$0xff]  }
0x106b   : > { %9704 = vmatprep.subr.bf16.mxu0 %v13938_v49  ;;  %9423 = vmatpush2.bf16.msra.mxu1 %v13933_v14  ;;  %v14011_v49 = vld [vmem:[%s18694_s21 + $0x4b0] ss:$8 sps:$4 sm:$0xff]   ;;  %v14016_v14 = vld [vmem:[%s18694_s21 + $0x4a4] ss:$8 sps:$4 sm:$0xff]  }
0x106c   : > { %9424 = vmatprep.subr.bf16.mxu1 %v13941_v58  ;;  %v14014_v58 = vld [vmem:[%s18694_s21 + $0x4a0] ss:$8 sps:$4 sm:$0xff]  }
0x106e   : > { %9705 = vmatpush2.bf16.msra.mxu0 %v13936_v38  ;;  %v14019_v38 = vld [vmem:[%s18694_s21 + $0x494] ss:$8 sps:$4 sm:$0xff]  }
0x106f   : > { %9706 = vmatprep.subr.bf16.mxu0 %v13944_v30  ;;  %9425 = vmatpush2.bf16.msra.mxu1 %v13939_v21  ;;  %v14017_v30 = vld [vmem:[%s18694_s21 + $0x490] ss:$8 sps:$4 sm:$0xff]   ;;  %v14022_v21 = vld [vmem:[%s18694_s21 + $0x484] ss:$8 sps:$4 sm:$0xff]  }
0x1070   : > { %9426 = vmatprep.subr.bf16.mxu1 %v13947_v36  ;;  %v14020_v36 = vld [vmem:[%s18694_s21 + $0x480] ss:$8 sps:$4 sm:$0xff]  }
0x1072   : > { %9707 = vmatpush2.bf16.msra.mxu0 %v13942_v26  ;;  %v9774_v26 = vrot.slane %v17836_v2, %v16255_v47  ;;  %v14044_v2 = vld [vmem:[%s18696_s23 + $0x30] ss:$8 sps:$4 sm:$0xff]  }
0x1073   : > { %9708 = vmatprep.subr.bf16.mxu0 %v13950_v0  ;;  %9427 = vmatpush2.bf16.msra.mxu1 %v13945_v41  ;;  %v14023_v0 = vld [vmem:[%s18696_s23 + $0x70] ss:$8 sps:$4 sm:$0xff]   ;;  %v14025_v41 = vld [vmem:[%s18696_s23 + $0x74] ss:$8 sps:$4 sm:$0xff]  }
0x1074   : > { %9428 = vmatprep.subr.bf16.mxu1 %v13953_v16  ;;  %v14028_v16 = vld [vmem:[%s18696_s23 + $0x64] ss:$8 sps:$4 sm:$0xff]  }
0x1076   : > { %9709 = vmatpush2.bf16.msra.mxu0 %v13948_v48  ;;  %v14029_v48 = vld [vmem:[%s18696_s23 + $0x170] ss:$8 sps:$4 sm:$0xff]  }
0x1077   : > { %9710 = vmatprep.subr.bf16.mxu0 %v13956_v11  ;;  %9429 = vmatpush2.bf16.msra.mxu1 %v13951_v44  ;;  %v14031_v11 = vld [vmem:[%s18696_s23 + $0x174] ss:$8 sps:$4 sm:$0xff]   ;;  %v14026_v44 = vld [vmem:[%s18696_s23 + $0x60] ss:$8 sps:$4 sm:$0xff]  }
0x1078   : > { %9430 = vmatprep.subr.bf16.mxu1 %v13959_v13  ;;  %v14037_v13 = vld [vmem:[%s18696_s23 + $0x164] ss:$8 sps:$4 sm:$0xff]  }
0x107a   : > { %9711 = vmatpush2.bf16.msra.mxu0 %v13954_v54  ;;  %v14034_v54 = vld [vmem:[%s18696_s23 + $0x54] ss:$8 sps:$4 sm:$0xff]  }
0x107b   : > { %9712 = vmatprep.subr.bf16.mxu0 %v13962_v50  ;;  %9431 = vmatpush2.bf16.msra.mxu1 %v13957_v57  ;;  %v14035_v50 = vld [vmem:[%s18696_s23 + $0x160] ss:$8 sps:$4 sm:$0xff]   ;;  %v14043_v57 = vld [vmem:[%s18696_s23 + $0x154] ss:$8 sps:$4 sm:$0xff]  }
0x107c   : > { %9432 = vmatprep.subr.bf16.mxu1 %v13965_v17  ;;  %v14032_v17 = vld [vmem:[%s18696_s23 + $0x50] ss:$8 sps:$4 sm:$0xff]  }
0x107e   : > { %9713 = vmatpush2.bf16.msra.mxu0 %v13960_v19  ;;  %v14040_v19 = vld [vmem:[%s18696_s23 + $0x44] ss:$8 sps:$4 sm:$0xff]  }
0x107f   : > { %9714 = vmatprep.subr.bf16.mxu0 %v13968_v28  ;;  %9433 = vmatpush2.bf16.msra.mxu1 %v13963_v3  ;;  %v14041_v28 = vld [vmem:[%s18696_s23 + $0x150] ss:$8 sps:$4 sm:$0xff]   ;;  %v14049_v3 = vld [vmem:[%s18696_s23 + $0x144] ss:$8 sps:$4 sm:$0xff]  }
0x1080   : > { %9434 = vmatprep.subr.bf16.mxu1 %v13971_v6  ;;  %v14038_v6 = vld [vmem:[%s18696_s23 + $0x40] ss:$8 sps:$4 sm:$0xff]  }
0x1082   : > { %9715 = vmatpush2.bf16.msra.mxu0 %v13966_v10  ;;  %v14046_v10 = vld [vmem:[%s18696_s23 + $0x34] ss:$8 sps:$4 sm:$0xff]  }
0x1083   : > { %9435 = vmatpush2.bf16.msra.mxu1 %v13969_v8  ;;  %10375 = vmatprep.subr.bf16.mxu0 %v14031_v11  ;;  %v14047_v8 = vld [vmem:[%s18696_s23 + $0x140] ss:$8 sps:$4 sm:$0xff]   ;;  %v14103_v11 = vld [vmem:[%s18696_s23 + $0x1b4] ss:$8 sps:$4 sm:$0xff]  }
0x1084   : > { %9436 = vmatprep.subr.bf16.mxu1 %v13974_v52  ;;  %v14055_v52 = vld [vmem:[%s18696_s23 + $0x134] ss:$8 sps:$4 sm:$0xff]  }
0x1085   : > { %9717 = vmatmul.mubr.bf16.vlgmr.msra.gmra.mxu0 %v9514_v34  ;;  %v14052_v34 = vld [vmem:[%s18696_s23 + $0x24] ss:$8 sps:$4 sm:$0xff]  }
0x1086   : > { %10376 = vmatpush1.bf16.msra.mxu0 %v14029_v48  ;;  %v14100_v48 = vld [vmem:[%s18696_s23 + $0xa4] ss:$8 sps:$4 sm:$0xff]  }
0x1087   : > { %9437 = vmatpush2.bf16.msra.mxu1 %v13972_v1  ;;  %10377 = vmatprep.subr.bf16.mxu0 %v14037_v13  ;;  %v14053_v1 = vld [vmem:[%s18696_s23 + $0x130] ss:$8 sps:$4 sm:$0xff]  }
0x1088   : > { %9944 = vmatprep.subr.bf16.mxu1 %v13977_v27  ;;  %v14050_v27 = vld [vmem:[%s18696_s23 + $0x20] ss:$8 sps:$4 sm:$0xff]   ;;  %v14101_v13 = vld [vmem:[%s18696_s23 + $0x1b0] ss:$8 sps:$4 sm:$0xff]  }
0x108a   : > { %9439 = vmatmul.mubr.bf16.vlgmr.msra.gmra.mxu1 %v9236_v9  ;;  %10378 = vmatpush1.bf16.msra.mxu0 %v14035_v50  ;;  %v14109_v50 = vld [vmem:[%s18696_s23 + $0x1a4] ss:$8 sps:$4 sm:$0xff]  }
0x108b   : > { %9945 = vmatpush1.bf16.msra.mxu1 %v13975_v37  ;;  %9976 = vmatprep.mubr.bf16.mxu1 %v9781_v7  ;;  %v14056_v37 = vld [vmem:[%s18696_s23 + $0x10] ss:$8 sps:$4 sm:$0xff]  }
0x108c   : > { %9946 = vmatprep.subr.bf16.mxu1 %v13980_v45  ;;  %10379 = vmatprep.subr.bf16.mxu0 %v14043_v57  ;;  %v14104_v57 = vld [vmem:[%s18696_s23 + $0x90] ss:$8 sps:$4 sm:$0xff]  }
0x108e   : > { %10380 = vmatpush1.bf16.msra.mxu0 %v14041_v28  ;;  %v14115_v28 = vld [vmem:[%s18696_s23 + $0x194] ss:$8 sps:$4 sm:$0xff]  }
0x108f   : > { %9947 = vmatpush1.bf16.msra.mxu1 %v13978_v53  ;;  %10381 = vmatprep.subr.bf16.mxu0 %v14049_v3  ;;  %v14110_v3 = vld [vmem:[%s18696_s23 + $0x80] ss:$8 sps:$4 sm:$0xff]  }
0x1090   : > { %9948 = vmatprep.subr.bf16.mxu1 %v13983_v51 }
0x1092   : > { %10382 = vmatpush1.bf16.msra.mxu0 %v14047_v8  ;;  %v14121_v8 = vld [vmem:[%s18696_s23 + $0x184] ss:$8 sps:$4 sm:$0xff]  }
0x1093   : > { %9949 = vmatpush1.bf16.msra.mxu1 %v13981_v29  ;;  %10383 = vmatprep.subr.bf16.mxu0 %v14055_v52  ;;  %v14119_v52 = vld [vmem:[%s18696_s23 + $0x180] ss:$8 sps:$4 sm:$0xff]  }
0x1094   : > { %9950 = vmatprep.subr.bf16.mxu1 %v13986_v55 }
0x1096   : > { %10384 = vmatpush1.bf16.msra.mxu0 %v14053_v1 }
0x1097   : > { %9951 = vmatpush1.bf16.msra.mxu1 %v13984_v4 }
0x1098   : > { %9952 = vmatprep.subr.bf16.mxu1 %v13989_v15 }
0x109b   : > { %9953 = vmatpush1.bf16.msra.mxu1 %v13987_v23  ;;  %v14059_v23 = vld [vmem:[%s18696_s23 + $0x120] ss:$8 sps:$4 sm:$0xff]  }
0x109c   : > { %9954 = vmatprep.subr.bf16.mxu1 %v13992_v18  ;;  %v14061_v18 = vld [vmem:[%s18696_s23 + $0x124] ss:$8 sps:$4 sm:$0xff]  }
0x109d   : > { %10385 = vmatprep.subr.bf16.mxu0 %v14061_v18 }
0x109e   : > { %10386 = vmatpush1.bf16.msra.mxu0 %v14059_v23  ;;  %v9987_v23 = vld [vmem:[%s18695_s22] sm:$0x3] }
0x109f   : > { %9955 = vmatpush1.bf16.msra.mxu1 %v13990_v31  ;;  %v9992_v18 = vrot.slane %v9987_v23, %v16750_v40 }
0x10a0   : > { %9956 = vmatprep.subr.bf16.mxu1 %v13995_v5  ;;  %v14064_v5 = vld [vmem:[%s18696_s23 + $0x4] ss:$8 sps:$4 sm:$0xff]  }
0x10a3   : > { %9957 = vmatpush1.bf16.msra.mxu1 %v13993_v32  ;;  %v14062_v32 = vld [vmem:[%s18696_s23] ss:$8 sps:$4 sm:$0xff]  }
0x10a4   : > { %9958 = vmatprep.subr.bf16.mxu1 %v13998_v60  ;;  %v14067_v60 = vld [vmem:[%s18696_s23 + $0x114] ss:$8 sps:$4 sm:$0xff]  }
0x10a5   : > { %10387 = vmatprep.subr.bf16.mxu0 %v14067_v60 }
0x10a7   : > { %9959 = vmatpush1.bf16.msra.mxu1 %v13996_v20  ;;  %v14065_v20 = vld [vmem:[%s18696_s23 + $0x110] ss:$8 sps:$4 sm:$0xff]  }
0x10a8   : > { %9960 = vmatprep.subr.bf16.mxu1 %v14001_v61  ;;  %10388 = vmatpush1.bf16.msra.mxu0 %v14065_v20  ;;  %v14070_v61 = vld [vmem:[%s18696_s23 + $0xf4] ss:$8 sps:$4 sm:$0xff]  }
0x10ab   : > { %9961 = vmatpush2.bf16.msra.mxu1 %v13999_v39  ;;  %v14068_v39 = vld [vmem:[%s18696_s23 + $0xf0] ss:$8 sps:$4 sm:$0xff]  }
0x10ac   : > { %9962 = vmatprep.subr.bf16.mxu1 %v14004_v59  ;;  %v14073_v59 = vld [vmem:[%s18696_s23 + $0x104] ss:$8 sps:$4 sm:$0xff]  }
0x10ad   : > { %10389 = vmatprep.subr.bf16.mxu0 %v14073_v59 }
0x10af   : > { %9963 = vmatpush2.bf16.msra.mxu1 %v14002_v25  ;;  %v14071_v25 = vld [vmem:[%s18696_s23 + $0x100] ss:$8 sps:$4 sm:$0xff]  }
0x10b0   : > { %9964 = vmatprep.subr.bf16.mxu1 %v14007_v22  ;;  %10390 = vmatpush1.bf16.msra.mxu0 %v14071_v25  ;;  %v14076_v22 = vld [vmem:[%s18696_s23 + $0xe4] ss:$8 sps:$4 sm:$0xff]  }
0x10b3   : > { %9965 = vmatpush2.bf16.msra.mxu1 %v14005_v46  ;;  %v14074_v46 = vld [vmem:[%s18696_s23 + $0xe0] ss:$8 sps:$4 sm:$0xff]  }
0x10b4   : > { %9966 = vmatprep.subr.bf16.mxu1 %v14010_v12  ;;  %v14079_v12 = vld [vmem:[%s18696_s23 + $0x1f4] ss:$8 sps:$4 sm:$0xff]  }
0x10b5   : > { %10391 = vmatprep.subr.bf16.mxu0 %v14079_v12 }
0x10b7   : > { %9967 = vmatpush2.bf16.msra.mxu1 %v14008_v24  ;;  %v14077_v24 = vld [vmem:[%s18696_s23 + $0x1f0] ss:$8 sps:$4 sm:$0xff]  }
0x10b8   : > { %9968 = vmatprep.subr.bf16.mxu1 %v14013_v63  ;;  %v14082_v63 = vld [vmem:[%s18696_s23 + $0xd4] ss:$8 sps:$4 sm:$0xff]   ;;  %10392 = vmatpush2.bf16.msra.mxu0 %v14077_v24 }
0x10bb   : > { %9969 = vmatpush2.bf16.msra.mxu1 %v14011_v49  ;;  %v14080_v49 = vld [vmem:[%s18696_s23 + $0xd0] ss:$8 sps:$4 sm:$0xff]  }
0x10bc   : > { %9970 = vmatprep.subr.bf16.mxu1 %v14016_v14  ;;  %v14085_v14 = vld [vmem:[%s18696_s23 + $0x1e4] ss:$8 sps:$4 sm:$0xff]  }
0x10bd   : > { %10393 = vmatprep.subr.bf16.mxu0 %v14085_v14 }
0x10bf   : > { %9971 = vmatpush2.bf16.msra.mxu1 %v14014_v58  ;;  %v14083_v58 = vld [vmem:[%s18696_s23 + $0x1e0] ss:$8 sps:$4 sm:$0xff]  }
0x10c0   : > { %9972 = vmatprep.subr.bf16.mxu1 %v14019_v38  ;;  %v14088_v38 = vld [vmem:[%s18696_s23 + $0xc4] ss:$8 sps:$4 sm:$0xff]   ;;  %10394 = vmatpush2.bf16.msra.mxu0 %v14083_v58 }
0x10c3   : > { %9973 = vmatpush2.bf16.msra.mxu1 %v14017_v30  ;;  %v14091_v30 = vld [vmem:[%s18696_s23 + $0x1d4] ss:$8 sps:$4 sm:$0xff]  }
0x10c4   : > { %9974 = vmatprep.subr.bf16.mxu1 %v14022_v21  ;;  %v14086_v21 = vld [vmem:[%s18696_s23 + $0xc0] ss:$8 sps:$4 sm:$0xff]   ;;  %10395 = vmatprep.subr.bf16.mxu0 %v14091_v30 }
0x10c7   : > { %9975 = vmatpush2.bf16.msra.mxu1 %v14020_v36  ;;  %v14089_v36 = vld [vmem:[%s18696_s23 + $0x1d0] ss:$8 sps:$4 sm:$0xff]  }
0x10c8   : > { %10601 = vmatprep.subr.bf16.mxu1 %v14025_v41  ;;  %v14092_v41 = vld [vmem:[%s18696_s23 + $0xb0] ss:$8 sps:$4 sm:$0xff]   ;;  %10396 = vmatpush2.bf16.msra.mxu0 %v14089_v36 }
0x10ca   : > { %9977 = vmatmul.mubr.bf16.vlgmr.msra.gmra.mxu1 %v9774_v26  ;;  %v14094_v26 = vld [vmem:[%s18696_s23 + $0xb4] ss:$8 sps:$4 sm:$0xff]  }
0x10cb   : > { %10602 = vmatpush1.bf16.msra.mxu1 %v14023_v0  ;;  %v14097_v0 = vld [vmem:[%s18696_s23 + $0x1c4] ss:$8 sps:$4 sm:$0xff]  }
0x10cc   : > { %10603 = vmatprep.subr.bf16.mxu1 %v14028_v16  ;;  %v14095_v16 = vld [vmem:[%s18696_s23 + $0x1c0] ss:$8 sps:$4 sm:$0xff]   ;;  %10397 = vmatprep.subr.bf16.mxu0 %v14097_v0 }
0x10cd   : > { %10398 = vmatpush2.bf16.msra.mxu0 %v14095_v16 }
0x10ce   : > { %10399 = vmatprep.subr.bf16.mxu0 %v14103_v11 }
0x10cf   : > { %10604 = vmatpush1.bf16.msra.mxu1 %v14026_v44  ;;  %v14098_v44 = vld [vmem:[%s18696_s23 + $0xa0] ss:$8 sps:$4 sm:$0xff]  }
0x10d0   : > { %10605 = vmatprep.subr.bf16.mxu1 %v14034_v54  ;;  %v14106_v54 = vld [vmem:[%s18696_s23 + $0x94] ss:$8 sps:$4 sm:$0xff]  }
0x10d1   : > { %10400 = vmatpush2.bf16.msra.mxu0 %v14101_v13 }
0x10d2   : > { %10401 = vmatprep.subr.bf16.mxu0 %v14109_v50 }
0x10d3   : > { %10606 = vmatpush1.bf16.msra.mxu1 %v14032_v17  ;;  %v14107_v17 = vld [vmem:[%s18696_s23 + $0x1a0] ss:$8 sps:$4 sm:$0xff]  }
0x10d4   : > { %10607 = vmatprep.subr.bf16.mxu1 %v14040_v19  ;;  %v14112_v19 = vld [vmem:[%s18696_s23 + $0x84] ss:$8 sps:$4 sm:$0xff]  }
0x10d5   : > { %10402 = vmatpush2.bf16.msra.mxu0 %v14107_v17 }
0x10d6   : > { %10403 = vmatprep.subr.bf16.mxu0 %v14115_v28 }
0x10d7   : > { %10608 = vmatpush1.bf16.msra.mxu1 %v14038_v6  ;;  %v14113_v6 = vld [vmem:[%s18696_s23 + $0x190] ss:$8 sps:$4 sm:$0xff]  }
0x10d8   : > { %10609 = vmatprep.subr.bf16.mxu1 %v14046_v10  ;;  %v14118_v10 = vld [vmem:[%s18696_s23 + $0x374] ss:$8 sps:$4 sm:$0xff]  }
0x10d9   : > { %10404 = vmatpush2.bf16.msra.mxu0 %v14113_v6 }
0x10da   : > { %10405 = vmatprep.subr.bf16.mxu0 %v14121_v8 }
0x10db   : > { %10610 = vmatpush1.bf16.msra.mxu1 %v14044_v2  ;;  %v14127_v2 = vld [vmem:[%s18696_s23 + $0x274] ss:$8 sps:$4 sm:$0xff]  }
0x10dc   : > { %10611 = vmatprep.subr.bf16.mxu1 %v14052_v34 }
0x10dd   : > { %10406 = vmatpush2.bf16.msra.mxu0 %v14119_v52 }
0x10de   : > { %10859 = vmatprep.subr.bf16.mxu0 %v14127_v2 }
0x10df   : > { %10612 = vmatpush1.bf16.msra.mxu1 %v14050_v27 }
0x10e0   : > { %10613 = vmatprep.subr.bf16.mxu1 %v14058_v56 }
0x10e3   : > { %10614 = vmatpush1.bf16.msra.mxu1 %v14056_v37 }
0x10e4   : > { %10615 = vmatprep.subr.bf16.mxu1 %v14064_v5 }
0x10e7   : > { %10616 = vmatpush1.bf16.msra.mxu1 %v14062_v32  ;;  %v9996_v32 = vrot.slane %v9987_v23, %v16756_v43 }
0x10e8   : > { %10617 = vmatprep.subr.bf16.mxu1 %v14070_v61 }
0x10eb   : > { %10618 = vmatpush2.bf16.msra.mxu1 %v14068_v39 }
0x10ec   : > { %10619 = vmatprep.subr.bf16.mxu1 %v14076_v22 }
0x10ef   : > { %10620 = vmatpush2.bf16.msra.mxu1 %v14074_v46 }
0x10f0   : > { %10621 = vmatprep.subr.bf16.mxu1 %v14082_v63 }
0x10f3   : > { %10622 = vmatpush2.bf16.msra.mxu1 %v14080_v49 }
0x10f4   : > { %10623 = vmatprep.subr.bf16.mxu1 %v14088_v38 }
0x10f7   : > { %10624 = vmatpush2.bf16.msra.mxu1 %v14086_v21 }
0x10f8   : > { %10625 = vmatprep.subr.bf16.mxu1 %v14094_v26 }
0x10fb   : > { %10626 = vmatpush2.bf16.msra.mxu1 %v14092_v41 }
0x10fc   : > { %10627 = vmatprep.subr.bf16.mxu1 %v14100_v48 }
0x10ff   : > { %10628 = vmatpush2.bf16.msra.mxu1 %v14098_v44 }
0x1100   : > { %10629 = vmatprep.subr.bf16.mxu1 %v14106_v54 }
0x1103   : > { %10630 = vmatpush2.bf16.msra.mxu1 %v14104_v57 }
0x1104   : > { %10631 = vmatprep.subr.bf16.mxu1 %v14112_v19 }
0x1105   : > { %v9182_v9 = vpop.f32.mrf.mxu0 }
0x1107   : > { %v9184_v45 = vpop.f32.mrf.mxu0  ;;  %10632 = vmatpush2.bf16.msra.mxu1 %v14110_v3 }
0x1108   : > { %11137 = vmatprep.subr.bf16.mxu1 %v14118_v10 }
0x1109   : > { %v9186_v7 = vpop.f32.mrf.mxu0 }
0x110a   : > { %v8956_v53 = vpop.f32.mrf.mxu1 }
0x110b   : > { %v9187_v51 = vpop.f32.mrf.mxu0  ;;  %v18018_v29 = vadd.f32 %v9182_v9, %v8956_v53 }
0x110c   : > { %v8958_v55 = vpop.f32.mrf.mxu1 }
0x110d   : > { %v18020_v4 = vadd.f32 %v9184_v45, %v8958_v55 }
0x110e   : > { %v8960_v15 = vpop.f32.mrf.mxu1 }
0x1110   : > { %v8961_v31 = vpop.f32.mrf.mxu1 }
0x1145   : > { %v9718_v34 = vpop.f32.mrf.mxu0 }
0x1147   : > { %v9720_v1 = vpop.f32.mrf.mxu0 }
0x1149   : > { %v9722_v27 = vpop.f32.mrf.mxu0 }
0x114a   : > { %v9440_v56 = vpop.f32.mrf.mxu1 }
0x114b   : > { %v9723_v37 = vpop.f32.mrf.mxu0  ;;  %v9447_v9 = vadd.f32 %v9440_v56, %v18018_v29 }
0x114c   : > { %v9442_v45 = vpop.f32.mrf.mxu1 }
0x114d   : > { %v9448_v7 = vadd.f32 %v9442_v45, %v18020_v4  ;;  %v9725_v53 = vadd.f32 %v9718_v34, %v9447_v9 }
0x114e   : > { %v9444_v51 = vpop.f32.mrf.mxu1 }
0x114f   : > { %v9726_v55 = vadd.f32 %v9720_v1, %v9448_v7 }
0x1150   : > { %v9445_v15 = vpop.f32.mrf.mxu1 }
0x118a   : > { %v9978_v31 = vpop.f32.mrf.mxu1 }
0x118b   : > { %v9985_v5 = vadd.f32 %v9978_v31, %v9725_v53 }
0x118c   : > { %v9980_v60 = vpop.f32.mrf.mxu1 }
0x118d   : > { %v9999_v20 = vadd.f32 %v9992_v18, %v9985_v5  ;;  %v9986_v29 = vadd.f32 %v9980_v60, %v9726_v55 }
0x118e   : > { %v9982_v61 = vpop.f32.mrf.mxu1 }
0x118f   : > { %v10000_v39 = vadd.f32 %v9996_v32, %v9986_v29  ;;  %v10001_v59 = vmax.f32 %v9999_v20, 0.0 }
0x1190   : > { %v9983_v4 = vpop.f32.mrf.mxu1 }
0x1191   : > { %v10002_v25 = vmax.f32 %v10000_v39, 0.0  ;;  %v14116_v4 = vld [vmem:[%s18696_s23 + $0x370] ss:$8 sps:$4 sm:$0xff]  }
0x1193   : > { %v10005_v22 = vcombine.low %v10001_v59, %v10002_v25 }
0x1195   : > { %v10012_v46 = vrot.slane %v10005_v22, %v14838_v35 }
0x1197   : > { %v10013_v12 = vcombine.high %v10012_v46, %v10012_v46  ;;  %v10020_v24 = vrot.slane %v10012_v46, %v14838_v35  ;;  %v14124_v46 = vld [vmem:[%s18696_s23 + $0x364] ss:$8 sps:$4 sm:$0xff]  }
0x1199   : > { %v10021_v63 = vcombine.high %v10020_v24, %v10020_v24  ;;  %v10028_v49 = vrot.slane %v10013_v12, %v14838_v35  ;;  %v10034_v14 = vpack.c.bf16 %v10020_v24, %v10020_v24 }
0x119b   : > { %v10029_v58 = vcombine.high %v10028_v49, %v10028_v49  ;;  %v10035_v38 = vpack.c.bf16 %v10021_v63, %v10021_v63  ;;  %v10036_v30 = vpack.c.bf16 %v10028_v49, %v10028_v49  ;;  %v10042_v21 = vrot.slane %v10034_v14, 7  ;;  %v14122_v63 = vld [vmem:[%s18696_s23 + $0x360] ss:$8 sps:$4 sm:$0xff]  }
0x119d   : > { %v10037_v36 = vpack.c.bf16 %v10029_v58, %v10029_v58  ;;  %v10043_v26 = vrot.slane %v10035_v38, 7  ;;  %v10044_v0 = vrot.slane %v10036_v30, 7  ;;  %v10047_v41 = vsel %vm18815_vm10, 0, %v10042_v21  ;;  %v14130_v38 = vld [vmem:[%s18696_s23 + $0x354] ss:$8 sps:$4 sm:$0xff]   ;;  %vm18829_vm10 = vmmov %vm18821_vm0 }
0x119e   : > { %v10054_v44 = vsel %vm18804_vm2, %v10047_v41, 0  ;;  %v14125_v30 = vld [vmem:[%s18696_s23 + $0x270] ss:$8 sps:$4 sm:$0xff]  }
0x119f   : > { %v10045_v16 = vrot.slane %v10037_v36, 7  ;;  %v10049_v48 = vsel %vm18816_vm4, 0, %v10043_v26  ;;  %v10051_v11 = vsel %vm18817_vm1, 0, %v10044_v0  ;;  %v14133_v26 = vld [vmem:[%s18696_s23 + $0x264] ss:$8 sps:$4 sm:$0xff]  }
0x11a0   : > { %v10055_v13 = vsel %vm18818_vm3, %v10049_v48, 0  ;;  %v10056_v57 = vsel %vm18820_vm9, %v10051_v11, 0  ;;  %v14128_v41 = vld [vmem:[%s18696_s23 + $0x350] ss:$8 sps:$4 sm:$0xff]   ;;  %v14131_v48 = vld [vmem:[%s18696_s23 + $0x260] ss:$8 sps:$4 sm:$0xff]  }
0x11a1   : > { %v10053_v54 = vsel %vm18819_vm5, 0, %v10045_v16  ;;  %v10062_v50 = vcombine.low %v10054_v44, %v10055_v13  ;;  %v14136_v16 = vld [vmem:[%s18696_s23 + $0x344] ss:$8 sps:$4 sm:$0xff]   ;;  %v14139_v11 = vld [vmem:[%s18696_s23 + $0x254] ss:$8 sps:$4 sm:$0xff]  }
0x11a2   : > { %v10057_v17 = vsel %vm18821_vm0, %v10053_v54, 0  ;;  %v14134_v44 = vld [vmem:[%s18696_s23 + $0x340] ss:$8 sps:$4 sm:$0xff]   ;;  %v14142_v13 = vld [vmem:[%s18696_s23 + $0x334] ss:$8 sps:$4 sm:$0xff]  }
0x11a3   : > { %v10069_v19 = vrot.slane %v10062_v50, %v16255_v47  ;;  %v10077_v28 = vcombine.low %v10056_v57, %v10057_v17  ;;  %v14137_v54 = vld [vmem:[%s18696_s23 + $0x250] ss:$8 sps:$4 sm:$0xff]   ;;  %v14145_v50 = vld [vmem:[%s18696_s23 + $0x244] ss:$8 sps:$4 sm:$0xff]  }
0x11a4   : > { %v14140_v57 = vld [vmem:[%s18696_s23 + $0x330] ss:$8 sps:$4 sm:$0xff]   ;;  %v14148_v17 = vld [vmem:[%s18696_s23 + $0x324] ss:$8 sps:$4 sm:$0xff]  }
0x11a5   : > { %v10084_v3 = vrot.slane %v10077_v28, %v16255_v47  ;;  %v10124_v6 = vcombine.high %v10069_v19, %v10069_v19  ;;  %v18169_v10 = vrot.slane %v10069_v19, %v16255_v47  ;;  %v14143_v19 = vld [vmem:[%s18696_s23 + $0x240] ss:$8 sps:$4 sm:$0xff]   ;;  %v14151_v28 = vld [vmem:[%s18696_s23 + $0x234] ss:$8 sps:$4 sm:$0xff]  }
0x11a7   : > { %v10132_v8 = vcombine.high %v10084_v3, %v10084_v3  ;;  %v18172_v52 = vrot.slane %v10084_v3, %v16255_v47  ;;  %v10131_v2 = vrot.slane %v10124_v6, %v16255_v47  ;;  %v10902_v34 = vcombine.high %v18169_v10, %v18169_v10  ;;  %v14146_v3 = vld [vmem:[%s18696_s23 + $0x320] ss:$8 sps:$4 sm:$0xff]   ;;  %v14154_v6 = vld [vmem:[%s18696_s23 + $0x314] ss:$8 sps:$4 sm:$0xff]  }
0x11a8   : > { %v10141_v56 = vshrl.u32 %v18169_v10, 16 }
0x11a9   : > { %v10416_v1 = vcombine.low %v18169_v10, %v18172_v52  ;;  %v10139_v27 = vrot.slane %v10132_v8, %v16255_v47  ;;  %v10146_v37 = vshll.u32 %v10131_v2, 16  ;;  %v10903_v9 = vcombine.high %v18172_v52, %v18172_v52  ;;  %v14149_v8 = vld [vmem:[%s18696_s23 + $0x230] ss:$8 sps:$4 sm:$0xff]  }
0x11aa   : > { %v10904_v45 = vshrl.u32 %v10131_v2, 16  ;;  %v10909_v7 = vshll.u32 %v10902_v34, 16  ;;  %v12886_v53 = vcombine.high %v18169_v10, %v18172_v52  ;;  %v10150_v55 = vshrl.u32 %v18172_v52, 16  ;;  %v14152_v34 = vld [vmem:[%s18696_s23 + $0x310] ss:$8 sps:$4 sm:$0xff]  }
0x11ab   : > { %v10423_v51 = vrot.slane %v10416_v1, %v16255_v47  ;;  %v10155_v15 = vshll.u32 %v10139_v27, 16  ;;  %v10912_v23 = vshrl.u32 %v10139_v27, 16  ;;  %v10917_v18 = vshll.u32 %v10903_v9, 16  ;;  %v14160_v1 = vld [vmem:[%s18696_s23 + $0x304] ss:$8 sps:$4 sm:$0xff]   ;;  %v14221_v52 = vld [vmem:[%s18698_s25 + $0x30] sm:$0xff]  }
0x11ac   : > { %v10674_v31 = vcombine.low %v10131_v2, %v10139_v27  ;;  %v10148_v32 = vsel %vm16293_vm7, %v10141_v56, %v10146_v37  ;;  %v10911_v29 = vsel %vm16293_vm7, %v10904_v45, %v10909_v7  ;;  %v14157_v2 = vld [vmem:[%s18696_s23 + $0x224] ss:$8 sps:$4 sm:$0xff]   ;;  %v14155_v27 = vld [vmem:[%s18696_s23 + $0x220] ss:$8 sps:$4 sm:$0xff]   ;;  %v14163_v56 = vld [vmem:[%s18696_s23 + $0x214] ss:$8 sps:$4 sm:$0xff]  }
0x11ad   : > { %v10424_v5 = vcombine.high %v10423_v51, %v10423_v51  ;;  %v10157_v60 = vsel %vm16293_vm7, %v10150_v55, %v10155_v15  ;;  %v10919_v61 = vsel %vm16293_vm7, %v10912_v23, %v10917_v18  ;;  %v10431_v22 = vrot.slane %v10423_v51, %v16255_v47  ;;  %v14158_v37 = vld [vmem:[%s18696_s23 + $0x300] ss:$8 sps:$4 sm:$0xff]   ;;  %v14166_v9 = vld [vmem:[%s18696_s23 + $0x3f4] ss:$8 sps:$4 sm:$0xff]   ;;  %v14161_v45 = vld [vmem:[%s18696_s23 + $0x210] ss:$8 sps:$4 sm:$0xff]  }
0x11ae   : > { %v10190_v20 = vcombine.low %v10148_v32, %v10157_v60  ;;  %v10952_v59 = vcombine.low %v10911_v29, %v10919_v61  ;;  %v18200_v25 = vrot.slane %v10674_v31, %v16255_v47  ;;  %v14169_v7 = vld [vmem:[%s18696_s23 + $0x204] ss:$8 sps:$4 sm:$0xff]   ;;  %v14164_v51 = vld [vmem:[%s18696_s23 + $0x3f0] ss:$8 sps:$4 sm:$0xff]   ;;  %v14167_v15 = vld [vmem:[%s18696_s23 + $0x200] ss:$8 sps:$4 sm:$0xff]  }
0x11af   : > { %v10438_v39 = vrot.slane %v10424_v5, %v16255_v47  ;;  %v14172_v55 = vld [vmem:[%s18696_s23 + $0x3e4] ss:$8 sps:$4 sm:$0xff]   ;;  %v14175_v23 = vld [vmem:[%s18696_s23 + $0x2f4] ss:$8 sps:$4 sm:$0xff]   ;;  %v14170_v18 = vld [vmem:[%s18696_s23 + $0x3e0] ss:$8 sps:$4 sm:$0xff]  }
0x11b0   : > { %v10197_v12 = vrot.slane %v10190_v20, %v16255_v47  ;;  %v18208_v62 = vrot.slane %v10952_v59, %v16255_v47  ;;  %v10682_v14 = vcombine.high %v18200_v25, %v18200_v25  ;;  %v14178_v31 = vld [vmem:[%s18696_s23 + $0x3d4] ss:$8 sps:$4 sm:$0xff]   ;;  %v14173_v5 = vld [vmem:[%s18696_s23 + $0x2f0] ss:$8 sps:$4 sm:$0xff]   ;;  %v14181_v32 = vld [vmem:[%s18696_s23 + $0x2e4] ss:$8 sps:$4 sm:$0xff]  }
0x11b1   : > { %10633 = vmatprep.mubr.bf16.mxu1 %v10438_v39  ;;  %v14176_v60 = vld [vmem:[%s18696_s23 + $0x3d0] ss:$8 sps:$4 sm:$0xff]   ;;  %v14184_v20 = vld [vmem:[%s18696_s23 + $0x3c4] ss:$8 sps:$4 sm:$0xff]   ;;  %v14179_v29 = vld [vmem:[%s18696_s23 + $0x2e0] ss:$8 sps:$4 sm:$0xff]  }
0x11b2   : > { %10634 = vmatmul.mubr.bf16.vlgmr.msra.gmra.mxu1 %v10431_v22  ;;  %v10198_v24 = vcombine.high %v10197_v12, %v10197_v12  ;;  %v10960_v49 = vcombine.high %v18208_v62, %v18208_v62  ;;  %v10205_v36 = vrot.slane %v10197_v12, %v16255_v47  ;;  %v10696_v0 = vrot.slane %v10682_v14, %v16255_v47  ;;  %v14187_v61 = vld [vmem:[%s18696_s23 + $0x2d4] ss:$8 sps:$4 sm:$0xff]   ;;  %v14182_v39 = vld [vmem:[%s18696_s23 + $0x3c0] ss:$8 sps:$4 sm:$0xff]   ;;  %v14185_v59 = vld [vmem:[%s18696_s23 + $0x2d0] ss:$8 sps:$4 sm:$0xff]  }
0x11b3   : > { %11138 = vmatpush1.bf16.msra.mxu1 %v14116_v4  ;;  %v14190_v4 = vld [vmem:[%s18696_s23 + $0x3b4] ss:$8 sps:$4 sm:$0xff]   ;;  %v14193_v22 = vld [vmem:[%s18696_s23 + $0x2c4] ss:$8 sps:$4 sm:$0xff]   ;;  %vm18822_vm7 = vmmov %vm18821_vm0 }
0x11b4   : > { %11139 = vmatprep.subr.bf16.mxu1 %v14124_v46  ;;  %v10212_v58 = vrot.slane %v10198_v24, %v16255_v47  ;;  %v10974_v21 = vrot.slane %v10960_v49, %v16255_v47  ;;  %v14188_v46 = vld [vmem:[%s18696_s23 + $0x3b0] ss:$8 sps:$4 sm:$0xff]   ;;  %v14196_v12 = vld [vmem:[%s18696_s23 + $0x3a4] ss:$8 sps:$4 sm:$0xff]   ;;  %v14191_v24 = vld [vmem:[%s18696_s23 + $0x2c0] ss:$8 sps:$4 sm:$0xff]  }
0x11b5   : > { %v14194_v49 = vld [vmem:[%s18696_s23 + $0x3a0] ss:$8 sps:$4 sm:$0xff]   ;;  %v14202_v14 = vld [vmem:[%s18696_s23 + $0x394] ss:$8 sps:$4 sm:$0xff]  }
0x11b6   : > { %10407 = vmatprep.mubr.bf16.mxu0 %v10212_v58  ;;  %11169 = vmatprep.mubr.bf16.mxu1 %v10974_v21  ;;  %v14197_v58 = vld [vmem:[%s18696_s23 + $0x2b0] ss:$8 sps:$4 sm:$0xff]   ;;  %v14208_v21 = vld [vmem:[%s18696_s23 + $0x384] ss:$8 sps:$4 sm:$0xff]   ;;  %v14220_v10 = vld [vmem:[%s18696_s23 + $0x474] ss:$8 sps:$4 sm:$0xff]  }
0x11b7   : > { %11140 = vmatpush1.bf16.msra.mxu1 %v14122_v63  ;;  %10408 = vmatmul.mubr.bf16.vlgmr.msra.gmra.mxu0 %v10205_v36  ;;  %v14199_v63 = vld [vmem:[%s18696_s23 + $0x2b4] ss:$8 sps:$4 sm:$0xff]   ;;  %v14203_v36 = vld [vmem:[%s18696_s23 + $0x2a0] ss:$8 sps:$4 sm:$0xff]  }
0x11b8   : > { %11141 = vmatprep.subr.bf16.mxu1 %v14130_v38  ;;  %10860 = vmatpush1.bf16.msra.mxu0 %v14125_v30  ;;  %v14205_v38 = vld [vmem:[%s18696_s23 + $0x2a4] ss:$8 sps:$4 sm:$0xff]   ;;  %v14200_v30 = vld [vmem:[%s18696_s23 + $0x390] ss:$8 sps:$4 sm:$0xff]  }
0x11b9   : > { %10891 = vmatprep.mubr.bf16.mxu0 %v10696_v0  ;;  %10861 = vmatprep.subr.bf16.mxu0 %v14133_v26  ;;  %v14211_v26 = vld [vmem:[%s18696_s23 + $0x294] ss:$8 sps:$4 sm:$0xff]   ;;  %v14206_v0 = vld [vmem:[%s18696_s23 + $0x380] ss:$8 sps:$4 sm:$0xff]  }
0x11bb   : > { %11142 = vmatpush1.bf16.msra.mxu1 %v14128_v41  ;;  %v14212_v41 = vld [vmem:[%s18698_s25 + $0x78] sm:$0xff]  }
0x11bc   : > { %11143 = vmatprep.subr.bf16.mxu1 %v14136_v16  ;;  %10862 = vmatpush1.bf16.msra.mxu0 %v14131_v48  ;;  %v14209_v16 = vld [vmem:[%s18696_s23 + $0x290] ss:$8 sps:$4 sm:$0xff]   ;;  %v14215_v48 = vld [vmem:[%s18696_s23 + $0x284] ss:$8 sps:$4 sm:$0xff]  }
0x11bd   : > { %10863 = vmatprep.subr.bf16.mxu0 %v14139_v11  ;;  %v14216_v11 = vld [vmem:[%s18698_s25 + $0x38] sm:$0xff]  }
0x11bf   : > { %11144 = vmatpush1.bf16.msra.mxu1 %v14134_v44  ;;  %v18405_v44 = vrot.slane %v12886_v53, %v16255_v47 }
0x11c0   : > { %11145 = vmatprep.subr.bf16.mxu1 %v14142_v13  ;;  %10864 = vmatpush1.bf16.msra.mxu0 %v14137_v54  ;;  %v10967_v13 = vrot.slane %v18208_v62, %v16255_v47  ;;  %v14217_v54 = vld [vmem:[%s18698_s25 + $0x70] sm:$0xff]  }
0x11c1   : > { %10865 = vmatprep.subr.bf16.mxu0 %v14145_v50  ;;  %v14213_v50 = vld [vmem:[%s18696_s23 + $0x280] ss:$8 sps:$4 sm:$0xff]   ;;  %v11220_v53 = vcombine.high %v18405_v44, %v18405_v44  ;;  %v14218_v62 = vld [vmem:[%s18696_s23 + $0x470] ss:$8 sps:$4 sm:$0xff]  }
0x11c3   : > { %11146 = vmatpush1.bf16.msra.mxu1 %v14140_v57  ;;  %v11715_v57 = vpack.c.b16 %v17692_v42, %v17692_v42  ;;  %v14222_v42 = vld [vmem:[%s18698_s25 + $0x68] sm:$0xff]  }
0x11c4   : > { %11147 = vmatprep.subr.bf16.mxu1 %v14148_v17  ;;  %10866 = vmatpush1.bf16.msra.mxu0 %v14143_v19  ;;  %v10689_v17 = vrot.slane %v18200_v25, %v16255_v47  ;;  %v14225_v19 = vld [vmem:[%s18696_s23 + $0x464] ss:$8 sps:$4 sm:$0xff]   ;;  %v14223_v25 = vld [vmem:[%s18696_s23 + $0x460] ss:$8 sps:$4 sm:$0xff]  }
0x11c5   : > { %10867 = vmatprep.subr.bf16.mxu0 %v14151_v28  ;;  %v11234_v28 = vrot.slane %v11220_v53, %v16255_v47  ;;  %v14280_v53 = vld [vmem:[%s18698_s25 + $0xb8] sm:$0xff]  }
0x11c7   : > { %11148 = vmatpush1.bf16.msra.mxu1 %v14146_v3  ;;  %v14226_v3 = vld [vmem:[%s18698_s25 + $0x28] sm:$0xff]  }
0x11c8   : > { %11149 = vmatprep.subr.bf16.mxu1 %v14154_v6  ;;  %10868 = vmatpush1.bf16.msra.mxu0 %v14149_v8  ;;  %v14227_v6 = vld [vmem:[%s18698_s25 + $0x60] sm:$0xff]   ;;  %v14230_v8 = vld [vmem:[%s18696_s23 + $0x454] ss:$8 sps:$4 sm:$0xff]  }
0x11c9   : > { %10869 = vmatprep.subr.bf16.mxu0 %v14157_v2  ;;  %v14231_v2 = vld [vmem:[%s18698_s25 + $0x20] sm:$0xff]  }
0x11cb   : > { %11150 = vmatpush1.bf16.msra.mxu1 %v14152_v34  ;;  %v14232_v34 = vld [vmem:[%s18698_s25 + $0x58] sm:$0xff]  }
0x11cc   : > { %11151 = vmatprep.subr.bf16.mxu1 %v14160_v1  ;;  %10870 = vmatpush1.bf16.msra.mxu0 %v14155_v27  ;;  %v14228_v1 = vld [vmem:[%s18696_s23 + $0x450] ss:$8 sps:$4 sm:$0xff]   ;;  %v14235_v27 = vld [vmem:[%s18696_s23 + $0x444] ss:$8 sps:$4 sm:$0xff]  }
0x11cd   : > { %10871 = vmatprep.subr.bf16.mxu0 %v14163_v56  ;;  %v14236_v56 = vld [vmem:[%s18698_s25 + $0x18] sm:$0xff]  }
0x11cf   : > { %11152 = vmatpush1.bf16.msra.mxu1 %v14158_v37  ;;  %v14237_v37 = vld [vmem:[%s18698_s25 + $0x50] sm:$0xff]  }
0x11d0   : > { %11153 = vmatprep.subr.bf16.mxu1 %v14166_v9  ;;  %10872 = vmatpush1.bf16.msra.mxu0 %v14161_v45  ;;  %v14233_v9 = vld [vmem:[%s18696_s23 + $0x440] ss:$8 sps:$4 sm:$0xff]   ;;  %v14240_v45 = vld [vmem:[%s18696_s23 + $0x434] ss:$8 sps:$4 sm:$0xff]  }
0x11d1   : > { %10873 = vmatprep.subr.bf16.mxu0 %v14169_v7  ;;  %v14241_v7 = vld [vmem:[%s18698_s25 + $0x10] sm:$0xff]  }
0x11d3   : > { %11154 = vmatpush2.bf16.msra.mxu1 %v14164_v51  ;;  %v14242_v51 = vld [vmem:[%s18698_s25 + $0x48] sm:$0xff]  }
0x11d4   : > { %11155 = vmatprep.subr.bf16.mxu1 %v14172_v55  ;;  %10874 = vmatpush1.bf16.msra.mxu0 %v14167_v15  ;;  %v14238_v55 = vld [vmem:[%s18696_s23 + $0x430] ss:$8 sps:$4 sm:$0xff]   ;;  %v14245_v15 = vld [vmem:[%s18696_s23 + $0x424] ss:$8 sps:$4 sm:$0xff]  }
0x11d5   : > { %10875 = vmatprep.subr.bf16.mxu0 %v14175_v23  ;;  %v14246_v23 = vld [vmem:[%s18698_s25 + $0x8] sm:$0xff]  }
0x11d7   : > { %11156 = vmatpush2.bf16.msra.mxu1 %v14170_v18  ;;  %v14247_v18 = vld [vmem:[%s18698_s25 + $0x40] sm:$0xff]  }
0x11d8   : > { %11157 = vmatprep.subr.bf16.mxu1 %v14178_v31  ;;  %10876 = vmatpush2.bf16.msra.mxu0 %v14173_v5  ;;  %v14243_v31 = vld [vmem:[%s18696_s23 + $0x420] ss:$8 sps:$4 sm:$0xff]   ;;  %v14250_v5 = vld [vmem:[%s18696_s23 + $0x414] ss:$8 sps:$4 sm:$0xff]  }
0x11d9   : > { %10877 = vmatprep.subr.bf16.mxu0 %v14181_v32  ;;  %v14251_v32 = vld [vmem:[%s18698_s25] sm:$0xff]  }
0x11db   : > { %11158 = vmatpush2.bf16.msra.mxu1 %v14176_v60  ;;  %v14248_v60 = vld [vmem:[%s18696_s23 + $0x410] ss:$8 sps:$4 sm:$0xff]  }
0x11dc   : > { %11159 = vmatprep.subr.bf16.mxu1 %v14184_v20  ;;  %10878 = vmatpush2.bf16.msra.mxu0 %v14179_v29  ;;  %v14254_v20 = vld [vmem:[%s18696_s23 + $0x404] ss:$8 sps:$4 sm:$0xff]   ;;  %v11714_v29 = vpack.c.b16 %v17710_v33, %v17710_v33 }
0x11dd   : > { %10879 = vmatprep.subr.bf16.mxu0 %v14187_v61  ;;  %v14252_v61 = vld [vmem:[%s18696_s23 + $0x400] ss:$8 sps:$4 sm:$0xff]   ;;  %v14260_v33 = vld [vmem:[%s18696_s23 + $0x4e4] ss:$8 sps:$4 sm:$0xff]  }
0x11df   : > { %11160 = vmatpush2.bf16.msra.mxu1 %v14182_v39  ;;  %v14257_v39 = vld [vmem:[%s18696_s23 + $0x4f4] ss:$8 sps:$4 sm:$0xff]  }
0x11e0   : > { %11161 = vmatprep.subr.bf16.mxu1 %v14190_v4  ;;  %10880 = vmatpush2.bf16.msra.mxu0 %v14185_v59  ;;  %v14255_v4 = vld [vmem:[%s18696_s23 + $0x4f0] ss:$8 sps:$4 sm:$0xff]   ;;  %v14258_v59 = vld [vmem:[%s18696_s23 + $0x4e0] ss:$8 sps:$4 sm:$0xff]  }
0x11e1   : > { %10881 = vmatprep.subr.bf16.mxu0 %v14193_v22  ;;  %v14263_v22 = vld [vmem:[%s18696_s23 + $0x4d4] ss:$8 sps:$4 sm:$0xff]  }
0x11e3   : > { %11162 = vmatpush2.bf16.msra.mxu1 %v14188_v46  ;;  %v14261_v46 = vld [vmem:[%s18696_s23 + $0x4d0] ss:$8 sps:$4 sm:$0xff]  }
0x11e4   : > { %11163 = vmatprep.subr.bf16.mxu1 %v14196_v12  ;;  %10882 = vmatpush2.bf16.msra.mxu0 %v14191_v24  ;;  %v14266_v12 = vld [vmem:[%s18696_s23 + $0x4c4] ss:$8 sps:$4 sm:$0xff]   ;;  %v14264_v24 = vld [vmem:[%s18696_s23 + $0x4c0] ss:$8 sps:$4 sm:$0xff]  }
0x11e5   : > { %10883 = vmatprep.subr.bf16.mxu0 %v14199_v63  ;;  %v14269_v63 = vld [vmem:[%s18696_s23 + $0x4b4] ss:$8 sps:$4 sm:$0xff]  }
0x11e7   : > { %11164 = vmatpush2.bf16.msra.mxu1 %v14194_v49  ;;  %v14267_v49 = vld [vmem:[%s18696_s23 + $0x4b0] ss:$8 sps:$4 sm:$0xff]  }
0x11e8   : > { %11165 = vmatprep.subr.bf16.mxu1 %v14202_v14  ;;  %10884 = vmatpush2.bf16.msra.mxu0 %v14197_v58  ;;  %v14272_v14 = vld [vmem:[%s18696_s23 + $0x4a4] ss:$8 sps:$4 sm:$0xff]   ;;  %v14270_v58 = vld [vmem:[%s18696_s23 + $0x4a0] ss:$8 sps:$4 sm:$0xff]  }
0x11e9   : > { %10885 = vmatprep.subr.bf16.mxu0 %v14205_v38  ;;  %v14275_v38 = vld [vmem:[%s18696_s23 + $0x494] ss:$8 sps:$4 sm:$0xff]  }
0x11eb   : > { %11166 = vmatpush2.bf16.msra.mxu1 %v14200_v30  ;;  %v14273_v30 = vld [vmem:[%s18696_s23 + $0x490] ss:$8 sps:$4 sm:$0xff]  }
0x11ec   : > { %11167 = vmatprep.subr.bf16.mxu1 %v14208_v21  ;;  %10886 = vmatpush2.bf16.msra.mxu0 %v14203_v36  ;;  %v14278_v21 = vld [vmem:[%s18696_s23 + $0x484] ss:$8 sps:$4 sm:$0xff]   ;;  %v14276_v36 = vld [vmem:[%s18696_s23 + $0x480] ss:$8 sps:$4 sm:$0xff]  }
0x11ed   : > { %10887 = vmatprep.subr.bf16.mxu0 %v14211_v26  ;;  %v11227_v26 = vrot.slane %v18405_v44, %v16255_v47  ;;  %v14281_v47 = vld [vmem:[%s18698_s25 + $0xf0] sm:$0xff]  }
0x11ee   : > { %v14282_v44 = vld [vmem:[%s18698_s25 + $0xb0] sm:$0xff]  }
0x11ef   : > { %11168 = vmatpush2.bf16.msra.mxu1 %v14206_v0 }
0x11f0   : > { %13057 = vmatprep.subr.bf16.mxu1 %v14212_v41  ;;  %10888 = vmatpush2.bf16.msra.mxu0 %v14209_v16 }
0x11f1   : > { %10889 = vmatprep.subr.bf16.mxu0 %v14215_v48 }
0x11f2   : > { %11170 = vmatmul.mubr.bf16.vlgmr.msra.gmra.mxu1 %v10967_v13 }
0x11f3   : > { %13058 = vmatpush3.bf16.msra.mxu1 %v14216_v11  ;;  %11946 = vmatprep.mubr.bf16.mxu1 %v11715_v57 }
0x11f4   : > { %13059 = vmatprep.subr.bf16.mxu1 %v14217_v54  ;;  %10890 = vmatpush2.bf16.msra.mxu0 %v14213_v50 }
0x11f5   : > { %11397 = vmatprep.subr.bf16.mxu0 %v14220_v10 }
0x11f7   : > { %13060 = vmatpush3.bf16.msra.mxu1 %v14221_v52  ;;  %10892 = vmatmul.mubr.bf16.vlgmr.msra.gmra.mxu0 %v10689_v17  ;;  %v14279_v52 = vld [vmem:[%s18698_s25 + $0xf8] sm:$0xff]   ;;  %v14285_v17 = vld [vmem:[%s18698_s25 + $0xe0] sm:$0xff]  }
0x11f8   : > { %13061 = vmatprep.subr.bf16.mxu1 %v14222_v42  ;;  %11398 = vmatpush1.bf16.msra.mxu0 %v14218_v62  ;;  %v14283_v42 = vld [vmem:[%s18698_s25 + $0xe8] sm:$0xff]  }
0x11f9   : > { %11429 = vmatprep.mubr.bf16.mxu0 %v11234_v28  ;;  %11399 = vmatprep.subr.bf16.mxu0 %v14225_v19  ;;  %v14284_v62 = vld [vmem:[%s18698_s25 + $0xa8] sm:$0xff]   ;;  %v14286_v19 = vld [vmem:[%s18698_s25 + $0xa0] sm:$0xff]   ;;  %v14287_v28 = vld [vmem:[%s18698_s25 + $0xd8] sm:$0xff]  }
0x11fb   : > { %13062 = vmatpush3.bf16.msra.mxu1 %v14226_v3  ;;  %v14288_v3 = vld [vmem:[%s18698_s25 + $0x98] sm:$0xff]  }
0x11fc   : > { %13063 = vmatprep.subr.bf16.mxu1 %v14227_v6  ;;  %11400 = vmatpush1.bf16.msra.mxu0 %v14223_v25  ;;  %v14289_v6 = vld [vmem:[%s18698_s25 + $0xd0] sm:$0xff]  }
0x11fd   : > { %11401 = vmatprep.subr.bf16.mxu0 %v14230_v8  ;;  %v14290_v25 = vld [vmem:[%s18698_s25 + $0x90] sm:$0xff]   ;;  %v14291_v8 = vld [vmem:[%s18698_s25 + $0xc8] sm:$0xff]  }
0x11ff   : > { %13064 = vmatpush3.bf16.msra.mxu1 %v14231_v2  ;;  %v14292_v2 = vld [vmem:[%s18698_s25 + $0x88] sm:$0xff]  }
0x1200   : > { %13065 = vmatprep.subr.bf16.mxu1 %v14232_v34  ;;  %11402 = vmatpush1.bf16.msra.mxu0 %v14228_v1  ;;  %v14293_v34 = vld [vmem:[%s18698_s25 + $0xc0] sm:$0xff]  }
0x1201   : > { %11403 = vmatprep.subr.bf16.mxu0 %v14235_v27  ;;  %v14294_v1 = vld [vmem:[%s18698_s25 + $0x80] sm:$0xff]  }
0x1203   : > { %13066 = vmatpush3.bf16.msra.mxu1 %v14236_v56 }
0x1204   : > { %13067 = vmatprep.subr.bf16.mxu1 %v14237_v37  ;;  %11404 = vmatpush1.bf16.msra.mxu0 %v14233_v9 }
0x1205   : > { %11405 = vmatprep.subr.bf16.mxu0 %v14240_v45 }
0x1207   : > { %13068 = vmatpush3.bf16.msra.mxu1 %v14241_v7 }
0x1208   : > { %13069 = vmatprep.subr.bf16.mxu1 %v14242_v51  ;;  %11406 = vmatpush1.bf16.msra.mxu0 %v14238_v55 }
0x1209   : > { %11407 = vmatprep.subr.bf16.mxu0 %v14245_v15 }
0x120b   : > { %13070 = vmatpush3.bf16.msra.mxu1 %v14246_v23 }
0x120c   : > { %13071 = vmatprep.subr.bf16.mxu1 %v14247_v18  ;;  %11408 = vmatpush1.bf16.msra.mxu0 %v14243_v31 }
0x120d   : > { %11409 = vmatprep.subr.bf16.mxu0 %v14250_v5 }
0x120f   : > { %13072 = vmatpush3.bf16.msra.mxu1 %v14251_v32 }
0x1210   : > { %11410 = vmatpush1.bf16.msra.mxu0 %v14248_v60  ;;  %13079 = vmatprep.subr.bf16.mxu1 %v14279_v52 }
0x1211   : > { %11411 = vmatprep.subr.bf16.mxu0 %v14254_v20 }
0x1212   : > { %11947 = vmatmul.mubr.bf16.vlgmr.msra.gmra.mxu1 %v11714_v29 }
0x1213   : > { %13080 = vmatpush3.bf16.msra.mxu1 %v14280_v53 }
0x1214   : > { %11412 = vmatpush1.bf16.msra.mxu0 %v14252_v61  ;;  %13081 = vmatprep.subr.bf16.mxu1 %v14281_v47  ;;  %v11440_v61 = vld [vmem:[%s18697_s24] sm:$0x3] }
0x1215   : > { %11413 = vmatprep.subr.bf16.mxu0 %v14257_v39  ;;  %v11445_v39 = vrot.slane %v11440_v61, %v16750_v40 }
0x1217   : > { %13082 = vmatpush3.bf16.msra.mxu1 %v14282_v44 }
0x1218   : > { %11414 = vmatpush2.bf16.msra.mxu0 %v14255_v4  ;;  %13083 = vmatprep.subr.bf16.mxu1 %v14283_v42 }
0x1219   : > { %11415 = vmatprep.subr.bf16.mxu0 %v14260_v33 }
0x121b   : > { %13084 = vmatpush3.bf16.msra.mxu1 %v14284_v62 }
0x121c   : > { %11416 = vmatpush2.bf16.msra.mxu0 %v14258_v59  ;;  %13085 = vmatprep.subr.bf16.mxu1 %v14285_v17  ;;  %v11449_v59 = vrot.slane %v11440_v61, %v16756_v43 }
0x121d   : > { %11417 = vmatprep.subr.bf16.mxu0 %v14263_v22 }
0x121f   : > { %13086 = vmatpush3.bf16.msra.mxu1 %v14286_v19 }
0x1220   : > { %11418 = vmatpush2.bf16.msra.mxu0 %v14261_v46  ;;  %13087 = vmatprep.subr.bf16.mxu1 %v14287_v28 }
0x1221   : > { %11419 = vmatprep.subr.bf16.mxu0 %v14266_v12 }
0x1223   : > { %13088 = vmatpush3.bf16.msra.mxu1 %v14288_v3 }
0x1224   : > { %11420 = vmatpush2.bf16.msra.mxu0 %v14264_v24  ;;  %13089 = vmatprep.subr.bf16.mxu1 %v14289_v6 }
0x1225   : > { %11421 = vmatprep.subr.bf16.mxu0 %v14269_v63 }
0x1227   : > { %13090 = vmatpush3.bf16.msra.mxu1 %v14290_v25 }
0x1228   : > { %11422 = vmatpush2.bf16.msra.mxu0 %v14267_v49  ;;  %13091 = vmatprep.subr.bf16.mxu1 %v14291_v8 }
0x1229   : > { %11423 = vmatprep.subr.bf16.mxu0 %v14272_v14 }
0x122b   : > { %13092 = vmatpush3.bf16.msra.mxu1 %v14292_v2 }
0x122c   : > { %11424 = vmatpush2.bf16.msra.mxu0 %v14270_v58  ;;  %13093 = vmatprep.subr.bf16.mxu1 %v14293_v34 }
0x122d   : > { %11425 = vmatprep.subr.bf16.mxu0 %v14275_v38 }
0x122f   : > { %13094 = vmatpush3.bf16.msra.mxu1 %v14294_v1 }
0x1230   : > { %11426 = vmatpush2.bf16.msra.mxu0 %v14273_v30 }
0x1231   : > { %11427 = vmatprep.subr.bf16.mxu0 %v14278_v21 }
0x1234   : > { %11428 = vmatpush2.bf16.msra.mxu0 %v14276_v36 }
0x1237   : > { %11430 = vmatmul.mubr.bf16.vlgmr.msra.gmra.mxu0 %v11227_v26 }
0x1272   : > { %v10635_v0 = vpop.f32.mrf.mxu1 }
0x1274   : > { %v10637_v41 = vpop.f32.mrf.mxu1 }
0x1276   : > { %v10639_v16 = vpop.f32.mrf.mxu1 }
0x1277   : > { %v10409_v48 = vpop.f32.mrf.mxu0 }
0x1278   : > { %v10640_v11 = vpop.f32.mrf.mxu1  ;;  %v10636_v13 = vadd.f32 %v10635_v0, %v10409_v48 }
0x1279   : > { %v10411_v54 = vpop.f32.mrf.mxu0 }
0x127a   : > { %v10638_v50 = vadd.f32 %v10637_v41, %v10411_v54 }
0x127b   : > { %v10413_v57 = vpop.f32.mrf.mxu0 }
0x127d   : > { %v10414_v10 = vpop.f32.mrf.mxu0 }
0x12b2   : > { %v11171_v27 = vpop.f32.mrf.mxu1 }
0x12b4   : > { %v11173_v56 = vpop.f32.mrf.mxu1 }
0x12b6   : > { %v11175_v37 = vpop.f32.mrf.mxu1 }
0x12b7   : > { %v10893_v9 = vpop.f32.mrf.mxu0 }
0x12b8   : > { %v11176_v45 = vpop.f32.mrf.mxu1  ;;  %v10900_v7 = vadd.f32 %v10893_v9, %v10636_v13 }
0x12b9   : > { %v10895_v51 = vpop.f32.mrf.mxu0 }
0x12ba   : > { %v10901_v55 = vadd.f32 %v10895_v51, %v10638_v50  ;;  %v11178_v15 = vadd.f32 %v11171_v27, %v10900_v7 }
0x12bb   : > { %v10897_v23 = vpop.f32.mrf.mxu0 }
0x12bc   : > { %v11179_v18 = vadd.f32 %v11173_v56, %v10901_v55 }
0x12bd   : > { %v10898_v31 = vpop.f32.mrf.mxu0 }
0x12d2   : > { %v13073_v5 = vpop.f32.mrf.mxu1 }
0x12d4   : > { %v13074_v32 = vpop.f32.mrf.mxu1 }
0x12d5   : > { %v18609_v60 = vadd.f32 %v13074_v32, %v13073_v5 }
0x12d6   : > { %v13076_v20 = vpop.f32.mrf.mxu1 }
0x12d8   : > { %v13077_v29 = vpop.f32.mrf.mxu1 }
0x12f7   : > { %v11431_v4 = vpop.f32.mrf.mxu0 }
0x12f8   : > { %v11438_v33 = vadd.f32 %v11431_v4, %v11178_v15 }
0x12f9   : > { %v11433_v22 = vpop.f32.mrf.mxu0 }
0x12fa   : > { %v11452_v46 = vadd.f32 %v11445_v39, %v11438_v33  ;;  %v11439_v12 = vadd.f32 %v11433_v22, %v11179_v18 }
0x12fb   : > { %v11435_v24 = vpop.f32.mrf.mxu0 }
0x12fc   : > { %v11453_v63 = vadd.f32 %v11449_v59, %v11439_v12  ;;  %v11454_v14 = vmax.f32 %v11452_v46, 0.0 }
0x12fd   : > { %v11436_v49 = vpop.f32.mrf.mxu0 }
0x12fe   : > { %v11455_v58 = vmax.f32 %v11453_v63, 0.0 }
0x1300   : > { %v11458_v38 = vcombine.low %v11454_v14, %v11455_v58 }
0x1302   : > { %v11465_v30 = vrot.slane %v11458_v38, %v14838_v35 }
0x1304   : > { %v11466_v21 = vcombine.high %v11465_v30, %v11465_v30  ;;  %v11473_v36 = vrot.slane %v11465_v30, %v14838_v35 }
0x1306   : > { %v11474_v26 = vcombine.high %v11473_v36, %v11473_v36  ;;  %v11481_v40 = vrot.slane %v11466_v21, %v14838_v35  ;;  %v11501_v0 = vsel %vm18822_vm7, %v11473_v36, 0.0  ;;  %v11565_v43 = vsel %vm18823_vm12, %v11473_v36, -inf }
0x1307   : > { %v11502_v41 = vrot.slane %v11501_v0, 4  ;;  %v11566_v16 = vrot.slane %v11565_v43, 4 }
0x1308   : > { %v11482_v48 = vcombine.high %v11481_v40, %v11481_v40  ;;  %v11508_v11 = vsel %vm18824_vm11, %v11474_v26, 0.0  ;;  %v11529_v13 = vsel %vm18825_vm8, %v11481_v40, 0.0  ;;  %v11572_v54 = vsel %vm18826_vm6, %v11474_v26, -inf }
0x1309   : > { %v11503_v50 = vadd.f32 %v11502_v41, %v11501_v0  ;;  %v11509_v57 = vrot.slane %v11508_v11, 4  ;;  %v11530_v10 = vrot.slane %v11529_v13, 4  ;;  %v11567_v52 = vmax.f32 %v11565_v43, %v11566_v16 }
0x130a   : > { %v11573_v53 = vrot.slane %v11572_v54, 4  ;;  %v11593_v35 = vsel %vm18827_vm13, %v11481_v40, -inf  ;;  %v11536_v47 = vsel %vm18828_vm14, %v11482_v48, 0.0  ;;  %v11600_v44 = vsel %vm18829_vm10, %v11482_v48, -inf }
0x130b   : > { %v11504_v42 = vrot.slane %v11503_v50, 2  ;;  %v11531_v62 = vadd.f32 %v11530_v10, %v11529_v13  ;;  %v11568_v17 = vrot.slane %v11567_v52, 2  ;;  %v11594_v19 = vrot.slane %v11593_v35, 4 }
0x130c   : > { %v11510_v28 = vadd.f32 %v11509_v57, %v11508_v11  ;;  %v11537_v3 = vrot.slane %v11536_v47, 4  ;;  %v11574_v6 = vmax.f32 %v11572_v54, %v11573_v53  ;;  %v11601_v25 = vrot.slane %v11600_v44, 4 }
0x130d   : > { %v11505_v8 = vadd.f32 %v11504_v42, %v11503_v50  ;;  %v11532_v2 = vrot.slane %v11531_v62, 2  ;;  %v11569_v34 = vmax.f32 %v11567_v52, %v11568_v17  ;;  %v11595_v1 = vmax.f32 %v11593_v35, %v11594_v19 }
0x130e   : > { %v11511_v27 = vrot.slane %v11510_v28, 2  ;;  %v11538_v56 = vadd.f32 %v11537_v3, %v11536_v47  ;;  %v11575_v37 = vrot.slane %v11574_v6, 2  ;;  %v11602_v9 = vmax.f32 %v11600_v44, %v11601_v25  ;;  %v12919_v47 = vld [vmem:[%s18699_s26] ss:$0 sm:$0xff] }
0x130f   : > { %v11596_v45 = vrot.slane %v11595_v1, 2  ;;  %v11506_v7 = vrot.slane %v11505_v8, 1  ;;  %v11533_v51 = vadd.f32 %v11532_v2, %v11531_v62  ;;  %v11570_v55 = vrot.slane %v11569_v34, 1 }
0x1310   : > { %v11512_v15 = vadd.f32 %v11511_v27, %v11510_v28  ;;  %v11539_v23 = vrot.slane %v11538_v56, 2  ;;  %v11576_v18 = vmax.f32 %v11574_v6, %v11575_v37  ;;  %v11603_v31 = vrot.slane %v11602_v9, 2 }
0x1311   : > { %v11507_v5 = vadd.f32 %v11506_v7, %v11505_v8  ;;  %v11534_v32 = vrot.slane %v11533_v51, 1  ;;  %v11597_v20 = vmax.f32 %v11595_v1, %v11596_v45  ;;  %v11571_v22 = vmax.f32 %v11569_v34, %v11570_v55 }
0x1312   : > { %v11513_v29 = vrot.slane %v11512_v15, 1  ;;  %v11540_v61 = vadd.f32 %v11539_v23, %v11538_v56  ;;  %v11577_v39 = vrot.slane %v11576_v18, 1  ;;  %v11604_v4 = vmax.f32 %v11602_v9, %v11603_v31 }
0x1313   : > { %v11535_v33 = vadd.f32 %v11534_v32, %v11533_v51  ;;  %v11545_v59 = vmul.f32 0.5, %v11507_v5  ;;  %v11598_v46 = vrot.slane %v11597_v20, 1  ;;  %v11949_v62 = vadd.f32 %v18609_v60, %v12919_v47 }
0x1314   : > { %v11514_v12 = vadd.f32 %v11513_v29, %v11512_v15  ;;  %v11541_v24 = vrot.slane %v11540_v61, 1  ;;  %v11605_v63 = vrot.slane %v11604_v4, 1  ;;  %v11578_v21 = vmax.f32 %v11576_v18, %v11577_v39 }
0x1315   : > { %v11549_v49 = vmul.f32 0.5, %v11535_v33  ;;  %v11599_v14 = vmax.f32 %v11597_v20, %v11598_v46  ;;  %v11609_v58 = vadd.f32 %v11571_v22, %v11545_v59 }
0x1316   : > { %v11542_v38 = vadd.f32 %v11541_v24, %v11540_v61  ;;  %v11546_v30 = vmul.f32 0.5, %v11514_v12  ;;  %v11606_v40 = vmax.f32 %v11604_v4, %v11605_v63 }
0x1317   : > { %v11613_v36 = vadd.f32 %v11599_v14, %v11549_v49  ;;  %v11617_v43 = vpack.c.bf16 %v11609_v58, %v11609_v58 }
0x1318   : > { %v11550_v26 = vmul.f32 0.5, %v11542_v38  ;;  %v11610_v0 = vadd.f32 %v11578_v21, %v11546_v30 }
0x1319   : > { %v11621_v41 = vpack.c.bf16 %v11613_v36, %v11613_v36  ;;  %v11704_v54 = vunpack.c.l.b16 %v11617_v43 }
0x131a   : > { %v11614_v16 = vadd.f32 %v11606_v40, %v11550_v26  ;;  %v11618_v48 = vpack.c.bf16 %v11610_v0, %v11610_v0 }
0x131b   : > { %v11708_v11 = vunpack.c.l.b16 %v11621_v41 }
0x131c   : > { %v11622_v13 = vpack.c.bf16 %v11614_v16, %v11614_v16  ;;  %v11705_v50 = vunpack.c.l.b16 %v11618_v48 }
0x131d   : > { %v11712_v10 = vsel %vm3006_vm15, %v11708_v11, %v11704_v54 }
0x131e   : > { %v11709_v57 = vunpack.c.l.b16 %v11622_v13  ;;  %v11716_v35 = vpack.c.b16 %v11712_v10, %v11712_v10 }
0x1320   : > { %v11713_v52 = vsel %vm3006_vm15, %v11709_v57, %v11705_v50 }
0x1321   : > { %v11717_v53 = vpack.c.b16 %v11713_v52, %v11713_v52 }
0x1323   : > { %11986 = vmatprep.mubr.bf16.mxu1 %v11717_v53 }
0x1324   : > { %11987 = vmatmul.mubr.bf16.vlgmr.msra.gmra.mxu1 %v11716_v35 }
0x13e4   : > { %v13095_v44 = vpop.f32.mrf.mxu1 }
0x13e6   : > { %v13096_v42 = vpop.f32.mrf.mxu1 }
0x13e7   : > { %v13097_v17 = vadd.f32 %v13096_v42, %v13095_v44 }
0x13e8   : > { %v13098_v19 = vpop.f32.mrf.mxu1 }
0x13e9   : > { %v11989_v28 = vadd.f32 %v13097_v17, %v11949_v62 }
0x13ea   : > { %v13099_v3 = vpop.f32.mrf.mxu1 }
0x13eb   : > { %11994 = vst [vmem:[%s812_s7] sm:$0x3] %v11989_v28 }
0x13ec   : > { %14308 = shalt.err (!%p14305_p3)
}
0x13ed   : > { %s14309_s6 = scalar_lea.hbm %s18638_s8, 32  ;;  %s14313_s2 = scalar_lea.hbm %s18831_s0, 128 }
0x13ee   : > { %p14310_p4 = scmp.ne.s32.totalorder %s18638_s8, %s14309_s6  ;;  %p14314_p9 = scmp.lt.s32.totalorder %s18638_s8, %s18831_s0 }
0x13ef   : > { %p14315_p10 = scmp.lt.s32.totalorder %s14313_s2, %s14309_s6 }
0x13f0   : > { %p14311_p7 = pnand %p14310_p4, %p14548_p5 }
0x13f1   : > { %p14316_p11 = por %p14315_p10, %p14314_p9 }
0x13f2   : > { %p14312_p8 = pneg %p14311_p7 }
0x13f4   : > { %p14317_p12 = pnand %p14316_p11, %p14312_p8 }
0x13f6   : > { %14320 = shalt.err (!%p14317_p12)
}
0x13f7   : > { %13130 = dma.vmem_to_hbm [thread:$0]  (%p14548_p5), %s12010_s5, 32, %s18638_s8, %s11996_s29  }
0x13f8 PF: > { %s18832_s3 = sld [smem:[#allocation7_spill]] }
0x13f9   : > { %s18833_s1 = sld [smem:[#allocation5_spill]] }
0x13fe   : > { %p13136_p13 = scmp.ge.s32.totalorder %s18832_s3, 2 }
0x13ff   : > { %s12021_s10 = sand.u32 1, %s18833_s1  }
0x1400   : > { %p13133_p0 = pnand %p13136_p13, %p14552_p6  ;;  %s12022_s11 = scalar_lea.sflag [#allocation3], %s12021_s10 }
0x1402   : > { %p13134_p1 = pneg %p13133_p0 }
0x1404   : > { %14338 = dma.done.wait (%p13134_p1), %s12022_s11, 32  }
0x1405   : > { %14340 = vsyncadd (%p13134_p1), %s12022_s11, 4294967264  ;;  %s18835_s30 = sld [smem:[#allocation8_spill]]  ;;  %s18838_s7 = smov %s14347_s4 }
0x1406   : > { %s18836_s6 = sld [smem:[#allocation6_spill]] }
0x1407   : > { %s18837_s8 = sld [smem:[#allocation9_spill]] }
0x140b   : > { %p37_p2 = scmp.ge.s32.totalorder %s18835_s30, 6  }
0x140c   : > { %s18839_s4 = smov %s18836_s6 }
0x140d   :  { %39 = sbr.rel (!%p37_p2) target bundleno = 17 (0x11), region = 163 }
0x1412   :  { %12027 = vsyncpa [#allocation3], 1 }
0x1413   :  { %12029 = vsyncpa [#allocation3 + $0x1], 1 }

</bundles_post_ra>
